<compile_context>
chip_gen: v5e
topology: v5e:2x2
jax: 0.10.0
libtpu: 0.0.40
codegen_flags: <defaults>
</compile_context>

<pallas_src>
import functools

import jax
import jax.numpy as jnp
from jax.experimental import pallas as pl
from jax.experimental.pallas import tpu as pltpu


def _round_up(x, m):
    return ((x + m - 1) // m) * m


def _cdiv(a, b):
    return (a + b - 1) // b


def gate_kernel(s_ref, v_ref, wv_ref, w1_ref, b1_ref, w2_ref, b2_ref,
                s_out_ref, v_out_ref, *, f_in, f_out):
    tn = s_ref.shape[0]          # nodes in this tile
    w_dt = w1_ref.dtype

    # ---- v_lin: MXU matmul at M = 3*tile on the flat (3T, F_in) block ----
    v2d = v_ref[...]                                             # (3T, F_in), native dtype
    if f_out % 128 == 0:
        vlin = jnp.dot(v2d, wv_ref[...], preferred_element_type=jnp.float32)
        vec_s, vec_v = vlin[:, :f_out], vlin[:, f_out:]          # free lane slices
    else:
        # Split by output half: static lane slices on the small weight instead of
        # a lane-offset slice of the big (3T, 2F_out) result.
        vec_s = jnp.dot(v2d, wv_ref[:, :f_out], preferred_element_type=jnp.float32)
        vec_v = jnp.dot(v2d, wv_ref[:, f_out:], preferred_element_type=jnp.float32)

    # ---- L2 norm over the 3 spatial components (group-of-3 sublane reduce) ----
    sq = vec_s * vec_s                                           # (3T, F_out) f32
    vec_norm = jnp.sqrt(jnp.sum(sq.reshape(tn, 3, f_out), axis=1))   # (T, F_out) f32

    # ---- s_mlp: Linear -> SiLU -> Linear ----
    s = s_ref[...]
    if f_in % 128 == 0 and f_out % 128 == 0:
        # Lane-aligned concat -> one MXU matmul with K = F_in + F_out.
        x = jnp.concatenate([s.astype(w_dt), vec_norm.astype(w_dt)], axis=-1)
        h = jnp.dot(x, w1_ref[...], preferred_element_type=jnp.float32)
    else:
        # No lane-axis concat: x @ W1 == scalar @ W1[:f_in] + vec_norm @ W1[f_in:].
        h = (jnp.dot(s.astype(w_dt), w1_ref[:f_in, :],
                     preferred_element_type=jnp.float32)
             + jnp.dot(vec_norm.astype(w_dt), w1_ref[f_in:, :],
                       preferred_element_type=jnp.float32))
    h = h + b1_ref[...]
    h = h * jax.nn.sigmoid(h)                                    # SiLU (sigmoid -> EUP)
    h = h.astype(w2_ref.dtype)

    if f_out % 128 == 0:
        out = jnp.dot(h, w2_ref[...], preferred_element_type=jnp.float32) + b2_ref[...]
        s_s, s_v = out[:, :f_out], out[:, f_out:]
    else:
        s_s = (jnp.dot(h, w2_ref[:, :f_out], preferred_element_type=jnp.float32)
               + b2_ref[:, :f_out])
        s_v = (jnp.dot(h, w2_ref[:, f_out:], preferred_element_type=jnp.float32)
               + b2_ref[:, f_out:])

    # ---- outputs ----
    s_out_ref[...] = (s_s * jax.nn.sigmoid(s_s)).astype(s_out_ref.dtype)
    # Broadcast the gate to the 3 component rows of each node; multiply in the
    # dense flat 2D layout and store directly.
    s_v_rep = jnp.broadcast_to(s_v[:, None, :], (tn, 3, f_out)).reshape(3 * tn, f_out)
    v_out_ref[...] = (s_v_rep * vec_v).astype(v_out_ref.dtype)


def _gate_vmem_bytes(tile, f_in, f_out, hidden, in_bytes, w_bytes, out_bytes):
    """Double-buffered VMEM footprint estimate for the flat 2D layout."""
    io = 2 * tile * (4 * f_in * in_bytes + 4 * f_out * out_bytes)   # in/out N-blocks
    wts = 2 * w_bytes * (f_in * 2 * f_out + (f_in + f_out) * hidden + hidden
                         + hidden * 2 * f_out + 2 * f_out)          # constant-index weights
    tmp = 4 * tile * (16 * f_out + 2 * hidden)                      # f32 intermediates
    return io + wts + tmp


def _device_kind():
    try:
        return jax.devices()[0].device_kind.lower()
    except Exception:
        return ""


@functools.partial(jax.jit, static_argnames=("out_channels", "tile_n"))
def gate_forward(scalar, vector, wv, w1, b1, w2, b2, *, out_channels, tile_n=512):
    """scalar: (N, F_in), vector: (N, 3, F_in)  [PyTorch convention, unchanged]."""
    n, f_in = scalar.shape
    f_out = out_channels
    hidden = w1.shape[1]
    assert vector.shape == (n, 3, f_in)
    assert wv.shape == (f_in, 2 * f_out)
    assert w1.shape == (f_in + f_out, hidden)
    assert w2.shape == (hidden, 2 * f_out)

    kind = _device_kind()
    if ("v5" in kind) or ("v6" in kind):
        # 128 MiB physical VMEM: allow big tiles, raise the scoped limit explicitly.
        vmem_budget = 48 << 20
        vmem_limit = 80 << 20
    else:
        # v7x (64 MiB physical / 32 MiB scoped) and unknown chips: stay conservative.
        vmem_budget = 20 << 20
        vmem_limit = 28 << 20

    out_dtype = jnp.result_type(scalar.dtype, vector.dtype)
    in_bytes = max(scalar.dtype.itemsize, vector.dtype.itemsize)
    w_bytes = w1.dtype.itemsize
    out_bytes = jnp.dtype(out_dtype).itemsize

    # Tile over nodes: multiple of 128 (full MXU fill, unmasked stores), as large
    # as the budget allows; on dual-TensorCore chips keep >= 2 parallel grid steps.
    tile = max(128, min(_round_up(tile_n, 128), _round_up(n, 128)))
    if ("v7" in kind or "7x" in kind) and n > 128:
        tile = min(tile, _round_up(_cdiv(n, 2), 128))
    while tile > 128 and _gate_vmem_bytes(tile, f_in, f_out, hidden,
                                          in_bytes, w_bytes, out_bytes) > vmem_budget:
        tile = max(128, _round_up(tile // 2, 128))

    # Ragged N: zero-pad (zeros are benign in the forward pass), slice on output.
    n_pad = _round_up(n, tile)
    if n_pad != n:
        scalar = jnp.pad(scalar, ((0, n_pad - n), (0, 0)))
        vector = jnp.pad(vector, ((0, n_pad - n), (0, 0), (0, 0)))
    # Free row-major view: node-major / component-minor.  One contiguous 2D DMA per
    # tile, no 3->8 sublane padding in VMEM, no in-kernel repack of F_in-wide data.
    vector_flat = vector.reshape(3 * n_pad, f_in)

    grid = (n_pad // tile,)

    in_specs = [
        pl.BlockSpec((tile, f_in), lambda i: (i, 0)),             # scalar
        pl.BlockSpec((3 * tile, f_in), lambda i: (i, 0)),         # vector (flat 2D)
        pl.BlockSpec((f_in, 2 * f_out), lambda i: (0, 0)),        # Wv  (constant index)
        pl.BlockSpec((f_in + f_out, hidden), lambda i: (0, 0)),   # W1
        pl.BlockSpec((1, hidden), lambda i: (0, 0)),              # b1
        pl.BlockSpec((hidden, 2 * f_out), lambda i: (0, 0)),      # W2
        pl.BlockSpec((1, 2 * f_out), lambda i: (0, 0)),           # b2
    ]
    out_shape = (jax.ShapeDtypeStruct((n_pad, f_out), out_dtype),
                 jax.ShapeDtypeStruct((3 * n_pad, f_out), out_dtype))
    out_specs = (pl.BlockSpec((tile, f_out), lambda i: (i, 0)),
                 pl.BlockSpec((3 * tile, f_out), lambda i: (i, 0)))

    flops = 2 * n_pad * (3 * f_in * 2 * f_out + (f_in + f_out) * hidden
                         + hidden * 2 * f_out) + 12 * n_pad * f_out
    transcendentals = n_pad * (hidden + 2 * f_out)
    bytes_accessed = (n_pad * f_in * scalar.dtype.itemsize
                      + 3 * n_pad * f_in * vector.dtype.itemsize
                      + w_bytes * (f_in * 2 * f_out + (f_in + f_out) * hidden + hidden
                                   + hidden * 2 * f_out + 2 * f_out)
                      + 4 * n_pad * f_out * out_bytes)

    kern = functools.partial(gate_kernel, f_in=f_in, f_out=f_out)

    s_out, v_out = pl.pallas_call(
        kern,
        out_shape=out_shape,
        grid_spec=pltpu.PrefetchScalarGridSpec(
            num_scalar_prefetch=0,
            grid=grid,
            in_specs=in_specs,
            out_specs=out_specs,
        ),
        compiler_params=pltpu.CompilerParams(
            dimension_semantics=("parallel",),
            vmem_limit_bytes=vmem_limit),
        cost_estimate=pl.CostEstimate(flops=flops,
                                      transcendentals=transcendentals,
                                      bytes_accessed=bytes_accessed),
    )(scalar, vector_flat, wv, w1, b1, w2, b2)

    return s_out[:n], v_out[:3 * n].reshape(n, 3, f_out)


def gate_reference(scalar, vector, wv, w1, b1, w2, b2, out_channels):
    """Pure-JAX reference mirroring the PyTorch forward (f32)."""
    f_out = out_channels
    vlin = jnp.einsum("ncf,fo->nco", vector, wv)      # (N, 3, 2*F_out)
    vec_s, vec_v = vlin[..., :f_out], vlin[..., f_out:]
    vec_norm = jnp.linalg.norm(vec_s, axis=-2)        # (N, F_out)
    x = jnp.concatenate([scalar, vec_norm], axis=-1)
    h = jax.nn.silu(x @ w1 + b1[0])
    out = h @ w2 + b2[0]
    s_s, s_v = out[:, :f_out], out[:, f_out:]
    return jax.nn.silu(s_s), s_v[:, None, :] * vec_v


if __name__ == "__main__":
    def _check(n, f_in, f_out, hidden, dtype=jnp.float32, atol=1e-3, rtol=1e-3):
        key = jax.random.PRNGKey(0)
        ks = jax.random.split(key, 7)
        scalar = jax.random.normal(ks[0], (n, f_in), dtype=jnp.float32)
        vector = jax.random.normal(ks[1], (n, 3, f_in), dtype=jnp.float32)
        wv = jax.random.normal(ks[2], (f_in, 2 * f_out), dtype=jnp.float32) * 0.1
        w1 = jax.random.normal(ks[3], (f_in + f_out, hidden), dtype=jnp.float32) * 0.1
        b1 = jax.random.normal(ks[4], (1, hidden), dtype=jnp.float32) * 0.01
        w2 = jax.random.normal(ks[5], (hidden, 2 * f_out), dtype=jnp.float32) * 0.1
        b2 = jax.random.normal(ks[6], (1, 2 * f_out), dtype=jnp.float32) * 0.01

        args = [a.astype(dtype) for a in (scalar, vector, wv, w1, b1, w2, b2)]
        s_out, v_out = gate_forward(*args, out_channels=f_out)
        jax.block_until_ready((s_out, v_out))

        s_ref, v_ref = gate_reference(scalar, vector, wv, w1, b1, w2, b2, f_out)
        assert s_out.shape == (n, f_out) and v_out.shape == (n, 3, f_out)
        assert jnp.allclose(s_out.astype(jnp.float32), s_ref, atol=atol, rtol=rtol), \
            "scalar mismatch"
        assert jnp.allclose(v_out.astype(jnp.float32), v_ref, atol=atol, rtol=rtol), \
            "vector mismatch"

    # Ragged N + non-128-aligned F_out (split-matmul path).
    _check(n=50, f_in=32, f_out=32, hidden=32)
    # Multiple grid steps with a padded tail.
    _check(n=300, f_in=64, f_out=64, hidden=96)
    # 128-aligned dims: fused W1 matmul + single Wv/W2 matmuls.
    _check(n=256, f_in=128, f_out=128, hidden=128)
    # Native bf16 activations/weights through the MXU (loose tolerance vs f32 reference).
    _check(n=200, f_in=64, f_out=64, hidden=64, dtype=jnp.bfloat16, atol=0.15, rtol=0.15)

    print("KERNEL_OK")
</pallas_src>

<mosaic_0001>
module attributes {stable_mosaic.version = 11 : i64} {
  func.func @gate_kernel(%arg0: i32, %arg1: memref<128x32xf32, #tpu.memory_space<vmem>>, %arg2: memref<384x32xf32, #tpu.memory_space<vmem>>, %arg3: memref<32x64xf32, #tpu.memory_space<vmem>>, %arg4: memref<64x32xf32, #tpu.memory_space<vmem>>, %arg5: memref<1x32xf32, #tpu.memory_space<vmem>>, %arg6: memref<32x64xf32, #tpu.memory_space<vmem>>, %arg7: memref<1x64xf32, #tpu.memory_space<vmem>>, %arg8: memref<128x32xf32, #tpu.memory_space<vmem>>, %arg9: memref<384x32xf32, #tpu.memory_space<vmem>>) attributes {dimension_semantics = [#tpu.dimension_semantics<parallel>], iteration_bounds = array<i64: 1>, scalar_prefetch = 0 : i64, scratch_operands = 0 : i64, tpu.core_type = #tpu.core_type<tc>, window_params = [{transform_indices = @transform_0, window_bounds = array<i64: 128, 32>}, {transform_indices = @transform_1, window_bounds = array<i64: 384, 32>}, {pipeline_mode = #tpu.pipeline_mode<synchronous>, transform_indices = @transform_2, window_bounds = array<i64: 32, 64>}, {pipeline_mode = #tpu.pipeline_mode<synchronous>, transform_indices = @transform_3, window_bounds = array<i64: 64, 32>}, {pipeline_mode = #tpu.pipeline_mode<synchronous>, transform_indices = @transform_4, window_bounds = array<i64: 1, 32>}, {pipeline_mode = #tpu.pipeline_mode<synchronous>, transform_indices = @transform_5, window_bounds = array<i64: 32, 64>}, {pipeline_mode = #tpu.pipeline_mode<synchronous>, transform_indices = @transform_6, window_bounds = array<i64: 1, 64>}, {transform_indices = @transform_7, window_bounds = array<i64: 128, 32>}, {transform_indices = @transform_8, window_bounds = array<i64: 384, 32>}]} {
    %c0 = arith.constant 0 : index
    %c0_0 = arith.constant 0 : index
    %0 = vector.load %arg2[%c0, %c0_0] : memref<384x32xf32, #tpu.memory_space<vmem>>, vector<384x32xf32>
    %c0_1 = arith.constant 0 : index
    %c0_2 = arith.constant 0 : index
    %1 = vector.load %arg3[%c0_1, %c0_2] : memref<32x64xf32, #tpu.memory_space<vmem>>, vector<32x32xf32>
    %cst = arith.constant dense<0.000000e+00> : vector<384x32xf32>
    %2 = tpu.matmul %0, %1, %cst {dimension_numbers = #tpu.dot_dimension_numbers<[1], [0], [0], [1], [0, 0, 1, 1], [], []>} : vector<384x32xf32>, vector<32x32xf32>, vector<384x32xf32> -> vector<384x32xf32>
    %c0_3 = arith.constant 0 : index
    %c32 = arith.constant 32 : index
    %3 = vector.load %arg3[%c0_3, %c32] : memref<32x64xf32, #tpu.memory_space<vmem>>, vector<32x32xf32>
    %cst_4 = arith.constant dense<0.000000e+00> : vector<384x32xf32>
    %4 = tpu.matmul %0, %3, %cst_4 {dimension_numbers = #tpu.dot_dimension_numbers<[1], [0], [0], [1], [0, 0, 1, 1], [], []>} : vector<384x32xf32>, vector<32x32xf32>, vector<384x32xf32> -> vector<384x32xf32>
    %5 = arith.mulf %2, %2 : vector<384x32xf32>
    %6 = vector.shape_cast %5 : vector<384x32xf32> to vector<128x3x32xf32>
    %cst_5 = arith.constant dense<0.000000e+00> : vector<128x32xf32>
    %7 = vector.multi_reduction <add>, %6, %cst_5 [1] : vector<128x3x32xf32> to vector<128x32xf32>
    %8 = math.sqrt %7 : vector<128x32xf32>
    %c0_6 = arith.constant 0 : index
    %c0_7 = arith.constant 0 : index
    %9 = vector.load %arg1[%c0_6, %c0_7] : memref<128x32xf32, #tpu.memory_space<vmem>>, vector<128x32xf32>
    %c0_8 = arith.constant 0 : index
    %c0_9 = arith.constant 0 : index
    %10 = vector.load %arg4[%c0_8, %c0_9] : memref<64x32xf32, #tpu.memory_space<vmem>>, vector<32x32xf32>
    %cst_10 = arith.constant dense<0.000000e+00> : vector<128x32xf32>
    %11 = tpu.matmul %9, %10, %cst_10 {dimension_numbers = #tpu.dot_dimension_numbers<[1], [0], [0], [1], [0, 0, 1, 1], [], []>} : vector<128x32xf32>, vector<32x32xf32>, vector<128x32xf32> -> vector<128x32xf32>
    %c32_11 = arith.constant 32 : index
    %c0_12 = arith.constant 0 : index
    %12 = vector.load %arg4[%c32_11, %c0_12] : memref<64x32xf32, #tpu.memory_space<vmem>>, vector<32x32xf32>
    %cst_13 = arith.constant dense<0.000000e+00> : vector<128x32xf32>
    %13 = tpu.matmul %8, %12, %cst_13 {dimension_numbers = #tpu.dot_dimension_numbers<[1], [0], [0], [1], [0, 0, 1, 1], [], []>} : vector<128x32xf32>, vector<32x32xf32>, vector<128x32xf32> -> vector<128x32xf32>
    %14 = arith.addf %11, %13 : vector<128x32xf32>
    %c0_14 = arith.constant 0 : index
    %c0_15 = arith.constant 0 : index
    %15 = vector.load %arg5[%c0_14, %c0_15] : memref<1x32xf32, #tpu.memory_space<vmem>>, vector<1x32xf32>
    %16 = vector.broadcast %15 : vector<1x32xf32> to vector<128x32xf32>
    %17 = arith.addf %14, %16 : vector<128x32xf32>
    %18 = arith.negf %17 : vector<128x32xf32>
    %19 = math.exp %18 : vector<128x32xf32>
    %cst_16 = arith.constant 1.000000e+00 : f32
    %20 = vector.broadcast %cst_16 : f32 to vector<128x32xf32>
    %21 = arith.addf %20, %19 : vector<128x32xf32>
    %22 = arith.divf %20, %21 : vector<128x32xf32>
    %23 = arith.mulf %17, %22 : vector<128x32xf32>
    %c0_17 = arith.constant 0 : index
    %c0_18 = arith.constant 0 : index
    %24 = vector.load %arg6[%c0_17, %c0_18] : memref<32x64xf32, #tpu.memory_space<vmem>>, vector<32x32xf32>
    %cst_19 = arith.constant dense<0.000000e+00> : vector<128x32xf32>
    %25 = tpu.matmul %23, %24, %cst_19 {dimension_numbers = #tpu.dot_dimension_numbers<[1], [0], [0], [1], [0, 0, 1, 1], [], []>} : vector<128x32xf32>, vector<32x32xf32>, vector<128x32xf32> -> vector<128x32xf32>
    %c0_20 = arith.constant 0 : index
    %c0_21 = arith.constant 0 : index
    %26 = vector.load %arg7[%c0_20, %c0_21] : memref<1x64xf32, #tpu.memory_space<vmem>>, vector<1x32xf32>
    %27 = vector.broadcast %26 : vector<1x32xf32> to vector<128x32xf32>
    %28 = arith.addf %25, %27 : vector<128x32xf32>
    %c0_22 = arith.constant 0 : index
    %c32_23 = arith.constant 32 : index
    %29 = vector.load %arg6[%c0_22, %c32_23] : memref<32x64xf32, #tpu.memory_space<vmem>>, vector<32x32xf32>
    %cst_24 = arith.constant dense<0.000000e+00> : vector<128x32xf32>
    %30 = tpu.matmul %23, %29, %cst_24 {dimension_numbers = #tpu.dot_dimension_numbers<[1], [0], [0], [1], [0, 0, 1, 1], [], []>} : vector<128x32xf32>, vector<32x32xf32>, vector<128x32xf32> -> vector<128x32xf32>
    %c0_25 = arith.constant 0 : index
    %c32_26 = arith.constant 32 : index
    %31 = vector.load %arg7[%c0_25, %c32_26] : memref<1x64xf32, #tpu.memory_space<vmem>>, vector<1x32xf32>
    %32 = vector.broadcast %31 : vector<1x32xf32> to vector<128x32xf32>
    %33 = arith.addf %30, %32 : vector<128x32xf32>
    %34 = arith.negf %28 : vector<128x32xf32>
    %35 = math.exp %34 : vector<128x32xf32>
    %cst_27 = arith.constant 1.000000e+00 : f32
    %36 = vector.broadcast %cst_27 : f32 to vector<128x32xf32>
    %37 = arith.addf %36, %35 : vector<128x32xf32>
    %38 = arith.divf %36, %37 : vector<128x32xf32>
    %39 = arith.mulf %28, %38 : vector<128x32xf32>
    %c0_28 = arith.constant 0 : index
    %c0_29 = arith.constant 0 : index
    %40 = vector.load %arg8[%c0_28, %c0_29] : memref<128x32xf32, #tpu.memory_space<vmem>>, vector<128x32xf32>
    tpu.vector_store %arg8[%c0_28, %c0_29], %39 {strides = array<i32>} : memref<128x32xf32, #tpu.memory_space<vmem>>, vector<128x32xf32>,
    %41 = vector.shape_cast %33 : vector<128x32xf32> to vector<128x1x32xf32>
    %42 = vector.shape_cast %41 : vector<128x1x32xf32> to vector<128x1x32xf32>
    %43 = vector.broadcast %42 : vector<128x1x32xf32> to vector<128x3x32xf32>
    %44 = vector.shape_cast %43 : vector<128x3x32xf32> to vector<384x32xf32>
    %45 = arith.mulf %44, %4 : vector<384x32xf32>
    %c0_30 = arith.constant 0 : index
    %c0_31 = arith.constant 0 : index
    %46 = vector.load %arg9[%c0_30, %c0_31] : memref<384x32xf32, #tpu.memory_space<vmem>>, vector<384x32xf32>
    tpu.vector_store %arg9[%c0_30, %c0_31], %45 {strides = array<i32>} : memref<384x32xf32, #tpu.memory_space<vmem>>, vector<384x32xf32>,
    return
  }
  func.func @transform_0(%arg0: i32) -> (i32, i32) {
    %c0_i32 = arith.constant 0 : i32
    %c0_i32_0 = arith.constant 0 : i32
    return %arg0, %c0_i32 : i32, i32
  }
  func.func @transform_1(%arg0: i32) -> (i32, i32) {
    %c0_i32 = arith.constant 0 : i32
    %c0_i32_0 = arith.constant 0 : i32
    return %arg0, %c0_i32 : i32, i32
  }
  func.func @transform_2(%arg0: i32) -> (i32, i32) {
    %c0_i32 = arith.constant 0 : i32
    %c0_i32_0 = arith.constant 0 : i32
    %c0_i32_1 = arith.constant 0 : i32
    return %c0_i32, %c0_i32_0 : i32, i32
  }
  func.func @transform_3(%arg0: i32) -> (i32, i32) {
    %c0_i32 = arith.constant 0 : i32
    %c0_i32_0 = arith.constant 0 : i32
    %c0_i32_1 = arith.constant 0 : i32
    return %c0_i32, %c0_i32_0 : i32, i32
  }
  func.func @transform_4(%arg0: i32) -> (i32, i32) {
    %c0_i32 = arith.constant 0 : i32
    %c0_i32_0 = arith.constant 0 : i32
    %c0_i32_1 = arith.constant 0 : i32
    return %c0_i32, %c0_i32_0 : i32, i32
  }
  func.func @transform_5(%arg0: i32) -> (i32, i32) {
    %c0_i32 = arith.constant 0 : i32
    %c0_i32_0 = arith.constant 0 : i32
    %c0_i32_1 = arith.constant 0 : i32
    return %c0_i32, %c0_i32_0 : i32, i32
  }
  func.func @transform_6(%arg0: i32) -> (i32, i32) {
    %c0_i32 = arith.constant 0 : i32
    %c0_i32_0 = arith.constant 0 : i32
    %c0_i32_1 = arith.constant 0 : i32
    return %c0_i32, %c0_i32_0 : i32, i32
  }
  func.func @transform_7(%arg0: i32) -> (i32, i32) {
    %c0_i32 = arith.constant 0 : i32
    %c0_i32_0 = arith.constant 0 : i32
    return %arg0, %c0_i32 : i32, i32
  }
  func.func @transform_8(%arg0: i32) -> (i32, i32) {
    %c0_i32 = arith.constant 0 : i32
    %c0_i32_0 = arith.constant 0 : i32
    return %arg0, %c0_i32 : i32, i32
  }
}

</mosaic_0001>

<bundles_post_ra>
// kernel: gate_forward.1
= control target key start
LH: loop header
LB: loop body
LE: loop exit
PB: predicated region body
PF: predicated region fallthrough
CT: control target
= control target key end

     0   :  { %s8974_s11 = smov 96   ;;  %vm80_vm0 = vcmask 261120   ;;  %vm1637_vm1 = vcmask 256000   ;;  %vm4222_vm8 = vcmask 1041409   ;;  %vm4224_vm10 = vcmask 1042434   ;;  %s13463_s2 = inlined_call_operand.vmem [shape: f32[32,64], index: 2, kind: input, shape index: {}]   ;;  %s13464_s1 = inlined_call_operand.vmem [shape: f32[384,32], index: 1, kind: input, shape index: {}]   ;;  %s13465_s3 = inlined_call_operand.vmem [shape: f32[64,32], index: 3, kind: input, shape index: {}]   ;;  %s13466_s0 = inlined_call_operand.vmem [shape: f32[128,32], index: 0, kind: input, shape index: {}]   ;;  %s13467_s5 = inlined_call_operand.vmem [shape: f32[32,64], index: 5, kind: input, shape index: {}]   ;;  %s13468_s4 = inlined_call_operand.vmem [shape: f32[1,32], index: 4, kind: input, shape index: {}]   ;;  %s13469_s6 = inlined_call_operand.vmem [shape: f32[1,64], index: 6, kind: input, shape index: {}]   ;;  %s13470_s8 = inlined_call_operand.vmem [shape: f32[384,32], index: 8, kind: output, shape index: {1}]   ;;  %s13471_s7 = inlined_call_operand.vmem [shape: f32[128,32], index: 7, kind: output, shape index: {0}]  }
   0x1   :  { %v79_v0 = vld [vmem:[%s13463_s2 + $0x18] sm:$0xff]  ;;  %v78_v1 = vld [vmem:[%s13463_s2 + $0x10] sm:$0xff]  ;;  %v77_v3 = vld [vmem:[%s13463_s2 + $0x8] sm:$0xff]  ;;  %vm4226_vm15 = vcmask 1043459  }
   0x2   :  { %237 = vmatpush.msra.mxu0 %v79_v0  ;;  %v8560_v2 = vpack.i.bf16 %v78_v1, %v79_v0  ;;  %8551 = vmatpush.msra.mxu2 %v79_v0  ;;  %v76_v4 = vld [vmem:[%s13463_s2] sm:$0xff]  ;;  %v29_v7 = vld [vmem:[%s13464_s1 + $0x8] sm:$0xff]  ;;  %v30_v8 = vld [vmem:[%s13464_s1 + $0x10] sm:$0xff] }
   0x3   :  { %v28_v5 = vld [vmem:[%s13464_s1] sm:$0xff]  ;;  %v8565_v6 = vpack.i.bf16 %v76_v4, %v77_v3  ;;  %v9049_v9 = vld [vmem:[%s13464_s1 + $0x18] sm:$0xff]  ;;  %v9063_v11 = vld [vmem:[%s13464_s1 + $0x28] sm:$0xff] }
   0x4   :  { %238 = vmatpush.msra.mxu0 %v78_v1  ;;  %8561 = vrot.lane.b32.xlu0 %v8560_v2, %s8974_s11  ;;  %v9056_v10 = vld [vmem:[%s13464_s1 + $0x20] sm:$0xff]  ;;  %v9070_v12 = vld [vmem:[%s13464_s1 + $0x30] sm:$0xff]  ;;  %v9077_v13 = vld [vmem:[%s13464_s1 + $0x38] sm:$0xff] }
   0x5   :  { %8552 = vmatpush.msra.mxu2 %v78_v1  ;;  %v68_v31 = vld [vmem:[%s13464_s1 + $0x140] sm:$0xff]  ;;  %v69_v35 = vld [vmem:[%s13464_s1 + $0x148] sm:$0xff]  ;;  %v70_v41 = vld [vmem:[%s13464_s1 + $0x150] sm:$0xff] }
   0x6   :  { %239 = vmatpush.msra.mxu0 %v77_v3  ;;  %v9090_v34 = vld [vmem:[%s13464_s1 + $0x40] sm:$0xff]  ;;  %v71_v58 = vld [vmem:[%s13464_s1 + $0x158] sm:$0xff]  ;;  %v9125_v2 = vld [vmem:[%s13464_s1 + $0x48] sm:$0xff] }
   0x7   :  { %8553 = vmatpush.msra.mxu2 %v77_v3 }
   0x8   :  { %240 = vmatpush.msra.mxu0 %v76_v4 }
   0x9   :  { %8359 = vmatmul.msk.f32.vlgmr.msra.gmra.mxu0 %vm80_vm0, %v28_v5  ;;  %8554 = vmatpush.msra.mxu2 %v76_v4 }
   0xa   :  { %8399 = vmatmul.msk.f32.vlgmr.msra.gmra.mxu2 %vm80_vm0, %v68_v31 }
   0xc   :  { %8566 = vrot.lane.b32.xlu0 %v8565_v6, %s8974_s11 }
  0x11   :  { %8360 = vmatmul.msk.f32.gmra.mxu0 %vm80_vm0, %v29_v7 }
  0x12   :  { %8400 = vmatmul.msk.f32.gmra.mxu2 %vm80_vm0, %v69_v35 }
  0x19   :  { %8361 = vmatmul.msk.f32.gmra.mxu0 %vm80_vm0, %v30_v8 }
  0x1a   :  { %8401 = vmatmul.msk.f32.gmra.mxu2 %vm80_vm0, %v70_v41 }
  0x21   :  { %8362 = vmatmul.msk.f32.gmra.mxu0 %vm80_vm0, %v9049_v9 }
  0x22   :  { %8402 = vmatmul.msk.f32.gmra.mxu2 %vm80_vm0, %v71_v58 }
  0x29   :  { %8363 = vmatmul.msk.f32.gmra.mxu0 %vm80_vm0, %v9056_v10 }
  0x31   :  { %8364 = vmatmul.msk.f32.gmra.mxu0 %vm80_vm0, %v9063_v11 }
  0x39   :  { %8365 = vmatmul.msk.f32.gmra.mxu0 %vm80_vm0, %v9070_v12 }
  0x41   :  { %8366 = vmatmul.msk.f32.gmra.mxu0 %vm80_vm0, %v9077_v13 }
  0x49   :  { %8367 = vmatmul.msk.f32.gmra.mxu0 %vm80_vm0, %v9090_v34 }
  0x51   :  { %8368 = vmatmul.msk.f32.gmra.mxu0 %vm80_vm0, %v9125_v2 }
  0x76   :  { %v8562_v18 = vpop.permute.xlu0 %8561 }
  0x77   :  { %v8563_v19 = vunpack.i.l.bf16 %v8562_v18  ;;  %v8564_v20 = vunpack.i.h.bf16 %v8562_v18 }
  0x79   :  { %8555 = vmatpush.msra.mxu3 %v8563_v19  ;;  %414 = vmatpush.msra.mxu1 %v8563_v19 }
  0x7b   :  { %8556 = vmatpush.msra.mxu3 %v8564_v20  ;;  %415 = vmatpush.msra.mxu1 %v8564_v20 }
  0x7e   :  { %v8567_v21 = vpop.permute.xlu0 %8566 }
  0x7f   :  { %v8568_v23 = vunpack.i.l.bf16 %v8567_v21  ;;  %v8569_v27 = vunpack.i.h.bf16 %v8567_v21 }
  0x81   :  { %8557 = vmatpush.msra.mxu3 %v8568_v23  ;;  %416 = vmatpush.msra.mxu1 %v8568_v23 }
  0x83   :  { %8558 = vmatpush.msra.mxu3 %v8569_v27  ;;  %417 = vmatpush.msra.mxu1 %v8569_v27 }
  0x84   :  { %8407 = vmatmul.msk.f32.vlgmr.msra.gmra.mxu1 %vm80_vm0, %v28_v5  ;;  %8447 = vmatmul.msk.f32.vlgmr.msra.gmra.mxu3 %vm80_vm0, %v68_v31 }
  0x86   :  { %v242_v14 = vpop.f32.mrf.mxu0 }
  0x87   :  { %v563_v15 = vmul.f32 %v242_v14, %v242_v14 }
  0x89   :  { %v659_v16 = vrot.slane %v563_v15, 1  ;;  %v660_v17 = vrot.slane %v563_v15, 2  ;;  %995 = vst [vmem:[#allocation1] ss:$9 sm:$0xff] %v563_v15  ;;  %v661_v22 = vrot.slane %v563_v15, 3  ;;  %v662_v24 = vrot.slane %v563_v15, 4 }
  0x8a   :  { %v663_v26 = vrot.slane %v563_v15, 5  ;;  %v664_v29 = vrot.slane %v563_v15, 6  ;;  %v665_v32 = vrot.slane %v563_v15, 7 }
  0x8b   :  { %997 = vst [vmem:[#allocation1 + $0x1] ss:$9 sm:$0xff] %v659_v16 }
  0x8c   :  { %999 = vst [vmem:[#allocation1 + $0x2] ss:$9 sm:$0xff] %v660_v17  ;;  %8408 = vmatmul.msk.f32.gmra.mxu1 %vm80_vm0, %v29_v7  ;;  %8448 = vmatmul.msk.f32.gmra.mxu3 %vm80_vm0, %v69_v35 }
  0x8e   :  { %v245_v28 = vpop.f32.mrf.mxu0 }
  0x8f   :  { %v564_v30 = vmul.f32 %v245_v28, %v245_v28  ;;  %v73_v28 = vld [vmem:[%s13464_s1 + $0x168] sm:$0xff] }
  0x91   :  { %v666_v36 = vrot.slane %v564_v30, 1  ;;  %v667_v37 = vrot.slane %v564_v30, 2  ;;  %v668_v39 = vrot.slane %v564_v30, 3  ;;  %v669_v44 = vrot.slane %v564_v30, 4 }
  0x92   :  { %v670_v46 = vrot.slane %v564_v30, 5  ;;  %v671_v49 = vrot.slane %v564_v30, 6  ;;  %v672_v61 = vrot.slane %v564_v30, 7 }
  0x93   :  { %v1000_v25 = vld [vmem:[#allocation1] sm:$0xff] }
  0x94   :  { %1001 = vst [vmem:[#allocation1] ss:$9 sm:$0xff] %v661_v22  ;;  %8409 = vmatmul.msk.f32.gmra.mxu1 %vm80_vm0, %v30_v8  ;;  %v1638_v40 = vsel %vm1637_vm1, %v1000_v25, 0.0  ;;  %8449 = vmatmul.msk.f32.gmra.mxu3 %vm80_vm0, %v70_v41 }
  0x95   :  { %1002 = vst [vmem:[#allocation1 + $0x1] ss:$9 sm:$0xff] %v662_v24  ;;  %v1639_v42 = vrot.slane %v1638_v40, 4 }
  0x96   :  { %1003 = vst [vmem:[#allocation1 + $0x2] ss:$9 sm:$0xff] %v663_v26  ;;  %v248_v51 = vpop.f32.mrf.mxu0 }
  0x97   :  { %v1640_v48 = vadd.f32 %v1639_v42, %v1638_v40  ;;  %v9111_v54 = vmul.f32 %v248_v51, %v248_v51 }
  0x99   :  { %v1641_v53 = vrot.slane %v1640_v48, 2  ;;  %v673_v62 = vrot.slane %v9111_v54, 1  ;;  %v674_v19 = vrot.slane %v9111_v54, 2  ;;  %v675_v20 = vrot.slane %v9111_v54, 3 }
  0x9a   :  { %v676_v22 = vrot.slane %v9111_v54, 4  ;;  %v679_v42 = vrot.slane %v9111_v54, 7 }
  0x9b   :  { %v1642_v59 = vadd.f32 %v1641_v53, %v1640_v48 }
  0x9c   :  { %8410 = vmatmul.msk.f32.gmra.mxu1 %vm80_vm0, %v9049_v9  ;;  %8450 = vmatmul.msk.f32.gmra.mxu3 %vm80_vm0, %v71_v58 }
  0x9d   :  { %v1004_v33 = vld [vmem:[#allocation1] sm:$0xff]  ;;  %v1643_v4 = vrot.slane %v1642_v59, 1 }
  0x9e   :  { %1005 = vst [vmem:[#allocation1] ss:$9 sm:$0xff] %v664_v29  ;;  %v1645_v43 = vsel %vm1637_vm1, %v1004_v33, 0.0 }
  0x9f   :  { %1006 = vst [vmem:[#allocation1 + $0x1] ss:$9 sm:$0xff] %v665_v32  ;;  %v1646_v50 = vrot.slane %v1645_v43, 4  ;;  %v9136_v14 = vadd.f32 %v1643_v4, %v1642_v59 }
  0xa0   :  { %1007 = vst [vmem:[#allocation1 + $0x2] ss:$9 sm:$0xff] %v564_v30 }
  0xa1   :  { %v1647_v55 = vadd.f32 %v1646_v50, %v1645_v43  ;;  %8582 = vrsqrt.f32 %v9136_v14  ;;  %v251_v43 = vpop.f32.mrf.mxu0  ;;  %v9186_v50 = vld [vmem:[%s13464_s1 + $0x50] sm:$0xff]  ;;  %vm2541_vm2 = vcmp.eq.f32.partialorder %v9136_v14, inf  ;;  %vm2543_vm3 = vcmp.eq.f32.partialorder %v9136_v14, 0.0 }
  0xa2   :  { %8369 = vmatmul.msk.f32.gmra.mxu0 %vm80_vm0, %v9186_v50 }
  0xa3   :  { %v1648_v63 = vrot.slane %v1647_v55, 2 }
  0xa4   :  { %8411 = vmatmul.msk.f32.gmra.mxu1 %vm80_vm0, %v9056_v10  ;;  %v72_v10 = vld [vmem:[%s13464_s1 + $0x160] sm:$0xff] }
  0xa5   :  { %v1649_v7 = vadd.f32 %v1648_v63, %v1647_v55  ;;  %8403 = vmatmul.msk.f32.gmra.mxu2 %vm80_vm0, %v72_v10  ;;  %8451 = vmatmul.msk.f32.gmra.mxu3 %vm80_vm0, %v72_v10 }
  0xa7   :  { %v1008_v38 = vld [vmem:[#allocation1] sm:$0xff]  ;;  %v1650_v16 = vrot.slane %v1649_v7, 1  ;;  %v9157_v32 = vpop.eup %8582 }
  0xa8   :  { %1009 = vst [vmem:[#allocation1] ss:$9 sm:$0xff] %v666_v36  ;;  %v1652_v45 = vsel %vm1637_vm1, %v1008_v38, 0.0  ;;  %v677_v36 = vrot.slane %v9111_v54, 5  ;;  %v2535_v38 = vmul.f32 %v9157_v32, %v9136_v14 }
  0xa9   :  { %1010 = vst [vmem:[#allocation1 + $0x1] ss:$9 sm:$0xff] %v667_v37  ;;  %v1653_v52 = vrot.slane %v1652_v45, 4  ;;  %v9144_v23 = vadd.f32 %v1650_v16, %v1649_v7 }
  0xaa   :  { %1011 = vst [vmem:[#allocation1 + $0x2] ss:$9 sm:$0xff] %v668_v39  ;;  %v678_v39 = vrot.slane %v9111_v54, 6 }
  0xab   :  { %v1654_v57 = vadd.f32 %v1653_v52, %v1652_v45  ;;  %8584 = vrsqrt.f32 %v9144_v23  ;;  %vm2553_vm4 = vcmp.eq.f32.partialorder %v9144_v23, inf  ;;  %vm2555_vm5 = vcmp.eq.f32.partialorder %v9144_v23, 0.0 }
  0xac   :  { %8412 = vmatmul.msk.f32.gmra.mxu1 %vm80_vm0, %v9063_v11 }
  0xad   :  { %v1655_v1 = vrot.slane %v1654_v57, 2  ;;  %8404 = vmatmul.msk.f32.gmra.mxu2 %vm80_vm0, %v73_v28  ;;  %8452 = vmatmul.msk.f32.gmra.mxu3 %vm80_vm0, %v73_v28  ;;  %v4092_v28 = vld [vmem:[%s13465_s3 + $0x30] sm:$0xff] }
  0xaf   :  { %v1656_v8 = vadd.f32 %v1655_v1, %v1654_v57 }
  0xb1   :  { %v1012_v47 = vld [vmem:[#allocation1] sm:$0xff]  ;;  %v1657_v18 = vrot.slane %v1656_v8, 1  ;;  %v9170_v41 = vpop.eup %8584 }
  0xb2   :  { %1013 = vst [vmem:[#allocation1] ss:$9 sm:$0xff] %v669_v44  ;;  %v1659_v56 = vsel %vm1637_vm1, %v1012_v47, 0.0  ;;  %v2547_v51 = vmul.f32 %v9170_v41, %v9144_v23 }
  0xb3   :  { %1014 = vst [vmem:[#allocation1 + $0x1] ss:$9 sm:$0xff] %v670_v46  ;;  %v1660_v60 = vrot.slane %v1659_v56, 4  ;;  %v9147_v26 = vadd.f32 %v1657_v18, %v1656_v8 }
  0xb4   :  { %1015 = vst [vmem:[#allocation1 + $0x2] ss:$9 sm:$0xff] %v671_v49  ;;  %8413 = vmatmul.msk.f32.gmra.mxu1 %vm80_vm0, %v9070_v12  ;;  %v9181_v49 = vmul.f32 %v251_v43, %v251_v43  ;;  %v2548_v59 = vmul.f32 %v9170_v41, %v2547_v51  ;;  %v4086_v51 = vld [vmem:[%s13465_s3] sm:$0xff] }
  0xb5   :  { %v1661_v5 = vadd.f32 %v1660_v60, %v1659_v56  ;;  %8586 = vrsqrt.f32 %v9147_v26  ;;  %vm2565_vm6 = vcmp.eq.f32.partialorder %v9147_v26, inf  ;;  %vm2567_vm7 = vcmp.eq.f32.partialorder %v9147_v26, 0.0 }
  0xb6   :  { %v680_v58 = vrot.slane %v9181_v49, 1  ;;  %v2549_v8 = vmul.f32 0.5, %v2548_v59 }
  0xb7   :  { %v1662_v15 = vrot.slane %v1661_v5, 2 }
  0xb9   :  { %v1663_v11 = vadd.f32 %v1662_v15, %v1661_v5 }
  0xbb   :  { %v1016_v0 = vld [vmem:[#allocation1] sm:$0xff]  ;;  %v1664_v29 = vrot.slane %v1663_v11, 1  ;;  %v9173_v45 = vpop.eup %8586 }
  0xbc   :  { %1017 = vst [vmem:[#allocation1] ss:$9 sm:$0xff] %v672_v61  ;;  %v1666_v3 = vsel %vm1637_vm1, %v1016_v0, 0.0  ;;  %8414 = vmatmul.msk.f32.gmra.mxu1 %vm80_vm0, %v9077_v13  ;;  %v2536_v13 = vmul.f32 %v9157_v32, %v2535_v38  ;;  %v2559_v53 = vmul.f32 %v9173_v45, %v9147_v26  ;;  %v681_v61 = vrot.slane %v9181_v49, 2  ;;  %v4091_v38 = vld [vmem:[%s13465_s3 + $0x28] sm:$0xff] }
  0xbd   :  { %1018 = vst [vmem:[#allocation1 + $0x1] ss:$9 sm:$0xff] %v9111_v54  ;;  %v1667_v6 = vrot.slane %v1666_v3, 4  ;;  %v9160_v12 = vadd.f32 %v1664_v29, %v1663_v11  ;;  %v74_v54 = vld [vmem:[%s13464_s1 + $0x170] sm:$0xff] }
  0xbe   :  { %1019 = vst [vmem:[#allocation1 + $0x2] ss:$9 sm:$0xff] %v673_v62  ;;  %v2537_v56 = vmul.f32 0.5, %v2536_v13  ;;  %8405 = vmatmul.msk.f32.gmra.mxu2 %vm80_vm0, %v74_v54  ;;  %8453 = vmatmul.msk.f32.gmra.mxu3 %vm80_vm0, %v74_v54  ;;  %v2560_v63 = vmul.f32 %v9173_v45, %v2559_v53  ;;  %v4088_v29 = vld [vmem:[%s13465_s3 + $0x10] sm:$0xff]  ;;  %v4090_v13 = vld [vmem:[%s13465_s3 + $0x20] sm:$0xff] }
  0xbf   :  { %v1668_v9 = vadd.f32 %v1667_v6, %v1666_v3  ;;  %8588 = vrsqrt.f32 %v9160_v12  ;;  %vm2577_vm9 = vcmp.eq.f32.partialorder %v9160_v12, inf  ;;  %vm2579_vm11 = vcmp.eq.f32.partialorder %v9160_v12, 0.0 }
  0xc0   :  { %v2538_v5 = vsub.f32 1.5, %v2537_v56  ;;  %v2561_v10 = vmul.f32 0.5, %v2560_v63 }
  0xc1   :  { %v1669_v17 = vrot.slane %v1668_v9, 2 }
  0xc2   :  { %v2539_v18 = vmul.f32 %v9157_v32, %v2538_v5 }
  0xc3   :  { %v1670_v24 = vadd.f32 %v1669_v17, %v1668_v9  ;;  %v75_v17 = vld [vmem:[%s13464_s1 + $0x178] sm:$0xff] }
  0xc4   :  { %8415 = vmatmul.msk.f32.gmra.mxu1 %vm80_vm0, %v9090_v34  ;;  %v2540_v32 = vmul.f32 %v2539_v18, %v9136_v14 }
  0xc5   :  { %v1020_v21 = vld [vmem:[#allocation1] sm:$0xff]  ;;  %v1671_v31 = vrot.slane %v1670_v24, 1  ;;  %v9198_v57 = vpop.eup %8588 }
  0xc6   :  { %1021 = vst [vmem:[#allocation1] ss:$9 sm:$0xff] %v674_v19  ;;  %v1673_v25 = vsel %vm1637_vm1, %v1020_v21, 0.0  ;;  %v2571_v6 = vmul.f32 %v9198_v57, %v9160_v12  ;;  %8406 = vmatmul.msk.f32.gmra.mxu2 %vm80_vm0, %v75_v17  ;;  %8454 = vmatmul.msk.f32.gmra.mxu3 %vm80_vm0, %v75_v17  ;;  %v4089_v21 = vld [vmem:[%s13465_s3 + $0x18] sm:$0xff] }
  0xc7   :  { %1022 = vst [vmem:[#allocation1 + $0x1] ss:$9 sm:$0xff] %v675_v20  ;;  %v1674_v27 = vrot.slane %v1673_v25, 4  ;;  %v9163_v37 = vadd.f32 %v1671_v31, %v1670_v24  ;;  %v4093_v20 = vld [vmem:[%s13465_s3 + $0x38] sm:$0xff]  ;;  %4498 = vmatpush.msrb.mxu3 %v4089_v21  ;;  %v682_v31 = vrot.slane %v9181_v49, 3 }
  0xc8   :  { %1023 = vst [vmem:[#allocation1 + $0x2] ss:$9 sm:$0xff] %v676_v22  ;;  %v2572_v19 = vmul.f32 %v9198_v57, %v2571_v6  ;;  %v2550_v22 = vsub.f32 1.5, %v2549_v8  ;;  %4385 = vmatpush.msrb.mxu2 %v4093_v20 }
  0xc9   :  { %v1675_v30 = vadd.f32 %v1674_v27, %v1673_v25  ;;  %8590 = vrsqrt.f32 %v9163_v37  ;;  %v2562_v25 = vsub.f32 1.5, %v2561_v10  ;;  %4499 = vmatpush.msrb.mxu3 %v4088_v29  ;;  %v4070_v10 = vld [vmem:[%s13466_s0] sm:$0xff]  ;;  %vm2589_vm12 = vcmp.eq.f32.partialorder %v9163_v37, inf }
  0xca   :  { %4386 = vmatpush.msrb.mxu2 %v4092_v28  ;;  %vm2591_vm13 = vcmp.eq.f32.partialorder %v9163_v37, 0.0 }
  0xcb   :  { %v1676_v33 = vrot.slane %v1675_v30, 2 }
  0xcc   :  { %8416 = vmatmul.msk.f32.gmra.mxu1 %vm80_vm0, %v9125_v2  ;;  %4387 = vmatpush.msrb.mxu2 %v4091_v38 }
  0xcd   :  { %v1677_v35 = vadd.f32 %v1676_v33, %v1675_v30  ;;  %v2573_v33 = vmul.f32 0.5, %v2572_v19 }
  0xce   :  { %4388 = vmatpush.msrb.mxu2 %v4090_v13 }
  0xcf   :  { %v1024_v40 = vld [vmem:[#allocation1] sm:$0xff]  ;;  %v1678_v44 = vrot.slane %v1677_v35, 1  ;;  %v9204_v60 = vpop.eup %8590  ;;  %v2574_v53 = vsub.f32 1.5, %v2573_v33 }
  0xd0   :  { %1025 = vst [vmem:[#allocation1] ss:$9 sm:$0xff] %v677_v36  ;;  %v1680_v46 = vsel %vm1637_vm1, %v1024_v40, 0.0  ;;  %v2583_v9 = vmul.f32 %v9204_v60, %v9163_v37  ;;  %v2551_v40 = vmul.f32 %v9170_v41, %v2550_v22 }
  0xd1   :  { %1026 = vst [vmem:[#allocation1 + $0x1] ss:$9 sm:$0xff] %v678_v39  ;;  %v9177_v47 = vadd.f32 %v1678_v44, %v1677_v35  ;;  %v1681_v48 = vrot.slane %v1680_v46, 4  ;;  %v683_v35 = vrot.slane %v9181_v49, 4  ;;  %v4087_v39 = vld [vmem:[%s13465_s3 + $0x8] sm:$0xff]  ;;  %v684_v44 = vrot.slane %v9181_v49, 5 }
  0xd2   :  { %1027 = vst [vmem:[#allocation1 + $0x2] ss:$9 sm:$0xff] %v679_v42  ;;  %v2584_v24 = vmul.f32 %v9204_v60, %v2583_v9  ;;  %4500 = vmatpush.msrb.mxu3 %v4087_v39  ;;  %v2552_v54 = vmul.f32 %v2551_v40, %v9144_v23 }
  0xd3   :  { %v1682_v52 = vadd.f32 %v1681_v48, %v1680_v46  ;;  %8592 = vrsqrt.f32 %v9177_v47  ;;  %v2563_v46 = vmul.f32 %v9173_v45, %v2562_v25  ;;  %v2542_v45 = vsel %vm2541_vm2, %v9136_v14, %v2540_v32 }
  0xd4   :  { %v2585_v42 = vmul.f32 0.5, %v2584_v24  ;;  %4501 = vmatpush.msrb.mxu3 %v4086_v51  ;;  %8417 = vmatmul.msk.f32.gmra.mxu1 %vm80_vm0, %v9186_v50  ;;  %v2554_v5 = vsel %vm2553_vm4, %v9144_v23, %v2552_v54  ;;  %vm2601_vm14 = vcmp.eq.f32.partialorder %v9177_v47, inf  ;;  %v2604_v39 = vand.u32 2147483648, %v9177_v47 }
  0xd5   :  { %v1683_v55 = vrot.slane %v1682_v52, 2  ;;  %v2564_v59 = vmul.f32 %v2563_v46, %v9147_v26  ;;  %8471 = vmatmul.msk.f32.vlgmr.msrb.gmra.mxu3 %vm80_vm0, %v4070_v10  ;;  %vm2603_vm4 = vcmp.eq.f32.partialorder %v9177_v47, 0.0 }
  0xd7   :  { %v1684_v62 = vadd.f32 %v1683_v55, %v1682_v52  ;;  %v2586_v55 = vsub.f32 1.5, %v2585_v42  ;;  %v2566_v50 = vsel %vm2565_vm6, %v9147_v26, %v2564_v59  ;;  %vm4230_vm6 = vcmask 1045509  }
  0xd9   :  { %v1028_v0 = vld [vmem:[#allocation1] sm:$0xff]  ;;  %v9210_v1 = vpop.eup %8592  ;;  %v1685_v3 = vrot.slane %v1684_v62, 1  ;;  %v2587_v6 = vmul.f32 %v9204_v60, %v2586_v55  ;;  %v2568_v60 = vand.u32 2147483648, %v9147_v26  ;;  %v39_v26 = vld [vmem:[%s13464_s1 + $0x58] sm:$0xff] }
  0xda   :  { %1029 = vst [vmem:[#allocation1] ss:$9 sm:$0xff] %v9181_v49  ;;  %v1687_v4 = vsel %vm1637_vm1, %v1028_v0, 0.0  ;;  %v2595_v15 = vmul.f32 %v9210_v1, %v9177_v47  ;;  %8370 = vmatmul.msk.f32.gmra.mxu0 %vm80_vm0, %v39_v26 }
  0xdb   :  { %1030 = vst [vmem:[#allocation1 + $0x1] ss:$9 sm:$0xff] %v680_v58  ;;  %v1688_v7 = vrot.slane %v1687_v4, 4  ;;  %v9218_v34 = vadd.f32 %v1685_v3, %v1684_v62  ;;  %v2544_v58 = vand.u32 2147483648, %v9136_v14  ;;  %v254_v62 = vpop.f32.mrf.mxu0  ;;  %v2556_v3 = vand.u32 2147483648, %v9144_v23 }
  0xdc   :  { %1031 = vst [vmem:[#allocation1 + $0x2] ss:$9 sm:$0xff] %v681_v61  ;;  %v2596_v27 = vmul.f32 %v9210_v1, %v2595_v15  ;;  %v9286_v8 = vmul.f32 %v254_v62, %v254_v62  ;;  %v686_v15 = vrot.slane %v9181_v49, 7  ;;  %v2588_v20 = vmul.f32 %v2587_v6, %v9163_v37  ;;  %8418 = vmatmul.msk.f32.gmra.mxu1 %vm80_vm0, %v39_v26 }
  0xdd   :  { %v1689_v16 = vadd.f32 %v1688_v7, %v1687_v4  ;;  %8594 = vrsqrt.f32 %v9218_v34  ;;  %v2545_v0 = vsel %vm2543_vm3, %v2544_v58, %v2542_v45  ;;  %v2575_v4 = vmul.f32 %v9198_v57, %v2574_v53 }
  0xde   :  { %v2597_v48 = vmul.f32 0.5, %v2596_v27  ;;  %v685_v7 = vrot.slane %v9181_v49, 6  ;;  %v2569_v49 = vsel %vm2567_vm7, %v2568_v60, %v2566_v50  ;;  %v2580_v23 = vand.u32 2147483648, %v9160_v12  ;;  %v40_v60 = vld [vmem:[%s13464_s1 + $0x60] sm:$0xff] }
  0xdf   :  { %v1690_v11 = vrot.slane %v1689_v16, 2  ;;  %v2576_v18 = vmul.f32 %v2575_v4, %v9160_v12  ;;  %v2592_v27 = vand.u32 2147483648, %v9163_v37  ;;  %v688_v32 = vrot.slane %v9286_v8, 2 }
  0xe0   :  { %v2598_v61 = vsub.f32 1.5, %v2597_v48  ;;  %vm2613_vm2 = vcmp.eq.f32.partialorder %v9218_v34, inf  ;;  %vm4228_vm3 = vcmask 1044484   ;;  %v2616_v42 = vand.u32 2147483648, %v9218_v34 }
  0xe1   :  { %v1691_v30 = vadd.f32 %v1690_v11, %v1689_v16  ;;  %v2578_v25 = vsel %vm2577_vm9, %v9160_v12, %v2576_v18  ;;  %vm4232_vm7 = vcmask 1046534   ;;  %v691_v59 = vrot.slane %v9286_v8, 5 }
  0xe2   :  { %v2599_v9 = vmul.f32 %v9210_v1, %v2598_v61  ;;  %v2557_v1 = vsel %vm2555_vm5, %v2556_v3, %v2554_v5  ;;  %v2581_v38 = vsel %vm2579_vm11, %v2580_v23, %v2578_v25  ;;  %vm2615_vm5 = vcmp.eq.f32.partialorder %v9218_v34, 0.0  ;;  %8371 = vmatmul.msk.f32.gmra.mxu0 %vm80_vm0, %v40_v60 }
  0xe3   :  { %v9249_v36 = vld [vmem:[#allocation1] sm:$0xff]  ;;  %v1692_v2 = vrot.slane %v1691_v30, 1  ;;  %v8595_v43 = vpop.eup %8594  ;;  %v4223_v24 = vsel %vm4222_vm8, %v2557_v1, %v2545_v0  ;;  %vm4234_vm11 = vcmask 1047559   ;;  %v692_v61 = vrot.slane %v9286_v8, 6 }
  0xe4   :  { %1033 = vst [vmem:[#allocation1] ss:$9 sm:$0xff] %v682_v31  ;;  %v2607_v52 = vmul.f32 %v8595_v43, %v9218_v34  ;;  %v2600_v21 = vmul.f32 %v2599_v9, %v9177_v47  ;;  %v4225_v29 = vsel %vm4224_vm10, %v2569_v49, %v4223_v24  ;;  %v2590_v31 = vsel %vm2589_vm12, %v9163_v37, %v2588_v20 }
  0xe5   :  { %1034 = vst [vmem:[#allocation1 + $0x1] ss:$9 sm:$0xff] %v683_v35  ;;  %v9266_v41 = vadd.f32 %v1692_v2, %v1691_v30  ;;  %v687_v30 = vrot.slane %v9286_v8, 1  ;;  %v2593_v40 = vsel %vm2591_vm13, %v2592_v27, %v2590_v31  ;;  %v4227_v51 = vsel %vm4226_vm15, %v2581_v38, %v4225_v29  ;;  %8419 = vmatmul.msk.f32.gmra.mxu1 %vm80_vm0, %v40_v60  ;;  %v4893_v29 = vld [vmem:[%s13467_s5 + $0x10] sm:$0xff] }
  0xe6   :  { %1035 = vst [vmem:[#allocation1 + $0x2] ss:$9 sm:$0xff] %v684_v44  ;;  %v2608_v56 = vmul.f32 %v8595_v43, %v2607_v52  ;;  %v2602_v33 = vsel %vm2601_vm14, %v9177_v47, %v2600_v21  ;;  %v689_v44 = vrot.slane %v9286_v8, 3  ;;  %v4229_v47 = vsel %vm4228_vm3, %v2593_v40, %v4227_v51 }
  0xe7   :  { %8596 = vrsqrt.f32 %v9266_v41  ;;  %v2605_v48 = vsel %vm2603_vm4, %v2604_v39, %v2602_v33  ;;  %vm2625_vm9 = vcmp.eq.f32.partialorder %v9266_v41, inf  ;;  %v2628_v37 = vand.u32 2147483648, %v9266_v41 }
  0xe8   :  { %v2609_v63 = vmul.f32 0.5, %v2608_v56  ;;  %vm2627_vm12 = vcmp.eq.f32.partialorder %v9266_v41, 0.0  ;;  %v1694_v55 = vsel %vm1637_vm1, %v9249_v36, 0.0  ;;  %v690_v56 = vrot.slane %v9286_v8, 4 }
  0xe9   :  { %v1695_v62 = vrot.slane %v1694_v55, 4  ;;  %v693_v50 = vrot.slane %v9286_v8, 7 }
  0xea   :  { %v2610_v14 = vsub.f32 1.5, %v2609_v63  ;;  %v257_v63 = vpop.f32.mrf.mxu0 }
  0xeb   :  { %v9356_v4 = vmul.f32 %v257_v63, %v257_v63  ;;  %v1696_v36 = vadd.f32 %v1695_v62, %v1694_v55  ;;  %v41_v63 = vld [vmem:[%s13464_s1 + $0x68] sm:$0xff] }
  0xec   :  { %v2611_v17 = vmul.f32 %v8595_v43, %v2610_v14  ;;  %8372 = vmatmul.msk.f32.gmra.mxu0 %vm80_vm0, %v41_v63 }
  0xed   :  { %v8597_v57 = vpop.eup %8596  ;;  %v9294_v16 = vld [vmem:[#allocation1] sm:$0xff]  ;;  %v694_v9 = vrot.slane %v9356_v4, 1  ;;  %v1697_v10 = vrot.slane %v1696_v36, 2  ;;  %v695_v24 = vrot.slane %v9356_v4, 2  ;;  %v696_v25 = vrot.slane %v9356_v4, 3  ;;  %8420 = vmatmul.msk.f32.gmra.mxu1 %vm80_vm0, %v41_v63 }
  0xee   :  { %1037 = vst [vmem:[#allocation1] ss:$9 sm:$0xff] %v685_v7  ;;  %v2619_v19 = vmul.f32 %v8597_v57, %v9266_v41  ;;  %v2612_v22 = vmul.f32 %v2611_v17, %v9218_v34  ;;  %v1701_v58 = vsel %vm1637_vm1, %v9294_v16, 0.0  ;;  %v697_v27 = vrot.slane %v9356_v4, 4 }
  0xef   :  { %1038 = vst [vmem:[#allocation1 + $0x1] ss:$9 sm:$0xff] %v686_v15  ;;  %v1702_v0 = vrot.slane %v1701_v58, 4  ;;  %v698_v51 = vrot.slane %v9356_v4, 5 }
  0xf0   :  { %1039 = vst [vmem:[#allocation1 + $0x2] ss:$9 sm:$0xff] %v9286_v8  ;;  %v2620_v11 = vmul.f32 %v8597_v57, %v2619_v19  ;;  %v2614_v2 = vsel %vm2613_vm2, %v9218_v34, %v2612_v22  ;;  %v4231_v34 = vsel %vm4230_vm6, %v2605_v48, %v4229_v47  ;;  %v1698_v8 = vadd.f32 %v1697_v10, %v1696_v36 }
  0xf1   :  { %v2617_v12 = vsel %vm2615_vm5, %v2616_v42, %v2614_v2  ;;  %v1703_v6 = vadd.f32 %v1702_v0, %v1701_v58  ;;  %v699_v47 = vrot.slane %v9356_v4, 6  ;;  %v4891_v58 = vld [vmem:[%s13467_s5] sm:$0xff] }
  0xf2   :  { %v2621_v28 = vmul.f32 0.5, %v2620_v11  ;;  %v4233_v53 = vsel %vm4232_vm7, %v2617_v12, %v4231_v34  ;;  %v1699_v23 = vrot.slane %v1698_v8, 1 }
  0xf3   :  { %v1704_v15 = vrot.slane %v1703_v6, 2 }
  0xf4   :  { %v2622_v35 = vsub.f32 1.5, %v2621_v28  ;;  %v9377_v33 = vadd.f32 %v1699_v23, %v1698_v8  ;;  %v4072_v23 = vld [vmem:[%s13466_s0 + $0x10] sm:$0xff] }
  0xf5   :  { %v1705_v19 = vadd.f32 %v1704_v15, %v1703_v6 }
  0xf6   :  { %v2623_v43 = vmul.f32 %v8597_v57, %v2622_v35  ;;  %8598 = vrsqrt.f32 %v9377_v33  ;;  %vm2637_vm13 = vcmp.eq.f32.partialorder %v9377_v33, inf  ;;  %vm2639_vm14 = vcmp.eq.f32.partialorder %v9377_v33, 0.0 }
  0xf7   :  { %v1040_v46 = vld [vmem:[#allocation1] sm:$0xff]  ;;  %v1706_v11 = vrot.slane %v1705_v19, 1 }
  0xf8   :  { %1041 = vst [vmem:[#allocation1] ss:$9 sm:$0xff] %v687_v30  ;;  %v2624_v13 = vmul.f32 %v2623_v43, %v9266_v41  ;;  %v1708_v3 = vsel %vm1637_vm1, %v1040_v46, 0.0  ;;  %v4894_v30 = vld [vmem:[%s13467_s5 + $0x18] sm:$0xff] }
  0xf9   :  { %1042 = vst [vmem:[#allocation1 + $0x1] ss:$9 sm:$0xff] %v688_v32  ;;  %v1709_v14 = vrot.slane %v1708_v3, 4  ;;  %v8570_v32 = vpack.i.bf16 %v4893_v29, %v4894_v30  ;;  %4959 = vmatpush.msra.mxu2 %v4894_v30  ;;  %v9380_v39 = vadd.f32 %v1706_v11, %v1705_v19 }
  0xfa   :  { %1043 = vst [vmem:[#allocation1 + $0x2] ss:$9 sm:$0xff] %v689_v44  ;;  %v2626_v52 = vsel %vm2625_vm9, %v9266_v41, %v2624_v13 }
  0xfb   :  { %v2629_v45 = vsel %vm2627_vm12, %v2628_v37, %v2626_v52  ;;  %v1710_v16 = vadd.f32 %v1709_v14, %v1708_v3  ;;  %8571 = vrot.lane.b32.xlu1 %v8570_v32, %s8974_s11  ;;  %4960 = vmatpush.msra.mxu2 %v4893_v29  ;;  %8600 = vrsqrt.f32 %v9380_v39  ;;  %vm2649_vm2 = vcmp.eq.f32.partialorder %v9380_v39, inf }
  0xfc   :  { %v4235_v54 = vsel %vm4234_vm11, %v2629_v45, %v4233_v53  ;;  %v9394_v34 = vpop.eup %8598  ;;  %v700_v45 = vrot.slane %v9356_v4, 7  ;;  %v260_v53 = vpop.f32.mrf.mxu0  ;;  %vm2651_vm4 = vcmp.eq.f32.partialorder %v9380_v39, 0.0 }
  0xfd   :  { %8455 = vmatmul.msk.f32.vlgmr.msrb.gmra.mxu2 %vm80_vm0, %v4235_v54  ;;  %v1711_v49 = vrot.slane %v1710_v16, 2  ;;  %v9410_v62 = vmul.f32 %v260_v53, %v260_v53  ;;  %v2631_v3 = vmul.f32 %v9394_v34, %v9377_v33 }
  0xff   :  { %v1712_v22 = vadd.f32 %v1711_v49, %v1710_v16 }
 0x101   :  { %v1044_v41 = vld [vmem:[#allocation1] sm:$0xff]  ;;  %v1713_v2 = vrot.slane %v1712_v22, 1  ;;  %v9397_v55 = vpop.eup %8600 }
 0x102   :  { %1045 = vst [vmem:[#allocation1] ss:$9 sm:$0xff] %v690_v56  ;;  %v1715_v5 = vsel %vm1637_vm1, %v1044_v41, 0.0 }
 0x103   :  { %1046 = vst [vmem:[#allocation1 + $0x1] ss:$9 sm:$0xff] %v691_v59  ;;  %v1716_v7 = vrot.slane %v1715_v5, 4  ;;  %v9384_v46 = vadd.f32 %v1713_v2, %v1712_v22  ;;  %v4892_v59 = vld [vmem:[%s13467_s5 + $0x8] sm:$0xff]  ;;  %v703_v2 = vrot.slane %v9410_v62, 3 }
 0x104   :  { %1047 = vst [vmem:[#allocation1 + $0x2] ss:$9 sm:$0xff] %v692_v61  ;;  %v8575_v0 = vpack.i.bf16 %v4891_v58, %v4892_v59  ;;  %4961 = vmatpush.msra.mxu2 %v4892_v59 }
 0x105   :  { %v1717_v1 = vadd.f32 %v1716_v7, %v1715_v5  ;;  %8602 = vrsqrt.f32 %v9384_v46  ;;  %v2643_v5 = vmul.f32 %v9397_v55, %v9380_v39  ;;  %vm2661_vm5 = vcmp.eq.f32.partialorder %v9384_v46, inf }
 0x106   :  { %8576 = vrot.lane.b32.xlu1 %v8575_v0, %s8974_s11  ;;  %4962 = vmatpush.msra.mxu2 %v4891_v58  ;;  %vm2663_vm9 = vcmp.eq.f32.partialorder %v9384_v46, 0.0 }
 0x107   :  { %v1718_v26 = vrot.slane %v1717_v1, 2  ;;  %v2644_v16 = vmul.f32 %v9397_v55, %v2643_v5  ;;  %v2640_v5 = vand.u32 2147483648, %v9377_v33 }
 0x109   :  { %v1719_v31 = vadd.f32 %v1718_v26, %v1717_v1  ;;  %v2645_v11 = vmul.f32 0.5, %v2644_v16 }
 0x10b   :  { %v1048_v57 = vld [vmem:[#allocation1] sm:$0xff]  ;;  %v1720_v42 = vrot.slane %v1719_v31, 1  ;;  %v9425_v6 = vpop.eup %8602 }
 0x10c   :  { %1049 = vst [vmem:[#allocation1] ss:$9 sm:$0xff] %v693_v50  ;;  %v1722_v17 = vsel %vm1637_vm1, %v1048_v57, 0.0  ;;  %v701_v50 = vrot.slane %v9410_v62, 1  ;;  %v702_v57 = vrot.slane %v9410_v62, 2  ;;  %v2655_v60 = vmul.f32 %v9425_v6, %v9384_v46 }
 0x10d   :  { %1050 = vst [vmem:[#allocation1 + $0x1] ss:$9 sm:$0xff] %v9356_v4  ;;  %v1723_v18 = vrot.slane %v1722_v17, 4  ;;  %v9387_v12 = vadd.f32 %v1720_v42, %v1719_v31  ;;  %v4071_v4 = vld [vmem:[%s13466_s0 + $0x8] sm:$0xff]  ;;  %v2646_v31 = vsub.f32 1.5, %v2645_v11  ;;  %v704_v42 = vrot.slane %v9410_v62, 4 }
 0x10e   :  { %1051 = vst [vmem:[#allocation1 + $0x2] ss:$9 sm:$0xff] %v694_v9  ;;  %8472 = vmatmul.msk.f32.gmra.mxu3 %vm80_vm0, %v4071_v4  ;;  %v2632_v9 = vmul.f32 %v9394_v34, %v2631_v3  ;;  %v2656_v22 = vmul.f32 %v9425_v6, %v2655_v60  ;;  %v263_v4 = vpop.f32.mrf.mxu0 }
 0x10f   :  { %v1724_v20 = vadd.f32 %v1723_v18, %v1722_v17  ;;  %8604 = vrsqrt.f32 %v9387_v12  ;;  %vm2673_vm12 = vcmp.eq.f32.partialorder %v9387_v12, inf }
 0x110   :  { %v2657_v32 = vmul.f32 0.5, %v2656_v22 }
 0x111   :  { %v1725_v21 = vrot.slane %v1724_v20, 2 }
 0x112   :  { %v2658_v53 = vsub.f32 1.5, %v2657_v32 }
 0x113   :  { %v1726_v35 = vadd.f32 %v1725_v21, %v1724_v20  ;;  %v2633_v20 = vmul.f32 0.5, %v2632_v9 }
 0x115   :  { %v1052_v28 = vld [vmem:[#allocation1] sm:$0xff]  ;;  %v1727_v44 = vrot.slane %v1726_v35, 1  ;;  %v9429_v7 = vpop.eup %8604  ;;  %v2634_v29 = vsub.f32 1.5, %v2633_v20 }
 0x116   :  { %1053 = vst [vmem:[#allocation1] ss:$9 sm:$0xff] %v695_v24  ;;  %v1729_v38 = vsel %vm1637_vm1, %v1052_v28, 0.0  ;;  %v2667_v19 = vmul.f32 %v9429_v7, %v9387_v12  ;;  %8473 = vmatmul.msk.f32.gmra.mxu3 %vm80_vm0, %v4072_v23 }
 0x117   :  { %1054 = vst [vmem:[#allocation1 + $0x1] ss:$9 sm:$0xff] %v696_v25  ;;  %v1730_v40 = vrot.slane %v1729_v38, 4  ;;  %v9390_v37 = vadd.f32 %v1727_v44, %v1726_v35 }
 0x118   :  { %1055 = vst [vmem:[#allocation1 + $0x2] ss:$9 sm:$0xff] %v697_v27  ;;  %v2668_v27 = vmul.f32 %v9429_v7, %v2667_v19 }
 0x119   :  { %v1731_v43 = vadd.f32 %v1730_v40, %v1729_v38  ;;  %8606 = vrsqrt.f32 %v9390_v37 }
 0x11a   :  { %v2669_v40 = vmul.f32 0.5, %v2668_v27 }
 0x11b   :  { %v1732_v48 = vrot.slane %v1731_v43, 2 }
 0x11c   :  { %v2670_v58 = vsub.f32 1.5, %v2669_v40 }
 0x11d   :  { %v1733_v13 = vadd.f32 %v1732_v48, %v1731_v43  ;;  %v2635_v48 = vmul.f32 %v9394_v34, %v2634_v29 }
 0x11f   :  { %v1056_v52 = vld [vmem:[#allocation1] sm:$0xff]  ;;  %v1734_v54 = vrot.slane %v1733_v13, 1  ;;  %v9433_v10 = vpop.eup %8606  ;;  %v2636_v59 = vmul.f32 %v2635_v48, %v9377_v33  ;;  %v9536_v48 = vpop.f32.mrf.mxu2 }
 0x120   :  { %1057 = vst [vmem:[#allocation1] ss:$9 sm:$0xff] %v698_v51  ;;  %v1736_v56 = vsel %vm1637_vm1, %v1056_v52, 0.0  ;;  %v2679_v26 = vmul.f32 %v9433_v10, %v9390_v37  ;;  %v4073_v52 = vld [vmem:[%s13466_s0 + $0x18] sm:$0xff] }
 0x121   :  { %1058 = vst [vmem:[#allocation1 + $0x1] ss:$9 sm:$0xff] %v699_v47  ;;  %v9407_v41 = vadd.f32 %v1734_v54, %v1733_v13  ;;  %v1737_v61 = vrot.slane %v1736_v56, 4  ;;  %v705_v47 = vrot.slane %v9410_v62, 5  ;;  %8474 = vmatmul.msk.f32.gmra.mxu3 %vm80_vm0, %v4073_v52  ;;  %v2638_v9 = vsel %vm2637_vm13, %v9377_v33, %v2636_v59 }
 0x122   :  { %1059 = vst [vmem:[#allocation1 + $0x2] ss:$9 sm:$0xff] %v700_v45  ;;  %v2680_v30 = vmul.f32 %v9433_v10, %v2679_v26  ;;  %v2647_v45 = vmul.f32 %v9397_v55, %v2646_v31  ;;  %v2659_v55 = vmul.f32 %v9425_v6, %v2658_v53  ;;  %v2664_v26 = vand.u32 2147483648, %v9384_v46 }
 0x123   :  { %v1738_v36 = vadd.f32 %v1737_v61, %v1736_v56  ;;  %8608 = vrsqrt.f32 %v9407_v41  ;;  %vm2675_vm13 = vcmp.eq.f32.partialorder %v9387_v12, 0.0  ;;  %v2676_v33 = vand.u32 2147483648, %v9387_v12 }
 0x124   :  { %v2681_v13 = vmul.f32 0.5, %v2680_v30  ;;  %v2648_v0 = vmul.f32 %v2647_v45, %v9380_v39  ;;  %v2660_v60 = vmul.f32 %v2659_v55, %v9384_v46  ;;  %v4074_v30 = vld [vmem:[%s13466_s0 + $0x20] sm:$0xff] }
 0x125   :  { %v1739_v14 = vrot.slane %v1738_v36, 2 }
 0x126   :  { %v2682_v61 = vsub.f32 1.5, %v2681_v13  ;;  %v2650_v16 = vsel %vm2649_vm2, %v9380_v39, %v2648_v0  ;;  %v2662_v11 = vsel %vm2661_vm5, %v9384_v46, %v2660_v60  ;;  %vm2687_vm2 = vcmp.eq.f32.partialorder %v9390_v37, 0.0  ;;  %v9538_v13 = vpop.f32.mrf.mxu3  ;;  %v4075_v0 = vld [vmem:[%s13466_s0 + $0x28] sm:$0xff] }
 0x127   :  { %v1740_v15 = vadd.f32 %v1739_v14, %v1738_v36  ;;  %v2671_v14 = vmul.f32 %v9429_v7, %v2670_v58  ;;  %v2652_v7 = vand.u32 2147483648, %v9380_v39  ;;  %v42_v39 = vld [vmem:[%s13464_s1 + $0x70] sm:$0xff]  ;;  %v2665_v31 = vsel %vm2663_vm9, %v2664_v26, %v2662_v11  ;;  %13499 = vst [vmem:[#allocation2_spill] sm:$0xff] %v9538_v13 }
 0x128   :  { %8373 = vmatmul.msk.f32.gmra.mxu0 %vm80_vm0, %v42_v39  ;;  %8421 = vmatmul.msk.f32.gmra.mxu1 %vm80_vm0, %v42_v39  ;;  %vm2699_vm9 = vcmp.eq.f32.partialorder %v9407_v41, 0.0  ;;  %v4077_v39 = vld [vmem:[%s13466_s0 + $0x38] sm:$0xff] }
 0x129   :  { %v1060_v17 = vld [vmem:[#allocation1] sm:$0xff]  ;;  %v9439_v1 = vpop.eup %8608  ;;  %v1741_v18 = vrot.slane %v1740_v15, 1  ;;  %8475 = vmatmul.msk.f32.gmra.mxu3 %vm80_vm0, %v4074_v30 }
 0x12a   :  { %1061 = vst [vmem:[#allocation1] ss:$9 sm:$0xff] %v9410_v62  ;;  %v1743_v8 = vsel %vm1637_vm1, %v1060_v17, 0.0  ;;  %v2691_v24 = vmul.f32 %v9439_v1, %v9407_v41 }
 0x12b   :  { %1062 = vst [vmem:[#allocation1 + $0x1] ss:$9 sm:$0xff] %v701_v50  ;;  %v1744_v49 = vrot.slane %v1743_v8, 4  ;;  %v9450_v21 = vadd.f32 %v1741_v18, %v1740_v15  ;;  %v706_v50 = vrot.slane %v9410_v62, 6  ;;  %v9486_v15 = vmul.f32 %v263_v4, %v263_v4 }
 0x12c   :  { %1063 = vst [vmem:[#allocation1 + $0x2] ss:$9 sm:$0xff] %v702_v57  ;;  %v2692_v35 = vmul.f32 %v9439_v1, %v2691_v24  ;;  %v2683_v57 = vmul.f32 %v9433_v10, %v2682_v61  ;;  %v2672_v10 = vmul.f32 %v2671_v14, %v9387_v12 }
 0x12d   :  { %v1745_v25 = vadd.f32 %v1744_v49, %v1743_v8  ;;  %8610 = vrsqrt.f32 %v9450_v21  ;;  %v707_v8 = vrot.slane %v9410_v62, 7  ;;  %v2641_v62 = vsel %vm2639_vm14, %v2640_v5, %v2638_v9 }
 0x12e   :  { %v2693_v54 = vmul.f32 0.5, %v2692_v35  ;;  %v2684_v23 = vmul.f32 %v2683_v57, %v9390_v37  ;;  %v2674_v27 = vsel %vm2673_vm12, %v9387_v12, %v2672_v10  ;;  %vm2685_vm14 = vcmp.eq.f32.partialorder %v9390_v37, inf  ;;  %v9563_v5 = vpop.f32.mrf.mxu3  ;;  %v4076_v57 = vld [vmem:[%s13466_s0 + $0x30] sm:$0xff] }
 0x12f   :  { %v1746_v28 = vrot.slane %v1745_v25, 2  ;;  %v2688_v35 = vand.u32 2147483648, %v9390_v37  ;;  %vm2709_vm5 = vcmp.eq.f32.partialorder %v9450_v21, inf  ;;  %v708_v40 = vrot.slane %v9486_v15, 1  ;;  %13500 = vst [vmem:[#allocation3_spill] sm:$0xff] %v9563_v5 }
 0x130   :  { %v2694_v3 = vsub.f32 1.5, %v2693_v54  ;;  %v2686_v32 = vsel %vm2685_vm14, %v9390_v37, %v2684_v23  ;;  %v2677_v46 = vsel %vm2675_vm13, %v2676_v33, %v2674_v27  ;;  %v2712_v37 = vand.u32 2147483648, %v9450_v21 }
 0x131   :  { %v1747_v38 = vadd.f32 %v1746_v28, %v1745_v25  ;;  %v709_v52 = vrot.slane %v9486_v15, 2  ;;  %vm2711_vm12 = vcmp.eq.f32.partialorder %v9450_v21, 0.0  ;;  %v710_v54 = vrot.slane %v9486_v15, 3  ;;  %8476 = vmatmul.msk.f32.gmra.mxu3 %vm80_vm0, %v4075_v0 }
 0x132   :  { %v2695_v17 = vmul.f32 %v9439_v1, %v2694_v3  ;;  %v2653_v1 = vsel %vm2651_vm4, %v2652_v7, %v2650_v16  ;;  %vm2697_vm4 = vcmp.eq.f32.partialorder %v9407_v41, inf  ;;  %v712_v14 = vrot.slane %v9486_v15, 5 }
 0x133   :  { %v9462_v43 = vld [vmem:[#allocation1] sm:$0xff]  ;;  %v1748_v44 = vrot.slane %v1747_v38, 1  ;;  %v8611_v51 = vpop.eup %8610  ;;  %v4236_v29 = vsel %vm4222_vm8, %v2653_v1, %v2641_v62  ;;  %v713_v9 = vrot.slane %v9486_v15, 6  ;;  %v714_v10 = vrot.slane %v9486_v15, 7 }
 0x134   :  { %1065 = vst [vmem:[#allocation1] ss:$9 sm:$0xff] %v703_v2  ;;  %v2703_v34 = vmul.f32 %v8611_v51, %v9450_v21  ;;  %v2696_v22 = vmul.f32 %v2695_v17, %v9407_v41  ;;  %v4237_v12 = vsel %vm4224_vm10, %v2665_v31, %v4236_v29  ;;  %v1750_v60 = vsel %vm1637_vm1, %v9462_v43, 0.0  ;;  %v43_v43 = vld [vmem:[%s13464_s1 + $0x78] sm:$0xff] }
 0x135   :  { %1066 = vst [vmem:[#allocation1 + $0x1] ss:$9 sm:$0xff] %v704_v42  ;;  %v9471_v56 = vadd.f32 %v1748_v44, %v1747_v38  ;;  %v2700_v42 = vand.u32 2147483648, %v9407_v41  ;;  %v4238_v59 = vsel %vm4226_vm15, %v2677_v46, %v4237_v12  ;;  %8374 = vmatmul.msk.f32.gmra.mxu0 %vm80_vm0, %v43_v43  ;;  %8422 = vmatmul.msk.f32.gmra.mxu1 %vm80_vm0, %v43_v43 }
 0x136   :  { %1067 = vst [vmem:[#allocation1 + $0x2] ss:$9 sm:$0xff] %v705_v47  ;;  %v2704_v63 = vmul.f32 %v8611_v51, %v2703_v34  ;;  %v2698_v38 = vsel %vm2697_vm4, %v9407_v41, %v2696_v22 }
 0x137   :  { %8612 = vrsqrt.f32 %v9471_v56  ;;  %v2701_v53 = vsel %vm2699_vm9, %v2700_v42, %v2698_v38  ;;  %vm2721_vm13 = vcmp.eq.f32.partialorder %v9471_v56, inf  ;;  %v2724_v41 = vand.u32 2147483648, %v9471_v56  ;;  %v4078_v42 = vld [vmem:[%s13466_s0 + $0x40] sm:$0xff] }
 0x138   :  { %v2705_v36 = vmul.f32 0.5, %v2704_v63  ;;  %vm2723_vm14 = vcmp.eq.f32.partialorder %v9471_v56, 0.0 }
 0x139   :  { %8477 = vmatmul.msk.f32.gmra.mxu3 %vm80_vm0, %v4076_v57  ;;  %v44_v57 = vld [vmem:[%s13464_s1 + $0x80] sm:$0xff] }
 0x13a   :  { %v2706_v6 = vsub.f32 1.5, %v2705_v36  ;;  %v9561_v36 = vpop.f32.mrf.mxu2 }
 0x13c   :  { %v2707_v49 = vmul.f32 %v8611_v51, %v2706_v6  ;;  %v2689_v51 = vsel %vm2687_vm2, %v2688_v35, %v2686_v32  ;;  %v266_v6 = vpop.f32.mrf.mxu0 }
 0x13d   :  { %v8613_v18 = vpop.eup %8612  ;;  %v9492_v19 = vld [vmem:[#allocation1] sm:$0xff]  ;;  %v4239_v61 = vsel %vm4228_vm3, %v2689_v51, %v4238_v59  ;;  %v9576_v17 = vmul.f32 %v266_v6, %v266_v6  ;;  %8375 = vmatmul.msk.f32.gmra.mxu0 %vm80_vm0, %v44_v57  ;;  %8423 = vmatmul.msk.f32.gmra.mxu1 %vm80_vm0, %v44_v57 }
 0x13e   :  { %1069 = vst [vmem:[#allocation1] ss:$9 sm:$0xff] %v706_v50  ;;  %v2715_v20 = vmul.f32 %v8613_v18, %v9471_v56  ;;  %v2708_v25 = vmul.f32 %v2707_v49, %v9450_v21  ;;  %v4240_v63 = vsel %vm4230_vm6, %v2701_v53, %v4239_v61  ;;  %v1757_v16 = vsel %vm1637_vm1, %v9492_v19, 0.0  ;;  %v9580_v49 = vpop.f32.mrf.mxu3 }
 0x13f   :  { %1070 = vst [vmem:[#allocation1 + $0x1] ss:$9 sm:$0xff] %v707_v8  ;;  %v1751_v8 = vrot.slane %v1750_v60, 4  ;;  %v716_v29 = vrot.slane %v9576_v17, 2  ;;  %v717_v31 = vrot.slane %v9576_v17, 3  ;;  %v718_v38 = vrot.slane %v9576_v17, 4 }
 0x140   :  { %1071 = vst [vmem:[#allocation1 + $0x2] ss:$9 sm:$0xff] %v9486_v15  ;;  %v2716_v24 = vmul.f32 %v8613_v18, %v2715_v20  ;;  %v2710_v44 = vsel %vm2709_vm5, %v9450_v21, %v2708_v25  ;;  %v715_v20 = vrot.slane %v9576_v17, 1 }
 0x141   :  { %v2713_v34 = vsel %vm2711_vm12, %v2712_v37, %v2710_v44  ;;  %13501 = vst [vmem:[#allocation4_spill] sm:$0xff] %v9580_v49  ;;  %v1752_v26 = vadd.f32 %v1751_v8, %v1750_v60  ;;  %8478 = vmatmul.msk.f32.gmra.mxu3 %vm80_vm0, %v4077_v39  ;;  %v4079_v60 = vld [vmem:[%s13466_s0 + $0x48] sm:$0xff] }
 0x142   :  { %v2717_v28 = vmul.f32 0.5, %v2716_v24  ;;  %v4241_v3 = vsel %vm4232_vm7, %v2713_v34, %v4240_v63  ;;  %v9578_v7 = vpop.f32.mrf.mxu2  ;;  %v720_v63 = vrot.slane %v9576_v17, 6 }
 0x143   :  { %v1753_v11 = vrot.slane %v1752_v26, 2 }
 0x144   :  { %v2718_v2 = vsub.f32 1.5, %v2717_v28 }
 0x145   :  { %v1754_v30 = vadd.f32 %v1753_v11, %v1752_v26 }
 0x146   :  { %v2719_v47 = vmul.f32 %v8613_v18, %v2718_v2  ;;  %v1758_v18 = vrot.slane %v1757_v16, 4  ;;  %v9598_v27 = vpop.f32.mrf.mxu3 }
 0x147   :  { %v1072_v45 = vld [vmem:[#allocation1] sm:$0xff]  ;;  %13502 = vst [vmem:[#allocation5_spill] sm:$0xff] %v9598_v27  ;;  %v1755_v37 = vrot.slane %v1754_v30, 1 }
 0x148   :  { %1073 = vst [vmem:[#allocation1] ss:$9 sm:$0xff] %v708_v40  ;;  %v2720_v58 = vmul.f32 %v2719_v47, %v9471_v56  ;;  %v1759_v62 = vadd.f32 %v1758_v18, %v1757_v16  ;;  %v1764_v19 = vsel %vm1637_vm1, %v1072_v45, 0.0 }
 0x149   :  { %1074 = vst [vmem:[#allocation1 + $0x1] ss:$9 sm:$0xff] %v709_v52  ;;  %v1765_v23 = vrot.slane %v1764_v19, 4  ;;  %8479 = vmatmul.msk.f32.gmra.mxu3 %vm80_vm0, %v4078_v42 }
 0x14a   :  { %1075 = vst [vmem:[#allocation1 + $0x2] ss:$9 sm:$0xff] %v710_v54  ;;  %v2722_v21 = vsel %vm2721_vm13, %v9471_v56, %v2720_v58  ;;  %v711_v56 = vrot.slane %v9486_v15, 4  ;;  %v1760_v15 = vrot.slane %v1759_v62, 2  ;;  %v9596_v25 = vpop.f32.mrf.mxu2  ;;  %v9611_v54 = vadd.f32 %v1755_v37, %v1754_v30 }
 0x14b   :  { %v2725_v55 = vsel %vm2723_vm14, %v2724_v41, %v2722_v21  ;;  %v1766_v33 = vadd.f32 %v1765_v23, %v1764_v19  ;;  %v719_v41 = vrot.slane %v9576_v17, 5 }
 0x14c   :  { %v4242_v4 = vsel %vm4234_vm11, %v2725_v55, %v4241_v3  ;;  %v1761_v24 = vadd.f32 %v1760_v15, %v1759_v62  ;;  %v721_v3 = vrot.slane %v9576_v17, 7  ;;  %vm2733_vm4 = vcmp.eq.f32.partialorder %v9611_v54, inf }
 0x14d   :  { %8456 = vmatmul.msk.f32.gmra.mxu2 %vm80_vm0, %v4242_v4  ;;  %v1767_v40 = vrot.slane %v1766_v33, 2  ;;  %v269_v4 = vpop.f32.mrf.mxu0  ;;  %vm2735_vm9 = vcmp.eq.f32.partialorder %v9611_v54, 0.0 }
 0x14e   :  { %v1762_v2 = vrot.slane %v1761_v24, 1  ;;  %v9615_v59 = vpop.f32.mrf.mxu3 }
 0x14f   :  { %v1768_v45 = vadd.f32 %v1767_v40, %v1766_v33  ;;  %13503 = vst [vmem:[#allocation6_spill] sm:$0xff] %v9615_v59 }
 0x150   :  { %v9609_v52 = vadd.f32 %v1762_v2, %v1761_v24 }
 0x151   :  { %v1076_v50 = vld [vmem:[#allocation1] sm:$0xff]  ;;  %v1769_v61 = vrot.slane %v1768_v45, 1  ;;  %8480 = vmatmul.msk.f32.gmra.mxu3 %vm80_vm0, %v4079_v60 }
 0x152   :  { %1077 = vst [vmem:[#allocation1] ss:$9 sm:$0xff] %v711_v56  ;;  %v1771_v22 = vsel %vm1637_vm1, %v1076_v50, 0.0  ;;  %v9613_v58 = vpop.f32.mrf.mxu2  ;;  %8614 = vrsqrt.f32 %v9609_v52  ;;  %vm2745_vm2 = vcmp.eq.f32.partialorder %v9609_v52, inf  ;;  %vm2747_vm5 = vcmp.eq.f32.partialorder %v9609_v52, 0.0 }
 0x153   :  { %1078 = vst [vmem:[#allocation1 + $0x1] ss:$9 sm:$0xff] %v712_v14  ;;  %v1772_v28 = vrot.slane %v1771_v22, 4  ;;  %8616 = vrsqrt.f32 %v9611_v54  ;;  %v9622_v14 = vadd.f32 %v1769_v61, %v1768_v45 }
 0x154   :  { %1079 = vst [vmem:[#allocation1 + $0x2] ss:$9 sm:$0xff] %v713_v9  ;;  %v9624_v9 = vmul.f32 %v269_v4, %v269_v4 }
 0x155   :  { %v1773_v44 = vadd.f32 %v1772_v28, %v1771_v22  ;;  %8618 = vrsqrt.f32 %v9622_v14  ;;  %vm2757_vm12 = vcmp.eq.f32.partialorder %v9622_v14, inf  ;;  %vm2759_vm13 = vcmp.eq.f32.partialorder %v9622_v14, 0.0 }
 0x156   :  { %v9643_v62 = vpop.f32.mrf.mxu3  ;;  %v723_v43 = vrot.slane %v9624_v9, 2 }
 0x157   :  { %v1774_v12 = vrot.slane %v1773_v44, 2  ;;  %13504 = vst [vmem:[#allocation7_spill] sm:$0xff] %v9643_v62 }
 0x158   :  { %v9629_v16 = vpop.eup %8614 }
 0x159   :  { %v1775_v55 = vadd.f32 %v1774_v12, %v1773_v44  ;;  %v9637_v18 = vpop.eup %8616  ;;  %v2739_v19 = vmul.f32 %v9629_v16, %v9609_v52 }
 0x15a   :  { %v2727_v11 = vmul.f32 %v9637_v18, %v9611_v54 }
 0x15b   :  { %v1080_v1 = vld [vmem:[#allocation1] sm:$0xff]  ;;  %v1776_v6 = vrot.slane %v1775_v55, 1  ;;  %v9659_v30 = vpop.eup %8618 }
 0x15c   :  { %1081 = vst [vmem:[#allocation1] ss:$9 sm:$0xff] %v714_v10  ;;  %v1778_v35 = vsel %vm1637_vm1, %v1080_v1, 0.0  ;;  %v722_v10 = vrot.slane %v9624_v9, 1  ;;  %v2751_v42 = vmul.f32 %v9659_v30, %v9622_v14 }
 0x15d   :  { %1082 = vst [vmem:[#allocation1 + $0x1] ss:$9 sm:$0xff] %v9576_v17  ;;  %v1779_v46 = vrot.slane %v1778_v35, 4  ;;  %v9645_v1 = vadd.f32 %v1776_v6, %v1775_v55  ;;  %v4081_v55 = vld [vmem:[%s13466_s0 + $0x58] sm:$0xff] }
 0x15e   :  { %1083 = vst [vmem:[#allocation1 + $0x2] ss:$9 sm:$0xff] %v715_v20  ;;  %v9641_v20 = vpop.f32.mrf.mxu2  ;;  %v9675_v37 = vpop.f32.mrf.mxu3 }
 0x15f   :  { %v1780_v47 = vadd.f32 %v1779_v46, %v1778_v35  ;;  %8620 = vrsqrt.f32 %v9645_v1  ;;  %v2728_v35 = vmul.f32 %v9637_v18, %v2727_v11  ;;  %13505 = vst [vmem:[#allocation8_spill] sm:$0xff] %v9675_v37  ;;  %vm2769_vm14 = vcmp.eq.f32.partialorder %v9645_v1, inf }
 0x161   :  { %v1781_v34 = vrot.slane %v1780_v47, 2 }
 0x163   :  { %v1782_v56 = vadd.f32 %v1781_v34, %v1780_v47  ;;  %v2729_v47 = vmul.f32 0.5, %v2728_v35  ;;  %v725_v34 = vrot.slane %v9624_v9, 4 }
 0x165   :  { %v1084_v32 = vld [vmem:[#allocation1] sm:$0xff]  ;;  %v1783_v17 = vrot.slane %v1782_v56, 1  ;;  %v9671_v44 = vpop.eup %8620  ;;  %v2730_v4 = vsub.f32 1.5, %v2729_v47 }
 0x166   :  { %1085 = vst [vmem:[#allocation1] ss:$9 sm:$0xff] %v716_v29  ;;  %v1785_v51 = vsel %vm1637_vm1, %v1084_v32, 0.0  ;;  %v2740_v29 = vmul.f32 %v9629_v16, %v2739_v19 }
 0x167   :  { %1086 = vst [vmem:[#allocation1 + $0x1] ss:$9 sm:$0xff] %v717_v31  ;;  %v1786_v53 = vrot.slane %v1785_v51, 4  ;;  %v9650_v26 = vadd.f32 %v1783_v17, %v1782_v56  ;;  %v4080_v31 = vld [vmem:[%s13466_s0 + $0x50] sm:$0xff]  ;;  %v2731_v19 = vmul.f32 %v9637_v18, %v2730_v4 }
 0x168   :  { %1087 = vst [vmem:[#allocation1 + $0x2] ss:$9 sm:$0xff] %v718_v38  ;;  %8481 = vmatmul.msk.f32.gmra.mxu3 %vm80_vm0, %v4080_v31  ;;  %v2741_v46 = vmul.f32 0.5, %v2740_v29  ;;  %v728_v29 = vrot.slane %v9624_v9, 7 }
 0x169   :  { %v1787_v21 = vadd.f32 %v1786_v53, %v1785_v51  ;;  %8622 = vrsqrt.f32 %v9650_v26  ;;  %v9673_v51 = vpop.f32.mrf.mxu2  ;;  %v724_v53 = vrot.slane %v9624_v9, 3 }
 0x16b   :  { %v1788_v50 = vrot.slane %v1787_v21, 2 }
 0x16d   :  { %v1789_v8 = vadd.f32 %v1788_v50, %v1787_v21  ;;  %v2742_v21 = vsub.f32 1.5, %v2741_v46 }
 0x16f   :  { %v1088_v0 = vld [vmem:[#allocation1] sm:$0xff]  ;;  %v1790_v22 = vrot.slane %v1789_v8, 1  ;;  %v9677_v45 = vpop.eup %8622  ;;  %v2743_v6 = vmul.f32 %v9629_v16, %v2742_v21 }
 0x170   :  { %1089 = vst [vmem:[#allocation1] ss:$9 sm:$0xff] %v719_v41  ;;  %v1792_v15 = vsel %vm1637_vm1, %v1088_v0, 0.0  ;;  %v726_v0 = vrot.slane %v9624_v9, 5  ;;  %8482 = vmatmul.msk.f32.gmra.mxu3 %vm80_vm0, %v4081_v55  ;;  %v2775_v56 = vmul.f32 %v9677_v45, %v9650_v26 }
 0x171   :  { %1090 = vst [vmem:[#allocation1 + $0x1] ss:$9 sm:$0xff] %v720_v63  ;;  %v1793_v39 = vrot.slane %v1792_v15, 4  ;;  %v9667_v38 = vadd.f32 %v1790_v22, %v1789_v8  ;;  %v2752_v63 = vmul.f32 %v9659_v30, %v2751_v42  ;;  %v2744_v16 = vmul.f32 %v2743_v6, %v9609_v52 }
 0x172   :  { %1091 = vst [vmem:[#allocation1 + $0x2] ss:$9 sm:$0xff] %v721_v3  ;;  %v2763_v3 = vmul.f32 %v9671_v44, %v9645_v1 }
 0x173   :  { %v1794_v33 = vadd.f32 %v1793_v39, %v1792_v15  ;;  %8624 = vrsqrt.f32 %v9667_v38  ;;  %v2753_v60 = vmul.f32 0.5, %v2752_v63  ;;  %v9704_v39 = vpop.f32.mrf.mxu3 }
 0x174   :  { %v2764_v8 = vmul.f32 %v9671_v44, %v2763_v3  ;;  %13506 = vst [vmem:[#allocation9_spill] sm:$0xff] %v9704_v39 }
 0x175   :  { %v1795_v2 = vrot.slane %v1794_v33, 2  ;;  %v2754_v22 = vsub.f32 1.5, %v2753_v60 }
 0x176   :  { %v2765_v18 = vmul.f32 0.5, %v2764_v8 }
 0x177   :  { %v1796_v12 = vadd.f32 %v1795_v2, %v1794_v33  ;;  %v727_v33 = vrot.slane %v9624_v9, 6  ;;  %v2746_v2 = vsel %vm2745_vm2, %v9609_v52, %v2744_v16  ;;  %vm2771_vm2 = vcmp.eq.f32.partialorder %v9645_v1, 0.0 }
 0x178   :  { %v2766_v42 = vsub.f32 1.5, %v2765_v18 }
 0x179   :  { %v1092_v23 = vld [vmem:[#allocation1] sm:$0xff]  ;;  %v1797_v50 = vrot.slane %v1796_v12, 1  ;;  %v9695_v17 = vpop.eup %8624 }
 0x17a   :  { %1093 = vst [vmem:[#allocation1] ss:$9 sm:$0xff] %v9624_v9  ;;  %v1799_v24 = vsel %vm1637_vm1, %v1092_v23, 0.0  ;;  %v9702_v23 = vpop.f32.mrf.mxu2  ;;  %v2748_v9 = vand.u32 2147483648, %v9609_v52  ;;  %v2767_v55 = vmul.f32 %v9671_v44, %v2766_v42  ;;  %v45_v52 = vld [vmem:[%s13464_s1 + $0x88] sm:$0xff] }
 0x17b   :  { %1094 = vst [vmem:[#allocation1 + $0x1] ss:$9 sm:$0xff] %v722_v10  ;;  %v1800_v28 = vrot.slane %v1799_v24, 4  ;;  %v272_v10 = vpop.f32.mrf.mxu0  ;;  %v9700_v15 = vadd.f32 %v1797_v50, %v1796_v12  ;;  %v2736_v12 = vand.u32 2147483648, %v9611_v54  ;;  %8376 = vmatmul.msk.f32.gmra.mxu0 %vm80_vm0, %v45_v52  ;;  %8424 = vmatmul.msk.f32.gmra.mxu1 %vm80_vm0, %v45_v52 }
 0x17c   :  { %1095 = vst [vmem:[#allocation1 + $0x2] ss:$9 sm:$0xff] %v723_v43  ;;  %v2776_v43 = vmul.f32 %v9677_v45, %v2775_v56  ;;  %v2768_v18 = vmul.f32 %v2767_v55, %v9645_v1 }
 0x17d   :  { %v1801_v32 = vadd.f32 %v1800_v28, %v1799_v24  ;;  %v2787_v24 = vmul.f32 %v9695_v17, %v9667_v38  ;;  %v9712_v28 = vmul.f32 %v272_v10, %v272_v10  ;;  %8626 = vrsqrt.f32 %v9700_v15 }
 0x17e   :  { %v2777_v35 = vmul.f32 0.5, %v2776_v43 }
 0x17f   :  { %v1802_v40 = vrot.slane %v1801_v32, 2  ;;  %v2788_v46 = vmul.f32 %v9695_v17, %v2787_v24  ;;  %v729_v44 = vrot.slane %v9712_v28, 1  ;;  %v730_v6 = vrot.slane %v9712_v28, 2  ;;  %v4082_v24 = vld [vmem:[%s13466_s0 + $0x60] sm:$0xff] }
 0x180   :  { %v731_v60 = vrot.slane %v9712_v28, 3  ;;  %v732_v8 = vrot.slane %v9712_v28, 4  ;;  %v733_v10 = vrot.slane %v9712_v28, 5  ;;  %8483 = vmatmul.msk.f32.gmra.mxu3 %vm80_vm0, %v4082_v24 }
 0x181   :  { %v1803_v61 = vadd.f32 %v1802_v40, %v1801_v32  ;;  %v2732_v32 = vmul.f32 %v2731_v19, %v9611_v54  ;;  %v2755_v40 = vmul.f32 %v9659_v30, %v2754_v22 }
 0x182   :  { %v4390_v50 = vpop.f32.mrf.mxu2 }
 0x183   :  { %v9682_v41 = vld [vmem:[#allocation1] sm:$0xff]  ;;  %v1804_v57 = vrot.slane %v1803_v61, 1  ;;  %v2734_v47 = vsel %vm2733_vm4, %v9611_v54, %v2732_v32  ;;  %v2756_v30 = vmul.f32 %v2755_v40, %v9622_v14  ;;  %v8627_v21 = vpop.eup %8626  ;;  %v2772_v54 = vand.u32 2147483648, %v9645_v1 }
 0x184   :  { %1097 = vst [vmem:[#allocation1] ss:$9 sm:$0xff] %v724_v53  ;;  %v2778_v53 = vsub.f32 1.5, %v2777_v35  ;;  %v2737_v63 = vsel %vm2735_vm9, %v2736_v12, %v2734_v47  ;;  %v2799_v22 = vmul.f32 %v8627_v21, %v9700_v15  ;;  %vm2781_vm4 = vcmp.eq.f32.partialorder %v9650_v26, inf }
 0x185   :  { %1098 = vst [vmem:[#allocation1 + $0x1] ss:$9 sm:$0xff] %v725_v34  ;;  %v9706_v11 = vadd.f32 %v1804_v57, %v1803_v61  ;;  %v2749_v34 = vsel %vm2747_vm5, %v2748_v9, %v2746_v2  ;;  %v2789_v61 = vmul.f32 0.5, %v2788_v46  ;;  %v4503_v57 = vpop.f32.mrf.mxu3  ;;  %v2758_v43 = vsel %vm2757_vm12, %v9622_v14, %v2756_v30 }
 0x186   :  { %1099 = vst [vmem:[#allocation1 + $0x2] ss:$9 sm:$0xff] %v726_v0  ;;  %v2760_v0 = vand.u32 2147483648, %v9622_v14  ;;  %v2779_v4 = vmul.f32 %v9677_v45, %v2778_v53  ;;  %v4243_v56 = vsel %vm4222_vm8, %v2749_v34, %v2737_v63  ;;  %v9753_v45 = vld [vmem:[%s13468_s4] ss:$0 sm:$0xff]  ;;  %v4504_v32 = vadd.f32 %v4503_v57, %v4390_v50 }
 0x187   :  { %8628 = vrsqrt.f32 %v9706_v11  ;;  %v2790_v16 = vsub.f32 1.5, %v2789_v61  ;;  %v2800_v40 = vmul.f32 %v8627_v21, %v2799_v22  ;;  %vm2783_vm5 = vcmp.eq.f32.partialorder %v9650_v26, 0.0 }
 0x188   :  { %v2780_v35 = vmul.f32 %v2779_v4, %v9650_v26  ;;  %v2761_v46 = vsel %vm2759_vm13, %v2760_v0, %v2758_v43  ;;  %v9774_v42 = vadd.f32 %v9753_v45, %v4504_v32  ;;  %v2784_v47 = vand.u32 2147483648, %v9650_v26 }
 0x189   :  { %v2791_v2 = vmul.f32 %v9695_v17, %v2790_v16  ;;  %vm2793_vm9 = vcmp.eq.f32.partialorder %v9667_v38, inf  ;;  %v2801_v12 = vmul.f32 0.5, %v2800_v40  ;;  %v2770_v17 = vsel %vm2769_vm14, %v9645_v1, %v2768_v18 }
 0x18a   :  { %vm2795_vm12 = vcmp.eq.f32.partialorder %v9667_v38, 0.0  ;;  %v8487_v34 = vmul.f32 -1.442695, %v9774_v42  ;;  %v2782_v30 = vsel %vm2781_vm4, %v9650_v26, %v2780_v35  ;;  %v2796_v61 = vand.u32 2147483648, %v9667_v38 }
 0x18b   :  { %v2792_v53 = vmul.f32 %v2791_v2, %v9667_v38  ;;  %v2802_v63 = vsub.f32 1.5, %v2801_v12  ;;  %v1806_v0 = vsel %vm1637_vm1, %v9682_v41, 0.0  ;;  %v4244_v4 = vsel %vm4224_vm10, %v2761_v46, %v4243_v56  ;;  %v8572_v12 = vpop.permute.xlu1 %8571 }
 0x18c   :  { %8630 = vpow2.f32 %v8487_v34  ;;  %v2773_v50 = vsel %vm2771_vm2, %v2772_v54, %v2770_v17  ;;  %vm2805_vm13 = vcmp.eq.f32.partialorder %v9700_v15, inf  ;;  %vm2807_vm14 = vcmp.eq.f32.partialorder %v9700_v15, 0.0 }
 0x18d   :  { %v9715_v31 = vld [vmem:[#allocation1] sm:$0xff]  ;;  %v8629_v3 = vpop.eup %8628  ;;  %v2794_v55 = vsel %vm2793_vm9, %v9667_v38, %v2792_v53  ;;  %v2803_v57 = vmul.f32 %v8627_v21, %v2802_v63  ;;  %v2785_v41 = vsel %vm2783_vm5, %v2784_v47, %v2782_v30  ;;  %v1807_v56 = vrot.slane %v1806_v0, 4 }
 0x18e   :  { %1101 = vst [vmem:[#allocation1] ss:$9 sm:$0xff] %v727_v33  ;;  %v734_v33 = vrot.slane %v9712_v28, 6  ;;  %v1813_v1 = vsel %vm1637_vm1, %v9715_v31, 0.0  ;;  %v2797_v21 = vsel %vm2795_vm12, %v2796_v61, %v2794_v55  ;;  %v2808_v43 = vand.u32 2147483648, %v9700_v15  ;;  %v275_v31 = vpop.f32.mrf.mxu0 }
 0x18f   :  { %1102 = vst [vmem:[#allocation1 + $0x1] ss:$9 sm:$0xff] %v728_v29  ;;  %v2811_v29 = vmul.f32 %v8629_v3, %v9706_v11  ;;  %vm2817_vm2 = vcmp.eq.f32.partialorder %v9706_v11, inf  ;;  %vm2819_vm4 = vcmp.eq.f32.partialorder %v9706_v11, 0.0  ;;  %v2820_v22 = vand.u32 2147483648, %v9706_v11 }
 0x190   :  { %1103 = vst [vmem:[#allocation1 + $0x2] ss:$9 sm:$0xff] %v9712_v28  ;;  %v1814_v18 = vrot.slane %v1813_v1, 4  ;;  %v735_v34 = vrot.slane %v9712_v28, 7  ;;  %v8574_v61 = vunpack.i.h.bf16 %v8572_v12  ;;  %v8573_v63 = vunpack.i.l.bf16 %v8572_v12 }
 0x191   :  { %v2812_v9 = vmul.f32 %v8629_v3, %v2811_v29 }
 0x192   :  { %5043 = vmatpush.msra.mxu3 %v8573_v63 }
 0x193   :  { %v2813_v14 = vmul.f32 0.5, %v2812_v9  ;;  %v9825_v9 = vmul.f32 %v275_v31, %v275_v31 }
 0x194   :  { %5044 = vmatpush.msra.mxu3 %v8574_v61 }
 0x195   :  { %v2814_v52 = vsub.f32 1.5, %v2813_v14  ;;  %v736_v30 = vrot.slane %v9825_v9, 1 }
 0x197   :  { %v1104_v19 = vld [vmem:[#allocation1] sm:$0xff] }
 0x198   :  { %1105 = vst [vmem:[#allocation1] ss:$9 sm:$0xff] %v729_v44  ;;  %v4083_v44 = vld [vmem:[%s13466_s0 + $0x68] sm:$0xff]  ;;  %v1820_v16 = vsel %vm1637_vm1, %v1104_v19, 0.0 }
 0x199   :  { %1106 = vst [vmem:[#allocation1 + $0x1] ss:$9 sm:$0xff] %v730_v6  ;;  %v2815_v6 = vmul.f32 %v8629_v3, %v2814_v52  ;;  %8484 = vmatmul.msk.f32.gmra.mxu3 %vm80_vm0, %v4083_v44  ;;  %v4245_v3 = vsel %vm4226_vm15, %v2773_v50, %v4244_v4  ;;  %v1821_v46 = vrot.slane %v1820_v16, 4  ;;  %v46_v50 = vld [vmem:[%s13464_s1 + $0x90] sm:$0xff] }
 0x19a   :  { %1107 = vst [vmem:[#allocation1 + $0x2] ss:$9 sm:$0xff] %v731_v60  ;;  %v2804_v60 = vmul.f32 %v2803_v57, %v9700_v15  ;;  %v4246_v24 = vsel %vm4228_vm3, %v2785_v41, %v4245_v3  ;;  %8377 = vmatmul.msk.f32.gmra.mxu0 %vm80_vm0, %v46_v50  ;;  %8425 = vmatmul.msk.f32.gmra.mxu1 %vm80_vm0, %v46_v50  ;;  %v741_v50 = vrot.slane %v9825_v9, 6 }
 0x19b   :  { %v2816_v26 = vmul.f32 %v2815_v6, %v9706_v11  ;;  %v4247_v19 = vsel %vm4230_vm6, %v2797_v21, %v4246_v24  ;;  %v1822_v17 = vadd.f32 %v1821_v46, %v1820_v16  ;;  %v4085_v6 = vld [vmem:[%s13466_s0 + $0x78] sm:$0xff]  ;;  %v737_v16 = vrot.slane %v9825_v9, 2 }
 0x19c   :  { %v2806_v38 = vsel %vm2805_vm13, %v9700_v15, %v2804_v60  ;;  %v4084_v15 = vld [vmem:[%s13466_s0 + $0x70] sm:$0xff]  ;;  %v738_v24 = vrot.slane %v9825_v9, 3 }
 0x19d   :  { %v2809_v29 = vsel %vm2807_vm14, %v2808_v43, %v2806_v38  ;;  %v2818_v32 = vsel %vm2817_vm2, %v9706_v11, %v2816_v26  ;;  %v1815_v11 = vadd.f32 %v1814_v18, %v1813_v1  ;;  %v1823_v57 = vrot.slane %v1822_v17, 2 }
 0x19e   :  { %v2821_v35 = vsel %vm2819_vm4, %v2820_v22, %v2818_v32  ;;  %v4248_v2 = vsel %vm4232_vm7, %v2809_v29, %v4247_v19  ;;  %v8577_v22 = vpop.permute.xlu1 %8576  ;;  %v739_v32 = vrot.slane %v9825_v9, 4 }
 0x19f   :  { %v4249_v47 = vsel %vm4234_vm11, %v2821_v35, %v4248_v2  ;;  %v1816_v55 = vrot.slane %v1815_v11, 2  ;;  %v1824_v43 = vadd.f32 %v1823_v57, %v1822_v17  ;;  %v8578_v18 = vunpack.i.l.bf16 %v8577_v22 }
 0x1a0   :  { %8457 = vmatmul.msk.f32.gmra.mxu2 %vm80_vm0, %v4249_v47  ;;  %v8579_v46 = vunpack.i.h.bf16 %v8577_v22 }
 0x1a1   :  { %v1108_v54 = vld [vmem:[#allocation1] sm:$0xff]  ;;  %8485 = vmatmul.msk.f32.gmra.mxu3 %vm80_vm0, %v4084_v15  ;;  %v1825_v47 = vrot.slane %v1824_v43, 1 }
 0x1a2   :  { %1109 = vst [vmem:[#allocation1] ss:$9 sm:$0xff] %v732_v8  ;;  %v8631_v8 = vpop.eup %8630  ;;  %5045 = vmatpush.msra.mxu3 %v8578_v18 }
 0x1a3   :  { %1110 = vst [vmem:[#allocation1 + $0x1] ss:$9 sm:$0xff] %v733_v10  ;;  %v1808_v10 = vadd.f32 %v1807_v56, %v1806_v0  ;;  %v9823_v40 = vadd.f32 1.0, %v8631_v8  ;;  %v1817_v56 = vadd.f32 %v1816_v55, %v1815_v11  ;;  %v9865_v61 = vadd.f32 %v1825_v47, %v1824_v43 }
 0x1a4   :  { %1111 = vst [vmem:[#allocation1 + $0x2] ss:$9 sm:$0xff] %v734_v33  ;;  %v1827_v33 = vsel %vm1637_vm1, %v1108_v54, 0.0  ;;  %5046 = vmatpush.msra.mxu3 %v8579_v46 }
 0x1a5   :  { %8632 = vrcp.f32 %v9823_v40  ;;  %v1809_v53 = vrot.slane %v1808_v10, 2  ;;  %v1828_v14 = vrot.slane %v1827_v33, 4  ;;  %v4646_v60 = vand.u32 2147483648, %v9823_v40 }
 0x1a6   :  { %v4644_v38 = vand.u32 2147483647, %v9823_v40  ;;  %v1818_v8 = vrot.slane %v1817_v56, 1  ;;  %vm4640_vm9 = vweird.f32 %v9823_v40 }
 0x1a7   :  { %v1810_v52 = vadd.f32 %v1809_v53, %v1808_v10  ;;  %v1829_v44 = vadd.f32 %v1828_v14, %v1827_v33  ;;  %v4647_v2 = vor.u32 1.1754944e-38, %v4646_v60 }
 0x1a8   :  { %vm4645_vm13 = vcmp.eq.f32.partialorder %v4644_v38, 8.507059e+37  ;;  %v9858_v17 = vadd.f32 %v1818_v8, %v1817_v56 }
 0x1a9   :  { %8486 = vmatmul.msk.f32.gmra.mxu3 %vm80_vm0, %v4085_v6  ;;  %v1811_v21 = vrot.slane %v1810_v52, 1  ;;  %v1830_v26 = vrot.slane %v1829_v44, 2 }
 0x1aa   :  { %vm2841_vm4 = vcmp.eq.f32.partialorder %v9858_v17, inf }
 0x1ab   :  { %v1112_v0 = vld [vmem:[#allocation1] sm:$0xff]  ;;  %v8633_v4 = vpop.eup %8632  ;;  %v9855_v10 = vadd.f32 %v1811_v21, %v1810_v52  ;;  %v1831_v33 = vadd.f32 %v1830_v26, %v1829_v44 }
 0x1ac   :  { %1113 = vst [vmem:[#allocation1] ss:$9 sm:$0xff] %v735_v34  ;;  %v4636_v28 = vmul.f32 %v8633_v4, %v9823_v40  ;;  %v1834_v41 = vsel %vm1637_vm1, %v1112_v0, 0.0  ;;  %vm4641_vm5 = vweird.f32 %v8633_v4 }
 0x1ad   :  { %1114 = vst [vmem:[#allocation1 + $0x1] ss:$9 sm:$0xff] %v9825_v9  ;;  %v1835_v1 = vrot.slane %v1834_v41, 4  ;;  %vm4642_vm12 = vmor %vm4640_vm9, %vm4641_vm5  ;;  %v1832_v34 = vrot.slane %v1831_v33, 1  ;;  %8634 = vrsqrt.f32 %v9855_v10  ;;  %vm2829_vm14 = vcmp.eq.f32.partialorder %v9855_v10, inf }
 0x1ae   :  { %1115 = vst [vmem:[#allocation1 + $0x2] ss:$9 sm:$0xff] %v736_v30  ;;  %v4637_v54 = vsub.f32 1.0, %v4636_v28  ;;  %8636 = vrsqrt.f32 %v9858_v17  ;;  %v742_v28 = vrot.slane %v9825_v9, 7  ;;  %vm2831_vm2 = vcmp.eq.f32.partialorder %v9855_v10, 0.0 }
 0x1af   :  { %v1836_v3 = vadd.f32 %v1835_v1, %v1834_v41  ;;  %v9869_v55 = vadd.f32 %v1832_v34, %v1831_v33  ;;  %8638 = vrsqrt.f32 %v9865_v61  ;;  %v278_v41 = vpop.f32.mrf.mxu0  ;;  %vm2843_vm5 = vcmp.eq.f32.partialorder %v9858_v17, 0.0 }
 0x1b0   :  { %v4638_v31 = vmul.f32 %v8633_v4, %v4637_v54  ;;  %v9884_v60 = vmul.f32 %v278_v41, %v278_v41  ;;  %vm2853_vm9 = vcmp.eq.f32.partialorder %v9865_v61, inf }
 0x1b1   :  { %v1837_v29 = vrot.slane %v1836_v3, 2  ;;  %8640 = vrsqrt.f32 %v9869_v55 }
 0x1b2   :  { %v4639_v19 = vadd.f32 %v8633_v4, %v4638_v31  ;;  %v743_v22 = vrot.slane %v9884_v60, 1  ;;  %v744_v8 = vrot.slane %v9884_v60, 2 }
 0x1b3   :  { %v1838_v11 = vadd.f32 %v1837_v29, %v1836_v3  ;;  %v9876_v44 = vpop.eup %8634 }
 0x1b4   :  { %v4643_v15 = vsel %vm4642_vm12, %v8633_v4, %v4639_v19  ;;  %v740_v4 = vrot.slane %v9825_v9, 5  ;;  %v8637_v56 = vpop.eup %8636  ;;  %v47_v9 = vld [vmem:[%s13464_s1 + $0x98] sm:$0xff]  ;;  %v2823_v3 = vmul.f32 %v9876_v44, %v9855_v10  ;;  %vm2855_vm12 = vcmp.eq.f32.partialorder %v9865_v61, 0.0 }
 0x1b5   :  { %v1116_v35 = vld [vmem:[#allocation1] sm:$0xff]  ;;  %v4648_v12 = vsel %vm4645_vm13, %v4647_v2, %v4643_v15  ;;  %v1839_v63 = vrot.slane %v1838_v11, 1  ;;  %v8639_v43 = vpop.eup %8638  ;;  %8378 = vmatmul.msk.f32.gmra.mxu0 %vm80_vm0, %v47_v9  ;;  %8426 = vmatmul.msk.f32.gmra.mxu1 %vm80_vm0, %v47_v9  ;;  %v746_v9 = vrot.slane %v9884_v60, 4  ;;  %vm2865_vm13 = vcmp.eq.f32.partialorder %v9869_v55, inf }
 0x1b6   :  { %1117 = vst [vmem:[#allocation1] ss:$9 sm:$0xff] %v737_v16  ;;  %v1841_v53 = vsel %vm1637_vm1, %v1116_v35, 0.0  ;;  %v9861_v14 = vmul.f32 %v4648_v12, %v9774_v42  ;;  %v2835_v16 = vmul.f32 %v8637_v56, %v9858_v17 }
 0x1b7   :  { %1118 = vst [vmem:[#allocation1 + $0x1] ss:$9 sm:$0xff] %v738_v24  ;;  %v1842_v40 = vrot.slane %v1841_v53, 4  ;;  %v9872_v42 = vadd.f32 %v1839_v63, %v1838_v11  ;;  %v9895_v38 = vpop.eup %8640  ;;  %v2847_v24 = vmul.f32 %v8639_v43, %v9865_v61 }
 0x1b8   :  { %1119 = vst [vmem:[#allocation1 + $0x2] ss:$9 sm:$0xff] %v739_v32  ;;  %8519 = vmatmul.msk.f32.vlgmr.msra.gmra.mxu3 %vm80_vm0, %v9861_v14  ;;  %v2824_v32 = vmul.f32 %v9876_v44, %v2823_v3  ;;  %v2836_v19 = vmul.f32 %v8637_v56, %v2835_v16  ;;  %v2859_v33 = vmul.f32 %v9895_v38, %v9869_v55 }
 0x1b9   :  { %13507 = vst [vmem:[#allocation10_spill] sm:$0xff] %v9861_v14  ;;  %v1843_v30 = vadd.f32 %v1842_v40, %v1841_v53  ;;  %8642 = vrsqrt.f32 %v9872_v42  ;;  %v2848_v11 = vmul.f32 %v8639_v43, %v2847_v24  ;;  %v747_v24 = vrot.slane %v9884_v60, 5 }
 0x1ba   :  { %v2825_v40 = vmul.f32 0.5, %v2824_v32  ;;  %v2837_v34 = vmul.f32 0.5, %v2836_v19 }
 0x1bb   :  { %v1844_v0 = vrot.slane %v1843_v30, 2 }
 0x1bd   :  { %v1845_v52 = vadd.f32 %v1844_v0, %v1843_v30  ;;  %v2860_v0 = vmul.f32 %v9895_v38, %v2859_v33 }
 0x1bf   :  { %v1120_v57 = vld [vmem:[#allocation1] sm:$0xff]  ;;  %v1846_v6 = vrot.slane %v1845_v52, 1  ;;  %v9899_v18 = vpop.eup %8642 }
 0x1c0   :  { %1121 = vst [vmem:[#allocation1] ss:$9 sm:$0xff] %v740_v4  ;;  %v1848_v1 = vsel %vm1637_vm1, %v1120_v57, 0.0  ;;  %v2871_v53 = vmul.f32 %v9899_v18, %v9872_v42  ;;  %v2849_v4 = vmul.f32 0.5, %v2848_v11  ;;  %v2826_v57 = vsub.f32 1.5, %v2825_v40 }
 0x1c1   :  { %1122 = vst [vmem:[#allocation1 + $0x1] ss:$9 sm:$0xff] %v741_v50  ;;  %v9881_v54 = vadd.f32 %v1846_v6, %v1845_v52  ;;  %v1849_v21 = vrot.slane %v1848_v1, 4  ;;  %v2832_v40 = vand.u32 2147483648, %v9855_v10 }
 0x1c2   :  { %1123 = vst [vmem:[#allocation1 + $0x2] ss:$9 sm:$0xff] %v742_v28  ;;  %v2872_v50 = vmul.f32 %v9899_v18, %v2871_v53  ;;  %v2838_v28 = vsub.f32 1.5, %v2837_v34  ;;  %v2850_v16 = vsub.f32 1.5, %v2849_v4  ;;  %v281_v53 = vpop.f32.mrf.mxu0 }
 0x1c3   :  { %v1850_v26 = vadd.f32 %v1849_v21, %v1848_v1  ;;  %8644 = vrsqrt.f32 %v9881_v54  ;;  %v745_v1 = vrot.slane %v9884_v60, 3  ;;  %v2861_v21 = vmul.f32 0.5, %v2860_v0 }
 0x1c5   :  { %v1851_v31 = vrot.slane %v1850_v26, 2 }
 0x1c7   :  { %v1852_v29 = vadd.f32 %v1851_v31, %v1850_v26  ;;  %v2873_v31 = vmul.f32 0.5, %v2872_v50  ;;  %v9942_v50 = vmul.f32 %v281_v53, %v281_v53 }
 0x1c9   :  { %v1124_v35 = vld [vmem:[#allocation1] sm:$0xff]  ;;  %v9903_v2 = vpop.eup %8644  ;;  %v1853_v46 = vrot.slane %v1852_v29, 1  ;;  %v2874_v33 = vsub.f32 1.5, %v2873_v31 }
 0x1ca   :  { %1125 = vst [vmem:[#allocation1] ss:$9 sm:$0xff] %v9884_v60  ;;  %v1855_v47 = vsel %vm1637_vm1, %v1124_v35, 0.0  ;;  %v2883_v30 = vmul.f32 %v9903_v2, %v9881_v54 }
 0x1cb   :  { %1126 = vst [vmem:[#allocation1 + $0x1] ss:$9 sm:$0xff] %v743_v22  ;;  %v1856_v15 = vrot.slane %v1855_v47, 4  ;;  %v9911_v12 = vadd.f32 %v1853_v46, %v1852_v29  ;;  %v2839_v29 = vmul.f32 %v8637_v56, %v2838_v28  ;;  %v2862_v46 = vsub.f32 1.5, %v2861_v21 }
 0x1cc   :  { %1127 = vst [vmem:[#allocation1 + $0x2] ss:$9 sm:$0xff] %v744_v8  ;;  %v2884_v41 = vmul.f32 %v9903_v2, %v2883_v30  ;;  %v2827_v8 = vmul.f32 %v9876_v44, %v2826_v57 }
 0x1cd   :  { %v1857_v63 = vadd.f32 %v1856_v15, %v1855_v47  ;;  %8646 = vrsqrt.f32 %v9911_v12  ;;  %v2851_v47 = vmul.f32 %v8639_v43, %v2850_v16  ;;  %v2840_v44 = vmul.f32 %v2839_v29, %v9858_v17 }
 0x1ce   :  { %v2885_v32 = vmul.f32 0.5, %v2884_v41  ;;  %v2828_v11 = vmul.f32 %v2827_v8, %v9855_v10  ;;  %v2844_v43 = vand.u32 2147483648, %v9858_v17  ;;  %v2863_v30 = vmul.f32 %v9895_v38, %v2862_v46 }
 0x1cf   :  { %v1858_v52 = vrot.slane %v1857_v63, 2  ;;  %v2852_v0 = vmul.f32 %v2851_v47, %v9865_v61  ;;  %v2842_v28 = vsel %vm2841_vm4, %v9858_v17, %v2840_v44  ;;  %v749_v38 = vrot.slane %v9884_v60, 7 }
 0x1d0   :  { %v2886_v56 = vsub.f32 1.5, %v2885_v32  ;;  %v2830_v57 = vsel %vm2829_vm14, %v9855_v10, %v2828_v11  ;;  %vm2867_vm14 = vcmp.eq.f32.partialorder %v9869_v55, 0.0  ;;  %v2868_v8 = vand.u32 2147483648, %v9869_v55  ;;  %v4393_v29 = vpop.f32.mrf.mxu2 }
 0x1d1   :  { %v1859_v6 = vadd.f32 %v1858_v52, %v1857_v63  ;;  %v748_v63 = vrot.slane %v9884_v60, 6  ;;  %v2875_v52 = vmul.f32 %v9899_v18, %v2874_v33  ;;  %v2856_v18 = vand.u32 2147483648, %v9865_v61 }
 0x1d2   :  { %v2887_v41 = vmul.f32 %v9903_v2, %v2886_v56  ;;  %v2833_v60 = vsel %vm2831_vm2, %v2832_v40, %v2830_v57  ;;  %v2845_v2 = vsel %vm2843_vm5, %v2844_v43, %v2842_v28  ;;  %v2854_v16 = vsel %vm2853_vm9, %v9865_v61, %v2852_v0 }
 0x1d3   :  { %v9921_v26 = vld [vmem:[#allocation1] sm:$0xff]  ;;  %v1860_v3 = vrot.slane %v1859_v6, 1  ;;  %v8647_v22 = vpop.eup %8646  ;;  %v2876_v31 = vmul.f32 %v2875_v52, %v9872_v42  ;;  %vm2877_vm2 = vcmp.eq.f32.partialorder %v9872_v42, inf  ;;  %vm2879_vm4 = vcmp.eq.f32.partialorder %v9872_v42, 0.0 }
 0x1d4   :  { %1129 = vst [vmem:[#allocation1] ss:$9 sm:$0xff] %v745_v1  ;;  %v2895_v35 = vmul.f32 %v8647_v22, %v9911_v12  ;;  %v2888_v10 = vmul.f32 %v2887_v41, %v9881_v54  ;;  %v2880_v32 = vand.u32 2147483648, %v9872_v42  ;;  %v2857_v47 = vsel %vm2855_vm12, %v2856_v18, %v2854_v16 }
 0x1d5   :  { %1130 = vst [vmem:[#allocation1 + $0x1] ss:$9 sm:$0xff] %v746_v9  ;;  %v9925_v19 = vadd.f32 %v1860_v3, %v1859_v6  ;;  %v2864_v9 = vmul.f32 %v2863_v30, %v9869_v55  ;;  %v4250_v11 = vsel %vm4222_vm8, %v2845_v2, %v2833_v60  ;;  %v750_v44 = vrot.slane %v9942_v50, 1 }
 0x1d6   :  { %1131 = vst [vmem:[#allocation1 + $0x2] ss:$9 sm:$0xff] %v747_v24  ;;  %v2896_v15 = vmul.f32 %v8647_v22, %v2895_v35  ;;  %v4506_v24 = vpop.f32.mrf.mxu3  ;;  %v2878_v56 = vsel %vm2877_vm2, %v9872_v42, %v2876_v31  ;;  %vm2889_vm5 = vcmp.eq.f32.partialorder %v9881_v54, inf  ;;  %v751_v40 = vrot.slane %v9942_v50, 2 }
 0x1d7   :  { %8648 = vrsqrt.f32 %v9925_v19  ;;  %v4507_v46 = vadd.f32 %v4506_v24, %v4393_v29  ;;  %v2866_v33 = vsel %vm2865_vm13, %v9869_v55, %v2864_v9  ;;  %v2890_v61 = vsel %vm2889_vm5, %v9881_v54, %v2888_v10  ;;  %v8581_v9 = vld [vmem:[%s13469_s6] ss:$0 sm:$0xff] }
 0x1d8   :  { %v2897_v34 = vmul.f32 0.5, %v2896_v15  ;;  %vm2901_vm9 = vcmp.eq.f32.partialorder %v9911_v12, inf  ;;  %v2869_v43 = vsel %vm2867_vm14, %v2868_v8, %v2866_v33  ;;  %v2892_v30 = vand.u32 2147483648, %v9881_v54  ;;  %5028 = vrot.lane.b32.xlu2 %v8581_v9, %s8974_s11 }
 0x1d9   :  { %v9988_v53 = vadd.f32 %v9753_v45, %v4507_v46  ;;  %v2881_v45 = vsel %vm2879_vm4, %v2880_v32, %v2878_v56  ;;  %vm2891_vm12 = vcmp.eq.f32.partialorder %v9881_v54, 0.0  ;;  %v2904_v52 = vand.u32 2147483648, %v9911_v12  ;;  %v284_v46 = vpop.f32.mrf.mxu0 }
 0x1da   :  { %v2898_v4 = vsub.f32 1.5, %v2897_v34  ;;  %v2893_v28 = vsel %vm2891_vm12, %v2892_v30, %v2890_v61  ;;  %vm2903_vm13 = vcmp.eq.f32.partialorder %v9911_v12, 0.0  ;;  %v4251_v55 = vsel %vm4224_vm10, %v2857_v47, %v4250_v11 }
 0x1db   :  { %v8488_v0 = vmul.f32 -1.442695, %v9988_v53  ;;  %v752_v41 = vrot.slane %v9942_v50, 3  ;;  %v4252_v42 = vsel %vm4226_vm15, %v2869_v43, %v4251_v55  ;;  %vm2913_vm14 = vcmp.eq.f32.partialorder %v9925_v19, inf }
 0x1dc   :  { %v2899_v21 = vmul.f32 %v8647_v22, %v2898_v4  ;;  %v48_v22 = vld [vmem:[%s13464_s1 + $0xa0] sm:$0xff]  ;;  %v2916_v54 = vand.u32 2147483648, %v9925_v19  ;;  %vm2915_vm2 = vcmp.eq.f32.partialorder %v9925_v19, 0.0  ;;  %v1862_v31 = vsel %vm1637_vm1, %v9921_v26, 0.0 }
 0x1dd   :  { %v8649_v6 = vpop.eup %8648  ;;  %v9950_v1 = vld [vmem:[#allocation1] sm:$0xff]  ;;  %8379 = vmatmul.msk.f32.gmra.mxu0 %vm80_vm0, %v48_v22  ;;  %8427 = vmatmul.msk.f32.gmra.mxu1 %vm80_vm0, %v48_v22  ;;  %8650 = vpow2.f32 %v8488_v0  ;;  %v753_v24 = vrot.slane %v9942_v50, 4  ;;  %v1863_v8 = vrot.slane %v1862_v31, 4  ;;  %v754_v10 = vrot.slane %v9942_v50, 5 }
 0x1de   :  { %1133 = vst [vmem:[#allocation1] ss:$9 sm:$0xff] %v748_v63  ;;  %v2907_v3 = vmul.f32 %v8649_v6, %v9925_v19  ;;  %v2900_v35 = vmul.f32 %v2899_v21, %v9911_v12  ;;  %v1869_v22 = vsel %vm1637_vm1, %v9950_v1, 0.0  ;;  %v755_v32 = vrot.slane %v9942_v50, 6 }
 0x1df   :  { %1134 = vst [vmem:[#allocation1 + $0x1] ss:$9 sm:$0xff] %v749_v38  ;;  %v1864_v26 = vadd.f32 %v1863_v8, %v1862_v31  ;;  %v10028_v1 = vmul.f32 %v284_v46, %v284_v46  ;;  %v756_v43 = vrot.slane %v9942_v50, 7 }
 0x1e0   :  { %1135 = vst [vmem:[#allocation1 + $0x2] ss:$9 sm:$0xff] %v9942_v50  ;;  %v2908_v17 = vmul.f32 %v8649_v6, %v2907_v3  ;;  %v2902_v63 = vsel %vm2901_vm9, %v9911_v12, %v2900_v35  ;;  %v1870_v35 = vrot.slane %v1869_v22, 4 }
 0x1e1   :  { %v2905_v38 = vsel %vm2903_vm13, %v2904_v52, %v2902_v63  ;;  %v1865_v56 = vrot.slane %v1864_v26, 2  ;;  %v757_v30 = vrot.slane %v10028_v1, 1 }
 0x1e2   :  { %v2909_v15 = vmul.f32 0.5, %v2908_v17 }
 0x1e3   :  { %v8651_v16 = vpop.eup %8650 }
 0x1e4   :  { %v2910_v34 = vsub.f32 1.5, %v2909_v15  ;;  %v1871_v15 = vadd.f32 %v1870_v35, %v1869_v22 }
 0x1e6   :  { %v2911_v4 = vmul.f32 %v8649_v6, %v2910_v34  ;;  %v4253_v6 = vsel %vm4228_vm3, %v2881_v45, %v4252_v42  ;;  %v1872_v0 = vrot.slane %v1871_v15, 2 }
 0x1e7   :  { %v1136_v57 = vld [vmem:[#allocation1] sm:$0xff]  ;;  %v4254_v21 = vsel %vm4230_vm6, %v2893_v28, %v4253_v6  ;;  %v1866_v28 = vadd.f32 %v1865_v56, %v1864_v26 }
 0x1e8   :  { %1137 = vst [vmem:[#allocation1] ss:$9 sm:$0xff] %v750_v44  ;;  %v2912_v18 = vmul.f32 %v2911_v4, %v9925_v19  ;;  %v4255_v60 = vsel %vm4232_vm7, %v2905_v38, %v4254_v21  ;;  %v1876_v29 = vsel %vm1637_vm1, %v1136_v57, 0.0  ;;  %v49_v57 = vld [vmem:[%s13464_s1 + $0xa8] sm:$0xff] }
 0x1e9   :  { %1138 = vst [vmem:[#allocation1 + $0x1] ss:$9 sm:$0xff] %v751_v40  ;;  %v1877_v47 = vrot.slane %v1876_v29, 4  ;;  %8380 = vmatmul.msk.f32.gmra.mxu0 %vm80_vm0, %v49_v57  ;;  %8428 = vmatmul.msk.f32.gmra.mxu1 %vm80_vm0, %v49_v57 }
 0x1ea   :  { %1139 = vst [vmem:[#allocation1 + $0x2] ss:$9 sm:$0xff] %v752_v41  ;;  %v2914_v12 = vsel %vm2913_vm14, %v9925_v19, %v2912_v18  ;;  %v4620_v19 = vadd.f32 1.0, %v8651_v16 }
 0x1eb   :  { %v2917_v3 = vsel %vm2915_vm2, %v2916_v54, %v2914_v12  ;;  %v1878_v40 = vadd.f32 %v1877_v47, %v1876_v29  ;;  %v1873_v54 = vadd.f32 %v1872_v0, %v1871_v15  ;;  %v760_v29 = vrot.slane %v10028_v1, 4 }
 0x1ec   :  { %v4256_v2 = vsel %vm4234_vm11, %v2917_v3, %v4255_v60  ;;  %8652 = vrcp.f32 %v4620_v19  ;;  %v4661_v63 = vand.u32 2147483648, %v4620_v19  ;;  %v4659_v4 = vand.u32 2147483647, %v4620_v19 }
 0x1ed   :  { %8458 = vmatmul.msk.f32.gmra.mxu2 %vm80_vm0, %v4256_v2  ;;  %v1879_v55 = vrot.slane %v1878_v40, 2  ;;  %vm4655_vm5 = vweird.f32 %v4620_v19  ;;  %v1867_v60 = vrot.slane %v1866_v28, 1  ;;  %v1874_v16 = vrot.slane %v1873_v54, 1 }
 0x1ee   :  { %v4662_v42 = vor.u32 1.1754944e-38, %v4661_v63  ;;  %vm4660_vm12 = vcmp.eq.f32.partialorder %v4659_v4, 8.507059e+37  ;;  %v763_v0 = vrot.slane %v10028_v1, 7 }
 0x1ef   :  { %v1880_v9 = vadd.f32 %v1879_v55, %v1878_v40  ;;  %v761_v40 = vrot.slane %v10028_v1, 5 }
 0x1f1   :  { %v1140_v17 = vld [vmem:[#allocation1] sm:$0xff]  ;;  %v1881_v22 = vrot.slane %v1880_v9, 1 }
 0x1f2   :  { %1141 = vst [vmem:[#allocation1] ss:$9 sm:$0xff] %v753_v24  ;;  %v8653_v33 = vpop.eup %8652  ;;  %v1883_v11 = vsel %vm1637_vm1, %v1140_v17, 0.0  ;;  %v759_v24 = vrot.slane %v10028_v1, 3 }
 0x1f3   :  { %1142 = vst [vmem:[#allocation1 + $0x1] ss:$9 sm:$0xff] %v754_v10  ;;  %v4651_v44 = vmul.f32 %v8653_v33, %v4620_v19  ;;  %v1884_v34 = vrot.slane %v1883_v11, 4  ;;  %vm4656_vm4 = vweird.f32 %v8653_v33  ;;  %v758_v19 = vrot.slane %v10028_v1, 2 }
 0x1f4   :  { %1143 = vst [vmem:[#allocation1 + $0x2] ss:$9 sm:$0xff] %v755_v32  ;;  %vm4657_vm9 = vmor %vm4655_vm5, %vm4656_vm4  ;;  %v10048_v10 = vadd.f32 %v1867_v60, %v1866_v28  ;;  %v10054_v26 = vadd.f32 %v1881_v22, %v1880_v9 }
 0x1f5   :  { %v4652_v61 = vsub.f32 1.0, %v4651_v44  ;;  %v1885_v38 = vadd.f32 %v1884_v34, %v1883_v11 }
 0x1f6   :  { %8654 = vrsqrt.f32 %v10048_v10  ;;  %vm2925_vm13 = vcmp.eq.f32.partialorder %v10048_v10, inf  ;;  %vm2927_vm14 = vcmp.eq.f32.partialorder %v10048_v10, 0.0  ;;  %vm2949_vm5 = vcmp.eq.f32.partialorder %v10054_v26, inf }
 0x1f7   :  { %v4653_v52 = vmul.f32 %v8653_v33, %v4652_v61  ;;  %v1886_v2 = vrot.slane %v1885_v38, 2 }
 0x1f9   :  { %v4654_v50 = vadd.f32 %v8653_v33, %v4653_v52  ;;  %v1887_v17 = vadd.f32 %v1886_v2, %v1885_v38 }
 0x1fb   :  { %v1144_v45 = vld [vmem:[#allocation1] sm:$0xff]  ;;  %v4658_v6 = vsel %vm4657_vm9, %v8653_v33, %v4654_v50  ;;  %v1888_v47 = vrot.slane %v1887_v17, 1  ;;  %vm2951_vm9 = vcmp.eq.f32.partialorder %v10054_v26, 0.0 }
 0x1fc   :  { %1145 = vst [vmem:[#allocation1] ss:$9 sm:$0xff] %v756_v43  ;;  %v1890_v41 = vsel %vm1637_vm1, %v1144_v45, 0.0  ;;  %v4663_v21 = vsel %vm4660_vm12, %v4662_v42, %v4658_v6  ;;  %v8655_v34 = vpop.eup %8654  ;;  %v762_v43 = vrot.slane %v10028_v1, 6  ;;  %v287_v45 = vpop.f32.mrf.mxu0 }
 0x1fd   :  { %1146 = vst [vmem:[#allocation1 + $0x1] ss:$9 sm:$0xff] %v10028_v1  ;;  %v1891_v18 = vrot.slane %v1890_v41, 4  ;;  %v10042_v3 = vmul.f32 %v4663_v21, %v9988_v53  ;;  %v10051_v53 = vadd.f32 %v1874_v16, %v1873_v54  ;;  %v10059_v44 = vadd.f32 %v1888_v47, %v1887_v17  ;;  %v50_v1 = vld [vmem:[%s13464_s1 + $0xb0] sm:$0xff] }
 0x1fe   :  { %1147 = vst [vmem:[#allocation1 + $0x2] ss:$9 sm:$0xff] %v757_v30  ;;  %v10072_v50 = vmul.f32 %v287_v45, %v287_v45  ;;  %8381 = vmatmul.msk.f32.gmra.mxu0 %vm80_vm0, %v50_v1  ;;  %8429 = vmatmul.msk.f32.gmra.mxu1 %vm80_vm0, %v50_v1 }
 0x1ff   :  { %v1892_v12 = vadd.f32 %v1891_v18, %v1890_v41  ;;  %13508 = vst [vmem:[#allocation11_spill] sm:$0xff] %v10042_v3  ;;  %8520 = vmatmul.msk.f32.gmra.mxu3 %vm80_vm0, %v10042_v3  ;;  %8656 = vrsqrt.f32 %v10051_v53  ;;  %v2919_v41 = vmul.f32 %v8655_v34, %v10048_v10  ;;  %vm2937_vm2 = vcmp.eq.f32.partialorder %v10051_v53, inf }
 0x200   :  { %8658 = vrsqrt.f32 %v10054_v26  ;;  %v764_v21 = vrot.slane %v10072_v50, 1  ;;  %v765_v2 = vrot.slane %v10072_v50, 2  ;;  %vm2939_vm4 = vcmp.eq.f32.partialorder %v10051_v53, 0.0 }
 0x201   :  { %v1893_v31 = vrot.slane %v1892_v12, 2  ;;  %8660 = vrsqrt.f32 %v10059_v44  ;;  %v2920_v6 = vmul.f32 %v8655_v34, %v2919_v41  ;;  %vm2961_vm12 = vcmp.eq.f32.partialorder %v10059_v44, inf }
 0x203   :  { %v1894_v32 = vadd.f32 %v1893_v31, %v1892_v12  ;;  %v2921_v17 = vmul.f32 0.5, %v2920_v6 }
 0x205   :  { %v1148_v8 = vld [vmem:[#allocation1] sm:$0xff]  ;;  %v1895_v15 = vrot.slane %v1894_v32, 1  ;;  %v8657_v63 = vpop.eup %8656 }
 0x206   :  { %1149 = vst [vmem:[#allocation1] ss:$9 sm:$0xff] %v758_v19  ;;  %v1897_v35 = vsel %vm1637_vm1, %v1148_v8, 0.0  ;;  %v8659_v57 = vpop.eup %8658  ;;  %v2931_v38 = vmul.f32 %v8657_v63, %v10051_v53 }
 0x207   :  { %1150 = vst [vmem:[#allocation1 + $0x1] ss:$9 sm:$0xff] %v759_v24  ;;  %v1898_v46 = vrot.slane %v1897_v35, 4  ;;  %v10062_v61 = vadd.f32 %v1895_v15, %v1894_v32  ;;  %v2943_v42 = vmul.f32 %v8659_v57, %v10054_v26  ;;  %v10082_v12 = vpop.eup %8660 }
 0x208   :  { %1151 = vst [vmem:[#allocation1 + $0x2] ss:$9 sm:$0xff] %v760_v29  ;;  %v2932_v9 = vmul.f32 %v8657_v63, %v2931_v38  ;;  %v2955_v29 = vmul.f32 %v10082_v12, %v10059_v44  ;;  %v767_v38 = vrot.slane %v10072_v50, 4 }
 0x209   :  { %v1899_v33 = vadd.f32 %v1898_v46, %v1897_v35  ;;  %8662 = vrsqrt.f32 %v10062_v61  ;;  %v2944_v19 = vmul.f32 %v8659_v57, %v2943_v42 }
 0x20a   :  { %v2933_v35 = vmul.f32 0.5, %v2932_v9  ;;  %v768_v9 = vrot.slane %v10072_v50, 5 }
 0x20b   :  { %v1900_v11 = vrot.slane %v1899_v33, 2 }
 0x20d   :  { %v1901_v56 = vadd.f32 %v1900_v11, %v1899_v33  ;;  %v2945_v11 = vmul.f32 0.5, %v2944_v19 }
 0x20f   :  { %v1152_v30 = vld [vmem:[#allocation1] sm:$0xff]  ;;  %v1902_v52 = vrot.slane %v1901_v56, 1  ;;  %v10085_v60 = vpop.eup %8662 }
 0x210   :  { %1153 = vst [vmem:[#allocation1] ss:$9 sm:$0xff] %v761_v40  ;;  %v1904_v4 = vsel %vm1637_vm1, %v1152_v30, 0.0  ;;  %v2967_v46 = vmul.f32 %v10085_v60, %v10062_v61  ;;  %v2956_v40 = vmul.f32 %v10082_v12, %v2955_v29  ;;  %v2934_v30 = vsub.f32 1.5, %v2933_v35 }
 0x211   :  { %1154 = vst [vmem:[#allocation1 + $0x1] ss:$9 sm:$0xff] %v762_v43  ;;  %v10068_v28 = vadd.f32 %v1902_v52, %v1901_v56  ;;  %v1905_v55 = vrot.slane %v1904_v4, 4  ;;  %v2922_v56 = vsub.f32 1.5, %v2921_v17 }
 0x212   :  { %1155 = vst [vmem:[#allocation1 + $0x2] ss:$9 sm:$0xff] %v763_v0  ;;  %v2968_v0 = vmul.f32 %v10085_v60, %v2967_v46  ;;  %v2957_v1 = vmul.f32 0.5, %v2956_v40 }
 0x213   :  { %v1906_v18 = vadd.f32 %v1905_v55, %v1904_v4  ;;  %8664 = vrsqrt.f32 %v10068_v28  ;;  %v2946_v4 = vsub.f32 1.5, %v2945_v11  ;;  %v766_v55 = vrot.slane %v10072_v50, 3 }
 0x214   :  { %v2923_v41 = vmul.f32 %v8655_v34, %v2922_v56  ;;  %v2969_v6 = vmul.f32 0.5, %v2968_v0 }
 0x215   :  { %v1907_v54 = vrot.slane %v1906_v18, 2 }
 0x216   :  { %v2924_v34 = vmul.f32 %v2923_v41, %v10048_v10  ;;  %v2970_v17 = vsub.f32 1.5, %v2969_v6  ;;  %v2952_v41 = vand.u32 2147483648, %v10054_v26  ;;  %v4509_v6 = vpop.f32.mrf.mxu3 }
 0x217   :  { %v1908_v16 = vadd.f32 %v1907_v54, %v1906_v18  ;;  %v2935_v54 = vmul.f32 %v8657_v63, %v2934_v30  ;;  %v769_v30 = vrot.slane %v10072_v50, 6 }
 0x218   :  { %v2926_v11 = vsel %vm2925_vm13, %v10048_v10, %v2924_v34  ;;  %v2971_v40 = vmul.f32 %v10085_v60, %v2970_v17  ;;  %vm2963_vm13 = vcmp.eq.f32.partialorder %v10059_v44, 0.0 }
 0x219   :  { %v1156_v31 = vld [vmem:[#allocation1] sm:$0xff]  ;;  %v10088_v22 = vpop.eup %8664  ;;  %v1909_v24 = vrot.slane %v1908_v16, 1 }
 0x21a   :  { %1157 = vst [vmem:[#allocation1] ss:$9 sm:$0xff] %v10072_v50  ;;  %v1911_v8 = vsel %vm1637_vm1, %v1156_v31, 0.0  ;;  %v2979_v33 = vmul.f32 %v10088_v22, %v10068_v28  ;;  %v2947_v31 = vmul.f32 %v8659_v57, %v2946_v4  ;;  %v2928_v57 = vand.u32 2147483648, %v10048_v10  ;;  %v51_v10 = vld [vmem:[%s13464_s1 + $0xb8] sm:$0xff] }
 0x21b   :  { %1158 = vst [vmem:[#allocation1 + $0x1] ss:$9 sm:$0xff] %v764_v21  ;;  %v1912_v32 = vrot.slane %v1911_v8, 4  ;;  %v10096_v47 = vadd.f32 %v1909_v24, %v1908_v16  ;;  %v2958_v24 = vsub.f32 1.5, %v2957_v1  ;;  %v770_v4 = vrot.slane %v10072_v50, 7  ;;  %8382 = vmatmul.msk.f32.gmra.mxu0 %vm80_vm0, %v51_v10  ;;  %8430 = vmatmul.msk.f32.gmra.mxu1 %vm80_vm0, %v51_v10 }
 0x21c   :  { %1159 = vst [vmem:[#allocation1 + $0x2] ss:$9 sm:$0xff] %v765_v2  ;;  %v2980_v45 = vmul.f32 %v10088_v22, %v2979_v33  ;;  %v2948_v35 = vmul.f32 %v2947_v31, %v10054_v26  ;;  %v2940_v33 = vand.u32 2147483648, %v10051_v53  ;;  %v2929_v60 = vsel %vm2927_vm14, %v2928_v57, %v2926_v11 }
 0x21d   :  { %v1913_v15 = vadd.f32 %v1912_v32, %v1911_v8  ;;  %8666 = vrsqrt.f32 %v10096_v47  ;;  %v2936_v8 = vmul.f32 %v2935_v54, %v10051_v53  ;;  %v290_v32 = vpop.f32.mrf.mxu0  ;;  %v2964_v50 = vand.u32 2147483648, %v10059_v44 }
 0x21e   :  { %v2981_v2 = vmul.f32 0.5, %v2980_v45  ;;  %v10128_v0 = vmul.f32 %v290_v32, %v290_v32  ;;  %v2972_v54 = vmul.f32 %v2971_v40, %v10062_v61  ;;  %vm2973_vm14 = vcmp.eq.f32.partialorder %v10062_v61, inf }
 0x21f   :  { %v1914_v43 = vrot.slane %v1913_v15, 2  ;;  %v2938_v56 = vsel %vm2937_vm2, %v10051_v53, %v2936_v8  ;;  %vm2975_vm2 = vcmp.eq.f32.partialorder %v10062_v61, 0.0 }
 0x220   :  { %v2982_v29 = vsub.f32 1.5, %v2981_v2  ;;  %v2974_v17 = vsel %vm2973_vm14, %v10062_v61, %v2972_v54  ;;  %v771_v57 = vrot.slane %v10128_v0, 1  ;;  %v774_v10 = vrot.slane %v10128_v0, 4 }
 0x221   :  { %v1915_v52 = vadd.f32 %v1914_v43, %v1913_v15  ;;  %v2959_v15 = vmul.f32 %v10082_v12, %v2958_v24  ;;  %v2950_v12 = vsel %vm2949_vm5, %v10054_v26, %v2948_v35  ;;  %v2976_v24 = vand.u32 2147483648, %v10062_v61 }
 0x222   :  { %v2983_v45 = vmul.f32 %v10088_v22, %v2982_v29  ;;  %v2953_v53 = vsel %vm2951_vm9, %v2952_v41, %v2950_v12  ;;  %v10170_v29 = vld [vmem:[%s13468_s4] ss:$0 sm:$0xff]  ;;  %vm2997_vm5 = vcmp.eq.f32.partialorder %v10096_v47, inf  ;;  %vm2987_vm9 = vcmp.eq.f32.partialorder %v10068_v28, 0.0 }
 0x223   :  { %v10106_v18 = vld [vmem:[#allocation1] sm:$0xff]  ;;  %v1916_v42 = vrot.slane %v1915_v52, 1  ;;  %v8667_v21 = vpop.eup %8666  ;;  %v4396_v2 = vpop.f32.mrf.mxu2  ;;  %v2977_v40 = vsel %vm2975_vm2, %v2976_v24, %v2974_v17 }
 0x224   :  { %1161 = vst [vmem:[#allocation1] ss:$9 sm:$0xff] %v766_v55  ;;  %v2991_v19 = vmul.f32 %v8667_v21, %v10096_v47  ;;  %v4510_v34 = vadd.f32 %v4509_v6, %v4396_v2  ;;  %v775_v6 = vrot.slane %v10128_v0, 5 }
 0x225   :  { %1162 = vst [vmem:[#allocation1 + $0x1] ss:$9 sm:$0xff] %v767_v38  ;;  %v10109_v16 = vadd.f32 %v1916_v42, %v1915_v52  ;;  %v2941_v38 = vsel %vm2939_vm4, %v2940_v33, %v2938_v56  ;;  %v2960_v42 = vmul.f32 %v2959_v15, %v10059_v44  ;;  %vm2985_vm4 = vcmp.eq.f32.partialorder %v10068_v28, inf }
 0x226   :  { %1163 = vst [vmem:[#allocation1 + $0x2] ss:$9 sm:$0xff] %v768_v9  ;;  %v2992_v63 = vmul.f32 %v8667_v21, %v2991_v19  ;;  %v4257_v19 = vsel %vm4222_vm8, %v2941_v38, %v2929_v60  ;;  %v10173_v32 = vadd.f32 %v10170_v29, %v4510_v34  ;;  %v2988_v15 = vand.u32 2147483648, %v10068_v28 }
 0x227   :  { %8668 = vrsqrt.f32 %v10109_v16  ;;  %v2962_v26 = vsel %vm2961_vm12, %v10059_v44, %v2960_v42  ;;  %vm2999_vm12 = vcmp.eq.f32.partialorder %v10096_v47, 0.0  ;;  %v773_v44 = vrot.slane %v10128_v0, 3 }
 0x228   :  { %v2993_v46 = vmul.f32 0.5, %v2992_v63  ;;  %v4258_v63 = vsel %vm4224_vm10, %v2953_v53, %v4257_v19  ;;  %v2965_v33 = vsel %vm2963_vm13, %v2964_v50, %v2962_v26  ;;  %v8489_v56 = vmul.f32 -1.442695, %v10173_v32 }
 0x229   :  { %v4259_v61 = vsel %vm4226_vm15, %v2965_v33, %v4258_v63  ;;  %vm3009_vm13 = vcmp.eq.f32.partialorder %v10109_v16, inf  ;;  %vm3011_vm14 = vcmp.eq.f32.partialorder %v10109_v16, 0.0  ;;  %v1918_v34 = vsel %vm1637_vm1, %v10106_v18, 0.0  ;;  %v52_v33 = vld [vmem:[%s13464_s1 + $0xc0] sm:$0xff] }
 0x22a   :  { %v2994_v43 = vsub.f32 1.5, %v2993_v46  ;;  %8670 = vpow2.f32 %v8489_v56  ;;  %v777_v26 = vrot.slane %v10128_v0, 7  ;;  %v1919_v18 = vrot.slane %v1918_v34, 4  ;;  %8383 = vmatmul.msk.f32.gmra.mxu0 %vm80_vm0, %v52_v33 }
 0x22c   :  { %v2995_v1 = vmul.f32 %v8667_v21, %v2994_v43  ;;  %v2984_v21 = vmul.f32 %v2983_v45, %v10068_v28  ;;  %v3000_v43 = vand.u32 2147483648, %v10096_v47  ;;  %v772_v45 = vrot.slane %v10128_v0, 2 }
 0x22d   :  { %v8669_v52 = vpop.eup %8668  ;;  %v10133_v55 = vld [vmem:[#allocation1] sm:$0xff] }
 0x22e   :  { %1165 = vst [vmem:[#allocation1] ss:$9 sm:$0xff] %v769_v30  ;;  %v3003_v22 = vmul.f32 %v8669_v52, %v10109_v16  ;;  %v2996_v31 = vmul.f32 %v2995_v1, %v10096_v47  ;;  %v2986_v35 = vsel %vm2985_vm4, %v10068_v28, %v2984_v21  ;;  %v3012_v28 = vand.u32 2147483648, %v10109_v16 }
 0x22f   :  { %1166 = vst [vmem:[#allocation1 + $0x1] ss:$9 sm:$0xff] %v770_v4  ;;  %v2989_v12 = vsel %vm2987_vm9, %v2988_v15, %v2986_v35  ;;  %v776_v21 = vrot.slane %v10128_v0, 6  ;;  %v1925_v17 = vsel %vm1637_vm1, %v10133_v55, 0.0 }
 0x230   :  { %1167 = vst [vmem:[#allocation1 + $0x2] ss:$9 sm:$0xff] %v10128_v0  ;;  %v3004_v9 = vmul.f32 %v8669_v52, %v3003_v22  ;;  %v2998_v11 = vsel %vm2997_vm5, %v10096_v47, %v2996_v31  ;;  %v8671_v50 = vpop.eup %8670  ;;  %v1926_v15 = vrot.slane %v1925_v17, 4 }
 0x231   :  { %v3001_v41 = vsel %vm2999_vm12, %v3000_v43, %v2998_v11  ;;  %v4621_v54 = vadd.f32 1.0, %v8671_v50 }
 0x232   :  { %v3005_v8 = vmul.f32 0.5, %v3004_v9 }
 0x233   :  { %8672 = vrcp.f32 %v4621_v54  ;;  %v4674_v35 = vand.u32 2147483647, %v4621_v54  ;;  %vm4670_vm4 = vweird.f32 %v4621_v54 }
 0x234   :  { %v3006_v46 = vsub.f32 1.5, %v3005_v8  ;;  %v4676_v8 = vand.u32 2147483648, %v4621_v54 }
 0x235   :  { %vm4675_vm9 = vcmp.eq.f32.partialorder %v4674_v35, 8.507059e+37 }
 0x236   :  { %v3007_v30 = vmul.f32 %v8669_v52, %v3006_v46  ;;  %v4260_v52 = vsel %vm4228_vm3, %v2977_v40, %v4259_v61  ;;  %v4677_v55 = vor.u32 1.1754944e-38, %v4676_v8  ;;  %v10218_v40 = vpop.f32.mrf.mxu1  ;;  %8431 = vmatmul.msk.f32.gmra.mxu1 %vm80_vm0, %v52_v33 }
 0x237   :  { %v1168_v4 = vld [vmem:[#allocation1] sm:$0xff]  ;;  %v4261_v47 = vsel %vm4230_vm6, %v2989_v12, %v4260_v52  ;;  %v1927_v12 = vadd.f32 %v1926_v15, %v1925_v17  ;;  %v53_v15 = vld [vmem:[%s13464_s1 + $0xc8] sm:$0xff] }
 0x238   :  { %1169 = vst [vmem:[#allocation1] ss:$9 sm:$0xff] %v771_v57  ;;  %v3008_v1 = vmul.f32 %v3007_v30, %v10109_v16  ;;  %v4262_v42 = vsel %vm4232_vm7, %v3001_v41, %v4261_v47  ;;  %v1932_v46 = vsel %vm1637_vm1, %v1168_v4, 0.0  ;;  %v1920_v30 = vadd.f32 %v1919_v18, %v1918_v34  ;;  %8384 = vmatmul.msk.f32.gmra.mxu0 %vm80_vm0, %v53_v15 }
 0x239   :  { %1170 = vst [vmem:[#allocation1 + $0x1] ss:$9 sm:$0xff] %v772_v45  ;;  %v8673_v9 = vpop.eup %8672  ;;  %v1933_v11 = vrot.slane %v1932_v46, 4  ;;  %v1928_v47 = vrot.slane %v1927_v12, 2 }
 0x23a   :  { %1171 = vst [vmem:[#allocation1 + $0x2] ss:$9 sm:$0xff] %v773_v44  ;;  %v3010_v60 = vsel %vm3009_vm13, %v10109_v16, %v3008_v1  ;;  %v293_v16 = vpop.f32.mrf.mxu0  ;;  %v4666_v31 = vmul.f32 %v8673_v9, %v4621_v54  ;;  %vm4671_vm2 = vweird.f32 %v8673_v9 }
 0x23b   :  { %v3013_v38 = vsel %vm3011_vm14, %v3012_v28, %v3010_v60  ;;  %v10204_v2 = vmul.f32 %v293_v16, %v293_v16  ;;  %vm4672_vm5 = vmor %vm4670_vm4, %vm4671_vm2  ;;  %v1934_v44 = vadd.f32 %v1933_v11, %v1932_v46  ;;  %v1921_v28 = vrot.slane %v1920_v30, 2 }
 0x23c   :  { %v4263_v22 = vsel %vm4234_vm11, %v3013_v38, %v4262_v42  ;;  %v4667_v19 = vsub.f32 1.0, %v4666_v31  ;;  %v1929_v54 = vadd.f32 %v1928_v47, %v1927_v12 }
 0x23d   :  { %8459 = vmatmul.msk.f32.gmra.mxu2 %vm80_vm0, %v4263_v22  ;;  %v778_v24 = vrot.slane %v10204_v2, 1  ;;  %v779_v61 = vrot.slane %v10204_v2, 2  ;;  %v780_v52 = vrot.slane %v10204_v2, 3  ;;  %v781_v42 = vrot.slane %v10204_v2, 4 }
 0x23e   :  { %v4668_v57 = vmul.f32 %v8673_v9, %v4667_v19  ;;  %v1922_v50 = vadd.f32 %v1921_v28, %v1920_v30  ;;  %v782_v19 = vrot.slane %v10204_v2, 5 }
 0x240   :  { %v4669_v0 = vadd.f32 %v8673_v9, %v4668_v57 }
 0x241   :  { %v1172_v53 = vld [vmem:[#allocation1] sm:$0xff] }
 0x242   :  { %1173 = vst [vmem:[#allocation1] ss:$9 sm:$0xff] %v774_v10  ;;  %v4673_v56 = vsel %vm4672_vm5, %v8673_v9, %v4669_v0  ;;  %v1939_v45 = vsel %vm1637_vm1, %v1172_v53, 0.0  ;;  %v1930_v9 = vrot.slane %v1929_v54, 1  ;;  %v296_v57 = vpop.f32.mrf.mxu0 }
 0x243   :  { %1174 = vst [vmem:[#allocation1 + $0x1] ss:$9 sm:$0xff] %v775_v6  ;;  %v4678_v43 = vsel %vm4675_vm9, %v4677_v55, %v4673_v56  ;;  %v1940_v1 = vrot.slane %v1939_v45, 4  ;;  %v10241_v0 = vmul.f32 %v296_v57, %v296_v57 }
 0x244   :  { %1175 = vst [vmem:[#allocation1 + $0x2] ss:$9 sm:$0xff] %v776_v21  ;;  %v10223_v4 = vmul.f32 %v4678_v43, %v10173_v32  ;;  %v1935_v32 = vrot.slane %v1934_v44, 2  ;;  %v1923_v21 = vrot.slane %v1922_v50, 1  ;;  %v10237_v46 = vadd.f32 %v1930_v9, %v1929_v54 }
 0x245   :  { %v1941_v22 = vadd.f32 %v1940_v1, %v1939_v45  ;;  %v785_v43 = vrot.slane %v10241_v0, 1  ;;  %v786_v12 = vrot.slane %v10241_v0, 2 }
 0x246   :  { %13509 = vst [vmem:[#allocation12_spill] sm:$0xff] %v10223_v4  ;;  %8521 = vmatmul.msk.f32.gmra.mxu3 %vm80_vm0, %v10223_v4  ;;  %v1936_v6 = vadd.f32 %v1935_v32, %v1934_v44  ;;  %v10235_v35 = vadd.f32 %v1923_v21, %v1922_v50  ;;  %v788_v50 = vrot.slane %v10241_v0, 4  ;;  %vm3033_vm14 = vcmp.eq.f32.partialorder %v10237_v46, inf }
 0x247   :  { %v1942_v53 = vrot.slane %v1941_v22, 2  ;;  %vm3035_vm2 = vcmp.eq.f32.partialorder %v10237_v46, 0.0 }
 0x248   :  { %v1937_v34 = vrot.slane %v1936_v6, 1  ;;  %8674 = vrsqrt.f32 %v10235_v35  ;;  %vm3021_vm12 = vcmp.eq.f32.partialorder %v10235_v35, inf  ;;  %vm3023_vm13 = vcmp.eq.f32.partialorder %v10235_v35, 0.0 }
 0x249   :  { %v1943_v8 = vadd.f32 %v1942_v53, %v1941_v22  ;;  %8676 = vrsqrt.f32 %v10237_v46  ;;  %v787_v22 = vrot.slane %v10241_v0, 3 }
 0x24a   :  { %v10239_v18 = vadd.f32 %v1937_v34, %v1936_v6 }
 0x24b   :  { %v1176_v63 = vld [vmem:[#allocation1] sm:$0xff]  ;;  %v1944_v55 = vrot.slane %v1943_v8, 1 }
 0x24c   :  { %1177 = vst [vmem:[#allocation1] ss:$9 sm:$0xff] %v777_v26  ;;  %v1946_v41 = vsel %vm1637_vm1, %v1176_v63, 0.0  ;;  %v783_v26 = vrot.slane %v10204_v2, 6  ;;  %v784_v63 = vrot.slane %v10204_v2, 7  ;;  %8678 = vrsqrt.f32 %v10239_v18 }
 0x24d   :  { %1178 = vst [vmem:[#allocation1 + $0x1] ss:$9 sm:$0xff] %v10204_v2  ;;  %v1947_v38 = vrot.slane %v1946_v41, 4  ;;  %v10246_v2 = vpop.f32.mrf.mxu1  ;;  %8432 = vmatmul.msk.f32.gmra.mxu1 %vm80_vm0, %v53_v15  ;;  %v10254_v30 = vadd.f32 %v1944_v55, %v1943_v8  ;;  %vm3045_vm4 = vcmp.eq.f32.partialorder %v10239_v18, inf  ;;  %vm3047_vm5 = vcmp.eq.f32.partialorder %v10239_v18, 0.0 }
 0x24e   :  { %1179 = vst [vmem:[#allocation1 + $0x2] ss:$9 sm:$0xff] %v778_v24  ;;  %v10259_v1 = vpop.eup %8674 }
 0x24f   :  { %v1948_v10 = vadd.f32 %v1947_v38, %v1946_v41  ;;  %8680 = vrsqrt.f32 %v10254_v30  ;;  %vm3057_vm9 = vcmp.eq.f32.partialorder %v10254_v30, inf }
 0x251   :  { %v1949_v31 = vrot.slane %v1948_v10, 2 }
 0x253   :  { %v1950_v33 = vadd.f32 %v1949_v31, %v1948_v10 }
 0x255   :  { %v1180_v60 = vld [vmem:[#allocation1] sm:$0xff]  ;;  %v1951_v56 = vrot.slane %v1950_v33, 1 }
 0x256   :  { %1181 = vst [vmem:[#allocation1] ss:$9 sm:$0xff] %v779_v61  ;;  %v1953_v16 = vsel %vm1637_vm1, %v1180_v60, 0.0  ;;  %v8677_v61 = vpop.eup %8676  ;;  %v3015_v60 = vmul.f32 %v10259_v1, %v10235_v35 }
 0x257   :  { %1182 = vst [vmem:[#allocation1 + $0x1] ss:$9 sm:$0xff] %v780_v52  ;;  %v1954_v17 = vrot.slane %v1953_v16, 4  ;;  %v10257_v41 = vadd.f32 %v1951_v56, %v1950_v33  ;;  %v8679_v52 = vpop.eup %8678  ;;  %v3027_v47 = vmul.f32 %v8677_v61, %v10237_v46 }
 0x258   :  { %1183 = vst [vmem:[#allocation1 + $0x2] ss:$9 sm:$0xff] %v781_v42  ;;  %v3039_v42 = vmul.f32 %v8679_v52, %v10239_v18  ;;  %v10268_v32 = vpop.eup %8680  ;;  %v3016_v54 = vmul.f32 %v10259_v1, %v3015_v60 }
 0x259   :  { %v1955_v11 = vadd.f32 %v1954_v17, %v1953_v16  ;;  %8682 = vrsqrt.f32 %v10257_v41  ;;  %v3028_v10 = vmul.f32 %v8677_v61, %v3027_v47  ;;  %v3051_v8 = vmul.f32 %v10268_v32, %v10254_v30 }
 0x25a   :  { %v3040_v31 = vmul.f32 %v8679_v52, %v3039_v42  ;;  %v3017_v33 = vmul.f32 0.5, %v3016_v54 }
 0x25b   :  { %v1956_v45 = vrot.slane %v1955_v11, 2  ;;  %v3029_v57 = vmul.f32 0.5, %v3028_v10  ;;  %v3052_v56 = vmul.f32 %v10268_v32, %v3051_v8  ;;  %v791_v10 = vrot.slane %v10241_v0, 7 }
 0x25c   :  { %v3041_v15 = vmul.f32 0.5, %v3040_v31  ;;  %v3018_v47 = vsub.f32 1.5, %v3017_v33  ;;  %v4512_v33 = vpop.f32.mrf.mxu3 }
 0x25d   :  { %v1957_v28 = vadd.f32 %v1956_v45, %v1955_v11  ;;  %v3030_v45 = vsub.f32 1.5, %v3029_v57 }
 0x25f   :  { %v1184_v24 = vld [vmem:[#allocation1] sm:$0xff]  ;;  %v1958_v38 = vrot.slane %v1957_v28, 1  ;;  %v10273_v6 = vpop.eup %8682 }
 0x260   :  { %1185 = vst [vmem:[#allocation1] ss:$9 sm:$0xff] %v782_v19  ;;  %v1960_v16 = vsel %vm1637_vm1, %v1184_v24, 0.0  ;;  %v789_v19 = vrot.slane %v10241_v0, 5  ;;  %v3063_v24 = vmul.f32 %v10273_v6, %v10257_v41 }
 0x261   :  { %1186 = vst [vmem:[#allocation1 + $0x1] ss:$9 sm:$0xff] %v783_v26  ;;  %v10277_v21 = vadd.f32 %v1958_v38, %v1957_v28  ;;  %v1961_v34 = vrot.slane %v1960_v16, 4  ;;  %v790_v28 = vrot.slane %v10241_v0, 6  ;;  %v3042_v38 = vsub.f32 1.5, %v3041_v15  ;;  %v10306_v15 = vpop.f32.mrf.mxu1 }
 0x262   :  { %1187 = vst [vmem:[#allocation1 + $0x2] ss:$9 sm:$0xff] %v784_v63 }
 0x263   :  { %8684 = vrsqrt.f32 %v10277_v21  ;;  %v1962_v17 = vadd.f32 %v1961_v34, %v1960_v16  ;;  %v3043_v57 = vmul.f32 %v8679_v52, %v3042_v38 }
 0x265   :  { %v1963_v55 = vrot.slane %v1962_v17, 2 }
 0x267   :  { %v1964_v60 = vadd.f32 %v1963_v55, %v1962_v17  ;;  %v3019_v17 = vmul.f32 %v10259_v1, %v3018_v47 }
 0x269   :  { %v1188_v44 = vld [vmem:[#allocation1] sm:$0xff] }
 0x26a   :  { %1189 = vst [vmem:[#allocation1] ss:$9 sm:$0xff] %v10241_v0  ;;  %v1967_v9 = vsel %vm1637_vm1, %v1188_v44, 0.0  ;;  %v8685_v44 = vpop.eup %8684 }
 0x26b   :  { %1190 = vst [vmem:[#allocation1 + $0x1] ss:$9 sm:$0xff] %v785_v43  ;;  %v1968_v26 = vrot.slane %v1967_v9, 4  ;;  %v299_v43 = vpop.f32.mrf.mxu0  ;;  %v3075_v54 = vmul.f32 %v8685_v44, %v10277_v21 }
 0x26c   :  { %1191 = vst [vmem:[#allocation1 + $0x2] ss:$9 sm:$0xff] %v786_v12  ;;  %v3064_v12 = vmul.f32 %v10273_v6, %v3063_v24  ;;  %v10290_v42 = vmul.f32 %v299_v43, %v299_v43 }
 0x26d   :  { %v1969_v63 = vadd.f32 %v1968_v26, %v1967_v9  ;;  %v1965_v9 = vrot.slane %v1964_v60, 1  ;;  %v3076_v26 = vmul.f32 %v8685_v44, %v3075_v54 }
 0x26e   :  { %v3065_v34 = vmul.f32 0.5, %v3064_v12  ;;  %v3044_v12 = vmul.f32 %v3043_v57, %v10239_v18  ;;  %v792_v38 = vrot.slane %v10290_v42, 1 }
 0x26f   :  { %v1970_v11 = vrot.slane %v1969_v63, 2  ;;  %v10296_v8 = vadd.f32 %v1965_v9, %v1964_v60  ;;  %v3077_v0 = vmul.f32 0.5, %v3076_v26  ;;  %v3036_v60 = vand.u32 2147483648, %v10237_v46 }
 0x270   :  { %v3066_v55 = vsub.f32 1.5, %v3065_v34  ;;  %v4399_v52 = vpop.f32.mrf.mxu2  ;;  %v794_v26 = vrot.slane %v10290_v42, 3 }
 0x271   :  { %8686 = vrsqrt.f32 %v10296_v8  ;;  %v4513_v43 = vadd.f32 %v4512_v33, %v4399_v52 }
 0x273   :  { %v10275_v53 = vld [vmem:[#allocation1] sm:$0xff]  ;;  %v10323_v47 = vadd.f32 %v10170_v29, %v4513_v43 }
 0x274   :  { %1193 = vst [vmem:[#allocation1] ss:$9 sm:$0xff] %v787_v22  ;;  %v1971_v22 = vadd.f32 %v1970_v11, %v1969_v63  ;;  %v3020_v11 = vmul.f32 %v3019_v17, %v10235_v35  ;;  %v3046_v17 = vsel %vm3045_vm4, %v10239_v18, %v3044_v12  ;;  %vm3083_vm4 = vcmp.eq.f32.partialorder %v10277_v21, 0.0 }
 0x275   :  { %1194 = vst [vmem:[#allocation1 + $0x1] ss:$9 sm:$0xff] %v788_v50  ;;  %v3053_v50 = vmul.f32 0.5, %v3052_v56  ;;  %v3078_v56 = vsub.f32 1.5, %v3077_v0  ;;  %v3048_v0 = vand.u32 2147483648, %v10239_v18 }
 0x276   :  { %1195 = vst [vmem:[#allocation1 + $0x2] ss:$9 sm:$0xff] %v789_v19  ;;  %v1972_v31 = vrot.slane %v1971_v22, 1  ;;  %v3031_v19 = vmul.f32 %v8677_v61, %v3030_v45  ;;  %v54_v61 = vld [vmem:[%s13464_s1 + $0xd0] sm:$0xff]  ;;  %v3024_v45 = vand.u32 2147483648, %v10235_v35  ;;  %v3022_v9 = vsel %vm3021_vm12, %v10235_v35, %v3020_v11 }
 0x277   :  { %v3054_v24 = vsub.f32 1.5, %v3053_v50  ;;  %8385 = vmatmul.msk.f32.gmra.mxu0 %vm80_vm0, %v54_v61  ;;  %8433 = vmatmul.msk.f32.gmra.mxu1 %vm80_vm0, %v54_v61  ;;  %v3067_v50 = vmul.f32 %v10273_v6, %v3066_v55  ;;  %v8687_v54 = vpop.eup %8686  ;;  %v3049_v55 = vsel %vm3047_vm5, %v3048_v0, %v3046_v17  ;;  %vm3059_vm12 = vcmp.eq.f32.partialorder %v10254_v30, 0.0 }
 0x278   :  { %v10300_v63 = vadd.f32 %v1972_v31, %v1971_v22  ;;  %v3032_v1 = vmul.f32 %v3031_v19, %v10237_v46  ;;  %v3079_v31 = vmul.f32 %v8685_v44, %v3078_v56  ;;  %v8490_v19 = vmul.f32 -1.442695, %v10323_v47 }
 0x279   :  { %v3087_v57 = vmul.f32 %v8687_v54, %v10296_v8  ;;  %v3025_v33 = vsel %vm3023_vm13, %v3024_v45, %v3022_v9  ;;  %v3068_v61 = vmul.f32 %v3067_v50, %v10257_v41  ;;  %v3060_v56 = vand.u32 2147483648, %v10254_v30 }
 0x27a   :  { %8688 = vrsqrt.f32 %v10300_v63  ;;  %v3034_v22 = vsel %vm3033_vm14, %v10237_v46, %v3032_v1  ;;  %v3080_v46 = vmul.f32 %v3079_v31, %v10277_v21  ;;  %vm3069_vm13 = vcmp.eq.f32.partialorder %v10257_v41, inf }
 0x27b   :  { %8690 = vpow2.f32 %v8490_v19  ;;  %v3088_v1 = vmul.f32 %v8687_v54, %v3087_v57  ;;  %vm3071_vm14 = vcmp.eq.f32.partialorder %v10257_v41, 0.0  ;;  %v3072_v45 = vand.u32 2147483648, %v10257_v41 }
 0x27c   :  { %v3070_v12 = vsel %vm3069_vm13, %v10257_v41, %v3068_v61  ;;  %v796_v31 = vrot.slane %v10290_v42, 5  ;;  %v3084_v19 = vand.u32 2147483648, %v10277_v21  ;;  %v302_v61 = vpop.f32.mrf.mxu0  ;;  %vm3093_vm5 = vcmp.eq.f32.partialorder %v10296_v8, inf }
 0x27d   :  { %v10294_v16 = vld [vmem:[#allocation1] sm:$0xff]  ;;  %v3089_v43 = vmul.f32 0.5, %v3088_v1  ;;  %vm3107_vm13 = vcmp.eq.f32.partialorder %v10300_v63, 0.0 }
 0x27e   :  { %1197 = vst [vmem:[#allocation1] ss:$9 sm:$0xff] %v790_v28  ;;  %v3055_v28 = vmul.f32 %v10268_v32, %v3054_v24  ;;  %v793_v32 = vrot.slane %v10290_v42, 2  ;;  %v3037_v24 = vsel %vm3035_vm2, %v3036_v60, %v3034_v22  ;;  %vm3081_vm2 = vcmp.eq.f32.partialorder %v10277_v21, inf }
 0x27f   :  { %1198 = vst [vmem:[#allocation1 + $0x1] ss:$9 sm:$0xff] %v791_v10  ;;  %v4264_v35 = vsel %vm4222_vm8, %v3037_v24, %v3025_v33  ;;  %v795_v22 = vrot.slane %v10290_v42, 4  ;;  %v3073_v24 = vsel %vm3071_vm14, %v3072_v45, %v3070_v12  ;;  %v798_v12 = vrot.slane %v10290_v42, 7 }
 0x280   :  { %1199 = vst [vmem:[#allocation1 + $0x2] ss:$9 sm:$0xff] %v10290_v42  ;;  %v8689_v34 = vpop.eup %8688  ;;  %v3056_v6 = vmul.f32 %v3055_v28, %v10254_v30  ;;  %v3090_v28 = vsub.f32 1.5, %v3089_v43  ;;  %v4265_v60 = vsel %vm4224_vm10, %v3049_v55, %v4264_v35 }
 0x281   :  { %v3099_v44 = vmul.f32 %v8689_v34, %v10300_v63 }
 0x282   :  { %v3058_v11 = vsel %vm3057_vm9, %v10254_v30, %v3056_v6  ;;  %v797_v6 = vrot.slane %v10290_v42, 6  ;;  %vm3095_vm9 = vcmp.eq.f32.partialorder %v10296_v8, 0.0 }
 0x283   :  { %v3100_v52 = vmul.f32 %v8689_v34, %v3099_v44  ;;  %v3061_v50 = vsel %vm3059_vm12, %v3060_v56, %v3058_v11  ;;  %vm3105_vm12 = vcmp.eq.f32.partialorder %v10300_v63, inf  ;;  %v10384_v11 = vmul.f32 %v302_v61, %v302_v61 }
 0x284   :  { %v4266_v33 = vsel %vm4226_vm15, %v3061_v50, %v4265_v60 }
 0x285   :  { %v3101_v18 = vmul.f32 0.5, %v3100_v52  ;;  %v4267_v1 = vsel %vm4228_vm3, %v3073_v24, %v4266_v33 }
 0x287   :  { %v10330_v10 = vld [vmem:[#allocation1] sm:$0xff]  ;;  %v3102_v9 = vsub.f32 1.5, %v3101_v18  ;;  %v1974_v18 = vsel %vm1637_vm1, %v10275_v53, 0.0 }
 0x288   :  { %1201 = vst [vmem:[#allocation1] ss:$9 sm:$0xff] %v792_v38  ;;  %v8691_v38 = vpop.eup %8690 }
 0x289   :  { %1202 = vst [vmem:[#allocation1 + $0x1] ss:$9 sm:$0xff] %v793_v32  ;;  %v3082_v32 = vsel %vm3081_vm2, %v10277_v21, %v3080_v46  ;;  %v4622_v17 = vadd.f32 1.0, %v8691_v38  ;;  %v3103_v0 = vmul.f32 %v8689_v34, %v3102_v9  ;;  %v3108_v34 = vand.u32 2147483648, %v10300_v63 }
 0x28a   :  { %1203 = vst [vmem:[#allocation1 + $0x2] ss:$9 sm:$0xff] %v794_v26  ;;  %v3091_v26 = vmul.f32 %v8687_v54, %v3090_v28  ;;  %v3085_v30 = vsel %vm3083_vm4, %v3084_v19, %v3082_v32  ;;  %v3096_v54 = vand.u32 2147483648, %v10296_v8  ;;  %v1981_v28 = vsel %vm1637_vm1, %v10294_v16, 0.0  ;;  %v55_v32 = vld [vmem:[%s13464_s1 + $0xd8] sm:$0xff] }
 0x28b   :  { %8692 = vrcp.f32 %v4622_v17  ;;  %v3104_v41 = vmul.f32 %v3103_v0, %v10300_v63  ;;  %v4268_v52 = vsel %vm4230_vm6, %v3085_v30, %v4267_v1  ;;  %v4691_v50 = vand.u32 2147483648, %v4622_v17  ;;  %8386 = vmatmul.msk.f32.gmra.mxu0 %vm80_vm0, %v55_v32 }
 0x28c   :  { %v3092_v44 = vmul.f32 %v3091_v26, %v10296_v8  ;;  %v1975_v9 = vrot.slane %v1974_v18, 4  ;;  %v4689_v42 = vand.u32 2147483647, %v4622_v17  ;;  %v1982_v16 = vrot.slane %v1981_v28, 4 }
 0x28d   :  { %v3106_v46 = vsel %vm3105_vm12, %v10300_v63, %v3104_v41  ;;  %v799_v63 = vrot.slane %v10384_v11, 1  ;;  %vm4685_vm2 = vweird.f32 %v4622_v17  ;;  %v4692_v26 = vor.u32 1.1754944e-38, %v4691_v50 }
 0x28e   :  { %v3094_v21 = vsel %vm3093_vm5, %v10296_v8, %v3092_v44  ;;  %v3109_v56 = vsel %vm3107_vm13, %v3108_v34, %v3106_v46  ;;  %vm4690_vm5 = vcmp.eq.f32.partialorder %v4689_v42, 8.507059e+37  ;;  %v1983_v30 = vadd.f32 %v1982_v16, %v1981_v28  ;;  %v305_v42 = vpop.f32.mrf.mxu0 }
 0x28f   :  { %v3097_v55 = vsel %vm3095_vm9, %v3096_v54, %v3094_v21  ;;  %v800_v41 = vrot.slane %v10384_v11, 2  ;;  %v801_v34 = vrot.slane %v10384_v11, 3  ;;  %v802_v46 = vrot.slane %v10384_v11, 4 }
 0x290   :  { %v4269_v43 = vsel %vm4232_vm7, %v3097_v55, %v4268_v52 }
 0x291   :  { %v1204_v57 = vld [vmem:[#allocation1] sm:$0xff]  ;;  %v4270_v8 = vsel %vm4234_vm11, %v3109_v56, %v4269_v43  ;;  %v8693_v35 = vpop.eup %8692 }
 0x292   :  { %1205 = vst [vmem:[#allocation1] ss:$9 sm:$0xff] %v795_v22  ;;  %8460 = vmatmul.msk.f32.gmra.mxu2 %vm80_vm0, %v4270_v8  ;;  %v4681_v45 = vmul.f32 %v8693_v35, %v4622_v17  ;;  %v1988_v22 = vsel %vm1637_vm1, %v10330_v10, 0.0  ;;  %vm4686_vm14 = vweird.f32 %v8693_v35  ;;  %v10402_v10 = vpop.f32.mrf.mxu1  ;;  %8434 = vmatmul.msk.f32.gmra.mxu1 %vm80_vm0, %v55_v32  ;;  %v1995_v24 = vsel %vm1637_vm1, %v1204_v57, 0.0 }
 0x293   :  { %1206 = vst [vmem:[#allocation1 + $0x1] ss:$9 sm:$0xff] %v796_v31  ;;  %v1989_v31 = vrot.slane %v1988_v22, 4  ;;  %vm4687_vm4 = vmor %vm4685_vm2, %vm4686_vm14  ;;  %v1996_v17 = vrot.slane %v1995_v24, 4  ;;  %v1984_v57 = vrot.slane %v1983_v30, 2 }
 0x294   :  { %1207 = vst [vmem:[#allocation1 + $0x2] ss:$9 sm:$0xff] %v797_v6  ;;  %v4682_v38 = vsub.f32 1.0, %v4681_v45  ;;  %v1976_v6 = vadd.f32 %v1975_v9, %v1974_v18 }
 0x295   :  { %v1990_v33 = vadd.f32 %v1989_v31, %v1988_v22  ;;  %v1997_v56 = vadd.f32 %v1996_v17, %v1995_v24  ;;  %v1985_v43 = vadd.f32 %v1984_v57, %v1983_v30  ;;  %v804_v22 = vrot.slane %v10384_v11, 6  ;;  %v56_v24 = vld [vmem:[%s13464_s1 + $0xe0] sm:$0xff] }
 0x296   :  { %v4683_v53 = vmul.f32 %v8693_v35, %v4682_v38  ;;  %v1977_v21 = vrot.slane %v1976_v6, 2  ;;  %8387 = vmatmul.msk.f32.gmra.mxu0 %vm80_vm0, %v56_v24 }
 0x297   :  { %v1991_v52 = vrot.slane %v1990_v33, 2  ;;  %v1998_v45 = vrot.slane %v1997_v56, 2 }
 0x298   :  { %v4684_v19 = vadd.f32 %v8693_v35, %v4683_v53  ;;  %v805_v53 = vrot.slane %v10384_v11, 7 }
 0x299   :  { %v1999_v32 = vadd.f32 %v1998_v45, %v1997_v56 }
 0x29a   :  { %v4688_v0 = vsel %vm4687_vm4, %v8693_v35, %v4684_v19  ;;  %v1992_v35 = vadd.f32 %v1991_v52, %v1990_v33 }
 0x29b   :  { %v1208_v60 = vld [vmem:[#allocation1] sm:$0xff]  ;;  %v4693_v44 = vsel %vm4690_vm5, %v4692_v26, %v4688_v0  ;;  %v2000_v0 = vrot.slane %v1999_v32, 1 }
 0x29c   :  { %1209 = vst [vmem:[#allocation1] ss:$9 sm:$0xff] %v798_v12  ;;  %v2002_v61 = vsel %vm1637_vm1, %v1208_v60, 0.0  ;;  %v10408_v54 = vmul.f32 %v4693_v44, %v10323_v47  ;;  %v1978_v47 = vadd.f32 %v1977_v21, %v1976_v6  ;;  %v803_v60 = vrot.slane %v10384_v11, 5 }
 0x29d   :  { %1210 = vst [vmem:[#allocation1 + $0x1] ss:$9 sm:$0xff] %v10384_v11  ;;  %v2003_v55 = vrot.slane %v2002_v61, 4  ;;  %v1993_v38 = vrot.slane %v1992_v35, 1  ;;  %v10425_v6 = vmul.f32 %v305_v42, %v305_v42  ;;  %v10430_v11 = vpop.f32.mrf.mxu1  ;;  %8435 = vmatmul.msk.f32.gmra.mxu1 %vm80_vm0, %v56_v24 }
 0x29e   :  { %1211 = vst [vmem:[#allocation1 + $0x2] ss:$9 sm:$0xff] %v799_v63  ;;  %8522 = vmatmul.msk.f32.gmra.mxu3 %vm80_vm0, %v10408_v54  ;;  %v1979_v18 = vrot.slane %v1978_v47, 1  ;;  %v1986_v63 = vrot.slane %v1985_v43, 1 }
 0x29f   :  { %13510 = vst [vmem:[#allocation13_spill] sm:$0xff] %v10408_v54  ;;  %v2004_v8 = vadd.f32 %v2003_v55, %v2002_v61  ;;  %v10423_v26 = vadd.f32 %v1993_v38, %v1992_v35  ;;  %v806_v33 = vrot.slane %v10425_v6, 1  ;;  %v10438_v61 = vadd.f32 %v2000_v0, %v1999_v32 }
 0x2a0   :  { %v10419_v16 = vadd.f32 %v1979_v18, %v1978_v47  ;;  %v10421_v31 = vadd.f32 %v1986_v63, %v1985_v43  ;;  %v808_v35 = vrot.slane %v10425_v6, 3  ;;  %v809_v45 = vrot.slane %v10425_v6, 4 }
 0x2a1   :  { %v2005_v28 = vrot.slane %v2004_v8, 2  ;;  %vm3141_vm2 = vcmp.eq.f32.partialorder %v10423_v26, inf  ;;  %vm3143_vm4 = vcmp.eq.f32.partialorder %v10423_v26, 0.0  ;;  %vm3153_vm5 = vcmp.eq.f32.partialorder %v10438_v61, inf }
 0x2a2   :  { %8694 = vrsqrt.f32 %v10419_v16  ;;  %vm3117_vm9 = vcmp.eq.f32.partialorder %v10419_v16, inf  ;;  %vm3119_vm12 = vcmp.eq.f32.partialorder %v10419_v16, 0.0  ;;  %vm3129_vm13 = vcmp.eq.f32.partialorder %v10421_v31, inf }
 0x2a3   :  { %v2006_v19 = vadd.f32 %v2005_v28, %v2004_v8  ;;  %8696 = vrsqrt.f32 %v10421_v31  ;;  %vm3131_vm14 = vcmp.eq.f32.partialorder %v10421_v31, 0.0 }
 0x2a4   :  { %8698 = vrsqrt.f32 %v10423_v26 }
 0x2a5   :  { %v1212_v1 = vld [vmem:[#allocation1] sm:$0xff]  ;;  %v2007_v44 = vrot.slane %v2006_v19, 1  ;;  %8700 = vrsqrt.f32 %v10438_v61 }
 0x2a6   :  { %1213 = vst [vmem:[#allocation1] ss:$9 sm:$0xff] %v800_v41  ;;  %v2009_v12 = vsel %vm1637_vm1, %v1212_v1, 0.0  ;;  %v807_v41 = vrot.slane %v10425_v6, 2 }
 0x2a7   :  { %1214 = vst [vmem:[#allocation1 + $0x1] ss:$9 sm:$0xff] %v801_v34  ;;  %v2010_v9 = vrot.slane %v2009_v12, 4  ;;  %v10441_v34 = vadd.f32 %v2007_v44, %v2006_v19 }
 0x2a8   :  { %1215 = vst [vmem:[#allocation1 + $0x2] ss:$9 sm:$0xff] %v802_v46  ;;  %v10443_v1 = vpop.eup %8694 }
 0x2a9   :  { %v2011_v30 = vadd.f32 %v2010_v9, %v2009_v12  ;;  %v8697_v57 = vpop.eup %8696  ;;  %8702 = vrsqrt.f32 %v10441_v34  ;;  %v3111_v52 = vmul.f32 %v10443_v1, %v10419_v16  ;;  %v810_v9 = vrot.slane %v10425_v6, 5 }
 0x2aa   :  { %v8699_v46 = vpop.eup %8698  ;;  %v3123_v56 = vmul.f32 %v8697_v57, %v10421_v31 }
 0x2ab   :  { %v2012_v17 = vrot.slane %v2011_v30, 2  ;;  %v3135_v43 = vmul.f32 %v8699_v46, %v10423_v26  ;;  %v10452_v8 = vpop.eup %8700  ;;  %v3112_v18 = vmul.f32 %v10443_v1, %v3111_v52 }
 0x2ac   :  { %v3124_v12 = vmul.f32 %v8697_v57, %v3123_v56  ;;  %v3147_v19 = vmul.f32 %v10452_v8, %v10438_v61 }
 0x2ad   :  { %v2013_v55 = vadd.f32 %v2012_v17, %v2011_v30  ;;  %v3136_v32 = vmul.f32 %v8699_v46, %v3135_v43  ;;  %v3113_v44 = vmul.f32 0.5, %v3112_v18  ;;  %v811_v43 = vrot.slane %v10425_v6, 6 }
 0x2ae   :  { %v3125_v30 = vmul.f32 0.5, %v3124_v12 }
 0x2af   :  { %v1216_v50 = vld [vmem:[#allocation1] sm:$0xff]  ;;  %v2014_v47 = vrot.slane %v2013_v55, 1  ;;  %v10457_v63 = vpop.eup %8702 }
 0x2b0   :  { %1217 = vst [vmem:[#allocation1] ss:$9 sm:$0xff] %v803_v60  ;;  %v2016_v38 = vsel %vm1637_vm1, %v1216_v50, 0.0  ;;  %v3159_v50 = vmul.f32 %v10457_v63, %v10441_v34  ;;  %v3126_v52 = vsub.f32 1.5, %v3125_v30 }
 0x2b1   :  { %1218 = vst [vmem:[#allocation1 + $0x1] ss:$9 sm:$0xff] %v804_v22  ;;  %v10461_v60 = vadd.f32 %v2014_v47, %v2013_v55  ;;  %v308_v55 = vpop.f32.mrf.mxu0 }
 0x2b2   :  { %1219 = vst [vmem:[#allocation1 + $0x2] ss:$9 sm:$0xff] %v805_v53  ;;  %v2017_v53 = vrot.slane %v2016_v38, 4  ;;  %v3160_v56 = vmul.f32 %v10457_v63, %v3159_v50  ;;  %v10474_v12 = vmul.f32 %v308_v55, %v308_v55  ;;  %v3127_v30 = vmul.f32 %v8697_v57, %v3126_v52  ;;  %v57_v57 = vld [vmem:[%s13464_s1 + $0xe8] sm:$0xff] }
 0x2b3   :  { %8704 = vrsqrt.f32 %v10461_v60  ;;  %8388 = vmatmul.msk.f32.gmra.mxu0 %vm80_vm0, %v57_v57 }
 0x2b4   :  { %v2018_v24 = vadd.f32 %v2017_v53, %v2016_v38  ;;  %v3161_v50 = vmul.f32 0.5, %v3160_v56 }
 0x2b6   :  { %v2019_v17 = vrot.slane %v2018_v24, 2  ;;  %v3162_v55 = vsub.f32 1.5, %v3161_v50 }
 0x2b9   :  { %v1220_v21 = vld [vmem:[#allocation1] sm:$0xff]  ;;  %v8705_v47 = vpop.eup %8704 }
 0x2ba   :  { %1221 = vst [vmem:[#allocation1] ss:$9 sm:$0xff] %v10425_v6  ;;  %v2023_v22 = vsel %vm1637_vm1, %v1220_v21, 0.0  ;;  %v3148_v21 = vmul.f32 %v10452_v8, %v3147_v19  ;;  %v3171_v18 = vmul.f32 %v8705_v47, %v10461_v60 }
 0x2bb   :  { %1222 = vst [vmem:[#allocation1 + $0x1] ss:$9 sm:$0xff] %v806_v33  ;;  %v2024_v42 = vrot.slane %v2023_v22, 4  ;;  %v3137_v33 = vmul.f32 0.5, %v3136_v32  ;;  %v812_v32 = vrot.slane %v10425_v6, 7 }
 0x2bc   :  { %1223 = vst [vmem:[#allocation1 + $0x2] ss:$9 sm:$0xff] %v807_v41  ;;  %v3172_v39 = vmul.f32 %v8705_v47, %v3171_v18 }
 0x2bd   :  { %v2025_v0 = vadd.f32 %v2024_v42, %v2023_v22  ;;  %v3138_v38 = vsub.f32 1.5, %v3137_v33 }
 0x2be   :  { %v3173_v6 = vmul.f32 0.5, %v3172_v39 }
 0x2bf   :  { %v2026_v41 = vrot.slane %v2025_v0, 2  ;;  %v3139_v33 = vmul.f32 %v8699_v46, %v3138_v38  ;;  %v3132_v38 = vand.u32 2147483648, %v10421_v31 }
 0x2c0   :  { %v4402_v46 = vpop.f32.mrf.mxu2  ;;  %v3174_v52 = vsub.f32 1.5, %v3173_v6 }
 0x2c1   :  { %v2027_v22 = vadd.f32 %v2026_v41, %v2025_v0  ;;  %v4515_v41 = vpop.f32.mrf.mxu3 }
 0x2c2   :  { %v4516_v56 = vadd.f32 %v4515_v41, %v4402_v46  ;;  %v3175_v50 = vmul.f32 %v8705_v47, %v3174_v52 }
 0x2c3   :  { %v10459_v28 = vld [vmem:[#allocation1] sm:$0xff]  ;;  %v2028_v19 = vrot.slane %v2027_v22, 1 }
 0x2c4   :  { %1225 = vst [vmem:[#allocation1] ss:$9 sm:$0xff] %v808_v35  ;;  %v2020_v35 = vadd.f32 %v2019_v17, %v2018_v24 }
 0x2c5   :  { %1226 = vst [vmem:[#allocation1 + $0x1] ss:$9 sm:$0xff] %v809_v45  ;;  %v3114_v45 = vsub.f32 1.5, %v3113_v44  ;;  %v10484_v0 = vadd.f32 %v2028_v19, %v2027_v22  ;;  %v10507_v22 = vadd.f32 %v10170_v29, %v4516_v56 }
 0x2c6   :  { %1227 = vst [vmem:[#allocation1 + $0x2] ss:$9 sm:$0xff] %v810_v9  ;;  %v3149_v9 = vmul.f32 0.5, %v3148_v21  ;;  %v2021_v42 = vrot.slane %v2020_v35, 1  ;;  %v10490_v21 = vpop.f32.mrf.mxu1  ;;  %8436 = vmatmul.msk.f32.gmra.mxu1 %vm80_vm0, %v57_v57  ;;  %v3144_v57 = vand.u32 2147483648, %v10423_v26 }
 0x2c7   :  { %v3115_v44 = vmul.f32 %v10443_v1, %v3114_v45  ;;  %v3128_v1 = vmul.f32 %v3127_v30, %v10421_v31  ;;  %v8491_v29 = vmul.f32 -1.442695, %v10507_v22 }
 0x2c8   :  { %v10480_v24 = vadd.f32 %v2021_v42, %v2020_v35  ;;  %v3150_v17 = vsub.f32 1.5, %v3149_v9  ;;  %v3140_v35 = vmul.f32 %v3139_v33, %v10423_v26  ;;  %v813_v9 = vrot.slane %v10474_v12, 1 }
 0x2c9   :  { %v3116_v39 = vmul.f32 %v3115_v44, %v10419_v16  ;;  %v3130_v18 = vsel %vm3129_vm13, %v10421_v31, %v3128_v1  ;;  %v815_v33 = vrot.slane %v10474_v12, 3  ;;  %v3176_v31 = vmul.f32 %v3175_v50, %v10461_v60 }
 0x2ca   :  { %8706 = vrsqrt.f32 %v10480_v24  ;;  %v3151_v45 = vmul.f32 %v10452_v8, %v3150_v17  ;;  %v814_v8 = vrot.slane %v10474_v12, 2  ;;  %v3142_v17 = vsel %vm3141_vm2, %v10423_v26, %v3140_v35 }
 0x2cb   :  { %8708 = vrsqrt.f32 %v10484_v0  ;;  %v3118_v30 = vsel %vm3117_vm9, %v10419_v16, %v3116_v39  ;;  %v3133_v41 = vsel %vm3131_vm14, %v3132_v38, %v3130_v18  ;;  %v3145_v39 = vsel %vm3143_vm4, %v3144_v57, %v3142_v17 }
 0x2cc   :  { %8710 = vpow2.f32 %v8491_v29  ;;  %vm3155_vm9 = vcmp.eq.f32.partialorder %v10438_v61, 0.0  ;;  %v3156_v35 = vand.u32 2147483648, %v10438_v61  ;;  %vm3167_vm13 = vcmp.eq.f32.partialorder %v10441_v34, 0.0 }
 0x2cd   :  { %v10478_v53 = vld [vmem:[#allocation1] sm:$0xff]  ;;  %vm3177_vm14 = vcmp.eq.f32.partialorder %v10461_v60, inf  ;;  %v3180_v17 = vand.u32 2147483648, %v10461_v60  ;;  %vm3179_vm2 = vcmp.eq.f32.partialorder %v10461_v60, 0.0  ;;  %vm3189_vm4 = vcmp.eq.f32.partialorder %v10480_v24, inf }
 0x2ce   :  { %1229 = vst [vmem:[#allocation1] ss:$9 sm:$0xff] %v811_v43  ;;  %v3120_v43 = vand.u32 2147483648, %v10419_v16  ;;  %v3178_v50 = vsel %vm3177_vm14, %v10461_v60, %v3176_v31 }
 0x2cf   :  { %1230 = vst [vmem:[#allocation1 + $0x1] ss:$9 sm:$0xff] %v812_v32  ;;  %v3163_v32 = vmul.f32 %v10457_v63, %v3162_v55  ;;  %v3152_v63 = vmul.f32 %v3151_v45, %v10438_v61 }
 0x2d0   :  { %1231 = vst [vmem:[#allocation1 + $0x2] ss:$9 sm:$0xff] %v10474_v12  ;;  %v8707_v42 = vpop.eup %8706  ;;  %v3121_v1 = vsel %vm3119_vm12, %v3120_v43, %v3118_v30  ;;  %vm3165_vm12 = vcmp.eq.f32.partialorder %v10441_v34, inf  ;;  %v3168_v43 = vand.u32 2147483648, %v10441_v34 }
 0x2d1   :  { %v8709_v44 = vpop.eup %8708  ;;  %v3183_v6 = vmul.f32 %v8707_v42, %v10480_v24  ;;  %v3164_v55 = vmul.f32 %v3163_v32, %v10441_v34  ;;  %v3154_v56 = vsel %vm3153_vm5, %v10438_v61, %v3152_v63  ;;  %v4271_v16 = vsel %vm4222_vm8, %v3133_v41, %v3121_v1 }
 0x2d2   :  { %v3195_v47 = vmul.f32 %v8709_v44, %v10484_v0  ;;  %v4272_v18 = vsel %vm4224_vm10, %v3145_v39, %v4271_v16  ;;  %v8711_v32 = vpop.eup %8710  ;;  %v3157_v30 = vsel %vm3155_vm9, %v3156_v35, %v3154_v56  ;;  %v818_v41 = vrot.slane %v10474_v12, 6  ;;  %v311_v39 = vpop.f32.mrf.mxu0 }
 0x2d3   :  { %v3184_v46 = vmul.f32 %v8707_v42, %v3183_v6  ;;  %v3166_v38 = vsel %vm3165_vm12, %v10441_v34, %v3164_v55  ;;  %v4623_v6 = vadd.f32 1.0, %v8711_v32  ;;  %v3181_v61 = vsel %vm3179_vm2, %v3180_v17, %v3178_v50 }
 0x2d4   :  { %v3196_v52 = vmul.f32 %v8709_v44, %v3195_v47  ;;  %v3169_v47 = vsel %vm3167_vm13, %v3168_v43, %v3166_v38  ;;  %vm3191_vm5 = vcmp.eq.f32.partialorder %v10480_v24, 0.0  ;;  %vm3201_vm9 = vcmp.eq.f32.partialorder %v10484_v0, inf }
 0x2d5   :  { %v3185_v45 = vmul.f32 0.5, %v3184_v46  ;;  %v4273_v46 = vsel %vm4226_vm15, %v3157_v30, %v4272_v18  ;;  %8712 = vrcp.f32 %v4623_v6  ;;  %vm3203_vm12 = vcmp.eq.f32.partialorder %v10484_v0, 0.0 }
 0x2d6   :  { %v3197_v26 = vmul.f32 0.5, %v3196_v52  ;;  %v4274_v31 = vsel %vm4228_vm3, %v3169_v47, %v4273_v46  ;;  %v819_v18 = vrot.slane %v10474_v12, 7  ;;  %v2037_v32 = vsel %vm1637_vm1, %v10478_v53, 0.0 }
 0x2d7   :  { %v10514_v19 = vld [vmem:[#allocation1] sm:$0xff]  ;;  %v4275_v35 = vsel %vm4230_vm6, %v3181_v61, %v4274_v31  ;;  %v2038_v53 = vrot.slane %v2037_v32, 4  ;;  %vm4700_vm14 = vweird.f32 %v4623_v6 }
 0x2d8   :  { %1233 = vst [vmem:[#allocation1] ss:$9 sm:$0xff] %v813_v9  ;;  %v3186_v9 = vsub.f32 1.5, %v3185_v45  ;;  %v3198_v29 = vsub.f32 1.5, %v3197_v26  ;;  %v10568_v45 = vmul.f32 %v311_v39, %v311_v39  ;;  %v2044_v50 = vsel %vm1637_vm1, %v10514_v19, 0.0  ;;  %v10586_v19 = vpop.f32.mrf.mxu1 }
 0x2d9   :  { %1234 = vst [vmem:[#allocation1 + $0x1] ss:$9 sm:$0xff] %v814_v8  ;;  %v816_v8 = vrot.slane %v10474_v12, 4  ;;  %v2039_v46 = vadd.f32 %v2038_v53, %v2037_v32 }
 0x2da   :  { %1235 = vst [vmem:[#allocation1 + $0x2] ss:$9 sm:$0xff] %v815_v33  ;;  %v817_v33 = vrot.slane %v10474_v12, 5  ;;  %v3187_v63 = vmul.f32 %v8707_v42, %v3186_v9  ;;  %v3199_v1 = vmul.f32 %v8709_v44, %v3198_v29  ;;  %v3192_v42 = vand.u32 2147483648, %v10480_v24 }
 0x2db   :  { %v3204_v44 = vand.u32 2147483648, %v10484_v0  ;;  %v8713_v26 = vpop.eup %8712  ;;  %v2030_v9 = vsel %vm1637_vm1, %v10459_v28, 0.0  ;;  %v4706_v29 = vand.u32 2147483648, %v4623_v6  ;;  %v4704_v12 = vand.u32 2147483647, %v4623_v6 }
 0x2dc   :  { %v3188_v55 = vmul.f32 %v3187_v63, %v10480_v24  ;;  %v3200_v34 = vmul.f32 %v3199_v1, %v10484_v0  ;;  %v4696_v38 = vmul.f32 %v8713_v26, %v4623_v6  ;;  %v2031_v17 = vrot.slane %v2030_v9, 4 }
 0x2dd   :  { %vm4701_vm13 = vweird.f32 %v8713_v26  ;;  %v2045_v63 = vrot.slane %v2044_v50, 4  ;;  %v4707_v47 = vor.u32 1.1754944e-38, %v4706_v29  ;;  %v826_v53 = vrot.slane %v10568_v45, 7 }
 0x2de   :  { %v3190_v60 = vsel %vm3189_vm4, %v10480_v24, %v3188_v55  ;;  %v3202_v56 = vsel %vm3201_vm9, %v10484_v0, %v3200_v34  ;;  %v820_v0 = vrot.slane %v10568_v45, 1  ;;  %v4697_v30 = vsub.f32 1.0, %v4696_v38  ;;  %vm4702_vm2 = vmor %vm4700_vm14, %vm4701_vm13 }
 0x2df   :  { %v3193_v52 = vsel %vm3191_vm5, %v3192_v42, %v3190_v60  ;;  %v3205_v16 = vsel %vm3203_vm12, %v3204_v44, %v3202_v56  ;;  %v2032_v1 = vadd.f32 %v2031_v17, %v2030_v9  ;;  %vm4705_vm4 = vcmp.eq.f32.partialorder %v4704_v12, 8.507059e+37 }
 0x2e0   :  { %v4276_v43 = vsel %vm4232_vm7, %v3193_v52, %v4275_v35  ;;  %v4698_v28 = vmul.f32 %v8713_v26, %v4697_v30  ;;  %v2046_v42 = vadd.f32 %v2045_v63, %v2044_v50  ;;  %v821_v44 = vrot.slane %v10568_v45, 2  ;;  %v314_v63 = vpop.f32.mrf.mxu0 }
 0x2e1   :  { %v1236_v57 = vld [vmem:[#allocation1] sm:$0xff]  ;;  %v4277_v24 = vsel %vm4234_vm11, %v3205_v16, %v4276_v43  ;;  %v2033_v31 = vrot.slane %v2032_v1, 2  ;;  %v822_v52 = vrot.slane %v10568_v45, 3  ;;  %v823_v16 = vrot.slane %v10568_v45, 4 }
 0x2e2   :  { %1237 = vst [vmem:[#allocation1] ss:$9 sm:$0xff] %v816_v8  ;;  %8461 = vmatmul.msk.f32.gmra.mxu2 %vm80_vm0, %v4277_v24  ;;  %v2051_v61 = vsel %vm1637_vm1, %v1236_v57, 0.0  ;;  %v2040_v57 = vrot.slane %v2039_v46, 2  ;;  %v2047_v43 = vrot.slane %v2046_v42, 2  ;;  %v824_v50 = vrot.slane %v10568_v45, 5 }
 0x2e3   :  { %1238 = vst [vmem:[#allocation1 + $0x1] ss:$9 sm:$0xff] %v817_v33  ;;  %v58_v33 = vld [vmem:[%s13464_s1 + $0xf0] sm:$0xff]  ;;  %v2052_v6 = vrot.slane %v2051_v61, 4 }
 0x2e4   :  { %1239 = vst [vmem:[#allocation1 + $0x2] ss:$9 sm:$0xff] %v818_v41  ;;  %8389 = vmatmul.msk.f32.gmra.mxu0 %vm80_vm0, %v58_v33  ;;  %v4699_v41 = vadd.f32 %v8713_v26, %v4698_v28  ;;  %8437 = vmatmul.msk.f32.gmra.mxu1 %vm80_vm0, %v58_v33  ;;  %v2048_v9 = vadd.f32 %v2047_v43, %v2046_v42  ;;  %v825_v33 = vrot.slane %v10568_v45, 6 }
 0x2e5   :  { %v2053_v24 = vadd.f32 %v2052_v6, %v2051_v61 }
 0x2e6   :  { %v4703_v55 = vsel %vm4702_vm2, %v8713_v26, %v4699_v41  ;;  %v2041_v26 = vadd.f32 %v2040_v57, %v2039_v46  ;;  %v2049_v29 = vrot.slane %v2048_v9, 1  ;;  %v59_v46 = vld [vmem:[%s13464_s1 + $0xf8] sm:$0xff] }
 0x2e7   :  { %v4708_v39 = vsel %vm4705_vm4, %v4707_v47, %v4703_v55  ;;  %v10609_v55 = vmul.f32 %v314_v63, %v314_v63 }
 0x2e8   :  { %v10592_v60 = vmul.f32 %v4708_v39, %v10507_v22  ;;  %v2034_v22 = vadd.f32 %v2033_v31, %v2032_v1  ;;  %v10607_v61 = vadd.f32 %v2049_v29, %v2048_v9 }
 0x2e9   :  { %v827_v6 = vrot.slane %v10609_v55, 1  ;;  %v831_v63 = vrot.slane %v10609_v55, 5 }
 0x2ea   :  { %13511 = vst [vmem:[#allocation14_spill] sm:$0xff] %v10592_v60  ;;  %8523 = vmatmul.msk.f32.gmra.mxu3 %vm80_vm0, %v10592_v60  ;;  %vm3237_vm14 = vcmp.eq.f32.partialorder %v10607_v61, inf  ;;  %vm3239_vm2 = vcmp.eq.f32.partialorder %v10607_v61, 0.0 }
 0x2eb   :  { %v1240_v8 = vld [vmem:[#allocation1] sm:$0xff] }
 0x2ec   :  { %1241 = vst [vmem:[#allocation1] ss:$9 sm:$0xff] %v819_v18  ;;  %v2058_v34 = vsel %vm1637_vm1, %v1240_v8, 0.0  ;;  %v2054_v18 = vrot.slane %v2053_v24, 2  ;;  %v2042_v8 = vrot.slane %v2041_v26, 1  ;;  %8390 = vmatmul.msk.f32.gmra.mxu0 %vm80_vm0, %v59_v46 }
 0x2ed   :  { %1242 = vst [vmem:[#allocation1 + $0x1] ss:$9 sm:$0xff] %v10568_v45  ;;  %v2059_v35 = vrot.slane %v2058_v34, 4  ;;  %v10614_v45 = vpop.f32.mrf.mxu1  ;;  %8438 = vmatmul.msk.f32.gmra.mxu1 %vm80_vm0, %v59_v46 }
 0x2ee   :  { %1243 = vst [vmem:[#allocation1 + $0x2] ss:$9 sm:$0xff] %v820_v0  ;;  %v2035_v0 = vrot.slane %v2034_v22, 1  ;;  %v2055_v28 = vadd.f32 %v2054_v18, %v2053_v24  ;;  %v10605_v47 = vadd.f32 %v2042_v8, %v2041_v26 }
 0x2ef   :  { %v2060_v38 = vadd.f32 %v2059_v35, %v2058_v34 }
 0x2f0   :  { %v10603_v41 = vadd.f32 %v2035_v0, %v2034_v22  ;;  %v2056_v39 = vrot.slane %v2055_v28, 1  ;;  %v829_v0 = vrot.slane %v10609_v55, 3  ;;  %vm3225_vm12 = vcmp.eq.f32.partialorder %v10605_v47, inf }
 0x2f1   :  { %v2061_v30 = vrot.slane %v2060_v38, 2  ;;  %vm3227_vm13 = vcmp.eq.f32.partialorder %v10605_v47, 0.0 }
 0x2f2   :  { %8714 = vrsqrt.f32 %v10603_v41  ;;  %vm3213_vm5 = vcmp.eq.f32.partialorder %v10603_v41, inf  ;;  %vm3215_vm9 = vcmp.eq.f32.partialorder %v10603_v41, 0.0 }
 0x2f3   :  { %v2062_v1 = vadd.f32 %v2061_v30, %v2060_v38  ;;  %8716 = vrsqrt.f32 %v10605_v47 }
 0x2f4   :  { %8718 = vrsqrt.f32 %v10607_v61 }
 0x2f5   :  { %v1244_v56 = vld [vmem:[#allocation1] sm:$0xff]  ;;  %v2063_v34 = vrot.slane %v2062_v1, 1 }
 0x2f6   :  { %1245 = vst [vmem:[#allocation1] ss:$9 sm:$0xff] %v821_v44  ;;  %v2065_v32 = vsel %vm1637_vm1, %v1244_v56, 0.0  ;;  %v10622_v44 = vadd.f32 %v2056_v39, %v2055_v28 }
 0x2f7   :  { %1246 = vst [vmem:[#allocation1 + $0x1] ss:$9 sm:$0xff] %v822_v52  ;;  %v2066_v12 = vrot.slane %v2065_v32, 4  ;;  %v828_v52 = vrot.slane %v10609_v55, 2  ;;  %v10625_v57 = vadd.f32 %v2063_v34, %v2062_v1 }
 0x2f8   :  { %1247 = vst [vmem:[#allocation1 + $0x2] ss:$9 sm:$0xff] %v823_v16  ;;  %v10627_v35 = vpop.eup %8714  ;;  %8720 = vrsqrt.f32 %v10622_v44  ;;  %vm3249_vm4 = vcmp.eq.f32.partialorder %v10622_v44, inf }
 0x2f9   :  { %v2067_v42 = vadd.f32 %v2066_v12, %v2065_v32  ;;  %v8717_v16 = vpop.eup %8716  ;;  %8722 = vrsqrt.f32 %v10625_v57  ;;  %v3207_v22 = vmul.f32 %v10627_v35, %v10603_v41  ;;  %v830_v32 = vrot.slane %v10609_v55, 4 }
 0x2fa   :  { %v8719_v24 = vpop.eup %8718  ;;  %v3219_v26 = vmul.f32 %v8717_v16, %v10605_v47 }
 0x2fb   :  { %v2068_v31 = vrot.slane %v2067_v42, 2  ;;  %v3231_v9 = vmul.f32 %v8719_v24, %v10607_v61  ;;  %v3208_v8 = vmul.f32 %v10627_v35, %v3207_v22 }
 0x2fc   :  { %v3220_v30 = vmul.f32 %v8717_v16, %v3219_v26  ;;  %v317_v26 = vpop.f32.mrf.mxu0 }
 0x2fd   :  { %v2069_v43 = vadd.f32 %v2068_v31, %v2067_v42  ;;  %v3209_v31 = vmul.f32 0.5, %v3208_v8 }
 0x2fe   :  { %v10636_v18 = vpop.eup %8720 }
 0x2ff   :  { %v1248_v17 = vld [vmem:[#allocation1] sm:$0xff]  ;;  %v2070_v38 = vrot.slane %v2069_v43, 1  ;;  %v3243_v39 = vmul.f32 %v10636_v18, %v10622_v44 }
 0x300   :  { %1249 = vst [vmem:[#allocation1] ss:$9 sm:$0xff] %v824_v50  ;;  %v10641_v50 = vpop.eup %8722  ;;  %v2072_v28 = vsel %vm1637_vm1, %v1248_v17, 0.0 }
 0x301   :  { %1250 = vst [vmem:[#allocation1 + $0x1] ss:$9 sm:$0xff] %v825_v33  ;;  %v10645_v33 = vadd.f32 %v2070_v38, %v2069_v43  ;;  %v2073_v1 = vrot.slane %v2072_v28, 4  ;;  %v3255_v17 = vmul.f32 %v10641_v50, %v10625_v57  ;;  %v3244_v22 = vmul.f32 %v10636_v18, %v3243_v39 }
 0x302   :  { %1251 = vst [vmem:[#allocation1 + $0x2] ss:$9 sm:$0xff] %v826_v53  ;;  %v3232_v53 = vmul.f32 %v8719_v24, %v3231_v9 }
 0x303   :  { %8724 = vrsqrt.f32 %v10645_v33  ;;  %v2074_v42 = vadd.f32 %v2073_v1, %v2072_v28  ;;  %v3256_v9 = vmul.f32 %v10641_v50, %v3255_v17  ;;  %v3210_v28 = vsub.f32 1.5, %v3209_v31 }
 0x305   :  { %v3257_v62 = vmul.f32 0.5, %v3256_v9  ;;  %v3211_v31 = vmul.f32 %v10627_v35, %v3210_v28  ;;  %v3228_v28 = vand.u32 2147483648, %v10605_v47 }
 0x309   :  { %v1252_v56 = vld [vmem:[#allocation1] sm:$0xff] }
 0x30a   :  { %1253 = vst [vmem:[#allocation1] ss:$9 sm:$0xff] %v10609_v55  ;;  %v2079_v12 = vsel %vm1637_vm1, %v1252_v56, 0.0  ;;  %v2075_v56 = vrot.slane %v2074_v42, 2 }
 0x30b   :  { %1254 = vst [vmem:[#allocation1 + $0x1] ss:$9 sm:$0xff] %v827_v6  ;;  %v2080_v46 = vrot.slane %v2079_v12, 4  ;;  %v3221_v6 = vmul.f32 0.5, %v3220_v30  ;;  %v10658_v30 = vmul.f32 %v317_v26, %v317_v26  ;;  %v3258_v26 = vsub.f32 1.5, %v3257_v62 }
 0x30c   :  { %1255 = vst [vmem:[#allocation1 + $0x2] ss:$9 sm:$0xff] %v828_v52  ;;  %v3233_v52 = vmul.f32 0.5, %v3232_v53  ;;  %v833_v53 = vrot.slane %v10609_v55, 7 }
 0x30d   :  { %v2081_v34 = vadd.f32 %v2080_v46, %v2079_v12  ;;  %v3222_v38 = vsub.f32 1.5, %v3221_v6  ;;  %v3245_v46 = vmul.f32 0.5, %v3244_v22  ;;  %v10674_v22 = vpop.f32.mrf.mxu1 }
 0x30e   :  { %v3234_v12 = vsub.f32 1.5, %v3233_v52  ;;  %13512 = vst [vmem:[#allocation15_spill] sm:$0xff] %v10674_v22 }
 0x30f   :  { %v2082_v43 = vrot.slane %v2081_v34, 2  ;;  %v3223_v17 = vmul.f32 %v8717_v16, %v3222_v38  ;;  %v60_v16 = vld [vmem:[%s13464_s1 + $0x100] sm:$0xff] }
 0x310   :  { %v3235_v52 = vmul.f32 %v8719_v24, %v3234_v12  ;;  %8391 = vmatmul.msk.f32.gmra.mxu0 %vm80_vm0, %v60_v16  ;;  %8439 = vmatmul.msk.f32.gmra.mxu1 %vm80_vm0, %v60_v16  ;;  %v10693_v12 = vld [vmem:[%s13468_s4] ss:$0 sm:$0xff] }
 0x311   :  { %v2083_v1 = vadd.f32 %v2082_v43, %v2081_v34  ;;  %v4518_v43 = vpop.f32.mrf.mxu3  ;;  %v3224_v35 = vmul.f32 %v3223_v17, %v10605_v47 }
 0x313   :  { %v10643_v29 = vld [vmem:[#allocation1] sm:$0xff]  ;;  %v2084_v6 = vrot.slane %v2083_v1, 1 }
 0x314   :  { %1257 = vst [vmem:[#allocation1] ss:$9 sm:$0xff] %v829_v0  ;;  %v8725_v0 = vpop.eup %8724 }
 0x315   :  { %1258 = vst [vmem:[#allocation1 + $0x1] ss:$9 sm:$0xff] %v830_v32  ;;  %v832_v32 = vrot.slane %v10609_v55, 6  ;;  %v3267_v8 = vmul.f32 %v8725_v0, %v10645_v33  ;;  %v10668_v34 = vadd.f32 %v2084_v6, %v2083_v1  ;;  %v4405_v24 = vpop.f32.mrf.mxu2 }
 0x316   :  { %1259 = vst [vmem:[#allocation1 + $0x2] ss:$9 sm:$0xff] %v831_v63  ;;  %v2076_v63 = vadd.f32 %v2075_v56, %v2074_v42  ;;  %v3246_v56 = vsub.f32 1.5, %v3245_v46  ;;  %v4519_v9 = vadd.f32 %v4518_v43, %v4405_v24  ;;  %v834_v46 = vrot.slane %v10658_v30, 1 }
 0x317   :  { %v3268_v59 = vmul.f32 %v8725_v0, %v3267_v8  ;;  %v3226_v8 = vsel %vm3225_vm12, %v10605_v47, %v3224_v35  ;;  %vm3263_vm12 = vcmp.eq.f32.partialorder %v10625_v57, 0.0 }
 0x318   :  { %v2077_v39 = vrot.slane %v2076_v63, 1  ;;  %v3247_v62 = vmul.f32 %v10636_v18, %v3246_v56  ;;  %v10696_v1 = vadd.f32 %v10693_v12, %v4519_v9  ;;  %v3259_v18 = vmul.f32 %v10641_v50, %v3258_v26 }
 0x319   :  { %v3269_v55 = vmul.f32 0.5, %v3268_v59  ;;  %v3212_v59 = vmul.f32 %v3211_v31, %v10603_v41  ;;  %v3229_v35 = vsel %vm3227_vm13, %v3228_v28, %v3226_v8  ;;  %v3252_v28 = vand.u32 2147483648, %v10622_v44 }
 0x31a   :  { %v10664_v42 = vadd.f32 %v2077_v39, %v2076_v63  ;;  %v3236_v63 = vmul.f32 %v3235_v52, %v10607_v61  ;;  %v835_v39 = vrot.slane %v10658_v30, 2  ;;  %v8492_v52 = vmul.f32 -1.442695, %v10696_v1 }
 0x31b   :  { %v3270_v38 = vsub.f32 1.5, %v3269_v55  ;;  %v3214_v17 = vsel %vm3213_vm5, %v10603_v41, %v3212_v59  ;;  %v836_v55 = vrot.slane %v10658_v30, 3  ;;  %v3248_v43 = vmul.f32 %v3247_v62, %v10622_v44 }
 0x31c   :  { %8726 = vrsqrt.f32 %v10664_v42  ;;  %v3238_v50 = vsel %vm3237_vm14, %v10607_v61, %v3236_v63  ;;  %v3260_v59 = vmul.f32 %v3259_v18, %v10625_v57  ;;  %vm3251_vm5 = vcmp.eq.f32.partialorder %v10622_v44, 0.0 }
 0x31d   :  { %v10662_v37 = vld [vmem:[#allocation1] sm:$0xff]  ;;  %8728 = vrsqrt.f32 %v10668_v34  ;;  %v3271_v31 = vmul.f32 %v8725_v0, %v3270_v38  ;;  %v3240_v0 = vand.u32 2147483648, %v10607_v61  ;;  %v3250_v62 = vsel %vm3249_vm4, %v10622_v44, %v3248_v43 }
 0x31e   :  { %1261 = vst [vmem:[#allocation1] ss:$9 sm:$0xff] %v832_v32  ;;  %v3216_v32 = vand.u32 2147483648, %v10603_v41  ;;  %8730 = vpow2.f32 %v8492_v52  ;;  %vm3273_vm13 = vcmp.eq.f32.partialorder %v10645_v33, inf  ;;  %v3253_v52 = vsel %vm3251_vm5, %v3252_v28, %v3250_v62 }
 0x31f   :  { %1262 = vst [vmem:[#allocation1 + $0x1] ss:$9 sm:$0xff] %v833_v53  ;;  %v3241_v9 = vsel %vm3239_vm2, %v3240_v0, %v3238_v50  ;;  %v3272_v47 = vmul.f32 %v3271_v31, %v10645_v33  ;;  %v837_v31 = vrot.slane %v10658_v30, 4  ;;  %v838_v43 = vrot.slane %v10658_v30, 5 }
 0x320   :  { %1263 = vst [vmem:[#allocation1 + $0x2] ss:$9 sm:$0xff] %v10658_v30  ;;  %v3217_v24 = vsel %vm3215_vm9, %v3216_v32, %v3214_v17  ;;  %vm3261_vm9 = vcmp.eq.f32.partialorder %v10625_v57, inf  ;;  %v3264_v32 = vand.u32 2147483648, %v10625_v57  ;;  %vm3275_vm14 = vcmp.eq.f32.partialorder %v10645_v33, 0.0 }
 0x321   :  { %v4278_v41 = vsel %vm4222_vm8, %v3229_v35, %v3217_v24  ;;  %v3262_v8 = vsel %vm3261_vm9, %v10625_v57, %v3260_v59  ;;  %vm3285_vm2 = vcmp.eq.f32.partialorder %v10664_v42, inf  ;;  %vm3287_vm4 = vcmp.eq.f32.partialorder %v10664_v42, 0.0 }
 0x322   :  { %v8727_v53 = vpop.eup %8726  ;;  %v3265_v59 = vsel %vm3263_vm12, %v3264_v32, %v3262_v8  ;;  %vm3297_vm5 = vcmp.eq.f32.partialorder %v10668_v34, inf  ;;  %vm3299_vm9 = vcmp.eq.f32.partialorder %v10668_v34, 0.0 }
 0x323   :  { %v8729_v56 = vpop.eup %8728  ;;  %v3279_v16 = vmul.f32 %v8727_v53, %v10664_v42 }
 0x324   :  { %v3291_v26 = vmul.f32 %v8729_v56, %v10668_v34  ;;  %v8731_v17 = vpop.eup %8730 }
 0x325   :  { %v3280_v38 = vmul.f32 %v8727_v53, %v3279_v16  ;;  %v3276_v16 = vand.u32 2147483648, %v10645_v33  ;;  %v4624_v0 = vadd.f32 1.0, %v8731_v17  ;;  %v2086_v17 = vsel %vm1637_vm1, %v10643_v29, 0.0 }
 0x326   :  { %v3292_v63 = vmul.f32 %v8729_v56, %v3291_v26  ;;  %v839_v26 = vrot.slane %v10658_v30, 6 }
 0x327   :  { %v10703_v6 = vld [vmem:[#allocation1] sm:$0xff]  ;;  %8732 = vrcp.f32 %v4624_v0 }
 0x328   :  { %1265 = vst [vmem:[#allocation1] ss:$9 sm:$0xff] %v834_v46  ;;  %v3281_v46 = vmul.f32 0.5, %v3280_v38  ;;  %v3293_v61 = vmul.f32 0.5, %v3292_v63  ;;  %v320_v63 = vpop.f32.mrf.mxu0 }
 0x329   :  { %1266 = vst [vmem:[#allocation1 + $0x1] ss:$9 sm:$0xff] %v835_v39  ;;  %v4279_v39 = vsel %vm4224_vm10, %v3241_v9, %v4278_v41  ;;  %v10759_v32 = vmul.f32 %v320_v63, %v320_v63 }
 0x32a   :  { %1267 = vst [vmem:[#allocation1 + $0x2] ss:$9 sm:$0xff] %v836_v55  ;;  %v3282_v18 = vsub.f32 1.5, %v3281_v46  ;;  %v3274_v55 = vsel %vm3273_vm13, %v10645_v33, %v3272_v47  ;;  %v3294_v50 = vsub.f32 1.5, %v3293_v61  ;;  %v4280_v47 = vsel %vm4226_vm15, %v3253_v52, %v4279_v39 }
 0x32b   :  { %v3277_v44 = vsel %vm3275_vm14, %v3276_v16, %v3274_v55  ;;  %v4281_v62 = vsel %vm4228_vm3, %v3265_v59, %v4280_v47  ;;  %v2093_v52 = vsel %vm1637_vm1, %v10662_v37, 0.0  ;;  %v4721_v16 = vand.u32 2147483648, %v4624_v0 }
 0x32c   :  { %v3283_v35 = vmul.f32 %v8727_v53, %v3282_v18  ;;  %v3295_v38 = vmul.f32 %v8729_v56, %v3294_v50  ;;  %v3288_v53 = vand.u32 2147483648, %v10664_v42  ;;  %v3300_v56 = vand.u32 2147483648, %v10668_v34 }
 0x32d   :  { %v4282_v41 = vsel %vm4230_vm6, %v3277_v44, %v4281_v62  ;;  %v8733_v18 = vpop.eup %8732  ;;  %v2094_v37 = vrot.slane %v2093_v52, 4  ;;  %vm4715_vm13 = vweird.f32 %v4624_v0  ;;  %v4722_v44 = vor.u32 1.1754944e-38, %v4721_v16 }
 0x32e   :  { %v3284_v9 = vmul.f32 %v3283_v35, %v10664_v42  ;;  %v3296_v57 = vmul.f32 %v3295_v38, %v10668_v34  ;;  %v4711_v39 = vmul.f32 %v8733_v18, %v4624_v0  ;;  %v61_v35 = vld [vmem:[%s13464_s1 + $0x108] sm:$0xff]  ;;  %vm4716_vm12 = vweird.f32 %v8733_v18 }
 0x32f   :  { %8392 = vmatmul.msk.f32.gmra.mxu0 %vm80_vm0, %v61_v35  ;;  %vm4717_vm14 = vmor %vm4715_vm13, %vm4716_vm12 }
 0x330   :  { %v3286_v33 = vsel %vm3285_vm2, %v10664_v42, %v3284_v9  ;;  %v3298_v46 = vsel %vm3297_vm5, %v10668_v34, %v3296_v57  ;;  %v841_v34 = vrot.slane %v10759_v32, 1  ;;  %v4712_v50 = vsub.f32 1.0, %v4711_v39 }
 0x331   :  { %v1268_v24 = vld [vmem:[#allocation1] sm:$0xff]  ;;  %v3289_v28 = vsel %vm3287_vm4, %v3288_v53, %v3286_v33  ;;  %v3301_v61 = vsel %vm3299_vm9, %v3300_v56, %v3298_v46  ;;  %v2095_v53 = vadd.f32 %v2094_v37, %v2093_v52 }
 0x332   :  { %1269 = vst [vmem:[#allocation1] ss:$9 sm:$0xff] %v837_v31  ;;  %v4283_v8 = vsel %vm4232_vm7, %v3289_v28, %v4282_v41  ;;  %v840_v31 = vrot.slane %v10658_v30, 7  ;;  %v4713_v29 = vmul.f32 %v8733_v18, %v4712_v50  ;;  %v4719_v30 = vand.u32 2147483647, %v4624_v0 }
 0x333   :  { %1270 = vst [vmem:[#allocation1 + $0x1] ss:$9 sm:$0xff] %v838_v43  ;;  %v4284_v42 = vsel %vm4234_vm11, %v3301_v61, %v4283_v8  ;;  %v2100_v43 = vsel %vm1637_vm1, %v10703_v6, 0.0  ;;  %v10777_v6 = vpop.f32.mrf.mxu1  ;;  %8440 = vmatmul.msk.f32.gmra.mxu1 %vm80_vm0, %v61_v35  ;;  %v2107_v47 = vsel %vm1637_vm1, %v1268_v24, 0.0  ;;  %v842_v28 = vrot.slane %v10759_v32, 2 }
 0x334   :  { %1271 = vst [vmem:[#allocation1 + $0x2] ss:$9 sm:$0xff] %v839_v26  ;;  %8462 = vmatmul.msk.f32.gmra.mxu2 %vm80_vm0, %v4284_v42  ;;  %v2087_v26 = vrot.slane %v2086_v17, 4  ;;  %v2101_v59 = vrot.slane %v2100_v43, 4  ;;  %v4714_v38 = vadd.f32 %v8733_v18, %v4713_v29  ;;  %vm4720_vm2 = vcmp.eq.f32.partialorder %v4719_v30, 8.507059e+37 }
 0x335   :  { %13513 = vst [vmem:[#allocation16_spill] sm:$0xff] %v10777_v6  ;;  %v2108_v0 = vrot.slane %v2107_v47, 4  ;;  %v843_v41 = vrot.slane %v10759_v32, 3  ;;  %v2096_v24 = vrot.slane %v2095_v53, 2  ;;  %v844_v42 = vrot.slane %v10759_v32, 4 }
 0x336   :  { %v2088_v9 = vadd.f32 %v2087_v26, %v2086_v17  ;;  %v4718_v63 = vsel %vm4717_vm14, %v8733_v18, %v4714_v38  ;;  %v2102_v33 = vadd.f32 %v2101_v59, %v2100_v43  ;;  %v845_v35 = vrot.slane %v10759_v32, 5 }
 0x337   :  { %v4723_v57 = vsel %vm4720_vm2, %v4722_v44, %v4718_v63  ;;  %v2109_v39 = vadd.f32 %v2108_v0, %v2107_v47  ;;  %v2097_v17 = vadd.f32 %v2096_v24, %v2095_v53  ;;  %v846_v29 = vrot.slane %v10759_v32, 6  ;;  %v323_v44 = vpop.f32.mrf.mxu0 }
 0x338   :  { %v10783_v62 = vmul.f32 %v4723_v57, %v10696_v1  ;;  %v2089_v46 = vrot.slane %v2088_v9, 2  ;;  %v2103_v18 = vrot.slane %v2102_v33, 2  ;;  %v847_v38 = vrot.slane %v10759_v32, 7 }
 0x339   :  { %v2110_v52 = vrot.slane %v2109_v39, 2  ;;  %v2098_v43 = vrot.slane %v2097_v17, 1  ;;  %v10800_v57 = vmul.f32 %v323_v44, %v323_v44 }
 0x33a   :  { %13514 = vst [vmem:[#allocation17_spill] sm:$0xff] %v10783_v62  ;;  %8524 = vmatmul.msk.f32.gmra.mxu3 %vm80_vm0, %v10783_v62  ;;  %v2090_v1 = vadd.f32 %v2089_v46, %v2088_v9 }
 0x33b   :  { %v1272_v55 = vld [vmem:[#allocation1] sm:$0xff]  ;;  %v2111_v37 = vadd.f32 %v2110_v52, %v2109_v39  ;;  %v10796_v47 = vadd.f32 %v2098_v43, %v2097_v17  ;;  %v848_v46 = vrot.slane %v10800_v57, 1  ;;  %v849_v24 = vrot.slane %v10800_v57, 2 }
 0x33c   :  { %1273 = vst [vmem:[#allocation1] ss:$9 sm:$0xff] %v840_v31  ;;  %v2114_v56 = vsel %vm1637_vm1, %v1272_v55, 0.0  ;;  %v2091_v55 = vrot.slane %v2090_v1, 1  ;;  %v850_v43 = vrot.slane %v10800_v57, 3  ;;  %v853_v49 = vrot.slane %v10800_v57, 6 }
 0x33d   :  { %1274 = vst [vmem:[#allocation1 + $0x1] ss:$9 sm:$0xff] %v10759_v32  ;;  %v2115_v8 = vrot.slane %v2114_v56, 4  ;;  %v10805_v32 = vpop.f32.mrf.mxu1  ;;  %vm3321_vm9 = vcmp.eq.f32.partialorder %v10796_v47, inf  ;;  %vm3323_vm12 = vcmp.eq.f32.partialorder %v10796_v47, 0.0 }
 0x33e   :  { %1275 = vst [vmem:[#allocation1 + $0x2] ss:$9 sm:$0xff] %v841_v34  ;;  %v2104_v34 = vadd.f32 %v2103_v18, %v2102_v33  ;;  %v10794_v9 = vadd.f32 %v2091_v55, %v2090_v1  ;;  %v62_v33 = vld [vmem:[%s13464_s1 + $0x110] sm:$0xff] }
 0x33f   :  { %v2116_v31 = vadd.f32 %v2115_v8, %v2114_v56  ;;  %v2112_v56 = vrot.slane %v2111_v37, 1  ;;  %13515 = vst [vmem:[#allocation18_spill] sm:$0xff] %v10805_v32  ;;  %8393 = vmatmul.msk.f32.gmra.mxu0 %vm80_vm0, %v62_v33  ;;  %8441 = vmatmul.msk.f32.gmra.mxu1 %vm80_vm0, %v62_v33  ;;  %v852_v33 = vrot.slane %v10800_v57, 5 }
 0x340   :  { %v2105_v26 = vrot.slane %v2104_v34, 1  ;;  %8734 = vrsqrt.f32 %v10794_v9  ;;  %vm3309_vm4 = vcmp.eq.f32.partialorder %v10794_v9, inf  ;;  %vm3311_vm5 = vcmp.eq.f32.partialorder %v10794_v9, 0.0 }
 0x341   :  { %v2117_v16 = vrot.slane %v2116_v31, 2  ;;  %8736 = vrsqrt.f32 %v10796_v47 }
 0x342   :  { %v10798_v53 = vadd.f32 %v2105_v26, %v2104_v34 }
 0x343   :  { %v2118_v63 = vadd.f32 %v2117_v16, %v2116_v31  ;;  %v851_v16 = vrot.slane %v10800_v57, 4 }
 0x344   :  { %8738 = vrsqrt.f32 %v10798_v53  ;;  %vm3333_vm13 = vcmp.eq.f32.partialorder %v10798_v53, inf  ;;  %vm3335_vm14 = vcmp.eq.f32.partialorder %v10798_v53, 0.0 }
 0x345   :  { %v1276_v61 = vld [vmem:[#allocation1] sm:$0xff] }
 0x346   :  { %1277 = vst [vmem:[#allocation1] ss:$9 sm:$0xff] %v842_v28  ;;  %v2121_v50 = vsel %vm1637_vm1, %v1276_v61, 0.0  ;;  %v2119_v28 = vrot.slane %v2118_v63, 1  ;;  %v10818_v18 = vpop.eup %8734 }
 0x347   :  { %1278 = vst [vmem:[#allocation1 + $0x1] ss:$9 sm:$0xff] %v843_v41  ;;  %v2122_v59 = vrot.slane %v2121_v50, 4  ;;  %v10813_v41 = vadd.f32 %v2112_v56, %v2111_v37  ;;  %v8737_v39 = vpop.eup %8736  ;;  %v3303_v31 = vmul.f32 %v10818_v18, %v10794_v9 }
 0x348   :  { %1279 = vst [vmem:[#allocation1 + $0x2] ss:$9 sm:$0xff] %v844_v42  ;;  %v10816_v42 = vadd.f32 %v2119_v28, %v2118_v63  ;;  %v3315_v34 = vmul.f32 %v8737_v39, %v10796_v47 }
 0x349   :  { %v2123_v0 = vadd.f32 %v2122_v59, %v2121_v50  ;;  %8740 = vrsqrt.f32 %v10813_v41  ;;  %vm3345_vm2 = vcmp.eq.f32.partialorder %v10813_v41, inf }
 0x34a   :  { %v8739_v17 = vpop.eup %8738  ;;  %8742 = vrsqrt.f32 %v10816_v42  ;;  %v3316_v26 = vmul.f32 %v8737_v39, %v3315_v34 }
 0x34b   :  { %v2124_v61 = vrot.slane %v2123_v0, 2  ;;  %v3327_v55 = vmul.f32 %v8739_v17, %v10798_v53 }
 0x34d   :  { %v2125_v1 = vadd.f32 %v2124_v61, %v2123_v0  ;;  %v3328_v63 = vmul.f32 %v8739_v17, %v3327_v55  ;;  %v326_v55 = vpop.f32.mrf.mxu0 }
 0x34f   :  { %v1280_v30 = vld [vmem:[#allocation1] sm:$0xff]  ;;  %v2126_v52 = vrot.slane %v2125_v1, 1  ;;  %v10827_v50 = vpop.eup %8740 }
 0x350   :  { %1281 = vst [vmem:[#allocation1] ss:$9 sm:$0xff] %v845_v35  ;;  %v3304_v35 = vmul.f32 %v10818_v18, %v3303_v31  ;;  %v3339_v28 = vmul.f32 %v10827_v50, %v10813_v41 }
 0x351   :  { %1282 = vst [vmem:[#allocation1 + $0x1] ss:$9 sm:$0xff] %v846_v29  ;;  %v10832_v29 = vpop.eup %8742  ;;  %v10836_v59 = vadd.f32 %v2126_v52, %v2125_v1  ;;  %v3329_v1 = vmul.f32 0.5, %v3328_v63  ;;  %v854_v63 = vrot.slane %v10800_v57, 7 }
 0x352   :  { %1283 = vst [vmem:[#allocation1 + $0x2] ss:$9 sm:$0xff] %v847_v38  ;;  %v2128_v38 = vsel %vm1637_vm1, %v1280_v30, 0.0  ;;  %v3351_v30 = vmul.f32 %v10832_v29, %v10816_v42  ;;  %v3340_v52 = vmul.f32 %v10827_v50, %v3339_v28 }
 0x353   :  { %v2129_v56 = vrot.slane %v2128_v38, 4  ;;  %8744 = vrsqrt.f32 %v10836_v59 }
 0x354   :  { %v3352_v27 = vmul.f32 %v10832_v29, %v3351_v30 }
 0x356   :  { %v3353_v13 = vmul.f32 0.5, %v3352_v27  ;;  %v10865_v27 = vpop.f32.mrf.mxu1 }
 0x357   :  { %13516 = vst [vmem:[#allocation19_spill] sm:$0xff] %v10865_v27 }
 0x359   :  { %v1284_v8 = vld [vmem:[#allocation1] sm:$0xff] }
 0x35a   :  { %1285 = vst [vmem:[#allocation1] ss:$9 sm:$0xff] %v10800_v57  ;;  %v2135_v44 = vsel %vm1637_vm1, %v1284_v8, 0.0  ;;  %v3305_v8 = vmul.f32 0.5, %v3304_v35 }
 0x35b   :  { %1286 = vst [vmem:[#allocation1 + $0x1] ss:$9 sm:$0xff] %v848_v46  ;;  %v2136_v0 = vrot.slane %v2135_v44, 4  ;;  %v2130_v46 = vadd.f32 %v2129_v56, %v2128_v38 }
 0x35c   :  { %1287 = vst [vmem:[#allocation1 + $0x2] ss:$9 sm:$0xff] %v849_v24  ;;  %v3317_v24 = vmul.f32 0.5, %v3316_v26  ;;  %v3306_v38 = vsub.f32 1.5, %v3305_v8  ;;  %v10849_v26 = vmul.f32 %v326_v55, %v326_v55 }
 0x35d   :  { %v2137_v61 = vadd.f32 %v2136_v0, %v2135_v44  ;;  %v2131_v31 = vrot.slane %v2130_v46, 2  ;;  %v3330_v44 = vsub.f32 1.5, %v3329_v1  ;;  %v3341_v0 = vmul.f32 0.5, %v3340_v52 }
 0x35e   :  { %v3307_v8 = vmul.f32 %v10818_v18, %v3306_v38  ;;  %v3324_v38 = vand.u32 2147483648, %v10796_v47 }
 0x35f   :  { %v2138_v34 = vrot.slane %v2137_v61, 2  ;;  %v3331_v1 = vmul.f32 %v8739_v17, %v3330_v44 }
 0x361   :  { %v2139_v56 = vadd.f32 %v2138_v34, %v2137_v61  ;;  %v4521_v34 = vpop.f32.mrf.mxu3 }
 0x363   :  { %v10834_v37 = vld [vmem:[#allocation1] sm:$0xff] }
 0x364   :  { %1289 = vst [vmem:[#allocation1] ss:$9 sm:$0xff] %v850_v43  ;;  %v3318_v43 = vsub.f32 1.5, %v3317_v24  ;;  %v2140_v24 = vrot.slane %v2139_v56, 1 }
 0x365   :  { %1290 = vst [vmem:[#allocation1 + $0x1] ss:$9 sm:$0xff] %v851_v16  ;;  %v8745_v16 = vpop.eup %8744  ;;  %v4408_v17 = vpop.f32.mrf.mxu2 }
 0x366   :  { %1291 = vst [vmem:[#allocation1 + $0x2] ss:$9 sm:$0xff] %v852_v33  ;;  %v2132_v33 = vadd.f32 %v2131_v31, %v2130_v46  ;;  %v3363_v35 = vmul.f32 %v8745_v16, %v10836_v59  ;;  %v3319_v30 = vmul.f32 %v8737_v39, %v3318_v43  ;;  %v10859_v61 = vadd.f32 %v2140_v24, %v2139_v56 }
 0x367   :  { %v3342_v31 = vsub.f32 1.5, %v3341_v0  ;;  %v3354_v39 = vsub.f32 1.5, %v3353_v13  ;;  %v4522_v55 = vadd.f32 %v4521_v34, %v4408_v17  ;;  %v3312_v43 = vand.u32 2147483648, %v10794_v9 }
 0x368   :  { %v2133_v28 = vrot.slane %v2132_v33, 1  ;;  %v3364_v62 = vmul.f32 %v8745_v16, %v3363_v35  ;;  %v3320_v18 = vmul.f32 %v3319_v30, %v10796_v47  ;;  %v855_v56 = vrot.slane %v10849_v26, 1 }
 0x369   :  { %v3343_v13 = vmul.f32 %v10827_v50, %v3342_v31  ;;  %v10882_v44 = vadd.f32 %v10693_v12, %v4522_v55  ;;  %v3355_v35 = vmul.f32 %v10832_v29, %v3354_v39  ;;  %v856_v50 = vrot.slane %v10849_v26, 2 }
 0x36a   :  { %v10855_v46 = vadd.f32 %v2133_v28, %v2132_v33  ;;  %v3365_v57 = vmul.f32 0.5, %v3364_v62  ;;  %v3308_v62 = vmul.f32 %v3307_v8, %v10794_v9  ;;  %v3332_v33 = vmul.f32 %v3331_v1, %v10798_v53 }
 0x36b   :  { %v3322_v0 = vsel %vm3321_vm9, %v10796_v47, %v3320_v18  ;;  %v8493_v12 = vmul.f32 -1.442695, %v10882_v44  ;;  %v857_v1 = vrot.slane %v10849_v26, 3  ;;  %v3344_v29 = vmul.f32 %v3343_v13, %v10813_v41 }
 0x36c   :  { %8746 = vrsqrt.f32 %v10855_v46  ;;  %v3366_v52 = vsub.f32 1.5, %v3365_v57  ;;  %v3310_v24 = vsel %vm3309_vm4, %v10794_v9, %v3308_v62  ;;  %v3334_v31 = vsel %vm3333_vm13, %v10798_v53, %v3332_v33 }
 0x36d   :  { %v10853_v5 = vld [vmem:[#allocation1] sm:$0xff]  ;;  %8748 = vrsqrt.f32 %v10859_v61  ;;  %v3325_v34 = vsel %vm3323_vm12, %v3324_v38, %v3322_v0  ;;  %v3313_v18 = vsel %vm3311_vm5, %v3312_v43, %v3310_v24  ;;  %v3356_v39 = vmul.f32 %v3355_v35, %v10816_v42 }
 0x36e   :  { %1293 = vst [vmem:[#allocation1] ss:$9 sm:$0xff] %v853_v49  ;;  %v63_v49 = vld [vmem:[%s13464_s1 + $0x118] sm:$0xff]  ;;  %v3367_v30 = vmul.f32 %v8745_v16, %v3366_v52  ;;  %8750 = vpow2.f32 %v8493_v12  ;;  %vm3347_vm4 = vcmp.eq.f32.partialorder %v10813_v41, 0.0  ;;  %v3346_v55 = vsel %vm3345_vm2, %v10813_v41, %v3344_v29 }
 0x36f   :  { %1294 = vst [vmem:[#allocation1 + $0x1] ss:$9 sm:$0xff] %v854_v63  ;;  %8394 = vmatmul.msk.f32.gmra.mxu0 %vm80_vm0, %v63_v49  ;;  %8442 = vmatmul.msk.f32.gmra.mxu1 %vm80_vm0, %v63_v49  ;;  %v3336_v49 = vand.u32 2147483648, %v10798_v53  ;;  %v3348_v33 = vand.u32 2147483648, %v10813_v41  ;;  %v4285_v9 = vsel %vm4222_vm8, %v3325_v34, %v3313_v18  ;;  %vm3357_vm5 = vcmp.eq.f32.partialorder %v10816_v42, inf }
 0x370   :  { %1295 = vst [vmem:[#allocation1 + $0x2] ss:$9 sm:$0xff] %v10849_v26  ;;  %v3368_v47 = vmul.f32 %v3367_v30, %v10836_v59  ;;  %vm3359_vm9 = vcmp.eq.f32.partialorder %v10816_v42, 0.0  ;;  %v3360_v43 = vand.u32 2147483648, %v10816_v42  ;;  %v3358_v38 = vsel %vm3357_vm5, %v10816_v42, %v3356_v39 }
 0x371   :  { %v3337_v62 = vsel %vm3335_vm14, %v3336_v49, %v3334_v31  ;;  %vm3369_vm12 = vcmp.eq.f32.partialorder %v10836_v59, inf  ;;  %v3349_v24 = vsel %vm3347_vm4, %v3348_v33, %v3346_v55  ;;  %v3372_v31 = vand.u32 2147483648, %v10836_v59 }
 0x372   :  { %v8747_v63 = vpop.eup %8746  ;;  %v4286_v0 = vsel %vm4224_vm10, %v3337_v62, %v4285_v9  ;;  %v3370_v30 = vsel %vm3369_vm12, %v10836_v59, %v3368_v47  ;;  %v860_v34 = vrot.slane %v10849_v26, 6  ;;  %vm3371_vm13 = vcmp.eq.f32.partialorder %v10836_v59, 0.0  ;;  %v329_v62 = vpop.f32.mrf.mxu0 }
 0x373   :  { %v8749_v8 = vpop.eup %8748  ;;  %v3375_v57 = vmul.f32 %v8747_v63, %v10855_v46  ;;  %v3373_v41 = vsel %vm3371_vm13, %v3372_v31, %v3370_v30  ;;  %vm3381_vm14 = vcmp.eq.f32.partialorder %v10855_v46, inf  ;;  %vm3383_vm2 = vcmp.eq.f32.partialorder %v10855_v46, 0.0 }
 0x374   :  { %v3387_v16 = vmul.f32 %v8749_v8, %v10859_v61  ;;  %v8751_v35 = vpop.eup %8750  ;;  %vm3393_vm4 = vcmp.eq.f32.partialorder %v10859_v61, inf  ;;  %vm3395_vm5 = vcmp.eq.f32.partialorder %v10859_v61, 0.0 }
 0x375   :  { %v3376_v17 = vmul.f32 %v8747_v63, %v3375_v57  ;;  %v4625_v57 = vadd.f32 1.0, %v8751_v35  ;;  %v2149_v35 = vsel %vm1637_vm1, %v10853_v5, 0.0 }
 0x376   :  { %v3388_v52 = vmul.f32 %v8749_v8, %v3387_v16  ;;  %v3361_v16 = vsel %vm3359_vm9, %v3360_v43, %v3358_v38  ;;  %v2150_v5 = vrot.slane %v2149_v35, 4 }
 0x377   :  { %v10889_v28 = vld [vmem:[#allocation1] sm:$0xff]  ;;  %v3377_v13 = vmul.f32 0.5, %v3376_v17  ;;  %v4287_v17 = vsel %vm4226_vm15, %v3349_v24, %v4286_v0  ;;  %8752 = vrcp.f32 %v4625_v57  ;;  %v861_v0 = vrot.slane %v10849_v26, 7 }
 0x378   :  { %1297 = vst [vmem:[#allocation1] ss:$9 sm:$0xff] %v855_v56  ;;  %v3389_v53 = vmul.f32 0.5, %v3388_v52  ;;  %v4288_v47 = vsel %vm4228_vm3, %v3361_v16, %v4287_v17  ;;  %v2156_v30 = vsel %vm1637_vm1, %v10889_v28, 0.0  ;;  %vm4730_vm12 = vweird.f32 %v4625_v57  ;;  %v10961_v28 = vpop.f32.mrf.mxu1 }
 0x379   :  { %1298 = vst [vmem:[#allocation1 + $0x1] ss:$9 sm:$0xff] %v856_v50  ;;  %v3378_v56 = vsub.f32 1.5, %v3377_v13  ;;  %v858_v50 = vrot.slane %v10849_v26, 4  ;;  %v4289_v33 = vsel %vm4230_vm6, %v3373_v41, %v4288_v47  ;;  %v10943_v13 = vmul.f32 %v329_v62, %v329_v62 }
 0x37a   :  { %1299 = vst [vmem:[#allocation1 + $0x2] ss:$9 sm:$0xff] %v857_v1  ;;  %v3390_v12 = vsub.f32 1.5, %v3389_v53  ;;  %v859_v1 = vrot.slane %v10849_v26, 5  ;;  %v4734_v26 = vand.u32 2147483647, %v4625_v57  ;;  %v2151_v17 = vadd.f32 %v2150_v5, %v2149_v35 }
 0x37b   :  { %v3379_v29 = vmul.f32 %v8747_v63, %v3378_v56  ;;  %v3384_v63 = vand.u32 2147483648, %v10855_v46  ;;  %v2142_v56 = vsel %vm1637_vm1, %v10834_v37, 0.0  ;;  %13517 = vst [vmem:[#allocation20_spill] sm:$0xff] %v10961_v28  ;;  %v868_v5 = vrot.slane %v10943_v13, 7 }
 0x37c   :  { %v3391_v18 = vmul.f32 %v8749_v8, %v3390_v12  ;;  %v3396_v8 = vand.u32 2147483648, %v10859_v61  ;;  %v4736_v12 = vand.u32 2147483648, %v4625_v57  ;;  %v2143_v31 = vrot.slane %v2142_v56, 4 }
 0x37d   :  { %v3380_v39 = vmul.f32 %v3379_v29, %v10855_v46  ;;  %v8753_v53 = vpop.eup %8752  ;;  %v2157_v29 = vrot.slane %v2156_v30, 4 }
 0x37e   :  { %v3392_v42 = vmul.f32 %v3391_v18, %v10859_v61  ;;  %v4726_v38 = vmul.f32 %v8753_v53, %v4625_v57  ;;  %vm4731_vm9 = vweird.f32 %v8753_v53  ;;  %v4737_v16 = vor.u32 1.1754944e-38, %v4736_v12 }
 0x37f   :  { %v3382_v59 = vsel %vm3381_vm14, %v10855_v46, %v3380_v39  ;;  %vm4732_vm13 = vmor %vm4730_vm12, %vm4731_vm9  ;;  %v2144_v18 = vadd.f32 %v2143_v31, %v2142_v56  ;;  %vm4735_vm14 = vcmp.eq.f32.partialorder %v4734_v26, 8.507059e+37 }
 0x380   :  { %v3385_v52 = vsel %vm3383_vm2, %v3384_v63, %v3382_v59  ;;  %v3394_v55 = vsel %vm3393_vm4, %v10859_v61, %v3392_v42  ;;  %v862_v61 = vrot.slane %v10943_v13, 1  ;;  %v4727_v24 = vsub.f32 1.0, %v4726_v38 }
 0x381   :  { %v1300_v49 = vld [vmem:[#allocation1] sm:$0xff]  ;;  %v3397_v9 = vsel %vm3395_vm5, %v3396_v8, %v3394_v55  ;;  %v4290_v43 = vsel %vm4232_vm7, %v3385_v52, %v4289_v33  ;;  %v2158_v63 = vadd.f32 %v2157_v29, %v2156_v30  ;;  %v863_v8 = vrot.slane %v10943_v13, 2  ;;  %v332_v29 = vpop.f32.mrf.mxu0 }
 0x382   :  { %1301 = vst [vmem:[#allocation1] ss:$9 sm:$0xff] %v858_v50  ;;  %v4291_v46 = vsel %vm4234_vm11, %v3397_v9, %v4290_v43  ;;  %v4728_v37 = vmul.f32 %v8753_v53, %v4727_v24  ;;  %v2163_v41 = vsel %vm1637_vm1, %v1300_v49, 0.0  ;;  %v2145_v47 = vrot.slane %v2144_v18, 2 }
 0x383   :  { %1302 = vst [vmem:[#allocation1 + $0x1] ss:$9 sm:$0xff] %v859_v1  ;;  %8463 = vmatmul.msk.f32.gmra.mxu2 %vm80_vm0, %v4291_v46  ;;  %v64_v1 = vld [vmem:[%s13464_s1 + $0x120] sm:$0xff]  ;;  %v2164_v57 = vrot.slane %v2163_v41, 4  ;;  %v864_v52 = vrot.slane %v10943_v13, 3  ;;  %v2152_v49 = vrot.slane %v2151_v17, 2 }
 0x384   :  { %1303 = vst [vmem:[#allocation1 + $0x2] ss:$9 sm:$0xff] %v860_v34  ;;  %8395 = vmatmul.msk.f32.gmra.mxu0 %vm80_vm0, %v64_v1  ;;  %v4729_v34 = vadd.f32 %v8753_v53, %v4728_v37  ;;  %8443 = vmatmul.msk.f32.gmra.mxu1 %vm80_vm0, %v64_v1  ;;  %v865_v9 = vrot.slane %v10943_v13, 4  ;;  %v2159_v43 = vrot.slane %v2158_v63, 2  ;;  %v866_v30 = vrot.slane %v10943_v13, 5 }
 0x385   :  { %v2165_v46 = vadd.f32 %v2164_v57, %v2163_v41  ;;  %v867_v1 = vrot.slane %v10943_v13, 6 }
 0x386   :  { %v4733_v39 = vsel %vm4732_vm13, %v8753_v53, %v4729_v34  ;;  %v2153_v53 = vadd.f32 %v2152_v49, %v2151_v17  ;;  %v2160_v56 = vadd.f32 %v2159_v43, %v2158_v63  ;;  %v65_v17 = vld [vmem:[%s13464_s1 + $0x128] sm:$0xff] }
 0x387   :  { %v4738_v62 = vsel %vm4735_vm14, %v4737_v16, %v4733_v39  ;;  %v10984_v39 = vmul.f32 %v332_v29, %v332_v29 }
 0x388   :  { %v10967_v59 = vmul.f32 %v4738_v62, %v10882_v44  ;;  %v2146_v44 = vadd.f32 %v2145_v47, %v2144_v18  ;;  %v2161_v12 = vrot.slane %v2160_v56, 1 }
 0x389   :  { %v869_v57 = vrot.slane %v10984_v39, 1  ;;  %v873_v29 = vrot.slane %v10984_v39, 5 }
 0x38a   :  { %13518 = vst [vmem:[#allocation21_spill] sm:$0xff] %v10967_v59  ;;  %8525 = vmatmul.msk.f32.gmra.mxu3 %vm80_vm0, %v10967_v59  ;;  %v10982_v41 = vadd.f32 %v2161_v12, %v2160_v56 }
 0x38b   :  { %v1304_v50 = vld [vmem:[#allocation1] sm:$0xff] }
 0x38c   :  { %1305 = vst [vmem:[#allocation1] ss:$9 sm:$0xff] %v861_v0  ;;  %v2170_v42 = vsel %vm1637_vm1, %v1304_v50, 0.0  ;;  %v2166_v0 = vrot.slane %v2165_v46, 2  ;;  %v2154_v50 = vrot.slane %v2153_v53, 1  ;;  %8396 = vmatmul.msk.f32.gmra.mxu0 %vm80_vm0, %v65_v17  ;;  %vm3429_vm12 = vcmp.eq.f32.partialorder %v10982_v41, inf }
 0x38d   :  { %1306 = vst [vmem:[#allocation1 + $0x1] ss:$9 sm:$0xff] %v10943_v13  ;;  %v2171_v33 = vrot.slane %v2170_v42, 4  ;;  %v10989_v13 = vpop.f32.mrf.mxu1  ;;  %8444 = vmatmul.msk.f32.gmra.mxu1 %vm80_vm0, %v65_v17  ;;  %vm3431_vm13 = vcmp.eq.f32.partialorder %v10982_v41, 0.0 }
 0x38e   :  { %1307 = vst [vmem:[#allocation1 + $0x2] ss:$9 sm:$0xff] %v862_v61  ;;  %v2147_v61 = vrot.slane %v2146_v44, 1  ;;  %v2167_v37 = vadd.f32 %v2166_v0, %v2165_v46  ;;  %v10980_v16 = vadd.f32 %v2154_v50, %v2153_v53 }
 0x38f   :  { %v2172_v38 = vadd.f32 %v2171_v33, %v2170_v42  ;;  %13519 = vst [vmem:[#allocation22_spill] sm:$0xff] %v10989_v13 }
 0x390   :  { %v10978_v34 = vadd.f32 %v2147_v61, %v2146_v44  ;;  %v2168_v62 = vrot.slane %v2167_v37, 1  ;;  %v871_v61 = vrot.slane %v10984_v39, 3  ;;  %vm3417_vm5 = vcmp.eq.f32.partialorder %v10980_v16, inf }
 0x391   :  { %v2173_v24 = vrot.slane %v2172_v38, 2  ;;  %vm3419_vm9 = vcmp.eq.f32.partialorder %v10980_v16, 0.0 }
 0x392   :  { %8754 = vrsqrt.f32 %v10978_v34  ;;  %vm3405_vm2 = vcmp.eq.f32.partialorder %v10978_v34, inf  ;;  %vm3407_vm4 = vcmp.eq.f32.partialorder %v10978_v34, 0.0 }
 0x393   :  { %v2174_v18 = vadd.f32 %v2173_v24, %v2172_v38  ;;  %8756 = vrsqrt.f32 %v10980_v16 }
 0x394   :  { %8758 = vrsqrt.f32 %v10982_v41 }
 0x395   :  { %v1308_v55 = vld [vmem:[#allocation1] sm:$0xff]  ;;  %v2175_v42 = vrot.slane %v2174_v18, 1 }
 0x396   :  { %1309 = vst [vmem:[#allocation1] ss:$9 sm:$0xff] %v863_v8  ;;  %v2177_v35 = vsel %vm1637_vm1, %v1308_v55, 0.0  ;;  %v10997_v8 = vadd.f32 %v2168_v62, %v2167_v37 }
 0x397   :  { %1310 = vst [vmem:[#allocation1 + $0x1] ss:$9 sm:$0xff] %v864_v52  ;;  %v2178_v26 = vrot.slane %v2177_v35, 4  ;;  %v870_v52 = vrot.slane %v10984_v39, 2  ;;  %v11000_v49 = vadd.f32 %v2175_v42, %v2174_v18 }
 0x398   :  { %1311 = vst [vmem:[#allocation1 + $0x2] ss:$9 sm:$0xff] %v865_v9  ;;  %v11002_v33 = vpop.eup %8754  ;;  %8760 = vrsqrt.f32 %v10997_v8  ;;  %vm3441_vm14 = vcmp.eq.f32.partialorder %v10997_v8, inf }
 0x399   :  { %v2179_v63 = vadd.f32 %v2178_v26, %v2177_v35  ;;  %v8757_v9 = vpop.eup %8756  ;;  %8762 = vrsqrt.f32 %v11000_v49  ;;  %v3399_v44 = vmul.f32 %v11002_v33, %v10978_v34  ;;  %v872_v35 = vrot.slane %v10984_v39, 4 }
 0x39a   :  { %v8759_v46 = vpop.eup %8758  ;;  %v3411_v53 = vmul.f32 %v8757_v9, %v10980_v16 }
 0x39b   :  { %v2180_v47 = vrot.slane %v2179_v63, 2  ;;  %v3423_v56 = vmul.f32 %v8759_v46, %v10982_v41  ;;  %v3400_v50 = vmul.f32 %v11002_v33, %v3399_v44 }
 0x39c   :  { %v3412_v24 = vmul.f32 %v8757_v9, %v3411_v53  ;;  %v335_v53 = vpop.f32.mrf.mxu0 }
 0x39d   :  { %v2181_v43 = vadd.f32 %v2180_v47, %v2179_v63  ;;  %v3401_v47 = vmul.f32 0.5, %v3400_v50 }
 0x39e   :  { %v11011_v0 = vpop.eup %8760 }
 0x39f   :  { %v1312_v31 = vld [vmem:[#allocation1] sm:$0xff]  ;;  %v2182_v38 = vrot.slane %v2181_v43, 1  ;;  %v3435_v62 = vmul.f32 %v11011_v0, %v10997_v8 }
 0x3a0   :  { %1313 = vst [vmem:[#allocation1] ss:$9 sm:$0xff] %v866_v30  ;;  %v11016_v30 = vpop.eup %8762  ;;  %v2184_v37 = vsel %vm1637_vm1, %v1312_v31, 0.0 }
 0x3a1   :  { %1314 = vst [vmem:[#allocation1 + $0x1] ss:$9 sm:$0xff] %v867_v1  ;;  %v11020_v1 = vadd.f32 %v2182_v38, %v2181_v43  ;;  %v2185_v18 = vrot.slane %v2184_v37, 4  ;;  %v3447_v31 = vmul.f32 %v11016_v30, %v11000_v49  ;;  %v3436_v44 = vmul.f32 %v11011_v0, %v3435_v62 }
 0x3a2   :  { %1315 = vst [vmem:[#allocation1 + $0x2] ss:$9 sm:$0xff] %v868_v5  ;;  %v3424_v5 = vmul.f32 %v8759_v46, %v3423_v56 }
 0x3a3   :  { %8764 = vrsqrt.f32 %v11020_v1  ;;  %v2186_v63 = vadd.f32 %v2185_v18, %v2184_v37  ;;  %v3448_v56 = vmul.f32 %v11016_v30, %v3447_v31  ;;  %v3402_v37 = vsub.f32 1.5, %v3401_v47 }
 0x3a5   :  { %v3449_v60 = vmul.f32 0.5, %v3448_v56  ;;  %v3403_v47 = vmul.f32 %v11002_v33, %v3402_v37  ;;  %v3420_v37 = vand.u32 2147483648, %v10980_v16 }
 0x3a9   :  { %v1316_v55 = vld [vmem:[#allocation1] sm:$0xff] }
 0x3aa   :  { %1317 = vst [vmem:[#allocation1] ss:$9 sm:$0xff] %v10984_v39  ;;  %v2191_v26 = vsel %vm1637_vm1, %v1316_v55, 0.0  ;;  %v2187_v55 = vrot.slane %v2186_v63, 2 }
 0x3ab   :  { %1318 = vst [vmem:[#allocation1 + $0x1] ss:$9 sm:$0xff] %v869_v57  ;;  %v2192_v17 = vrot.slane %v2191_v26, 4  ;;  %v3413_v57 = vmul.f32 0.5, %v3412_v24  ;;  %v11033_v24 = vmul.f32 %v335_v53, %v335_v53  ;;  %v3450_v53 = vsub.f32 1.5, %v3449_v60 }
 0x3ac   :  { %1319 = vst [vmem:[#allocation1 + $0x2] ss:$9 sm:$0xff] %v870_v52  ;;  %v3425_v52 = vmul.f32 0.5, %v3424_v5  ;;  %v875_v5 = vrot.slane %v10984_v39, 7 }
 0x3ad   :  { %v2193_v42 = vadd.f32 %v2192_v17, %v2191_v26  ;;  %v3414_v38 = vsub.f32 1.5, %v3413_v57  ;;  %v3437_v17 = vmul.f32 0.5, %v3436_v44  ;;  %v11049_v44 = vpop.f32.mrf.mxu1 }
 0x3ae   :  { %v3426_v26 = vsub.f32 1.5, %v3425_v52  ;;  %13520 = vst [vmem:[#allocation23_spill] sm:$0xff] %v11049_v44 }
 0x3af   :  { %v2194_v43 = vrot.slane %v2193_v42, 2  ;;  %v3415_v31 = vmul.f32 %v8757_v9, %v3414_v38  ;;  %v66_v9 = vld [vmem:[%s13464_s1 + $0x130] sm:$0xff] }
 0x3b0   :  { %v3427_v52 = vmul.f32 %v8759_v46, %v3426_v26  ;;  %8397 = vmatmul.msk.f32.gmra.mxu0 %vm80_vm0, %v66_v9  ;;  %8445 = vmatmul.msk.f32.gmra.mxu1 %vm80_vm0, %v66_v9  ;;  %v11068_v26 = vld [vmem:[%s13468_s4] ss:$0 sm:$0xff] }
 0x3b1   :  { %v2195_v18 = vadd.f32 %v2194_v43, %v2193_v42  ;;  %v4524_v43 = vpop.f32.mrf.mxu3  ;;  %v3416_v33 = vmul.f32 %v3415_v31, %v10980_v16 }
 0x3b3   :  { %v11018_v12 = vld [vmem:[#allocation1] sm:$0xff]  ;;  %v2196_v57 = vrot.slane %v2195_v18, 1 }
 0x3b4   :  { %1321 = vst [vmem:[#allocation1] ss:$9 sm:$0xff] %v871_v61  ;;  %v8765_v61 = vpop.eup %8764 }
 0x3b5   :  { %1322 = vst [vmem:[#allocation1 + $0x1] ss:$9 sm:$0xff] %v872_v35  ;;  %v874_v35 = vrot.slane %v10984_v39, 6  ;;  %v3459_v50 = vmul.f32 %v8765_v61, %v11020_v1  ;;  %v11043_v42 = vadd.f32 %v2196_v57, %v2195_v18 }
 0x3b6   :  { %1323 = vst [vmem:[#allocation1 + $0x2] ss:$9 sm:$0xff] %v873_v29  ;;  %v2188_v29 = vadd.f32 %v2187_v55, %v2186_v63  ;;  %v3438_v55 = vsub.f32 1.5, %v3437_v17  ;;  %v876_v17 = vrot.slane %v11033_v24, 1 }
 0x3b7   :  { %v3460_v54 = vmul.f32 %v8765_v61, %v3459_v50  ;;  %v4411_v46 = vpop.f32.mrf.mxu2  ;;  %v3418_v50 = vsel %vm3417_vm5, %v10980_v16, %v3416_v33  ;;  %vm3455_vm5 = vcmp.eq.f32.partialorder %v11000_v49, 0.0 }
 0x3b8   :  { %v2189_v62 = vrot.slane %v2188_v29, 1  ;;  %v4525_v56 = vadd.f32 %v4524_v43, %v4411_v46  ;;  %v3439_v60 = vmul.f32 %v11011_v0, %v3438_v55  ;;  %v3451_v0 = vmul.f32 %v11016_v30, %v3450_v53 }
 0x3b9   :  { %v3461_v39 = vmul.f32 0.5, %v3460_v54  ;;  %v3404_v54 = vmul.f32 %v3403_v47, %v10978_v34  ;;  %v3421_v33 = vsel %vm3419_vm9, %v3420_v37, %v3418_v50  ;;  %v3444_v37 = vand.u32 2147483648, %v10997_v8 }
 0x3ba   :  { %v11039_v63 = vadd.f32 %v2189_v62, %v2188_v29  ;;  %v3428_v29 = vmul.f32 %v3427_v52, %v10982_v41  ;;  %v11071_v18 = vadd.f32 %v11068_v26, %v4525_v56  ;;  %v877_v62 = vrot.slane %v11033_v24, 2 }
 0x3bb   :  { %v3462_v38 = vsub.f32 1.5, %v3461_v39  ;;  %v3406_v31 = vsel %vm3405_vm2, %v10978_v34, %v3404_v54  ;;  %v878_v39 = vrot.slane %v11033_v24, 3  ;;  %v3440_v43 = vmul.f32 %v3439_v60, %v10997_v8 }
 0x3bc   :  { %8766 = vrsqrt.f32 %v11039_v63  ;;  %v8494_v52 = vmul.f32 -1.442695, %v11071_v18  ;;  %v3430_v30 = vsel %vm3429_vm12, %v10982_v41, %v3428_v29  ;;  %v3452_v54 = vmul.f32 %v3451_v0, %v11000_v49 }
 0x3bd   :  { %v11037_v59 = vld [vmem:[#allocation1] sm:$0xff]  ;;  %8768 = vrsqrt.f32 %v11043_v42  ;;  %v3463_v47 = vmul.f32 %v8765_v61, %v3462_v38  ;;  %v3432_v61 = vand.u32 2147483648, %v10982_v41  ;;  %vm3443_vm2 = vcmp.eq.f32.partialorder %v10997_v8, 0.0 }
 0x3be   :  { %1325 = vst [vmem:[#allocation1] ss:$9 sm:$0xff] %v874_v35  ;;  %v3408_v35 = vand.u32 2147483648, %v10978_v34  ;;  %8770 = vpow2.f32 %v8494_v52  ;;  %v3442_v60 = vsel %vm3441_vm14, %v10997_v8, %v3440_v43  ;;  %vm3465_vm9 = vcmp.eq.f32.partialorder %v11020_v1, inf }
 0x3bf   :  { %1326 = vst [vmem:[#allocation1 + $0x1] ss:$9 sm:$0xff] %v875_v5  ;;  %v3433_v56 = vsel %vm3431_vm13, %v3432_v61, %v3430_v30  ;;  %v3464_v16 = vmul.f32 %v3463_v47, %v11020_v1  ;;  %v879_v47 = vrot.slane %v11033_v24, 4  ;;  %v3445_v52 = vsel %vm3443_vm2, %v3444_v37, %v3442_v60 }
 0x3c0   :  { %1327 = vst [vmem:[#allocation1 + $0x2] ss:$9 sm:$0xff] %v11033_v24  ;;  %v3409_v46 = vsel %vm3407_vm4, %v3408_v35, %v3406_v31  ;;  %vm3453_vm4 = vcmp.eq.f32.partialorder %v11000_v49, inf  ;;  %v3456_v35 = vand.u32 2147483648, %v11000_v49  ;;  %v880_v43 = vrot.slane %v11033_v24, 5 }
 0x3c1   :  { %v4292_v34 = vsel %vm4222_vm8, %v3421_v33, %v3409_v46  ;;  %v3454_v50 = vsel %vm3453_vm4, %v11000_v49, %v3452_v54  ;;  %vm3467_vm12 = vcmp.eq.f32.partialorder %v11020_v1, 0.0  ;;  %vm3477_vm13 = vcmp.eq.f32.partialorder %v11039_v63, inf }
 0x3c2   :  { %v8767_v5 = vpop.eup %8766  ;;  %v3457_v54 = vsel %vm3455_vm5, %v3456_v35, %v3454_v50  ;;  %vm3479_vm14 = vcmp.eq.f32.partialorder %v11039_v63, 0.0  ;;  %vm3489_vm2 = vcmp.eq.f32.partialorder %v11043_v42, inf  ;;  %vm3491_vm4 = vcmp.eq.f32.partialorder %v11043_v42, 0.0 }
 0x3c3   :  { %v8769_v55 = vpop.eup %8768  ;;  %v3471_v9 = vmul.f32 %v8767_v5, %v11039_v63 }
 0x3c4   :  { %v3483_v53 = vmul.f32 %v8769_v55, %v11043_v42  ;;  %v8771_v31 = vpop.eup %8770 }
 0x3c5   :  { %v3472_v38 = vmul.f32 %v8767_v5, %v3471_v9  ;;  %v3468_v9 = vand.u32 2147483648, %v11020_v1  ;;  %v4626_v61 = vadd.f32 1.0, %v8771_v31  ;;  %v2198_v31 = vsel %vm1637_vm1, %v11018_v12, 0.0 }
 0x3c6   :  { %v3484_v29 = vmul.f32 %v8769_v55, %v3483_v53  ;;  %v881_v53 = vrot.slane %v11033_v24, 6 }
 0x3c7   :  { %v11078_v57 = vld [vmem:[#allocation1] sm:$0xff]  ;;  %8772 = vrcp.f32 %v4626_v61 }
 0x3c8   :  { %1329 = vst [vmem:[#allocation1] ss:$9 sm:$0xff] %v876_v17  ;;  %v3473_v17 = vmul.f32 0.5, %v3472_v38  ;;  %v3485_v41 = vmul.f32 0.5, %v3484_v29  ;;  %v338_v29 = vpop.f32.mrf.mxu0 }
 0x3c9   :  { %1330 = vst [vmem:[#allocation1 + $0x1] ss:$9 sm:$0xff] %v877_v62  ;;  %v4293_v62 = vsel %vm4224_vm10, %v3433_v56, %v4292_v34  ;;  %v11134_v35 = vmul.f32 %v338_v29, %v338_v29 }
 0x3ca   :  { %1331 = vst [vmem:[#allocation1 + $0x2] ss:$9 sm:$0xff] %v878_v39  ;;  %v3474_v0 = vsub.f32 1.5, %v3473_v17  ;;  %v3466_v39 = vsel %vm3465_vm9, %v11020_v1, %v3464_v16  ;;  %v3486_v30 = vsub.f32 1.5, %v3485_v41  ;;  %v4294_v16 = vsel %vm4226_vm15, %v3445_v52, %v4293_v62 }
 0x3cb   :  { %v3469_v8 = vsel %vm3467_vm12, %v3468_v9, %v3466_v39  ;;  %v4295_v60 = vsel %vm4228_vm3, %v3457_v54, %v4294_v16  ;;  %v2205_v52 = vsel %vm1637_vm1, %v11037_v59, 0.0  ;;  %v4751_v9 = vand.u32 2147483648, %v4626_v61 }
 0x3cc   :  { %v3475_v33 = vmul.f32 %v8767_v5, %v3474_v0  ;;  %v3487_v38 = vmul.f32 %v8769_v55, %v3486_v30  ;;  %v3480_v5 = vand.u32 2147483648, %v11039_v63  ;;  %v3492_v55 = vand.u32 2147483648, %v11043_v42 }
 0x3cd   :  { %v4296_v34 = vsel %vm4230_vm6, %v3469_v8, %v4295_v60  ;;  %v8773_v0 = vpop.eup %8772  ;;  %v2206_v59 = vrot.slane %v2205_v52, 4  ;;  %vm4745_vm9 = vweird.f32 %v4626_v61  ;;  %v4752_v8 = vor.u32 1.1754944e-38, %v4751_v9 }
 0x3ce   :  { %v3476_v56 = vmul.f32 %v3475_v33, %v11039_v63  ;;  %v3488_v49 = vmul.f32 %v3487_v38, %v11043_v42  ;;  %v4741_v62 = vmul.f32 %v8773_v0, %v4626_v61  ;;  %v67_v33 = vld [vmem:[%s13464_s1 + $0x138] sm:$0xff]  ;;  %vm4746_vm5 = vweird.f32 %v8773_v0 }
 0x3cf   :  { %8398 = vmatmul.msk.f32.gmra.mxu0 %vm80_vm0, %v67_v33  ;;  %vm4747_vm12 = vmor %vm4745_vm9, %vm4746_vm5 }
 0x3d0   :  { %v3478_v1 = vsel %vm3477_vm13, %v11039_v63, %v3476_v56  ;;  %v3490_v17 = vsel %vm3489_vm2, %v11043_v42, %v3488_v49  ;;  %v883_v42 = vrot.slane %v11134_v35, 1  ;;  %v4742_v30 = vsub.f32 1.0, %v4741_v62 }
 0x3d1   :  { %v1332_v46 = vld [vmem:[#allocation1] sm:$0xff]  ;;  %v3481_v37 = vsel %vm3479_vm14, %v3480_v5, %v3478_v1  ;;  %v3493_v41 = vsel %vm3491_vm4, %v3492_v55, %v3490_v17  ;;  %v2207_v5 = vadd.f32 %v2206_v59, %v2205_v52 }
 0x3d2   :  { %1333 = vst [vmem:[#allocation1] ss:$9 sm:$0xff] %v879_v47  ;;  %v4297_v50 = vsel %vm4232_vm7, %v3481_v37, %v4296_v34  ;;  %v882_v47 = vrot.slane %v11033_v24, 7  ;;  %v4743_v12 = vmul.f32 %v8773_v0, %v4742_v30  ;;  %v4749_v24 = vand.u32 2147483647, %v4626_v61 }
 0x3d3   :  { %1334 = vst [vmem:[#allocation1 + $0x1] ss:$9 sm:$0xff] %v880_v43  ;;  %v4298_v63 = vsel %vm4234_vm11, %v3493_v41, %v4297_v50  ;;  %v2212_v43 = vsel %vm1637_vm1, %v11078_v57, 0.0  ;;  %v11152_v57 = vpop.f32.mrf.mxu1  ;;  %8446 = vmatmul.msk.f32.gmra.mxu1 %vm80_vm0, %v67_v33  ;;  %v2219_v16 = vsel %vm1637_vm1, %v1332_v46, 0.0  ;;  %v884_v37 = vrot.slane %v11134_v35, 2 }
 0x3d4   :  { %1335 = vst [vmem:[#allocation1 + $0x2] ss:$9 sm:$0xff] %v881_v53  ;;  %8464 = vmatmul.msk.f32.gmra.mxu2 %vm80_vm0, %v4298_v63  ;;  %v2199_v53 = vrot.slane %v2198_v31, 4  ;;  %v2213_v54 = vrot.slane %v2212_v43, 4  ;;  %v4744_v38 = vadd.f32 %v8773_v0, %v4743_v12  ;;  %vm4750_vm13 = vcmp.eq.f32.partialorder %v4749_v24, 8.507059e+37 }
 0x3d5   :  { %13521 = vst [vmem:[#allocation24_spill] sm:$0xff] %v11152_v57  ;;  %v2220_v61 = vrot.slane %v2219_v16, 4  ;;  %v885_v34 = vrot.slane %v11134_v35, 3  ;;  %v2208_v46 = vrot.slane %v2207_v5, 2  ;;  %v886_v63 = vrot.slane %v11134_v35, 4 }
 0x3d6   :  { %v2200_v56 = vadd.f32 %v2199_v53, %v2198_v31  ;;  %v4748_v29 = vsel %vm4747_vm12, %v8773_v0, %v4744_v38  ;;  %v2214_v1 = vadd.f32 %v2213_v54, %v2212_v43  ;;  %v887_v33 = vrot.slane %v11134_v35, 5 }
 0x3d7   :  { %v4753_v49 = vsel %vm4750_vm13, %v4752_v8, %v4748_v29  ;;  %v2221_v62 = vadd.f32 %v2220_v61, %v2219_v16  ;;  %v2209_v31 = vadd.f32 %v2208_v46, %v2207_v5  ;;  %v888_v12 = vrot.slane %v11134_v35, 6  ;;  %v341_v8 = vpop.f32.mrf.mxu0 }
 0x3d8   :  { %v11158_v60 = vmul.f32 %v4753_v49, %v11071_v18  ;;  %v2201_v17 = vrot.slane %v2200_v56, 2  ;;  %v2215_v0 = vrot.slane %v2214_v1, 2  ;;  %v889_v38 = vrot.slane %v11134_v35, 7 }
 0x3d9   :  { %v2222_v52 = vrot.slane %v2221_v62, 2  ;;  %v2210_v43 = vrot.slane %v2209_v31, 1  ;;  %v11175_v49 = vmul.f32 %v341_v8, %v341_v8 }
 0x3da   :  { %13522 = vst [vmem:[#allocation25_spill] sm:$0xff] %v11158_v60  ;;  %8526 = vmatmul.msk.f32.gmra.mxu3 %vm80_vm0, %v11158_v60  ;;  %v2202_v18 = vadd.f32 %v2201_v17, %v2200_v56 }
 0x3db   :  { %v1336_v39 = vld [vmem:[#allocation1] sm:$0xff]  ;;  %v2223_v59 = vadd.f32 %v2222_v52, %v2221_v62  ;;  %v11171_v16 = vadd.f32 %v2210_v43, %v2209_v31  ;;  %v894_v8 = vrot.slane %v11175_v49, 5  ;;  %v895_v60 = vrot.slane %v11175_v49, 6 }
 0x3dc   :  { %1337 = vst [vmem:[#allocation1] ss:$9 sm:$0xff] %v882_v47  ;;  %v2226_v55 = vsel %vm1637_vm1, %v1336_v39, 0.0  ;;  %v2203_v39 = vrot.slane %v2202_v18, 1 }
 0x3dd   :  { %1338 = vst [vmem:[#allocation1 + $0x1] ss:$9 sm:$0xff] %v11134_v35  ;;  %v2227_v50 = vrot.slane %v2226_v55, 4  ;;  %v890_v35 = vrot.slane %v11175_v49, 1  ;;  %vm3513_vm4 = vcmp.eq.f32.partialorder %v11171_v16, inf  ;;  %vm3515_vm5 = vcmp.eq.f32.partialorder %v11171_v16, 0.0 }
 0x3de   :  { %1339 = vst [vmem:[#allocation1 + $0x2] ss:$9 sm:$0xff] %v883_v42  ;;  %v2216_v42 = vadd.f32 %v2215_v0, %v2214_v1  ;;  %v11169_v56 = vadd.f32 %v2203_v39, %v2202_v18  ;;  %v2224_v1 = vrot.slane %v2223_v59, 1  ;;  %v892_v39 = vrot.slane %v11175_v49, 3 }
 0x3df   :  { %v2228_v47 = vadd.f32 %v2227_v50, %v2226_v55 }
 0x3e0   :  { %v2217_v53 = vrot.slane %v2216_v42, 1  ;;  %8774 = vrsqrt.f32 %v11169_v56  ;;  %vm3501_vm14 = vcmp.eq.f32.partialorder %v11169_v56, inf  ;;  %vm3503_vm2 = vcmp.eq.f32.partialorder %v11169_v56, 0.0 }
 0x3e1   :  { %v2229_v9 = vrot.slane %v2228_v47, 2  ;;  %8776 = vrsqrt.f32 %v11171_v16 }
 0x3e2   :  { %v11173_v5 = vadd.f32 %v2217_v53, %v2216_v42 }
 0x3e3   :  { %v2230_v29 = vadd.f32 %v2229_v9, %v2228_v47 }
 0x3e4   :  { %8778 = vrsqrt.f32 %v11173_v5  ;;  %vm3525_vm9 = vcmp.eq.f32.partialorder %v11173_v5, inf  ;;  %vm3527_vm12 = vcmp.eq.f32.partialorder %v11173_v5, 0.0 }
 0x3e5   :  { %v1340_v41 = vld [vmem:[#allocation1] sm:$0xff]  ;;  %v2231_v61 = vrot.slane %v2230_v29, 1 }
 0x3e6   :  { %1341 = vst [vmem:[#allocation1] ss:$9 sm:$0xff] %v884_v37  ;;  %v2233_v30 = vsel %vm1637_vm1, %v1340_v41, 0.0  ;;  %v11181_v37 = vadd.f32 %v2224_v1, %v2223_v59  ;;  %v11186_v50 = vpop.eup %8774 }
 0x3e7   :  { %1342 = vst [vmem:[#allocation1 + $0x1] ss:$9 sm:$0xff] %v885_v34  ;;  %v2234_v54 = vrot.slane %v2233_v30, 4  ;;  %v891_v34 = vrot.slane %v11175_v49, 2  ;;  %v11184_v46 = vadd.f32 %v2231_v61, %v2230_v29  ;;  %v3495_v18 = vmul.f32 %v11186_v50, %v11169_v56 }
 0x3e8   :  { %1343 = vst [vmem:[#allocation1 + $0x2] ss:$9 sm:$0xff] %v886_v63  ;;  %v8777_v63 = vpop.eup %8776  ;;  %8780 = vrsqrt.f32 %v11181_v37  ;;  %vm3537_vm13 = vcmp.eq.f32.partialorder %v11181_v37, inf }
 0x3e9   :  { %v2235_v55 = vadd.f32 %v2234_v54, %v2233_v30  ;;  %8782 = vrsqrt.f32 %v11184_v46  ;;  %v3507_v31 = vmul.f32 %v8777_v63, %v11171_v16  ;;  %v893_v30 = vrot.slane %v11175_v49, 4 }
 0x3ea   :  { %v8779_v62 = vpop.eup %8778  ;;  %v3496_v43 = vmul.f32 %v11186_v50, %v3495_v18 }
 0x3eb   :  { %v2236_v17 = vrot.slane %v2235_v55, 2  ;;  %v3519_v42 = vmul.f32 %v8779_v62, %v11173_v5  ;;  %v3508_v9 = vmul.f32 %v8777_v63, %v3507_v31 }
 0x3ed   :  { %v2237_v0 = vadd.f32 %v2236_v17, %v2235_v55  ;;  %v3509_v17 = vmul.f32 0.5, %v3508_v9 }
 0x3ee   :  { %v11195_v52 = vpop.eup %8780 }
 0x3ef   :  { %v1344_v24 = vld [vmem:[#allocation1] sm:$0xff]  ;;  %v2238_v47 = vrot.slane %v2237_v0, 1  ;;  %v3531_v55 = vmul.f32 %v11195_v52, %v11181_v37 }
 0x3f0   :  { %1345 = vst [vmem:[#allocation1] ss:$9 sm:$0xff] %v887_v33  ;;  %v11200_v33 = vpop.eup %8782  ;;  %v2240_v59 = vsel %vm1637_vm1, %v1344_v24, 0.0 }
 0x3f1   :  { %1346 = vst [vmem:[#allocation1 + $0x1] ss:$9 sm:$0xff] %v888_v12  ;;  %v11204_v12 = vadd.f32 %v2238_v47, %v2237_v0  ;;  %v2241_v29 = vrot.slane %v2240_v59, 4  ;;  %v3543_v24 = vmul.f32 %v11200_v33, %v11184_v46  ;;  %v3532_v31 = vmul.f32 %v11195_v52, %v3531_v55  ;;  %v344_v47 = vpop.f32.mrf.mxu0 }
 0x3f2   :  { %1347 = vst [vmem:[#allocation1 + $0x2] ss:$9 sm:$0xff] %v889_v38  ;;  %v3520_v38 = vmul.f32 %v8779_v62, %v3519_v42  ;;  %v3510_v42 = vsub.f32 1.5, %v3509_v17  ;;  %v11217_v9 = vmul.f32 %v344_v47, %v344_v47 }
 0x3f3   :  { %8784 = vrsqrt.f32 %v11204_v12  ;;  %v2242_v61 = vadd.f32 %v2241_v29, %v2240_v59 }
 0x3f5   :  { %v2243_v0 = vrot.slane %v2242_v61, 2 }
 0x3f9   :  { %v1348_v41 = vld [vmem:[#allocation1] sm:$0xff] }
 0x3fa   :  { %1349 = vst [vmem:[#allocation1] ss:$9 sm:$0xff] %v11175_v49  ;;  %v2247_v54 = vsel %vm1637_vm1, %v1348_v41, 0.0  ;;  %v3521_v41 = vmul.f32 0.5, %v3520_v38  ;;  %v896_v38 = vrot.slane %v11175_v49, 7 }
 0x3fb   :  { %1350 = vst [vmem:[#allocation1 + $0x1] ss:$9 sm:$0xff] %v890_v35  ;;  %v2248_v1 = vrot.slane %v2247_v54, 4 }
 0x3fc   :  { %1351 = vst [vmem:[#allocation1 + $0x2] ss:$9 sm:$0xff] %v891_v34  ;;  %v3497_v34 = vmul.f32 0.5, %v3496_v43 }
 0x3fd   :  { %v2249_v35 = vadd.f32 %v2248_v1, %v2247_v54  ;;  %v3522_v54 = vsub.f32 1.5, %v3521_v41  ;;  %v3533_v1 = vmul.f32 0.5, %v3532_v31 }
 0x3fe   :  { %v3498_v59 = vsub.f32 1.5, %v3497_v34 }
 0x3ff   :  { %v2250_v18 = vrot.slane %v2249_v35, 2  ;;  %v3523_v41 = vmul.f32 %v8779_v62, %v3522_v54  ;;  %v3504_v62 = vand.u32 2147483648, %v11169_v56 }
 0x400   :  { %v3499_v34 = vmul.f32 %v11186_v50, %v3498_v59  ;;  %v897_v59 = vrot.slane %v11217_v9, 1 }
 0x401   :  { %v2251_v29 = vadd.f32 %v2250_v18, %v2249_v35  ;;  %v4527_v18 = vpop.f32.mrf.mxu3 }
 0x402   :  { %v3500_v50 = vmul.f32 %v3499_v34, %v11169_v56  ;;  %v899_v34 = vrot.slane %v11217_v9, 3 }
 0x403   :  { %v11202_v53 = vld [vmem:[#allocation1] sm:$0xff]  ;;  %v2252_v17 = vrot.slane %v2251_v29, 1 }
 0x404   :  { %1353 = vst [vmem:[#allocation1] ss:$9 sm:$0xff] %v892_v39  ;;  %v3544_v39 = vmul.f32 %v11200_v33, %v3543_v24  ;;  %v3511_v24 = vmul.f32 %v8777_v63, %v3510_v42 }
 0x405   :  { %1354 = vst [vmem:[#allocation1 + $0x1] ss:$9 sm:$0xff] %v893_v30  ;;  %v8785_v30 = vpop.eup %8784  ;;  %v11227_v35 = vadd.f32 %v2252_v17, %v2251_v29 }
 0x406   :  { %1355 = vst [vmem:[#allocation1 + $0x2] ss:$9 sm:$0xff] %v894_v8  ;;  %v2244_v8 = vadd.f32 %v2243_v0, %v2242_v61  ;;  %v3555_v43 = vmul.f32 %v8785_v30, %v11204_v12  ;;  %v3545_v3 = vmul.f32 0.5, %v3544_v39  ;;  %v3534_v0 = vsub.f32 1.5, %v3533_v1  ;;  %v4414_v31 = vpop.f32.mrf.mxu2 }
 0x407   :  { %v4528_v42 = vadd.f32 %v4527_v18, %v4414_v31  ;;  %v3528_v18 = vand.u32 2147483648, %v11173_v5 }
 0x408   :  { %v2245_v55 = vrot.slane %v2244_v8, 1  ;;  %v3556_v14 = vmul.f32 %v8785_v30, %v3555_v43  ;;  %v3546_v63 = vsub.f32 1.5, %v3545_v3  ;;  %v3535_v39 = vmul.f32 %v11195_v52, %v3534_v0 }
 0x409   :  { %v3516_v3 = vand.u32 2147483648, %v11171_v16  ;;  %v898_v52 = vrot.slane %v11217_v9, 2 }
 0x40a   :  { %v11223_v61 = vadd.f32 %v2245_v55, %v2244_v8  ;;  %v3557_v49 = vmul.f32 0.5, %v3556_v14  ;;  %v3524_v14 = vmul.f32 %v3523_v41, %v11173_v5  ;;  %v11243_v8 = vadd.f32 %v11068_v26, %v4528_v42 }
 0x40b   :  { %v3547_v29 = vmul.f32 %v11200_v33, %v3546_v63  ;;  %v3536_v33 = vmul.f32 %v3535_v39, %v11181_v37 }
 0x40c   :  { %8786 = vrsqrt.f32 %v11223_v61  ;;  %v3558_v47 = vsub.f32 1.5, %v3557_v49  ;;  %v8495_v17 = vmul.f32 -1.442695, %v11243_v8  ;;  %v3526_v41 = vsel %vm3525_vm9, %v11173_v5, %v3524_v14 }
 0x40d   :  { %v11221_v4 = vld [vmem:[#allocation1] sm:$0xff]  ;;  %8788 = vrsqrt.f32 %v11227_v35  ;;  %v3548_v63 = vmul.f32 %v3547_v29, %v11184_v46  ;;  %v3538_v42 = vsel %vm3537_vm13, %v11181_v37, %v3536_v33  ;;  %v3540_v14 = vand.u32 2147483648, %v11181_v37 }
 0x40e   :  { %1357 = vst [vmem:[#allocation1] ss:$9 sm:$0xff] %v895_v60  ;;  %v3512_v60 = vmul.f32 %v3511_v24, %v11171_v16  ;;  %v3559_v55 = vmul.f32 %v8785_v30, %v3558_v47  ;;  %8790 = vpow2.f32 %v8495_v17  ;;  %vm3563_vm9 = vcmp.eq.f32.partialorder %v11204_v12, 0.0 }
 0x40f   :  { %1358 = vst [vmem:[#allocation1 + $0x1] ss:$9 sm:$0xff] %v896_v38  ;;  %v3502_v38 = vsel %vm3501_vm14, %v11169_v56, %v3500_v50  ;;  %v3529_v50 = vsel %vm3527_vm12, %v3528_v18, %v3526_v41  ;;  %vm3539_vm14 = vcmp.eq.f32.partialorder %v11181_v37, 0.0  ;;  %v3564_v41 = vand.u32 2147483648, %v11204_v12 }
 0x410   :  { %1359 = vst [vmem:[#allocation1 + $0x2] ss:$9 sm:$0xff] %v11217_v9  ;;  %v3514_v54 = vsel %vm3513_vm4, %v11171_v16, %v3512_v60  ;;  %v3505_v60 = vsel %vm3503_vm2, %v3504_v62, %v3502_v38  ;;  %v3560_v16 = vmul.f32 %v3559_v55, %v11204_v12  ;;  %vm3549_vm2 = vcmp.eq.f32.partialorder %v11184_v46, inf }
 0x411   :  { %v3517_v49 = vsel %vm3515_vm5, %v3516_v3, %v3514_v54  ;;  %vm3551_vm4 = vcmp.eq.f32.partialorder %v11184_v46, 0.0  ;;  %v3552_v62 = vand.u32 2147483648, %v11184_v46  ;;  %v3550_v3 = vsel %vm3549_vm2, %v11184_v46, %v3548_v63 }
 0x412   :  { %v8787_v1 = vpop.eup %8786  ;;  %v4299_v56 = vsel %vm4222_vm8, %v3517_v49, %v3505_v60  ;;  %vm3561_vm5 = vcmp.eq.f32.partialorder %v11204_v12, inf  ;;  %v3541_v38 = vsel %vm3539_vm14, %v3540_v14, %v3538_v42  ;;  %v902_v49 = vrot.slane %v11217_v9, 6 }
 0x413   :  { %v8789_v24 = vpop.eup %8788  ;;  %v3567_v0 = vmul.f32 %v8787_v1, %v11223_v61  ;;  %v4300_v54 = vsel %vm4224_vm10, %v3529_v50, %v4299_v56  ;;  %v3562_v55 = vsel %vm3561_vm5, %v11204_v12, %v3560_v16  ;;  %v347_v50 = vpop.f32.mrf.mxu0  ;;  %vm3573_vm12 = vcmp.eq.f32.partialorder %v11223_v61, inf }
 0x414   :  { %v3579_v30 = vmul.f32 %v8789_v24, %v11227_v35  ;;  %v8791_v29 = vpop.eup %8790  ;;  %v3565_v37 = vsel %vm3563_vm9, %v3564_v41, %v3562_v55  ;;  %vm3575_vm13 = vcmp.eq.f32.partialorder %v11223_v61, 0.0  ;;  %vm3585_vm14 = vcmp.eq.f32.partialorder %v11227_v35, inf }
 0x415   :  { %v3568_v31 = vmul.f32 %v8787_v1, %v3567_v0  ;;  %v4627_v0 = vadd.f32 1.0, %v8791_v29  ;;  %vm3587_vm2 = vcmp.eq.f32.partialorder %v11227_v35, 0.0  ;;  %v2261_v29 = vsel %vm1637_vm1, %v11221_v4, 0.0 }
 0x416   :  { %v3580_v47 = vmul.f32 %v8789_v24, %v3579_v30  ;;  %v3553_v30 = vsel %vm3551_vm4, %v3552_v62, %v3550_v3 }
 0x417   :  { %v11250_v43 = vld [vmem:[#allocation1] sm:$0xff]  ;;  %v3569_v39 = vmul.f32 0.5, %v3568_v31  ;;  %v4301_v31 = vsel %vm4226_vm15, %v3541_v38, %v4300_v54  ;;  %8792 = vrcp.f32 %v4627_v0  ;;  %v903_v54 = vrot.slane %v11217_v9, 7 }
 0x418   :  { %1361 = vst [vmem:[#allocation1] ss:$9 sm:$0xff] %v897_v59  ;;  %v3581_v5 = vmul.f32 0.5, %v3580_v47  ;;  %v4302_v16 = vsel %vm4228_vm3, %v3553_v30, %v4301_v31  ;;  %v2268_v55 = vsel %vm1637_vm1, %v11250_v43, 0.0  ;;  %vm4760_vm5 = vweird.f32 %v4627_v0 }
 0x419   :  { %1362 = vst [vmem:[#allocation1 + $0x1] ss:$9 sm:$0xff] %v898_v52  ;;  %v3570_v59 = vsub.f32 1.5, %v3569_v39  ;;  %v900_v52 = vrot.slane %v11217_v9, 4  ;;  %v4303_v14 = vsel %vm4230_vm6, %v3565_v37, %v4302_v16  ;;  %v11304_v39 = vmul.f32 %v347_v50, %v347_v50 }
 0x41a   :  { %1363 = vst [vmem:[#allocation1 + $0x2] ss:$9 sm:$0xff] %v899_v34  ;;  %v3582_v17 = vsub.f32 1.5, %v3581_v5  ;;  %v901_v34 = vrot.slane %v11217_v9, 5  ;;  %v2269_v9 = vrot.slane %v2268_v55, 4 }
 0x41b   :  { %v3571_v33 = vmul.f32 %v8787_v1, %v3570_v59  ;;  %v3576_v1 = vand.u32 2147483648, %v11223_v61  ;;  %v2254_v59 = vsel %vm1637_vm1, %v11202_v53, 0.0  ;;  %v4764_v53 = vand.u32 2147483647, %v4627_v0 }
 0x41c   :  { %v3583_v60 = vmul.f32 %v8789_v24, %v3582_v17  ;;  %v3588_v24 = vand.u32 2147483648, %v11227_v35  ;;  %v4766_v17 = vand.u32 2147483648, %v4627_v0  ;;  %v2270_v31 = vadd.f32 %v2269_v9, %v2268_v55 }
 0x41d   :  { %v3572_v63 = vmul.f32 %v3571_v33, %v11223_v61  ;;  %v8793_v5 = vpop.eup %8792  ;;  %v2262_v33 = vrot.slane %v2261_v29, 4  ;;  %v909_v55 = vrot.slane %v11304_v39, 6 }
 0x41e   :  { %v3584_v46 = vmul.f32 %v3583_v60, %v11227_v35  ;;  %v4756_v3 = vmul.f32 %v8793_v5, %v4627_v0  ;;  %vm4761_vm4 = vweird.f32 %v8793_v5  ;;  %v4767_v4 = vor.u32 1.1754944e-38, %v4766_v17 }
 0x41f   :  { %v3574_v12 = vsel %vm3573_vm12, %v11223_v61, %v3572_v63  ;;  %vm4762_vm9 = vmor %vm4760_vm5, %vm4761_vm4  ;;  %vm4765_vm12 = vcmp.eq.f32.partialorder %v4764_v53, 8.507059e+37  ;;  %v2263_v43 = vadd.f32 %v2262_v33, %v2261_v29  ;;  %v906_v0 = vrot.slane %v11304_v39, 3  ;;  %v350_v33 = vpop.f32.mrf.mxu0 }
 0x420   :  { %v3577_v47 = vsel %vm3575_vm13, %v3576_v1, %v3574_v12  ;;  %v3586_v42 = vsel %vm3585_vm14, %v11227_v35, %v3584_v46  ;;  %v904_v35 = vrot.slane %v11304_v39, 1  ;;  %v4757_v38 = vsub.f32 1.0, %v4756_v3 }
 0x421   :  { %v1364_v18 = vld [vmem:[#allocation1] sm:$0xff]  ;;  %v3589_v56 = vsel %vm3587_vm2, %v3588_v24, %v3586_v42  ;;  %v4304_v62 = vsel %vm4232_vm7, %v3577_v47, %v4303_v14  ;;  %v905_v12 = vrot.slane %v11304_v39, 2  ;;  %v907_v42 = vrot.slane %v11304_v39, 4 }
 0x422   :  { %1365 = vst [vmem:[#allocation1] ss:$9 sm:$0xff] %v900_v52  ;;  %v4305_v61 = vsel %vm4234_vm11, %v3589_v56, %v4304_v62  ;;  %v4758_v41 = vmul.f32 %v8793_v5, %v4757_v38  ;;  %v2275_v60 = vsel %vm1637_vm1, %v1364_v18, 0.0  ;;  %v2264_v18 = vrot.slane %v2263_v43, 2 }
 0x423   :  { %1366 = vst [vmem:[#allocation1 + $0x1] ss:$9 sm:$0xff] %v901_v34  ;;  %8465 = vmatmul.msk.f32.gmra.mxu2 %vm80_vm0, %v4305_v61  ;;  %v2255_v34 = vrot.slane %v2254_v59, 4  ;;  %v2276_v46 = vrot.slane %v2275_v60, 4  ;;  %v2271_v14 = vrot.slane %v2270_v31, 2  ;;  %v910_v53 = vrot.slane %v11304_v39, 7 }
 0x424   :  { %1367 = vst [vmem:[#allocation1 + $0x2] ss:$9 sm:$0xff] %v902_v49  ;;  %v4759_v49 = vadd.f32 %v8793_v5, %v4758_v41  ;;  %v2265_v62 = vadd.f32 %v2264_v18, %v2263_v43 }
 0x425   :  { %v2256_v30 = vadd.f32 %v2255_v34, %v2254_v59  ;;  %v2277_v56 = vadd.f32 %v2276_v46, %v2275_v60  ;;  %v11338_v60 = vmul.f32 %v350_v33, %v350_v33 }
 0x426   :  { %v4763_v37 = vsel %vm4762_vm9, %v8793_v5, %v4759_v49  ;;  %v2272_v5 = vadd.f32 %v2271_v14, %v2270_v31 }
 0x427   :  { %v4768_v63 = vsel %vm4765_vm12, %v4767_v4, %v4763_v37  ;;  %v2257_v24 = vrot.slane %v2256_v30, 2  ;;  %v2278_v3 = vrot.slane %v2277_v56, 2  ;;  %v912_v46 = vrot.slane %v11338_v60, 2 }
 0x428   :  { %v11321_v1 = vmul.f32 %v4768_v63, %v11243_v8  ;;  %v2273_v38 = vrot.slane %v2272_v5, 1 }
 0x429   :  { %v2258_v8 = vadd.f32 %v2257_v24, %v2256_v30  ;;  %v2279_v34 = vadd.f32 %v2278_v3, %v2277_v56 }
 0x42a   :  { %13523 = vst [vmem:[#allocation26_spill] sm:$0xff] %v11321_v1  ;;  %8527 = vmatmul.msk.f32.gmra.mxu3 %vm80_vm0, %v11321_v1  ;;  %v11336_v30 = vadd.f32 %v2273_v38, %v2272_v5  ;;  %v914_v5 = vrot.slane %v11338_v60, 4 }
 0x42b   :  { %v1368_v52 = vld [vmem:[#allocation1] sm:$0xff]  ;;  %v2259_v59 = vrot.slane %v2258_v8, 1  ;;  %v2280_v37 = vrot.slane %v2279_v34, 1 }
 0x42c   :  { %1369 = vst [vmem:[#allocation1] ss:$9 sm:$0xff] %v903_v54  ;;  %v2282_v50 = vsel %vm1637_vm1, %v1368_v52, 0.0  ;;  %v908_v52 = vrot.slane %v11304_v39, 5  ;;  %vm3621_vm5 = vcmp.eq.f32.partialorder %v11336_v30, inf  ;;  %vm3623_vm9 = vcmp.eq.f32.partialorder %v11336_v30, 0.0 }
 0x42d   :  { %1370 = vst [vmem:[#allocation1 + $0x1] ss:$9 sm:$0xff] %v11304_v39  ;;  %v2283_v47 = vrot.slane %v2282_v50, 4  ;;  %v11332_v9 = vadd.f32 %v2259_v59, %v2258_v8  ;;  %v911_v39 = vrot.slane %v11338_v60, 1  ;;  %v11344_v31 = vadd.f32 %v2280_v37, %v2279_v34 }
 0x42e   :  { %1371 = vst [vmem:[#allocation1 + $0x2] ss:$9 sm:$0xff] %v904_v35  ;;  %v2266_v35 = vrot.slane %v2265_v62, 1  ;;  %v915_v34 = vrot.slane %v11338_v60, 5 }
 0x42f   :  { %v2284_v61 = vadd.f32 %v2283_v47, %v2282_v50  ;;  %8794 = vrsqrt.f32 %v11332_v9  ;;  %vm3597_vm13 = vcmp.eq.f32.partialorder %v11332_v9, inf  ;;  %vm3599_vm14 = vcmp.eq.f32.partialorder %v11332_v9, 0.0 }
 0x430   :  { %v11334_v49 = vadd.f32 %v2266_v35, %v2265_v62  ;;  %vm3633_vm12 = vcmp.eq.f32.partialorder %v11344_v31, inf }
 0x431   :  { %v2285_v29 = vrot.slane %v2284_v61, 2 }
 0x432   :  { %8796 = vrsqrt.f32 %v11334_v49  ;;  %vm3609_vm2 = vcmp.eq.f32.partialorder %v11334_v49, inf  ;;  %vm3611_vm4 = vcmp.eq.f32.partialorder %v11334_v49, 0.0 }
 0x433   :  { %v2286_v4 = vadd.f32 %v2285_v29, %v2284_v61  ;;  %8798 = vrsqrt.f32 %v11336_v30  ;;  %v913_v61 = vrot.slane %v11338_v60, 3 }
 0x434   :  { %8800 = vrsqrt.f32 %v11344_v31 }
 0x435   :  { %v1372_v16 = vld [vmem:[#allocation1] sm:$0xff]  ;;  %v2287_v63 = vrot.slane %v2286_v4, 1 }
 0x436   :  { %1373 = vst [vmem:[#allocation1] ss:$9 sm:$0xff] %v905_v12  ;;  %v2289_v54 = vsel %vm1637_vm1, %v1372_v16, 0.0 }
 0x437   :  { %1374 = vst [vmem:[#allocation1 + $0x1] ss:$9 sm:$0xff] %v906_v0  ;;  %v2290_v41 = vrot.slane %v2289_v54, 4  ;;  %v11347_v24 = vadd.f32 %v2287_v63, %v2286_v4  ;;  %v11349_v0 = vpop.eup %8794 }
 0x438   :  { %1375 = vst [vmem:[#allocation1 + $0x2] ss:$9 sm:$0xff] %v907_v42  ;;  %v8797_v16 = vpop.eup %8796  ;;  %v3591_v42 = vmul.f32 %v11349_v0, %v11332_v9 }
 0x439   :  { %v2291_v43 = vadd.f32 %v2290_v41, %v2289_v54  ;;  %v8799_v47 = vpop.eup %8798  ;;  %8802 = vrsqrt.f32 %v11347_v24  ;;  %v3603_v14 = vmul.f32 %v8797_v16, %v11334_v49 }
 0x43a   :  { %v3615_v8 = vmul.f32 %v8799_v47, %v11336_v30  ;;  %v11358_v62 = vpop.eup %8800  ;;  %v3592_v3 = vmul.f32 %v11349_v0, %v3591_v42 }
 0x43b   :  { %v2292_v50 = vrot.slane %v2291_v43, 2  ;;  %v3604_v59 = vmul.f32 %v8797_v16, %v3603_v14  ;;  %v3627_v33 = vmul.f32 %v11358_v62, %v11344_v31 }
 0x43c   :  { %v3593_v63 = vmul.f32 0.5, %v3592_v3 }
 0x43d   :  { %v2293_v18 = vadd.f32 %v2292_v50, %v2291_v43  ;;  %v3605_v43 = vmul.f32 0.5, %v3604_v59 }
 0x43f   :  { %v1376_v17 = vld [vmem:[#allocation1] sm:$0xff]  ;;  %v2294_v56 = vrot.slane %v2293_v18, 1  ;;  %v11363_v54 = vpop.eup %8802  ;;  %v3606_v42 = vsub.f32 1.5, %v3605_v43 }
 0x440   :  { %1377 = vst [vmem:[#allocation1] ss:$9 sm:$0xff] %v908_v52  ;;  %v2296_v52 = vsel %vm1637_vm1, %v1376_v17, 0.0  ;;  %v3639_v17 = vmul.f32 %v11363_v54, %v11347_v24 }
 0x441   :  { %1378 = vst [vmem:[#allocation1 + $0x1] ss:$9 sm:$0xff] %v909_v55  ;;  %v11367_v29 = vadd.f32 %v2294_v56, %v2293_v18  ;;  %v3616_v55 = vmul.f32 %v8799_v47, %v3615_v8  ;;  %v2297_v41 = vrot.slane %v2296_v52, 4  ;;  %v353_v18 = vpop.f32.mrf.mxu0  ;;  %v916_v8 = vrot.slane %v11338_v60, 6 }
 0x442   :  { %1379 = vst [vmem:[#allocation1 + $0x2] ss:$9 sm:$0xff] %v910_v53  ;;  %v3640_v14 = vmul.f32 %v11363_v54, %v3639_v17  ;;  %v11380_v59 = vmul.f32 %v353_v18, %v353_v18  ;;  %v3607_v43 = vmul.f32 %v8797_v16, %v3606_v42 }
 0x443   :  { %8804 = vrsqrt.f32 %v11367_v29  ;;  %v2298_v4 = vadd.f32 %v2297_v41, %v2296_v52 }
 0x444   :  { %v3641_v17 = vmul.f32 0.5, %v3640_v14  ;;  %v3608_v16 = vmul.f32 %v3607_v43, %v11334_v49 }
 0x445   :  { %v2299_v50 = vrot.slane %v2298_v4, 2 }
 0x449   :  { %v1380_v12 = vld [vmem:[#allocation1] sm:$0xff]  ;;  %v8805_v56 = vpop.eup %8804 }
 0x44a   :  { %1381 = vst [vmem:[#allocation1] ss:$9 sm:$0xff] %v11338_v60  ;;  %v2303_v38 = vsel %vm1637_vm1, %v1380_v12, 0.0  ;;  %v3628_v12 = vmul.f32 %v11358_v62, %v3627_v33  ;;  %v3651_v3 = vmul.f32 %v8805_v56, %v11367_v29 }
 0x44b   :  { %1382 = vst [vmem:[#allocation1 + $0x1] ss:$9 sm:$0xff] %v911_v39  ;;  %v2304_v53 = vrot.slane %v2303_v38, 4  ;;  %v3617_v39 = vmul.f32 0.5, %v3616_v55  ;;  %v917_v55 = vrot.slane %v11338_v60, 7 }
 0x44c   :  { %1383 = vst [vmem:[#allocation1 + $0x2] ss:$9 sm:$0xff] %v912_v46  ;;  %v3652_v1 = vmul.f32 %v8805_v56, %v3651_v3 }
 0x44d   :  { %v2305_v37 = vadd.f32 %v2304_v53, %v2303_v38  ;;  %v3618_v52 = vsub.f32 1.5, %v3617_v39 }
 0x44e   :  { %v3653_v60 = vmul.f32 0.5, %v3652_v1 }
 0x44f   :  { %v2306_v46 = vrot.slane %v2305_v37, 2  ;;  %v3619_v39 = vmul.f32 %v8799_v47, %v3618_v52  ;;  %v3600_v47 = vand.u32 2147483648, %v11332_v9  ;;  %v918_v52 = vrot.slane %v11380_v59, 1 }
 0x450   :  { %v3654_v42 = vsub.f32 1.5, %v3653_v60  ;;  %v3624_v60 = vand.u32 2147483648, %v11336_v30 }
 0x451   :  { %v2307_v38 = vadd.f32 %v2306_v46, %v2305_v37  ;;  %v4530_v46 = vpop.f32.mrf.mxu3  ;;  %v3620_v1 = vmul.f32 %v3619_v39, %v11336_v30 }
 0x453   :  { %v11365_v35 = vld [vmem:[#allocation1] sm:$0xff]  ;;  %v2308_v33 = vrot.slane %v2307_v38, 1 }
 0x454   :  { %1385 = vst [vmem:[#allocation1] ss:$9 sm:$0xff] %v913_v61  ;;  %v2300_v61 = vadd.f32 %v2299_v50, %v2298_v4 }
 0x455   :  { %1386 = vst [vmem:[#allocation1 + $0x1] ss:$9 sm:$0xff] %v914_v5  ;;  %v3594_v5 = vsub.f32 1.5, %v3593_v63  ;;  %v11390_v37 = vadd.f32 %v2308_v33, %v2307_v38  ;;  %v3610_v38 = vsel %vm3609_vm2, %v11334_v49, %v3608_v16  ;;  %v3655_v33 = vmul.f32 %v8805_v56, %v3654_v42 }
 0x456   :  { %1387 = vst [vmem:[#allocation1 + $0x2] ss:$9 sm:$0xff] %v915_v34  ;;  %v3629_v34 = vmul.f32 0.5, %v3628_v12  ;;  %v2301_v53 = vrot.slane %v2300_v61, 1  ;;  %v3642_v12 = vsub.f32 1.5, %v3641_v17  ;;  %v920_v17 = vrot.slane %v11380_v59, 3 }
 0x457   :  { %v3595_v63 = vmul.f32 %v11349_v0, %v3594_v5  ;;  %v4417_v18 = vpop.f32.mrf.mxu2  ;;  %vm3647_vm2 = vcmp.eq.f32.partialorder %v11347_v24, 0.0 }
 0x458   :  { %v11386_v4 = vadd.f32 %v2301_v53, %v2300_v61  ;;  %v3630_v50 = vsub.f32 1.5, %v3629_v34  ;;  %v4531_v14 = vadd.f32 %v4530_v46, %v4417_v18  ;;  %v3612_v61 = vand.u32 2147483648, %v11334_v49 }
 0x459   :  { %v3596_v0 = vmul.f32 %v3595_v63, %v11332_v9  ;;  %v3643_v34 = vmul.f32 %v11363_v54, %v3642_v12  ;;  %v3622_v63 = vsel %vm3621_vm5, %v11336_v30, %v3620_v1  ;;  %v3656_v49 = vmul.f32 %v3655_v33, %v11367_v29 }
 0x45a   :  { %8806 = vrsqrt.f32 %v11386_v4  ;;  %v11406_v5 = vadd.f32 %v11068_v26, %v4531_v14  ;;  %v3625_v18 = vsel %vm3623_vm9, %v3624_v60, %v3622_v63  ;;  %v3636_v14 = vand.u32 2147483648, %v11344_v31 }
 0x45b   :  { %8808 = vrsqrt.f32 %v11390_v37  ;;  %v3598_v53 = vsel %vm3597_vm13, %v11332_v9, %v3596_v0  ;;  %v3644_v16 = vmul.f32 %v3643_v34, %v11347_v24  ;;  %vm3635_vm13 = vcmp.eq.f32.partialorder %v11344_v31, 0.0 }
 0x45c   :  { %v8496_v26 = vmul.f32 -1.442695, %v11406_v5  ;;  %v3601_v46 = vsel %vm3599_vm14, %v3600_v47, %v3598_v53  ;;  %vm3645_vm14 = vcmp.eq.f32.partialorder %v11347_v24, inf  ;;  %v3648_v47 = vand.u32 2147483648, %v11347_v24 }
 0x45d   :  { %v11384_v41 = vld [vmem:[#allocation1] sm:$0xff]  ;;  %v921_v34 = vrot.slane %v11380_v59, 4  ;;  %vm3659_vm5 = vcmp.eq.f32.partialorder %v11367_v29, 0.0  ;;  %vm3669_vm9 = vcmp.eq.f32.partialorder %v11386_v4, inf }
 0x45e   :  { %1389 = vst [vmem:[#allocation1] ss:$9 sm:$0xff] %v916_v8  ;;  %v3631_v8 = vmul.f32 %v11358_v62, %v3630_v50  ;;  %v919_v62 = vrot.slane %v11380_v59, 2  ;;  %v3613_v50 = vsel %vm3611_vm4, %v3612_v61, %v3610_v38  ;;  %8810 = vpow2.f32 %v8496_v26 }
 0x45f   :  { %1390 = vst [vmem:[#allocation1 + $0x1] ss:$9 sm:$0xff] %v917_v55  ;;  %v4306_v9 = vsel %vm4222_vm8, %v3613_v50, %v3601_v46  ;;  %vm3657_vm4 = vcmp.eq.f32.partialorder %v11367_v29, inf  ;;  %v922_v26 = vrot.slane %v11380_v59, 5 }
 0x460   :  { %1391 = vst [vmem:[#allocation1 + $0x2] ss:$9 sm:$0xff] %v11380_v59  ;;  %v8807_v3 = vpop.eup %8806  ;;  %v3632_v54 = vmul.f32 %v3631_v8, %v11344_v31  ;;  %v3646_v8 = vsel %vm3645_vm14, %v11347_v24, %v3644_v16  ;;  %v3658_v53 = vsel %vm3657_vm4, %v11367_v29, %v3656_v49  ;;  %vm3683_vm14 = vcmp.eq.f32.partialorder %v11390_v37, 0.0 }
 0x461   :  { %v8809_v43 = vpop.eup %8808  ;;  %v3663_v39 = vmul.f32 %v8807_v3, %v11386_v4  ;;  %v3649_v60 = vsel %vm3647_vm2, %v3648_v47, %v3646_v8  ;;  %v924_v8 = vrot.slane %v11380_v59, 7 }
 0x462   :  { %v3675_v56 = vmul.f32 %v8809_v43, %v11390_v37  ;;  %v3634_v42 = vsel %vm3633_vm12, %v11344_v31, %v3632_v54  ;;  %vm3671_vm12 = vcmp.eq.f32.partialorder %v11386_v4, 0.0 }
 0x463   :  { %v3664_v12 = vmul.f32 %v8807_v3, %v3663_v39  ;;  %v923_v39 = vrot.slane %v11380_v59, 6 }
 0x464   :  { %v3676_v0 = vmul.f32 %v8809_v43, %v3675_v56  ;;  %v8811_v38 = vpop.eup %8810 }
 0x465   :  { %v3665_v1 = vmul.f32 0.5, %v3664_v12  ;;  %v4628_v54 = vadd.f32 1.0, %v8811_v38  ;;  %v3672_v12 = vand.u32 2147483648, %v11386_v4 }
 0x466   :  { %v3677_v30 = vmul.f32 0.5, %v3676_v0 }
 0x467   :  { %v11413_v55 = vld [vmem:[#allocation1] sm:$0xff]  ;;  %v3666_v61 = vsub.f32 1.5, %v3665_v1  ;;  %8812 = vrcp.f32 %v4628_v54  ;;  %vm4775_vm4 = vweird.f32 %v4628_v54 }
 0x468   :  { %1393 = vst [vmem:[#allocation1] ss:$9 sm:$0xff] %v918_v52  ;;  %v4307_v52 = vsel %vm4224_vm10, %v3625_v18, %v4306_v9  ;;  %v3678_v33 = vsub.f32 1.5, %v3677_v30 }
 0x469   :  { %1394 = vst [vmem:[#allocation1 + $0x1] ss:$9 sm:$0xff] %v919_v62  ;;  %v3637_v62 = vsel %vm3635_vm13, %v3636_v14, %v3634_v42  ;;  %v3667_v63 = vmul.f32 %v8807_v3, %v3666_v61  ;;  %v356_v3 = vpop.f32.mrf.mxu0  ;;  %vm3681_vm13 = vcmp.eq.f32.partialorder %v11390_v37, inf }
 0x46a   :  { %1395 = vst [vmem:[#allocation1 + $0x2] ss:$9 sm:$0xff] %v920_v17  ;;  %v3660_v17 = vand.u32 2147483648, %v11367_v29  ;;  %v3679_v31 = vmul.f32 %v8809_v43, %v3678_v33  ;;  %v4308_v16 = vsel %vm4226_vm15, %v3637_v62, %v4307_v52  ;;  %v3684_v43 = vand.u32 2147483648, %v11390_v37 }
 0x46b   :  { %v3668_v46 = vmul.f32 %v3667_v63, %v11386_v4  ;;  %v4309_v18 = vsel %vm4228_vm3, %v3649_v60, %v4308_v16  ;;  %v601_v14 = vmul.f32 %v356_v3, %v356_v3  ;;  %v4779_v62 = vand.u32 2147483647, %v4628_v54 }
 0x46c   :  { %v3661_v56 = vsel %vm3659_vm5, %v3660_v17, %v3658_v53  ;;  %v3680_v24 = vmul.f32 %v3679_v31, %v11390_v37 }
 0x46d   :  { %v3670_v29 = vsel %vm3669_vm9, %v11386_v4, %v3668_v46  ;;  %v4310_v42 = vsel %vm4230_vm6, %v3661_v56, %v4309_v18  ;;  %v8813_v4 = vpop.eup %8812  ;;  %v925_v61 = vrot.slane %v601_v14, 1  ;;  %vm4780_vm9 = vcmp.eq.f32.partialorder %v4779_v62, 8.507059e+37 }
 0x46e   :  { %v3673_v49 = vsel %vm3671_vm12, %v3672_v12, %v3670_v29  ;;  %v3682_v0 = vsel %vm3681_vm13, %v11390_v37, %v3680_v24  ;;  %v4771_v30 = vmul.f32 %v8813_v4, %v4628_v54  ;;  %v4781_v37 = vand.u32 2147483648, %v4628_v54 }
 0x46f   :  { %v3685_v1 = vsel %vm3683_vm14, %v3684_v43, %v3682_v0  ;;  %v4311_v9 = vsel %vm4232_vm7, %v3673_v49, %v4310_v42  ;;  %vm4776_vm2 = vweird.f32 %v8813_v4  ;;  %v926_v63 = vrot.slane %v601_v14, 2 }
 0x470   :  { %v4312_v47 = vsel %vm4234_vm11, %v3685_v1, %v4311_v9  ;;  %v4772_v38 = vsub.f32 1.0, %v4771_v30  ;;  %vm4777_vm5 = vmor %vm4775_vm4, %vm4776_vm2  ;;  %v4782_v33 = vor.u32 1.1754944e-38, %v4781_v37  ;;  %v928_v31 = vrot.slane %v601_v14, 4 }
 0x471   :  { %v11451_v50 = vld [vmem:[#allocation1] sm:$0xff]  ;;  %8466 = vmatmul.msk.f32.gmra.mxu2 %vm80_vm0, %v4312_v47  ;;  %v929_v54 = vrot.slane %v601_v14, 5  ;;  %v930_v56 = vrot.slane %v601_v14, 6  ;;  %v931_v16 = vrot.slane %v601_v14, 7  ;;  %v359_v3 = vpop.f32.mrf.mxu0  ;;  %v603_v9 = vmul.f32 %v9536_v48, %v9536_v48 }
 0x472   :  { %1397 = vst [vmem:[#allocation1] ss:$9 sm:$0xff] %v921_v34  ;;  %v4773_v34 = vmul.f32 %v8813_v4, %v4772_v38  ;;  %v604_v48 = vmul.f32 %v9561_v36, %v9561_v36 }
 0x473   :  { %1398 = vst [vmem:[#allocation1 + $0x1] ss:$9 sm:$0xff] %v922_v26  ;;  %v939_v47 = vrot.slane %v603_v9, 1  ;;  %v943_v38 = vrot.slane %v603_v9, 5  ;;  %v945_v62 = vrot.slane %v603_v9, 7 }
 0x474   :  { %1399 = vst [vmem:[#allocation1 + $0x2] ss:$9 sm:$0xff] %v923_v39  ;;  %v4774_v53 = vadd.f32 %v8813_v4, %v4773_v34  ;;  %v927_v39 = vrot.slane %v601_v14, 3  ;;  %v944_v34 = vrot.slane %v603_v9, 6  ;;  %v952_v36 = vrot.slane %v604_v48, 7 }
 0x476   :  { %v4778_v26 = vsel %vm4777_vm5, %v8813_v4, %v4774_v53  ;;  %v940_v4 = vrot.slane %v603_v9, 2 }
 0x477   :  { %v4783_v17 = vsel %vm4780_vm9, %v4782_v33, %v4778_v26  ;;  %v946_v33 = vrot.slane %v604_v48, 1  ;;  %v947_v26 = vrot.slane %v604_v48, 2 }
 0x478   :  { %v11476_v59 = vmul.f32 %v4783_v17, %v11406_v5  ;;  %v602_v5 = vmul.f32 %v359_v3, %v359_v3  ;;  %v948_v17 = vrot.slane %v604_v48, 3 }
 0x47a   :  { %13524 = vst [vmem:[#allocation27_spill] sm:$0xff] %v11476_v59  ;;  %8528 = vmatmul.msk.f32.gmra.mxu3 %vm80_vm0, %v11476_v59  ;;  %v932_v12 = vrot.slane %v602_v5, 1  ;;  %v933_v24 = vrot.slane %v602_v5, 2  ;;  %v934_v43 = vrot.slane %v602_v5, 3  ;;  %v935_v18 = vrot.slane %v602_v5, 4 }
 0x47b   :  { %v11473_v52 = vld [vmem:[#allocation1] sm:$0xff]  ;;  %v936_v0 = vrot.slane %v602_v5, 5  ;;  %v937_v42 = vrot.slane %v602_v5, 6 }
 0x47c   :  { %1401 = vst [vmem:[#allocation1] ss:$9 sm:$0xff] %v924_v8  ;;  %v941_v8 = vrot.slane %v603_v9, 3 }
 0x47d   :  { %1402 = vst [vmem:[#allocation1 + $0x1] ss:$9 sm:$0xff] %v601_v14  ;;  %v938_v14 = vrot.slane %v602_v5, 7 }
 0x47e   :  { %1403 = vst [vmem:[#allocation1 + $0x2] ss:$9 sm:$0xff] %v925_v61  ;;  %v942_v61 = vrot.slane %v603_v9, 4 }
 0x485   :  { %v11478_v60 = vld [vmem:[#allocation1] sm:$0xff] }
 0x486   :  { %1405 = vst [vmem:[#allocation1] ss:$9 sm:$0xff] %v926_v63 }
 0x487   :  { %1406 = vst [vmem:[#allocation1 + $0x1] ss:$9 sm:$0xff] %v927_v39  ;;  %v949_v39 = vrot.slane %v604_v48, 4 }
 0x488   :  { %1407 = vst [vmem:[#allocation1 + $0x2] ss:$9 sm:$0xff] %v928_v31  ;;  %v950_v31 = vrot.slane %v604_v48, 5 }
 0x48f   :  { %v11482_v46 = vld [vmem:[#allocation1] sm:$0xff] }
 0x490   :  { %1409 = vst [vmem:[#allocation1] ss:$9 sm:$0xff] %v929_v54  ;;  %v951_v54 = vrot.slane %v604_v48, 6 }
 0x491   :  { %1410 = vst [vmem:[#allocation1 + $0x1] ss:$9 sm:$0xff] %v930_v56 }
 0x492   :  { %1411 = vst [vmem:[#allocation1 + $0x2] ss:$9 sm:$0xff] %v931_v16  ;;  %v605_v16 = vmul.f32 %v9578_v7, %v9578_v7  ;;  %v606_v7 = vmul.f32 %v9596_v25, %v9596_v25  ;;  %v607_v25 = vmul.f32 %v9613_v58, %v9613_v58  ;;  %v2317_v58 = vsel %vm1637_vm1, %v11384_v41, 0.0 }
 0x493   :  { %v11536_v41 = vmul.f32 %v9641_v20, %v9641_v20 }
 0x494   :  { %v953_v3 = vrot.slane %v605_v16, 1 }
 0x499   :  { %v11484_v29 = vld [vmem:[#allocation1] sm:$0xff] }
 0x49a   :  { %1413 = vst [vmem:[#allocation1] ss:$9 sm:$0xff] %v602_v5 }
 0x49b   :  { %1414 = vst [vmem:[#allocation1 + $0x1] ss:$9 sm:$0xff] %v932_v12  ;;  %v954_v12 = vrot.slane %v605_v16, 2 }
 0x49c   :  { %1415 = vst [vmem:[#allocation1 + $0x2] ss:$9 sm:$0xff] %v933_v24  ;;  %v955_v24 = vrot.slane %v605_v16, 3 }
 0x4a3   :  { %v11486_v49 = vld [vmem:[#allocation1] sm:$0xff] }
 0x4a4   :  { %1417 = vst [vmem:[#allocation1] ss:$9 sm:$0xff] %v934_v43  ;;  %v956_v43 = vrot.slane %v605_v16, 4 }
 0x4a5   :  { %1418 = vst [vmem:[#allocation1 + $0x1] ss:$9 sm:$0xff] %v935_v18 }
 0x4a6   :  { %1419 = vst [vmem:[#allocation1 + $0x2] ss:$9 sm:$0xff] %v936_v0  ;;  %v957_v0 = vrot.slane %v605_v16, 5 }
 0x4ad   :  { %v11488_v1 = vld [vmem:[#allocation1] sm:$0xff] }
 0x4ae   :  { %1421 = vst [vmem:[#allocation1] ss:$9 sm:$0xff] %v937_v42  ;;  %v958_v42 = vrot.slane %v605_v16, 6 }
 0x4af   :  { %1422 = vst [vmem:[#allocation1 + $0x1] ss:$9 sm:$0xff] %v938_v14  ;;  %v959_v14 = vrot.slane %v605_v16, 7 }
 0x4b0   :  { %1423 = vst [vmem:[#allocation1 + $0x2] ss:$9 sm:$0xff] %v603_v9 }
 0x4b7   :  { %v11492_v30 = vld [vmem:[#allocation1] sm:$0xff] }
 0x4b8   :  { %1425 = vst [vmem:[#allocation1] ss:$9 sm:$0xff] %v939_v47  ;;  %v960_v47 = vrot.slane %v606_v7, 1 }
 0x4b9   :  { %1426 = vst [vmem:[#allocation1 + $0x1] ss:$9 sm:$0xff] %v940_v4  ;;  %v961_v4 = vrot.slane %v606_v7, 2 }
 0x4ba   :  { %1427 = vst [vmem:[#allocation1 + $0x2] ss:$9 sm:$0xff] %v941_v8 }
 0x4c1   :  { %v11494_v37 = vld [vmem:[#allocation1] sm:$0xff] }
 0x4c2   :  { %1429 = vst [vmem:[#allocation1] ss:$9 sm:$0xff] %v942_v61  ;;  %v962_v61 = vrot.slane %v606_v7, 3 }
 0x4c3   :  { %1430 = vst [vmem:[#allocation1 + $0x1] ss:$9 sm:$0xff] %v943_v38  ;;  %v963_v38 = vrot.slane %v606_v7, 4 }
 0x4c4   :  { %1431 = vst [vmem:[#allocation1 + $0x2] ss:$9 sm:$0xff] %v944_v34  ;;  %v964_v34 = vrot.slane %v606_v7, 5 }
 0x4cb   :  { %v11498_v53 = vld [vmem:[#allocation1] sm:$0xff] }
 0x4cc   :  { %1433 = vst [vmem:[#allocation1] ss:$9 sm:$0xff] %v945_v62  ;;  %v965_v62 = vrot.slane %v606_v7, 6 }
 0x4cd   :  { %1434 = vst [vmem:[#allocation1 + $0x1] ss:$9 sm:$0xff] %v604_v48 }
 0x4ce   :  { %1435 = vst [vmem:[#allocation1 + $0x2] ss:$9 sm:$0xff] %v946_v33  ;;  %v966_v33 = vrot.slane %v606_v7, 7 }
 0x4d5   :  { %v11500_v63 = vld [vmem:[#allocation1] sm:$0xff] }
 0x4d6   :  { %1437 = vst [vmem:[#allocation1] ss:$9 sm:$0xff] %v947_v26 }
 0x4d7   :  { %1438 = vst [vmem:[#allocation1 + $0x1] ss:$9 sm:$0xff] %v948_v17  ;;  %v967_v17 = vrot.slane %v607_v25, 1 }
 0x4d8   :  { %1439 = vst [vmem:[#allocation1 + $0x2] ss:$9 sm:$0xff] %v949_v39  ;;  %v968_v39 = vrot.slane %v607_v25, 2 }
 0x4df   :  { %v11502_v56 = vld [vmem:[#allocation1] sm:$0xff] }
 0x4e0   :  { %1441 = vst [vmem:[#allocation1] ss:$9 sm:$0xff] %v950_v31  ;;  %v969_v31 = vrot.slane %v607_v25, 3 }
 0x4e1   :  { %1442 = vst [vmem:[#allocation1 + $0x1] ss:$9 sm:$0xff] %v951_v54 }
 0x4e2   :  { %1443 = vst [vmem:[#allocation1 + $0x2] ss:$9 sm:$0xff] %v952_v36  ;;  %v970_v36 = vrot.slane %v607_v25, 4 }
 0x4e9   :  { %v11506_v5 = vld [vmem:[#allocation1] sm:$0xff] }
 0x4ea   :  { %1445 = vst [vmem:[#allocation1] ss:$9 sm:$0xff] %v605_v16  ;;  %v2310_v16 = vsel %vm1637_vm1, %v11365_v35, 0.0 }
 0x4eb   :  { %1446 = vst [vmem:[#allocation1 + $0x1] ss:$9 sm:$0xff] %v953_v3  ;;  %v971_v3 = vrot.slane %v607_v25, 5 }
 0x4ec   :  { %1447 = vst [vmem:[#allocation1 + $0x2] ss:$9 sm:$0xff] %v954_v12  ;;  %v972_v12 = vrot.slane %v607_v25, 6 }
 0x4f3   :  { %v11508_v18 = vld [vmem:[#allocation1] sm:$0xff] }
 0x4f4   :  { %1449 = vst [vmem:[#allocation1] ss:$9 sm:$0xff] %v955_v24 }
 0x4f5   :  { %1450 = vst [vmem:[#allocation1 + $0x1] ss:$9 sm:$0xff] %v956_v43  ;;  %v2311_v43 = vrot.slane %v2310_v16, 4 }
 0x4f6   :  { %1451 = vst [vmem:[#allocation1 + $0x2] ss:$9 sm:$0xff] %v957_v0  ;;  %v973_v0 = vrot.slane %v607_v25, 7 }
 0x4f7   :  { %v2312_v35 = vadd.f32 %v2311_v43, %v2310_v16  ;;  %v11545_v16 = vpop.f32.mrf.mxu3 }
 0x4fd   :  { %v11510_v9 = vld [vmem:[#allocation1] sm:$0xff] }
 0x4fe   :  { %1453 = vst [vmem:[#allocation1] ss:$9 sm:$0xff] %v958_v42  ;;  %v2318_v42 = vrot.slane %v2317_v58, 4 }
 0x4ff   :  { %1454 = vst [vmem:[#allocation1 + $0x1] ss:$9 sm:$0xff] %v959_v14  ;;  %v2324_v14 = vsel %vm1637_vm1, %v11413_v55, 0.0 }
 0x500   :  { %1455 = vst [vmem:[#allocation1 + $0x2] ss:$9 sm:$0xff] %v606_v7  ;;  %v2331_v7 = vsel %vm1637_vm1, %v11451_v50, 0.0  ;;  %v2338_v50 = vsel %vm1637_vm1, %v11473_v52, 0.0  ;;  %v2345_v52 = vsel %vm1637_vm1, %v11478_v60, 0.0 }
 0x501   :  { %v2339_v20 = vrot.slane %v2338_v50, 4 }
 0x507   :  { %v11514_v8 = vld [vmem:[#allocation1] sm:$0xff] }
 0x508   :  { %13525 = vst [vmem:[#allocation28_spill] sm:$0xff] %v11514_v8 }
 0x509   :  { %1457 = vst [vmem:[#allocation1] ss:$9 sm:$0xff] %v960_v47  ;;  %v2319_v47 = vadd.f32 %v2318_v42, %v2317_v58 }
 0x50a   :  { %1458 = vst [vmem:[#allocation1 + $0x1] ss:$9 sm:$0xff] %v961_v4  ;;  %v2325_v4 = vrot.slane %v2324_v14, 4 }
 0x50b   :  { %1459 = vst [vmem:[#allocation1 + $0x2] ss:$9 sm:$0xff] %v962_v61  ;;  %v2332_v61 = vrot.slane %v2331_v7, 4 }
 0x50d   :  { %v2333_v55 = vadd.f32 %v2332_v61, %v2331_v7  ;;  %v976_v7 = vrot.slane %v11536_v41, 3 }
 0x50f   :  { %v2334_v58 = vrot.slane %v2333_v55, 2 }
 0x512   :  { %v11516_v48 = vld [vmem:[#allocation1] sm:$0xff] }
 0x513   :  { %13526 = vst [vmem:[#allocation29_spill] sm:$0xff] %v11516_v48 }
 0x514   :  { %1461 = vst [vmem:[#allocation1] ss:$9 sm:$0xff] %v963_v38  ;;  %v2313_v38 = vrot.slane %v2312_v35, 2 }
 0x515   :  { %1462 = vst [vmem:[#allocation1 + $0x1] ss:$9 sm:$0xff] %v964_v34  ;;  %v2320_v34 = vrot.slane %v2319_v47, 2 }
 0x516   :  { %1463 = vst [vmem:[#allocation1 + $0x2] ss:$9 sm:$0xff] %v965_v62  ;;  %v2326_v62 = vadd.f32 %v2325_v4, %v2324_v14  ;;  %v2335_v14 = vadd.f32 %v2334_v58, %v2333_v55 }
 0x518   :  { %v2336_v55 = vrot.slane %v2335_v14, 1 }
 0x51d   :  { %v11520_v26 = vld [vmem:[#allocation1] sm:$0xff] }
 0x51e   :  { %13527 = vst [vmem:[#allocation30_spill] sm:$0xff] %v11520_v26 }
 0x51f   :  { %1465 = vst [vmem:[#allocation1] ss:$9 sm:$0xff] %v966_v33 }
 0x520   :  { %1466 = vst [vmem:[#allocation1 + $0x1] ss:$9 sm:$0xff] %v607_v25  ;;  %v974_v25 = vrot.slane %v11536_v41, 1 }
 0x521   :  { %1467 = vst [vmem:[#allocation1 + $0x2] ss:$9 sm:$0xff] %v967_v17  ;;  %v975_v17 = vrot.slane %v11536_v41, 2 }
 0x528   :  { %v11522_v54 = vld [vmem:[#allocation1] sm:$0xff] }
 0x529   :  { %13528 = vst [vmem:[#allocation31_spill] sm:$0xff] %v11522_v54 }
 0x52a   :  { %1469 = vst [vmem:[#allocation1] ss:$9 sm:$0xff] %v968_v39  ;;  %v2314_v39 = vadd.f32 %v2313_v38, %v2312_v35  ;;  %v977_v35 = vrot.slane %v11536_v41, 4  ;;  %v2346_v38 = vrot.slane %v2345_v52, 4 }
 0x52b   :  { %1470 = vst [vmem:[#allocation1 + $0x1] ss:$9 sm:$0xff] %v969_v31  ;;  %v2321_v31 = vadd.f32 %v2320_v34, %v2319_v47  ;;  %v978_v34 = vrot.slane %v11536_v41, 5 }
 0x52c   :  { %1471 = vst [vmem:[#allocation1 + $0x2] ss:$9 sm:$0xff] %v970_v36  ;;  %v2327_v36 = vrot.slane %v2326_v62, 2 }
 0x52e   :  { %v2328_v42 = vadd.f32 %v2327_v36, %v2326_v62 }
 0x530   :  { %v2329_v62 = vrot.slane %v2328_v42, 1 }
 0x532   :  { %v11561_v36 = vadd.f32 %v2329_v62, %v2328_v42  ;;  %v980_v42 = vrot.slane %v11536_v41, 7 }
 0x533   :  { %v11528_v24 = vld [vmem:[#allocation1] sm:$0xff] }
 0x534   :  { %13529 = vst [vmem:[#allocation32_spill] sm:$0xff] %v11528_v24  ;;  %vm3717_vm4 = vcmp.eq.f32.partialorder %v11561_v36, inf  ;;  %vm3719_vm5 = vcmp.eq.f32.partialorder %v11561_v36, 0.0 }
 0x535   :  { %1473 = vst [vmem:[#allocation1] ss:$9 sm:$0xff] %v971_v3  ;;  %v2340_v3 = vadd.f32 %v2339_v20, %v2338_v50  ;;  %v11558_v20 = vpop.f32.mrf.mxu3 }
 0x536   :  { %1474 = vst [vmem:[#allocation1 + $0x1] ss:$9 sm:$0xff] %v972_v12  ;;  %v2315_v12 = vrot.slane %v2314_v39, 1 }
 0x537   :  { %1475 = vst [vmem:[#allocation1 + $0x2] ss:$9 sm:$0xff] %v973_v0  ;;  %v2341_v43 = vrot.slane %v2340_v3, 2  ;;  %v2322_v0 = vrot.slane %v2321_v31, 1 }
 0x538   :  { %v11553_v47 = vadd.f32 %v2315_v12, %v2314_v39  ;;  %v11564_v39 = vadd.f32 %v2336_v55, %v2335_v14 }
 0x539   :  { %v2342_v4 = vadd.f32 %v2341_v43, %v2340_v3  ;;  %v2352_v3 = vsel %vm1637_vm1, %v11482_v46, 0.0  ;;  %v11580_v46 = vmul.f32 %v9673_v51, %v9673_v51  ;;  %v2359_v51 = vsel %vm1637_vm1, %v11484_v29, 0.0 }
 0x53a   :  { %8814 = vrsqrt.f32 %v11553_v47  ;;  %v2353_v43 = vrot.slane %v2352_v3, 4  ;;  %vm3693_vm12 = vcmp.eq.f32.partialorder %v11553_v47, inf  ;;  %vm3695_vm13 = vcmp.eq.f32.partialorder %v11553_v47, 0.0 }
 0x53b   :  { %v2343_v50 = vrot.slane %v2342_v4, 1  ;;  %v982_v44 = vrot.slane %v11580_v46, 2  ;;  %v983_v28 = vrot.slane %v11580_v46, 3  ;;  %vm3729_vm9 = vcmp.eq.f32.partialorder %v11564_v39, inf }
 0x53c   :  { %v2354_v14 = vadd.f32 %v2353_v43, %v2352_v3 }
 0x53e   :  { %v11539_v33 = vld [vmem:[#allocation1] sm:$0xff] }
 0x53f   :  { %13530 = vst [vmem:[#allocation33_spill] sm:$0xff] %v11539_v33 }
 0x540   :  { %1477 = vst [vmem:[#allocation1] ss:$9 sm:$0xff] %v11536_v41 }
 0x541   :  { %1478 = vst [vmem:[#allocation1 + $0x1] ss:$9 sm:$0xff] %v974_v25  ;;  %v11556_v25 = vadd.f32 %v2322_v0, %v2321_v31  ;;  %v11566_v31 = vadd.f32 %v2343_v50, %v2342_v4  ;;  %v979_v0 = vrot.slane %v11536_v41, 6  ;;  %v11585_v41 = vpop.f32.mrf.mxu3 }
 0x542   :  { %1479 = vst [vmem:[#allocation1 + $0x2] ss:$9 sm:$0xff] %v975_v17  ;;  %v2347_v17 = vadd.f32 %v2346_v38, %v2345_v52  ;;  %v2355_v38 = vrot.slane %v2354_v14, 2 }
 0x543   :  { %8816 = vrsqrt.f32 %v11556_v25  ;;  %13533 = vst [vmem:[#allocation36_spill] sm:$0xff] %v11585_v41  ;;  %vm3705_vm14 = vcmp.eq.f32.partialorder %v11556_v25, inf  ;;  %vm3707_vm2 = vcmp.eq.f32.partialorder %v11556_v25, 0.0 }
 0x544   :  { %v2348_v60 = vrot.slane %v2347_v17, 2  ;;  %8818 = vrsqrt.f32 %v11561_v36 }
 0x545   :  { %8820 = vrsqrt.f32 %v11564_v39 }
 0x546   :  { %v2349_v58 = vadd.f32 %v2348_v60, %v2347_v17  ;;  %8822 = vrsqrt.f32 %v11566_v31 }
 0x548   :  { %v2350_v12 = vrot.slane %v2349_v58, 1 }
 0x549   :  { %v11551_v61 = vld [vmem:[#allocation1] sm:$0xff] }
 0x54a   :  { %13531 = vst [vmem:[#allocation34_spill] sm:$0xff] %v11551_v61 }
 0x54b   :  { %1481 = vst [vmem:[#allocation1] ss:$9 sm:$0xff] %v976_v7  ;;  %v8815_v7 = vpop.eup %8814 }
 0x54c   :  { %1482 = vst [vmem:[#allocation1 + $0x1] ss:$9 sm:$0xff] %v977_v35  ;;  %v11575_v35 = vadd.f32 %v2350_v12, %v2349_v58  ;;  %v8817_v4 = vpop.eup %8816  ;;  %v3687_v62 = vmul.f32 %v8815_v7, %v11553_v47  ;;  %v2360_v58 = vrot.slane %v2359_v51, 4 }
 0x54d   :  { %1483 = vst [vmem:[#allocation1 + $0x2] ss:$9 sm:$0xff] %v978_v34  ;;  %v2356_v34 = vadd.f32 %v2355_v38, %v2354_v14  ;;  %v3699_v55 = vmul.f32 %v8817_v4, %v11556_v25  ;;  %v8819_v17 = vpop.eup %8818  ;;  %v981_v14 = vrot.slane %v11580_v46, 1 }
 0x54e   :  { %8824 = vrsqrt.f32 %v11575_v35  ;;  %v8821_v50 = vpop.eup %8820  ;;  %v2361_v43 = vadd.f32 %v2360_v58, %v2359_v51  ;;  %v3711_v59 = vmul.f32 %v8819_v17, %v11561_v36 }
 0x54f   :  { %v2357_v60 = vrot.slane %v2356_v34, 1  ;;  %v8823_v3 = vpop.eup %8822  ;;  %v3723_v57 = vmul.f32 %v8821_v50, %v11564_v39 }
 0x550   :  { %v2362_v13 = vrot.slane %v2361_v43, 2  ;;  %v3735_v61 = vmul.f32 %v8823_v3, %v11566_v31 }
 0x551   :  { %v11595_v38 = vadd.f32 %v2357_v60, %v2356_v34  ;;  %v3712_v60 = vmul.f32 %v8819_v17, %v3711_v59  ;;  %v3724_v58 = vmul.f32 %v8821_v50, %v3723_v57  ;;  %v984_v59 = vrot.slane %v11580_v46, 4 }
 0x552   :  { %v3736_v27 = vmul.f32 %v8823_v3, %v3735_v61  ;;  %v985_v57 = vrot.slane %v11580_v46, 5 }
 0x553   :  { %8826 = vrsqrt.f32 %v11595_v38  ;;  %v3713_v33 = vmul.f32 0.5, %v3712_v60  ;;  %v3725_v6 = vmul.f32 0.5, %v3724_v58 }
 0x554   :  { %v11573_v52 = vld [vmem:[#allocation1] sm:$0xff]  ;;  %v11591_v12 = vpop.eup %8824 }
 0x555   :  { %13532 = vst [vmem:[#allocation35_spill] sm:$0xff] %v11573_v52  ;;  %v11606_v52 = vpop.f32.mrf.mxu3  ;;  %v3714_v61 = vsub.f32 1.5, %v3713_v33 }
 0x556   :  { %1485 = vst [vmem:[#allocation1] ss:$9 sm:$0xff] %v979_v0  ;;  %v3688_v0 = vmul.f32 %v8815_v7, %v3687_v62  ;;  %v3747_v62 = vmul.f32 %v11591_v12, %v11575_v35 }
 0x557   :  { %1486 = vst [vmem:[#allocation1 + $0x1] ss:$9 sm:$0xff] %v980_v42  ;;  %v3700_v42 = vmul.f32 %v8817_v4, %v3699_v55  ;;  %v2363_v55 = vadd.f32 %v2362_v13, %v2361_v43  ;;  %v3737_v13 = vmul.f32 0.5, %v3736_v27 }
 0x558   :  { %1487 = vst [vmem:[#allocation1 + $0x2] ss:$9 sm:$0xff] %v11580_v46  ;;  %v3689_v51 = vmul.f32 0.5, %v3688_v0  ;;  %v3748_v41 = vmul.f32 %v11591_v12, %v3747_v62  ;;  %v986_v62 = vrot.slane %v11580_v46, 6 }
 0x559   :  { %v3701_v34 = vmul.f32 0.5, %v3700_v42  ;;  %13535 = vst [vmem:[#allocation38_spill] sm:$0xff] %v11606_v52  ;;  %v3738_v27 = vsub.f32 1.5, %v3737_v13  ;;  %v3696_v13 = vand.u32 2147483648, %v11553_v47 }
 0x55a   :  { %v3690_v32 = vsub.f32 1.5, %v3689_v51  ;;  %v11618_v51 = vmul.f32 %v9702_v23, %v9702_v23  ;;  %v987_v23 = vrot.slane %v11580_v46, 7 }
 0x55b   :  { %v3739_v58 = vmul.f32 %v8823_v3, %v3738_v27 }
 0x55c   :  { %v3691_v0 = vmul.f32 %v8815_v7, %v3690_v32  ;;  %v3715_v7 = vmul.f32 %v8819_v17, %v3714_v61 }
 0x55e   :  { %v3692_v32 = vmul.f32 %v3691_v0, %v11553_v47  ;;  %v3708_v0 = vand.u32 2147483648, %v11556_v25 }
 0x55f   :  { %v11599_v29 = vld [vmem:[#allocation1] sm:$0xff] }
 0x560   :  { %13534 = vst [vmem:[#allocation37_spill] sm:$0xff] %v11599_v29  ;;  %v2364_v29 = vrot.slane %v2363_v55, 1  ;;  %v3694_v46 = vsel %vm3693_vm12, %v11553_v47, %v3692_v32  ;;  %vm3731_vm12 = vcmp.eq.f32.partialorder %v11564_v39, 0.0 }
 0x561   :  { %1489 = vst [vmem:[#allocation1] ss:$9 sm:$0xff] %v981_v14  ;;  %v3702_v14 = vsub.f32 1.5, %v3701_v34  ;;  %v11622_v34 = vpop.f32.mrf.mxu3  ;;  %v3697_v27 = vsel %vm3695_vm13, %v3696_v13, %v3694_v46  ;;  %vm3741_vm13 = vcmp.eq.f32.partialorder %v11566_v31, inf  ;;  %v3756_v46 = vand.u32 2147483648, %v11575_v35 }
 0x562   :  { %1490 = vst [vmem:[#allocation1 + $0x1] ss:$9 sm:$0xff] %v982_v44  ;;  %v11609_v24 = vadd.f32 %v2364_v29, %v2363_v55  ;;  %v8827_v44 = vpop.eup %8826  ;;  %v3726_v29 = vsub.f32 1.5, %v3725_v6  ;;  %v988_v6 = vrot.slane %v11618_v51, 1 }
 0x563   :  { %1491 = vst [vmem:[#allocation1 + $0x2] ss:$9 sm:$0xff] %v983_v28  ;;  %v3749_v28 = vmul.f32 0.5, %v3748_v41  ;;  %v3703_v42 = vmul.f32 %v8817_v4, %v3702_v14  ;;  %v3759_v55 = vmul.f32 %v8827_v44, %v11595_v38 }
 0x564   :  { %8828 = vrsqrt.f32 %v11609_v24  ;;  %13537 = vst [vmem:[#allocation40_spill] sm:$0xff] %v11622_v34  ;;  %v3727_v60 = vmul.f32 %v8821_v50, %v3726_v29  ;;  %v3716_v50 = vmul.f32 %v3715_v7, %v11561_v36  ;;  %v3732_v7 = vand.u32 2147483648, %v11564_v39 }
 0x565   :  { %v3750_v41 = vsub.f32 1.5, %v3749_v28  ;;  %v3704_v33 = vmul.f32 %v3703_v42, %v11556_v25  ;;  %v3760_v4 = vmul.f32 %v8827_v44, %v3759_v55 }
 0x566   :  { %v3728_v3 = vmul.f32 %v3727_v60, %v11564_v39  ;;  %v3744_v60 = vand.u32 2147483648, %v11566_v31 }
 0x567   :  { %v3761_v14 = vmul.f32 0.5, %v3760_v4  ;;  %v3751_v17 = vmul.f32 %v11591_v12, %v3750_v41  ;;  %v3706_v28 = vsel %vm3705_vm14, %v11556_v25, %v3704_v33  ;;  %v3720_v12 = vand.u32 2147483648, %v11561_v36 }
 0x568   :  { %v3709_v55 = vsel %vm3707_vm2, %v3708_v0, %v3706_v28  ;;  %v3718_v33 = vsel %vm3717_vm4, %v11561_v36, %v3716_v50  ;;  %v3730_v47 = vsel %vm3729_vm9, %v11564_v39, %v3728_v3  ;;  %vm3753_vm14 = vcmp.eq.f32.partialorder %v11575_v35, inf }
 0x569   :  { %v3752_v41 = vmul.f32 %v3751_v17, %v11575_v35  ;;  %v11659_v4 = vpop.f32.mrf.mxu3  ;;  %vm3765_vm2 = vcmp.eq.f32.partialorder %v11595_v38, inf  ;;  %v3733_v17 = vsel %vm3731_vm12, %v3732_v7, %v3730_v47  ;;  %vm3743_vm4 = vcmp.eq.f32.partialorder %v11566_v31, 0.0  ;;  %v11693_v47 = vpop.permute.xlu2 %5028 }
 0x56a   :  { %v11613_v43 = vld [vmem:[#allocation1] sm:$0xff]  ;;  %13539 = vst [vmem:[#allocation42_spill] sm:$0xff] %v11659_v4  ;;  %vm3755_vm9 = vcmp.eq.f32.partialorder %v11575_v35, 0.0  ;;  %v3768_v36 = vand.u32 2147483648, %v11595_v38  ;;  %v989_v39 = vrot.slane %v11618_v51, 2  ;;  %vm3777_vm12 = vcmp.eq.f32.partialorder %v11609_v24, inf }
 0x56b   :  { %13536 = vst [vmem:[#allocation39_spill] sm:$0xff] %v11613_v43  ;;  %v13548_v43 = vrot.slane %v10402_v10, 3 }
 0x56c   :  { %1493 = vst [vmem:[#allocation1] ss:$9 sm:$0xff] %v984_v59  ;;  %v8829_v59 = vpop.eup %8828 }
 0x56d   :  { %1494 = vst [vmem:[#allocation1 + $0x1] ss:$9 sm:$0xff] %v985_v57  ;;  %v3762_v57 = vsub.f32 1.5, %v3761_v14  ;;  %v3771_v42 = vmul.f32 %v8829_v59, %v11609_v24  ;;  %v3754_v14 = vsel %vm3753_vm14, %v11575_v35, %v3752_v41  ;;  %v3780_v35 = vand.u32 2147483648, %v11609_v24 }
 0x56e   :  { %1495 = vst [vmem:[#allocation1 + $0x2] ss:$9 sm:$0xff] %v986_v62  ;;  %v3740_v62 = vmul.f32 %v3739_v58, %v11566_v31  ;;  %v4313_v58 = vsel %vm4222_vm8, %v3709_v55, %v3697_v27  ;;  %v3757_v0 = vsel %vm3755_vm9, %v3756_v46, %v3754_v14  ;;  %v993_v14 = vrot.slane %v11618_v51, 6 }
 0x56f   :  { %v3763_v29 = vmul.f32 %v8827_v44, %v3762_v57  ;;  %v3772_v32 = vmul.f32 %v8829_v59, %v3771_v42 }
 0x571   :  { %v3764_v44 = vmul.f32 %v3763_v29, %v11595_v38  ;;  %v3773_v25 = vmul.f32 0.5, %v3772_v32  ;;  %v5048_v7 = vpop.f32.mrf.mxu3 }
 0x573   :  { %v3774_v13 = vsub.f32 1.5, %v3773_v25  ;;  %v3766_v28 = vsel %vm3765_vm2, %v11595_v38, %v3764_v44  ;;  %v4420_v44 = vpop.f32.mrf.mxu2 }
 0x574   :  { %v4534_v25 = vadd.f32 %v11545_v16, %v4420_v44  ;;  %v994_v16 = vrot.slane %v11618_v51, 7 }
 0x575   :  { %v11641_v61 = vld [vmem:[#allocation1] sm:$0xff]  ;;  %v3775_v57 = vmul.f32 %v8829_v59, %v3774_v13 }
 0x576   :  { %13538 = vst [vmem:[#allocation41_spill] sm:$0xff] %v11641_v61 }
 0x577   :  { %1497 = vst [vmem:[#allocation1] ss:$9 sm:$0xff] %v987_v23  ;;  %v3742_v23 = vsel %vm3741_vm13, %v11566_v31, %v3740_v62  ;;  %v3776_v31 = vmul.f32 %v3775_v57, %v11609_v24  ;;  %v990_v62 = vrot.slane %v11618_v51, 3  ;;  %vm3779_vm13 = vcmp.eq.f32.partialorder %v11609_v24, 0.0 }
 0x578   :  { %1498 = vst [vmem:[#allocation1 + $0x1] ss:$9 sm:$0xff] %v11618_v51  ;;  %v3745_v50 = vsel %vm3743_vm4, %v3744_v60, %v3742_v23  ;;  %v11706_v60 = vadd.f32 %v5048_v7, %v11693_v47  ;;  %v6376_v57 = vrot.slane %v10218_v40, 1 }
 0x579   :  { %1499 = vst [vmem:[#allocation1 + $0x2] ss:$9 sm:$0xff] %v988_v6  ;;  %v3721_v6 = vsel %vm3719_vm5, %v3720_v12, %v3718_v33  ;;  %vm3767_vm5 = vcmp.eq.f32.partialorder %v11595_v38, 0.0  ;;  %v991_v38 = vrot.slane %v11618_v51, 4  ;;  %v3778_v27 = vsel %vm3777_vm12, %v11609_v24, %v3776_v31  ;;  %v11700_v24 = vld [vmem:[%s13468_s4] ss:$0 sm:$0xff] }
 0x57a   :  { %v4314_v3 = vsel %vm4224_vm10, %v3721_v6, %v4313_v58  ;;  %v3769_v42 = vsel %vm3767_vm5, %v3768_v36, %v3766_v28  ;;  %v3781_v41 = vsel %vm3779_vm13, %v3780_v35, %v3778_v27  ;;  %v11703_v23 = vadd.f32 %v11700_v24, %v4534_v25 }
 0x57b   :  { %v4315_v12 = vsel %vm4226_vm15, %v3733_v17, %v4314_v3  ;;  %v992_v6 = vrot.slane %v11618_v51, 5  ;;  %v5448_v17 = vrot.slane %v11706_v60, 1  ;;  %v5560_v46 = vperm.slane %v11706_v60, 0 }
 0x57c   :  { %v4316_v59 = vsel %vm4228_vm3, %v3745_v50, %v4315_v12  ;;  %v8497_v58 = vmul.f32 -1.442695, %v11703_v23  ;;  %v5449_v28 = vrot.slane %v11706_v60, 2  ;;  %v6377_v3 = vrot.slane %v10218_v40, 2 }
 0x57d   :  { %v4317_v55 = vsel %vm4230_vm6, %v3757_v0, %v4316_v59  ;;  %v5561_v50 = vperm.slane %v5448_v17, 0  ;;  %v5816_v0 = vrot.slane %v5560_v46, 1  ;;  %v6378_v51 = vrot.slane %v10218_v40, 3 }
 0x57e   :  { %v4318_v32 = vsel %vm4232_vm7, %v3769_v42, %v4317_v55  ;;  %8830 = vpow2.f32 %v8497_v58  ;;  %v5450_v31 = vrot.slane %v11706_v60, 3  ;;  %v5562_v12 = vperm.slane %v5449_v28, 0 }
 0x57f   :  { %v4319_v33 = vsel %vm4234_vm11, %v3781_v41, %v4318_v32  ;;  %v5818_v35 = vrot.slane %v5561_v50, 1  ;;  %v7048_v59 = vmul.f32 %v5560_v46, %v10218_v40  ;;  %v5819_v27 = vrot.slane %v5561_v50, 2 }
 0x580   :  { %v11682_v29 = vld [vmem:[#allocation1] sm:$0xff]  ;;  %8467 = vmatmul.msk.f32.gmra.mxu2 %vm80_vm0, %v4319_v33  ;;  %v7049_v55 = vmul.f32 %v6376_v57, %v5816_v0  ;;  %v2373_v32 = vsel %vm1637_vm1, %v11488_v1, 0.0  ;;  %v6381_v33 = vrot.slane %v10218_v40, 6  ;;  %v5451_v44 = vrot.slane %v11706_v60, 4 }
 0x581   :  { %13540 = vst [vmem:[#allocation43_spill] sm:$0xff] %v11682_v29  ;;  %v2366_v25 = vsel %vm1637_vm1, %v11486_v49, 0.0  ;;  %v6382_v58 = vrot.slane %v10218_v40, 7  ;;  %v6384_v17 = vrot.slane %v10246_v2, 2  ;;  %v2374_v28 = vrot.slane %v2373_v32, 4 }
 0x582   :  { %1501 = vst [vmem:[#allocation1] ss:$9 sm:$0xff] %v989_v39  ;;  %v5817_v39 = vrot.slane %v5560_v46, 2  ;;  %v5563_v57 = vperm.slane %v5450_v31, 0  ;;  %v2367_v49 = vrot.slane %v2366_v25, 4  ;;  %v2387_v31 = vsel %vm1637_vm1, %v11494_v37, 0.0 }
 0x583   :  { %1502 = vst [vmem:[#allocation1 + $0x1] ss:$9 sm:$0xff] %v990_v62  ;;  %v6379_v62 = vrot.slane %v10218_v40, 4 }
 0x584   :  { %1503 = vst [vmem:[#allocation1 + $0x2] ss:$9 sm:$0xff] %v991_v38  ;;  %v8831_v36 = vpop.eup %8830  ;;  %v6380_v38 = vrot.slane %v10218_v40, 5  ;;  %v7050_v7 = vmul.f32 %v6377_v3, %v5817_v39  ;;  %v6387_v40 = vrot.slane %v10246_v2, 5  ;;  %v5564_v39 = vperm.slane %v5451_v44, 0 }
 0x585   :  { %v11719_v42 = vadd.f32 1.0, %v8831_v36  ;;  %v7052_v46 = vmul.f32 %v6379_v62, %v5818_v35  ;;  %v6386_v36 = vrot.slane %v10246_v2, 4  ;;  %v5822_v44 = vrot.slane %v5563_v57, 1 }
 0x586   :  { %v7053_v0 = vmul.f32 %v6380_v38, %v5819_v27  ;;  %v5821_v27 = vrot.slane %v5562_v12, 2 }
 0x587   :  { %8832 = vrcp.f32 %v11719_v42  ;;  %v4794_v37 = vand.u32 2147483647, %v11719_v42  ;;  %vm4790_vm2 = vweird.f32 %v11719_v42 }
 0x589   :  { %vm4795_vm9 = vcmp.eq.f32.partialorder %v4794_v37, 8.507059e+37  ;;  %v13546_v37 = vrot.slane %v10246_v2, 7 }
 0x58b   :  { %v11711_v13 = vld [vmem:[#allocation1] sm:$0xff] }
 0x58c   :  { %13541 = vst [vmem:[#allocation44_spill] sm:$0xff] %v11711_v13 }
 0x58d   :  { %1505 = vst [vmem:[#allocation1] ss:$9 sm:$0xff] %v992_v6  ;;  %v6383_v6 = vrot.slane %v10246_v2, 1  ;;  %v8833_v3 = vpop.eup %8832 }
 0x58e   :  { %1506 = vst [vmem:[#allocation1 + $0x1] ss:$9 sm:$0xff] %v993_v14  ;;  %v5820_v14 = vrot.slane %v5562_v12, 1  ;;  %v4786_v35 = vmul.f32 %v8833_v3, %v11719_v42  ;;  %vm4791_vm14 = vweird.f32 %v8833_v3 }
 0x58f   :  { %1507 = vst [vmem:[#allocation1 + $0x2] ss:$9 sm:$0xff] %v994_v16  ;;  %v7051_v16 = vmul.f32 %v6378_v51, %v5561_v50  ;;  %v2380_v50 = vsel %vm1637_vm1, %v11492_v30, 0.0  ;;  %v6388_v51 = vrot.slane %v10246_v2, 6  ;;  %vm4792_vm4 = vmor %vm4790_vm2, %vm4791_vm14 }
 0x590   :  { %v7055_v62 = vmul.f32 %v6382_v58, %v5820_v14  ;;  %v4787_v30 = vsub.f32 1.0, %v4786_v35  ;;  %v5823_v58 = vrot.slane %v5563_v57, 2  ;;  %v5824_v14 = vrot.slane %v5564_v39, 1 }
 0x591   :  { %v5452_v35 = vrot.slane %v11706_v60, 5 }
 0x592   :  { %v4788_v1 = vmul.f32 %v8833_v3, %v4787_v30 }
 0x594   :  { %v4789_v38 = vadd.f32 %v8833_v3, %v4788_v1 }
 0x596   :  { %v11727_v41 = vld [vmem:[#allocation1] sm:$0xff]  ;;  %v4793_v34 = vsel %vm4792_vm4, %v8833_v3, %v4789_v38  ;;  %v13545_v38 = vrot.slane %v10246_v2, 3 }
 0x597   :  { %13542 = vst [vmem:[#allocation45_spill] sm:$0xff] %v11727_v41  ;;  %v2401_v41 = vsel %vm1637_vm1, %v11500_v63, 0.0  ;;  %v5565_v63 = vperm.slane %v5452_v35, 0  ;;  %v6396_v35 = vrot.slane %v10306_v15, 7 }
 0x598   :  { %7816 = vst [vmem:[#allocation1] ss:$9 sm:$0xff] %v7048_v59  ;;  %v7054_v59 = vmul.f32 %v6381_v33, %v5562_v12  ;;  %v2394_v33 = vsel %vm1637_vm1, %v11498_v53, 0.0 }
 0x599   :  { %7818 = vst [vmem:[#allocation1 + $0x1] ss:$9 sm:$0xff] %v7049_v55  ;;  %v2375_v55 = vadd.f32 %v2374_v28, %v2373_v32  ;;  %v2395_v12 = vrot.slane %v2394_v33, 4  ;;  %v7056_v32 = vmul.f32 %v5821_v27, %v10246_v2  ;;  %v7057_v28 = vmul.f32 %v6383_v6, %v5563_v57 }
 0x59a   :  { %7820 = vst [vmem:[#allocation1 + $0x2] ss:$9 sm:$0xff] %v7050_v7  ;;  %v2368_v7 = vadd.f32 %v2367_v49, %v2366_v25  ;;  %v5453_v6 = vrot.slane %v11706_v60, 6  ;;  %v2402_v27 = vrot.slane %v2401_v41, 4 }
 0x59b   :  { %7822 = vst [vmem:[#allocation1 + $0x3] ss:$9 sm:$0xff] %v7051_v16  ;;  %v2381_v16 = vrot.slane %v2380_v50, 4  ;;  %v2376_v53 = vrot.slane %v2375_v55, 2  ;;  %v2396_v52 = vadd.f32 %v2395_v12, %v2394_v33  ;;  %v7059_v33 = vmul.f32 %v13545_v38, %v5823_v58 }
 0x59c   :  { %7824 = vst [vmem:[#allocation1 + $0x4] ss:$9 sm:$0xff] %v7052_v46  ;;  %v4796_v46 = vand.u32 2147483648, %v11719_v42  ;;  %v2369_v25 = vrot.slane %v2368_v7, 2  ;;  %v7063_v12 = vmul.f32 %v13546_v37, %v5565_v63 }
 0x59d   :  { %7826 = vst [vmem:[#allocation1 + $0x5] ss:$9 sm:$0xff] %v7053_v0  ;;  %v2388_v0 = vrot.slane %v2387_v31, 4  ;;  %v2382_v49 = vadd.f32 %v2381_v16, %v2380_v50  ;;  %v2377_v42 = vadd.f32 %v2376_v53, %v2375_v55  ;;  %v6395_v53 = vrot.slane %v10306_v15, 6 }
 0x59e   :  { %7828 = vst [vmem:[#allocation1 + $0x6] ss:$9 sm:$0xff] %v7054_v59  ;;  %v5825_v59 = vrot.slane %v5564_v39, 2  ;;  %v4797_v4 = vor.u32 1.1754944e-38, %v4796_v46  ;;  %v7061_v46 = vmul.f32 %v6387_v40, %v5824_v14  ;;  %v6393_v14 = vrot.slane %v10306_v15, 4 }
 0x59f   :  { %7830 = vst [vmem:[#allocation1 + $0x7] ss:$9 sm:$0xff] %v7055_v62  ;;  %v7058_v62 = vmul.f32 %v6384_v17, %v5822_v44  ;;  %v2389_v30 = vadd.f32 %v2388_v0, %v2387_v31  ;;  %v5454_v17 = vrot.slane %v11706_v60, 7  ;;  %v2370_v31 = vadd.f32 %v2369_v25, %v2368_v7 }
 0x5a0   :  { %v4798_v1 = vsel %vm4795_vm9, %v4797_v4, %v4793_v34  ;;  %v2383_v3 = vrot.slane %v2382_v49, 2  ;;  %v7060_v44 = vmul.f32 %v6386_v36, %v5564_v39  ;;  %v7062_v0 = vmul.f32 %v6388_v51, %v5825_v59 }
 0x5a1   :  { %v11762_v50 = vmul.f32 %v4798_v1, %v11703_v23  ;;  %v2390_v16 = vrot.slane %v2389_v30, 2  ;;  %v6390_v34 = vrot.slane %v10306_v15, 1  ;;  %v2397_v4 = vrot.slane %v2396_v52, 2 }
 0x5a2   :  { %v5566_v23 = vperm.slane %v5453_v6, 0  ;;  %v6391_v60 = vrot.slane %v10306_v15, 2  ;;  %v2378_v55 = vrot.slane %v2377_v42, 1  ;;  %v2403_v7 = vadd.f32 %v2402_v27, %v2401_v41  ;;  %v5051_v41 = vpop.f32.mrf.mxu3 }
 0x5a3   :  { %13544 = vst [vmem:[#allocation47_spill] sm:$0xff] %v11762_v50  ;;  %8529 = vmatmul.msk.f32.gmra.mxu3 %vm80_vm0, %v11762_v50  ;;  %v5567_v58 = vperm.slane %v5454_v17, 0  ;;  %v6392_v36 = vrot.slane %v10306_v15, 3  ;;  %v2371_v39 = vrot.slane %v2370_v31, 1  ;;  %v2384_v40 = vadd.f32 %v2383_v3, %v2382_v49 }
 0x5a4   :  { %v5826_v51 = vrot.slane %v5565_v63, 1  ;;  %v2391_v59 = vadd.f32 %v2390_v16, %v2389_v30  ;;  %v2398_v25 = vadd.f32 %v2397_v4, %v2396_v52  ;;  %v11777_v49 = vadd.f32 %v2378_v55, %v2377_v42 }
 0x5a5   :  { %v2404_v6 = vrot.slane %v2403_v7, 2  ;;  %v5829_v1 = vrot.slane %v5566_v23, 2  ;;  %v5830_v2 = vrot.slane %v5567_v58, 1  ;;  %v11779_v27 = vadd.f32 %v2371_v39, %v2370_v31 }
 0x5a6   :  { %v11758_v57 = vld [vmem:[#allocation1] sm:$0xff]  ;;  %v2385_v30 = vrot.slane %v2384_v40, 1  ;;  %v5831_v17 = vrot.slane %v5567_v58, 2  ;;  %v7064_v3 = vmul.f32 %v5826_v51, %v10306_v15  ;;  %v11783_v38 = vadd.f32 %v5051_v41, %v11693_v47 }
 0x5a7   :  { %13543 = vst [vmem:[#allocation46_spill] sm:$0xff] %v11758_v57  ;;  %v2408_v42 = vsel %vm1637_vm1, %v11502_v56, 0.0  ;;  %8834 = vrsqrt.f32 %v11777_v49  ;;  %v7068_v31 = vmul.f32 %v6393_v14, %v5829_v1  ;;  %v7070_v4 = vmul.f32 %v6395_v53, %v5830_v2 }
 0x5a8   :  { %7832 = vst [vmem:[#allocation1] ss:$9 sm:$0xff] %v7056_v32  ;;  %v5827_v32 = vrot.slane %v5565_v63, 2  ;;  %v2399_v63 = vrot.slane %v2398_v25, 1  ;;  %v11788_v55 = vadd.f32 %v2385_v30, %v2384_v40  ;;  %8836 = vrsqrt.f32 %v11779_v27 }
 0x5a9   :  { %7833 = vst [vmem:[#allocation1 + $0x1] ss:$9 sm:$0xff] %v7057_v28  ;;  %v6394_v28 = vrot.slane %v10306_v15, 5  ;;  %v7071_v15 = vmul.f32 %v6396_v35, %v5831_v17  ;;  %v5455_v39 = vrot.slane %v11783_v38, 1  ;;  %v5457_v56 = vrot.slane %v11783_v38, 3 }
 0x5aa   :  { %7834 = vst [vmem:[#allocation1 + $0x2] ss:$9 sm:$0xff] %v7058_v62  ;;  %v5828_v62 = vrot.slane %v5566_v23, 1  ;;  %v7065_v52 = vmul.f32 %v6390_v34, %v5827_v32  ;;  %v6397_v40 = vrot.slane %v10402_v10, 1  ;;  %v6398_v51 = vrot.slane %v10402_v10, 2 }
 0x5ab   :  { %7835 = vst [vmem:[#allocation1 + $0x3] ss:$9 sm:$0xff] %v7059_v33  ;;  %v2392_v33 = vrot.slane %v2391_v59, 1  ;;  %8838 = vrsqrt.f32 %v11788_v55  ;;  %v6403_v53 = vrot.slane %v10402_v10, 7  ;;  %v5569_v1 = vperm.slane %v5455_v39, 0 }
 0x5ac   :  { %7836 = vst [vmem:[#allocation1 + $0x4] ss:$9 sm:$0xff] %v7060_v44  ;;  %v7066_v44 = vmul.f32 %v6391_v60, %v5566_v23  ;;  %v7067_v16 = vmul.f32 %v6392_v36, %v5828_v62  ;;  %v2409_v23 = vrot.slane %v2408_v42, 4  ;;  %v5456_v60 = vrot.slane %v11783_v38, 2 }
 0x5ad   :  { %7837 = vst [vmem:[#allocation1 + $0x5] ss:$9 sm:$0xff] %v7061_v46  ;;  %v7069_v46 = vmul.f32 %v6394_v28, %v5567_v58  ;;  %v11792_v34 = vadd.f32 %v2392_v33, %v2391_v59  ;;  %v11799_v36 = vadd.f32 %v2399_v63, %v2398_v25  ;;  %v6401_v59 = vrot.slane %v10402_v10, 5  ;;  %v11808_v28 = vpop.eup %8834 }
 0x5ae   :  { %7838 = vst [vmem:[#allocation1 + $0x6] ss:$9 sm:$0xff] %v7062_v0  ;;  %v2405_v0 = vadd.f32 %v2404_v6, %v2403_v7  ;;  %v5458_v7 = vrot.slane %v11783_v38, 4  ;;  %v2410_v25 = vadd.f32 %v2409_v23, %v2408_v42  ;;  %v11813_v62 = vpop.eup %8836  ;;  %v5568_v6 = vperm.slane %v11783_v38, 0 }
 0x5af   :  { %7839 = vst [vmem:[#allocation1 + $0x7] ss:$9 sm:$0xff] %v7063_v12  ;;  %v6400_v12 = vrot.slane %v10402_v10, 4  ;;  %8840 = vrsqrt.f32 %v11792_v34  ;;  %v3795_v63 = vmul.f32 %v11808_v28, %v11777_v49  ;;  %v2415_v39 = vsel %vm1637_vm1, %v11506_v5, 0.0 }
 0x5b0   :  { %v2406_v37 = vrot.slane %v2405_v0, 1  ;;  %8842 = vrsqrt.f32 %v11799_v36  ;;  %v11826_v42 = vperm.slane %v5458_v7, 0  ;;  %v5835_v7 = vrot.slane %v5569_v1, 2 }
 0x5b1   :  { %v3796_v35 = vmul.f32 %v11808_v28, %v3795_v63  ;;  %vm3789_vm5 = vcmp.eq.f32.partialorder %v11779_v27, inf  ;;  %vm3791_vm12 = vcmp.eq.f32.partialorder %v11779_v27, 0.0  ;;  %vm3801_vm13 = vcmp.eq.f32.partialorder %v11777_v49, inf }
 0x5b2   :  { %v5840_v23 = vrot.slane %v11826_v42, 1  ;;  %v7077_v57 = vmul.f32 %v6401_v59, %v5835_v7  ;;  %vm3803_vm14 = vcmp.eq.f32.partialorder %v11777_v49, 0.0  ;;  %vm3813_vm2 = vcmp.eq.f32.partialorder %v11788_v55, inf }
 0x5b3   :  { %v3797_v22 = vmul.f32 0.5, %v3796_v35  ;;  %vm3815_vm4 = vcmp.eq.f32.partialorder %v11788_v55, 0.0  ;;  %vm3825_vm9 = vcmp.eq.f32.partialorder %v11792_v34, inf }
 0x5b6   :  { %v11797_v58 = vld [vmem:[#allocation1] sm:$0xff] }
 0x5b7   :  { %13547 = vst [vmem:[#allocation48_spill] sm:$0xff] %v11797_v58 }
 0x5b8   :  { %7841 = vst [vmem:[#allocation1] ss:$9 sm:$0xff] %v7064_v3  ;;  %v11821_v3 = vadd.f32 %v2406_v37, %v2405_v0  ;;  %v11832_v0 = vpop.eup %8838 }
 0x5b9   :  { %7842 = vst [vmem:[#allocation1 + $0x1] ss:$9 sm:$0xff] %v7065_v52  ;;  %v5570_v52 = vperm.slane %v5456_v60, 0  ;;  %v5832_v60 = vrot.slane %v5568_v6, 1  ;;  %v11835_v37 = vpop.eup %8840 }
 0x5ba   :  { %7843 = vst [vmem:[#allocation1 + $0x2] ss:$9 sm:$0xff] %v7066_v44  ;;  %v5571_v44 = vperm.slane %v5457_v56, 0  ;;  %v5833_v56 = vrot.slane %v5568_v6, 2  ;;  %8844 = vrsqrt.f32 %v11821_v3  ;;  %v11838_v17 = vpop.eup %8842  ;;  %v3819_v50 = vmul.f32 %v11835_v37, %v11792_v34 }
 0x5bb   :  { %7844 = vst [vmem:[#allocation1 + $0x3] ss:$9 sm:$0xff] %v7067_v16  ;;  %v2411_v16 = vrot.slane %v2410_v25, 2  ;;  %v5836_v5 = vrot.slane %v5570_v52, 1  ;;  %v5837_v30 = vrot.slane %v5570_v52, 2  ;;  %v7073_v13 = vmul.f32 %v6397_v40, %v5832_v60 }
 0x5bc   :  { %7845 = vst [vmem:[#allocation1 + $0x4] ss:$9 sm:$0xff] %v7068_v31  ;;  %v3783_v31 = vmul.f32 %v11813_v62, %v11779_v27  ;;  %v5838_v2 = vrot.slane %v5571_v44, 1  ;;  %v5839_v41 = vrot.slane %v5571_v44, 2  ;;  %v7074_v29 = vmul.f32 %v6398_v51, %v5833_v56 }
 0x5bd   :  { %7846 = vst [vmem:[#allocation1 + $0x5] ss:$9 sm:$0xff] %v7069_v46  ;;  %v5834_v46 = vrot.slane %v5569_v1, 1  ;;  %v2412_v33 = vadd.f32 %v2411_v16, %v2410_v25  ;;  %v5841_v25 = vrot.slane %v11826_v42, 2  ;;  %v7072_v16 = vmul.f32 %v5568_v6, %v10402_v10 }
 0x5be   :  { %7847 = vst [vmem:[#allocation1 + $0x6] ss:$9 sm:$0xff] %v7070_v4  ;;  %v2416_v4 = vrot.slane %v2415_v39, 4  ;;  %v3784_v32 = vmul.f32 %v11813_v62, %v3783_v31  ;;  %v3831_v63 = vmul.f32 %v11838_v17, %v11799_v36  ;;  %v7075_v31 = vmul.f32 %v13548_v43, %v5569_v1 }
 0x5bf   :  { %7848 = vst [vmem:[#allocation1 + $0x7] ss:$9 sm:$0xff] %v7071_v15  ;;  %v3807_v15 = vmul.f32 %v11832_v0, %v11788_v55  ;;  %v2413_v14 = vrot.slane %v2412_v33, 1  ;;  %v7076_v58 = vmul.f32 %v6400_v12, %v5834_v46  ;;  %v13549_v6 = vrot.slane %v10402_v10, 6 }
 0x5c0   :  { %v2417_v61 = vadd.f32 %v2416_v4, %v2415_v39  ;;  %v11853_v54 = vpop.eup %8844  ;;  %v7079_v48 = vmul.f32 %v6403_v53, %v5836_v5  ;;  %v3785_v40 = vmul.f32 0.5, %v3784_v32  ;;  %v11861_v39 = vmul.f32 %v5837_v30, %v10430_v11 }
 0x5c1   :  { %v7078_v26 = vmul.f32 %v13549_v6, %v5570_v52  ;;  %v3808_v51 = vmul.f32 %v11832_v0, %v3807_v15  ;;  %v13550_v60 = vrot.slane %v10430_v11, 1  ;;  %v11867_v12 = vadd.f32 %v2413_v14, %v2412_v33 }
 0x5c2   :  { %v3820_v59 = vmul.f32 %v11835_v37, %v3819_v50  ;;  %v13551_v10 = vrot.slane %v10430_v11, 2  ;;  %v2418_v32 = vrot.slane %v2417_v61, 2  ;;  %v3832_v35 = vmul.f32 %v11838_v17, %v3831_v63 }
 0x5c3   :  { %v11865_v43 = vmul.f32 %v13550_v60, %v5571_v44  ;;  %v3843_v1 = vmul.f32 %v11853_v54, %v11821_v3  ;;  %v13552_v30 = vrot.slane %v10430_v11, 3  ;;  %v5459_v14 = vrot.slane %v11783_v38, 5 }
 0x5c4   :  { %v11872_v53 = vmul.f32 %v13551_v10, %v5838_v2  ;;  %v3798_v33 = vsub.f32 1.5, %v3797_v22  ;;  %8846 = vrsqrt.f32 %v11867_v12  ;;  %v2419_v50 = vadd.f32 %v2418_v32, %v2417_v61 }
 0x5c5   :  { %v11879_v52 = vmul.f32 %v13552_v30, %v5839_v41  ;;  %v3786_v2 = vsub.f32 1.5, %v3785_v40  ;;  %v3844_v44 = vmul.f32 %v11853_v54, %v3843_v1  ;;  %v13553_v56 = vrot.slane %v10430_v11, 4 }
 0x5c6   :  { %v11857_v8 = vld [vmem:[#allocation1] sm:$0xff]  ;;  %v13554_v41 = vrot.slane %v10430_v11, 5  ;;  %v3821_v22 = vmul.f32 0.5, %v3820_v59  ;;  %v13555_v4 = vrot.slane %v10430_v11, 6  ;;  %v5461_v5 = vrot.slane %v11783_v38, 7 }
 0x5c7   :  { %7850 = vst [vmem:[#allocation1] ss:$9 sm:$0xff] %v7072_v16  ;;  %v11887_v46 = vmul.f32 %v13553_v56, %v11826_v42  ;;  %v2420_v15 = vrot.slane %v2419_v50, 1  ;;  %v3833_v16 = vmul.f32 0.5, %v3832_v35  ;;  %v11899_v63 = vperm.slane %v5459_v14, 0 }
 0x5c8   :  { %7851 = vst [vmem:[#allocation1 + $0x1] ss:$9 sm:$0xff] %v7073_v13  ;;  %v3809_v13 = vmul.f32 0.5, %v3808_v51  ;;  %v11891_v7 = vmul.f32 %v13554_v41, %v5840_v23  ;;  %v11896_v61 = vmul.f32 %v13555_v4, %v5841_v25  ;;  %v6411_v42 = vrot.slane %v10490_v21, 1 }
 0x5c9   :  { %7852 = vst [vmem:[#allocation1 + $0x2] ss:$9 sm:$0xff] %v7074_v29  ;;  %v5460_v29 = vrot.slane %v11783_v38, 6  ;;  %v3799_v23 = vmul.f32 %v11808_v28, %v3798_v33  ;;  %v11904_v6 = vadd.f32 %v2420_v15, %v2419_v50  ;;  %v3787_v25 = vmul.f32 %v11813_v62, %v3786_v2 }
 0x5ca   :  { %7853 = vst [vmem:[#allocation1 + $0x3] ss:$9 sm:$0xff] %v7075_v31  ;;  %v3845_v31 = vmul.f32 0.5, %v3844_v44  ;;  %v3810_v40 = vsub.f32 1.5, %v3809_v13  ;;  %v8847_v38 = vpop.eup %8846  ;;  %v6413_v51 = vrot.slane %v10490_v21, 3  ;;  %v6414_v60 = vrot.slane %v10490_v21, 4 }
 0x5cb   :  { %7854 = vst [vmem:[#allocation1 + $0x4] ss:$9 sm:$0xff] %v7076_v58  ;;  %v6412_v58 = vrot.slane %v10490_v21, 2  ;;  %v3822_v59 = vsub.f32 1.5, %v3821_v22  ;;  %v3834_v28 = vsub.f32 1.5, %v3833_v16  ;;  %v3855_v10 = vmul.f32 %v8847_v38, %v11867_v12 }
 0x5cc   :  { %7855 = vst [vmem:[#allocation1 + $0x5] ss:$9 sm:$0xff] %v7077_v57  ;;  %v11907_v57 = vperm.slane %v5460_v29, 0  ;;  %8848 = vrsqrt.f32 %v11904_v6  ;;  %v5842_v62 = vrot.slane %v11899_v63, 1  ;;  %v3800_v32 = vmul.f32 %v3799_v23, %v11777_v49 }
 0x5cd   :  { %7856 = vst [vmem:[#allocation1 + $0x6] ss:$9 sm:$0xff] %v7078_v26  ;;  %v6415_v26 = vrot.slane %v10490_v21, 5  ;;  %v3846_v35 = vsub.f32 1.5, %v3845_v31  ;;  %v5843_v1 = vrot.slane %v11899_v63, 2  ;;  %v3788_v30 = vmul.f32 %v3787_v25, %v11779_v27 }
 0x5ce   :  { %7857 = vst [vmem:[#allocation1 + $0x7] ss:$9 sm:$0xff] %v7079_v48  ;;  %v11914_v48 = vperm.slane %v5461_v5, 0  ;;  %v3811_v14 = vmul.f32 %v11832_v0, %v3810_v40  ;;  %v3856_v33 = vmul.f32 %v8847_v38, %v3855_v10  ;;  %v5844_v50 = vrot.slane %v11907_v57, 1 }
 0x5cf   :  { %v13556_v2 = vrot.slane %v10430_v11, 7  ;;  %v3823_v44 = vmul.f32 %v11835_v37, %v3822_v59  ;;  %v3835_v56 = vmul.f32 %v11838_v17, %v3834_v28  ;;  %v3792_v0 = vand.u32 2147483648, %v11779_v27  ;;  %8305 = vst.msk [vmem:[%s13470_s8 + $0x10] sm:$0xff] %vm80_vm0, %v11857_v8 }
 0x5d0   :  { %v3857_v41 = vmul.f32 0.5, %v3856_v33  ;;  %v3802_v22 = vsel %vm3801_vm13, %v11777_v49, %v3800_v32  ;;  %v3847_v11 = vmul.f32 %v11853_v54, %v3846_v35  ;;  %v3790_v37 = vsel %vm3789_vm5, %v11779_v27, %v3788_v30  ;;  %v4423_v30 = vpop.f32.mrf.mxu2 }
 0x5d1   :  { %v7087_v13 = vmul.f32 %v13556_v2, %v11899_v63  ;;  %v3804_v5 = vand.u32 2147483648, %v11777_v49  ;;  %v3812_v17 = vmul.f32 %v3811_v14, %v11788_v55  ;;  %v3824_v16 = vmul.f32 %v3823_v44, %v11792_v34 }
 0x5d2   :  { %v8849_v4 = vpop.eup %8848  ;;  %v3858_v15 = vsub.f32 1.5, %v3857_v41  ;;  %v3816_v23 = vand.u32 2147483648, %v11788_v55  ;;  %v3836_v49 = vmul.f32 %v3835_v56, %v11799_v36  ;;  %v3848_v25 = vmul.f32 %v3847_v11, %v11821_v3 }
 0x5d3   :  { %v3867_v54 = vmul.f32 %v8849_v4, %v11904_v6  ;;  %vm3827_vm5 = vcmp.eq.f32.partialorder %v11792_v34, 0.0  ;;  %v3828_v59 = vand.u32 2147483648, %v11792_v34  ;;  %v3826_v27 = vsel %vm3825_vm9, %v11792_v34, %v3824_v16 }
 0x5d4   :  { %v3859_v31 = vmul.f32 %v8847_v38, %v3858_v15  ;;  %vm3839_vm13 = vcmp.eq.f32.partialorder %v11799_v36, 0.0  ;;  %v3840_v10 = vand.u32 2147483648, %v11799_v36  ;;  %v3852_v14 = vand.u32 2147483648, %v11821_v3 }
 0x5d5   :  { %v11930_v29 = vld [vmem:[#allocation1] sm:$0xff]  ;;  %v3868_v40 = vmul.f32 %v8849_v4, %v3867_v54  ;;  %vm3851_vm9 = vcmp.eq.f32.partialorder %v11821_v3, 0.0  ;;  %v5845_v41 = vrot.slane %v11907_v57, 2 }
 0x5d6   :  { %7859 = vst [vmem:[#allocation1] ss:$9 sm:$0xff] %v11861_v39  ;;  %v3805_v39 = vsel %vm3803_vm14, %v3804_v5, %v3802_v22  ;;  %v3860_v38 = vmul.f32 %v3859_v31, %v11867_v12  ;;  %vm3849_vm14 = vcmp.eq.f32.partialorder %v11821_v3, inf  ;;  %v7093_v31 = vmul.f32 %v6415_v26, %v11914_v48 }
 0x5d7   :  { %7860 = vst [vmem:[#allocation1 + $0x1] ss:$9 sm:$0xff] %v11865_v43  ;;  %v3793_v43 = vsel %vm3791_vm12, %v3792_v0, %v3790_v37  ;;  %vm3837_vm12 = vcmp.eq.f32.partialorder %v11799_v36, inf  ;;  %v3850_v32 = vsel %vm3849_vm14, %v11821_v3, %v3848_v25  ;;  %v3876_v3 = vand.u32 2147483648, %v11904_v6 }
 0x5d8   :  { %7861 = vst [vmem:[#allocation1 + $0x2] ss:$9 sm:$0xff] %v11872_v53  ;;  %v3814_v53 = vsel %vm3813_vm2, %v11788_v55, %v3812_v17  ;;  %v4320_v28 = vsel %vm4222_vm8, %v3805_v39, %v3793_v43  ;;  %vm3861_vm2 = vcmp.eq.f32.partialorder %v11867_v12, inf  ;;  %v3864_v55 = vand.u32 2147483648, %v11867_v12 }
 0x5d9   :  { %7862 = vst [vmem:[#allocation1 + $0x3] ss:$9 sm:$0xff] %v11879_v52  ;;  %v3869_v52 = vmul.f32 0.5, %v3868_v40  ;;  %v3862_v33 = vsel %vm3861_vm2, %v11867_v12, %v3860_v38  ;;  %v3853_v44 = vsel %vm3851_vm9, %v3852_v14, %v3850_v32  ;;  %v7089_v17 = vmul.f32 %v6411_v42, %v5843_v1 }
 0x5da   :  { %7863 = vst [vmem:[#allocation1 + $0x4] ss:$9 sm:$0xff] %v11887_v46  ;;  %v3838_v46 = vsel %vm3837_vm12, %v11799_v36, %v3836_v49  ;;  %v4537_v36 = vadd.f32 %v11558_v20, %v4423_v30  ;;  %vm3875_vm12 = vcmp.eq.f32.partialorder %v11904_v6, 0.0  ;;  %v6416_v39 = vrot.slane %v10490_v21, 6 }
 0x5db   :  { %7864 = vst [vmem:[#allocation1 + $0x5] ss:$9 sm:$0xff] %v11891_v7  ;;  %v3817_v7 = vsel %vm3815_vm4, %v3816_v23, %v3814_v53  ;;  %v3870_v35 = vsub.f32 1.5, %v3869_v52  ;;  %v3841_v2 = vsel %vm3839_vm13, %v3840_v10, %v3838_v46  ;;  %vm3863_vm4 = vcmp.eq.f32.partialorder %v11867_v12, 0.0 }
 0x5dc   :  { %7865 = vst [vmem:[#allocation1 + $0x6] ss:$9 sm:$0xff] %v11896_v61  ;;  %v3829_v61 = vsel %vm3827_vm5, %v3828_v59, %v3826_v27  ;;  %v4321_v56 = vsel %vm4224_vm10, %v3817_v7, %v4320_v28  ;;  %v11981_v34 = vadd.f32 %v11700_v24, %v4537_v36  ;;  %v3865_v0 = vsel %vm3863_vm4, %v3864_v55, %v3862_v33 }
 0x5dd   :  { %7866 = vst [vmem:[#allocation1 + $0x7] ss:$9 sm:$0xff] %v7087_v13  ;;  %v3871_v13 = vmul.f32 %v8849_v4, %v3870_v35  ;;  %v4322_v20 = vsel %vm4226_vm15, %v3829_v61, %v4321_v56  ;;  %vm3873_vm5 = vcmp.eq.f32.partialorder %v11904_v6, inf  ;;  %v7088_v24 = vmul.f32 %v5842_v62, %v10490_v21  ;;  %v5054_v4 = vpop.f32.mrf.mxu3 }
 0x5de   :  { %v4323_v11 = vsel %vm4228_vm3, %v3841_v2, %v4322_v20  ;;  %v8498_v12 = vmul.f32 -1.442695, %v11981_v34  ;;  %v5846_v62 = vrot.slane %v11914_v48, 1  ;;  %v5847_v23 = vrot.slane %v11914_v48, 2  ;;  %8306 = vst.msk [vmem:[%s13470_s8 + $0x18] sm:$0xff] %vm80_vm0, %v11930_v29 }
 0x5df   :  { %v3872_v22 = vmul.f32 %v3871_v13, %v11904_v6  ;;  %v4324_v5 = vsel %vm4230_vm6, %v3853_v44, %v4323_v11  ;;  %v6417_v42 = vrot.slane %v10490_v21, 7  ;;  %v7091_v1 = vmul.f32 %v6413_v51, %v5844_v50 }
 0x5e0   :  { %v4325_v54 = vsel %vm4232_vm7, %v3865_v0, %v4324_v5  ;;  %8850 = vpow2.f32 %v8498_v12  ;;  %v12016_v49 = vadd.f32 %v5054_v4, %v11693_v47  ;;  %v7094_v43 = vmul.f32 %v6416_v39, %v5846_v62  ;;  %v13557_v0 = vld [vmem:[#allocation28_spill] sm:$0xff]  ;;  %v13558_v12 = vld [vmem:[#allocation29_spill] sm:$0xff]  ;;  %v13559_v5 = vld [vmem:[#allocation30_spill] sm:$0xff] }
 0x5e1   :  { %v3874_v37 = vsel %vm3873_vm5, %v11904_v6, %v3872_v22  ;;  %v7090_v6 = vmul.f32 %v6412_v58, %v11907_v57  ;;  %v7092_v58 = vmul.f32 %v6414_v60, %v5845_v41  ;;  %v7095_v25 = vmul.f32 %v6417_v42, %v5847_v23 }
 0x5e2   :  { %v3877_v16 = vsel %vm3875_vm12, %v3876_v3, %v3874_v37  ;;  %v5462_v51 = vrot.slane %v12016_v49, 1  ;;  %v5576_v50 = vperm.slane %v12016_v49, 0  ;;  %v5463_v60 = vrot.slane %v12016_v49, 2 }
 0x5e3   :  { %v4326_v63 = vsel %vm4234_vm11, %v3877_v16, %v4325_v54  ;;  %v5464_v53 = vrot.slane %v12016_v49, 3  ;;  %v5465_v21 = vrot.slane %v12016_v49, 4  ;;  %v6418_v26 = vrot.slane %v10586_v19, 1 }
 0x5e4   :  { %v12000_v15 = vld [vmem:[#allocation1] sm:$0xff]  ;;  %8468 = vmatmul.msk.f32.gmra.mxu2 %vm80_vm0, %v4326_v63  ;;  %v6419_v48 = vrot.slane %v10586_v19, 2  ;;  %v5577_v59 = vperm.slane %v5462_v51, 0  ;;  %v2429_v38 = vsel %vm1637_vm1, %v11510_v9, 0.0  ;;  %v6420_v27 = vrot.slane %v10586_v19, 3 }
 0x5e5   :  { %7868 = vst [vmem:[#allocation1] ss:$9 sm:$0xff] %v7088_v24  ;;  %v6421_v52 = vrot.slane %v10586_v19, 4  ;;  %v5848_v28 = vrot.slane %v5576_v50, 1  ;;  %v2422_v46 = vsel %vm1637_vm1, %v11508_v18, 0.0  ;;  %v6422_v10 = vrot.slane %v10586_v19, 5 }
 0x5e6   :  { %7869 = vst [vmem:[#allocation1 + $0x1] ss:$9 sm:$0xff] %v7089_v17  ;;  %v8851_v57 = vpop.eup %8850  ;;  %v6423_v7 = vrot.slane %v10586_v19, 6  ;;  %v6424_v32 = vrot.slane %v10586_v19, 7  ;;  %v5849_v35 = vrot.slane %v5576_v50, 2  ;;  %v6425_v30 = vrot.slane %v10614_v45, 1 }
 0x5e7   :  { %7870 = vst [vmem:[#allocation1 + $0x2] ss:$9 sm:$0xff] %v7090_v6  ;;  %v12026_v40 = vadd.f32 1.0, %v8851_v57  ;;  %v6426_v61 = vrot.slane %v10614_v45, 2  ;;  %v12045_v9 = vperm.slane %v5463_v60, 0  ;;  %v2430_v14 = vrot.slane %v2429_v38, 4 }
 0x5e8   :  { %7871 = vst [vmem:[#allocation1 + $0x3] ss:$9 sm:$0xff] %v7091_v1  ;;  %v6427_v33 = vrot.slane %v10614_v45, 3  ;;  %v5850_v36 = vrot.slane %v5577_v59, 1  ;;  %v7096_v2 = vmul.f32 %v5576_v50, %v10586_v19  ;;  %v2423_v18 = vrot.slane %v2422_v46, 4 }
 0x5e9   :  { %7872 = vst [vmem:[#allocation1 + $0x4] ss:$9 sm:$0xff] %v7092_v58  ;;  %8852 = vrcp.f32 %v12026_v40  ;;  %v6428_v13 = vrot.slane %v10614_v45, 4  ;;  %v5851_v44 = vrot.slane %v5577_v59, 2  ;;  %v7097_v56 = vmul.f32 %v6418_v26, %v5848_v28  ;;  %v13560_v28 = vld [vmem:[#allocation31_spill] sm:$0xff] }
 0x5ea   :  { %7873 = vst [vmem:[#allocation1 + $0x5] ss:$9 sm:$0xff] %v7093_v31  ;;  %v2436_v22 = vsel %vm1637_vm1, %v13557_v0, 0.0  ;;  %v6429_v20 = vrot.slane %v10614_v45, 5  ;;  %v7098_v3 = vmul.f32 %v6419_v48, %v5849_v35  ;;  %v2443_v19 = vsel %vm1637_vm1, %v13558_v12, 0.0 }
 0x5eb   :  { %7874 = vst [vmem:[#allocation1 + $0x6] ss:$9 sm:$0xff] %v7094_v43  ;;  %v5852_v24 = vrot.slane %v12045_v9, 1  ;;  %v7099_v4 = vmul.f32 %v6420_v27, %v5577_v59  ;;  %v2431_v37 = vadd.f32 %v2430_v14, %v2429_v38  ;;  %v2450_v17 = vsel %vm1637_vm1, %v13559_v5, 0.0 }
 0x5ec   :  { %7875 = vst [vmem:[#allocation1 + $0x7] ss:$9 sm:$0xff] %v7095_v25  ;;  %v7100_v16 = vmul.f32 %v6421_v52, %v5850_v36  ;;  %v2424_v62 = vadd.f32 %v2423_v18, %v2422_v46  ;;  %v2437_v39 = vrot.slane %v2436_v22, 4  ;;  %v7101_v6 = vmul.f32 %v6422_v10, %v5851_v44 }
 0x5ed   :  { %v7102_v63 = vmul.f32 %v6423_v7, %v12045_v9  ;;  %v4811_v23 = vand.u32 2147483648, %v12026_v40  ;;  %v2444_v42 = vrot.slane %v2443_v19, 4  ;;  %v4809_v58 = vand.u32 2147483647, %v12026_v40  ;;  %8307 = vst.msk [vmem:[%s13470_s8 + $0x20] sm:$0xff] %vm80_vm0, %v12000_v15 }
 0x5ee   :  { %v2451_v31 = vrot.slane %v2450_v17, 4  ;;  %v6430_v43 = vrot.slane %v10614_v45, 6  ;;  %v5579_v57 = vperm.slane %v5464_v53, 0  ;;  %v7103_v25 = vmul.f32 %v6424_v32, %v5852_v24 }
 0x5ef   :  { %v8853_v55 = vpop.eup %8852  ;;  %v2432_v51 = vrot.slane %v2431_v37, 2  ;;  %vm4805_vm14 = vweird.f32 %v12026_v40  ;;  %v2425_v60 = vrot.slane %v2424_v62, 2  ;;  %v2438_v26 = vadd.f32 %v2437_v39, %v2436_v22 }
 0x5f0   :  { %v4801_v11 = vmul.f32 %v8853_v55, %v12026_v40  ;;  %vm4806_vm13 = vweird.f32 %v8853_v55  ;;  %v5580_v48 = vperm.slane %v5465_v21, 0  ;;  %v5853_v59 = vrot.slane %v12045_v9, 2 }
 0x5f1   :  { %vm4807_vm2 = vmor %vm4805_vm14, %vm4806_vm13  ;;  %v4812_v38 = vor.u32 1.1754944e-38, %v4811_v23  ;;  %v2445_v27 = vadd.f32 %v2444_v42, %v2443_v19  ;;  %vm4810_vm9 = vcmp.eq.f32.partialorder %v4809_v58, 8.507059e+37  ;;  %v2452_v52 = vadd.f32 %v2451_v31, %v2450_v17 }
 0x5f2   :  { %v4802_v54 = vsub.f32 1.0, %v4801_v11  ;;  %v2457_v46 = vsel %vm1637_vm1, %v13560_v28, 0.0  ;;  %v5854_v10 = vrot.slane %v5579_v57, 1  ;;  %v2433_v7 = vadd.f32 %v2432_v51, %v2431_v37 }
 0x5f3   :  { %v12050_v41 = vld [vmem:[#allocation1] sm:$0xff]  ;;  %v2458_v32 = vrot.slane %v2457_v46, 4  ;;  %v5855_v35 = vrot.slane %v5579_v57, 2  ;;  %v2426_v9 = vadd.f32 %v2425_v60, %v2424_v62  ;;  %v2439_v14 = vrot.slane %v2438_v26, 2  ;;  %v13561_v62 = vld [vmem:[#allocation15_spill] sm:$0xff] }
 0x5f4   :  { %7877 = vst [vmem:[#allocation1] ss:$9 sm:$0xff] %v7096_v2  ;;  %v4803_v1 = vmul.f32 %v8853_v55, %v4802_v54  ;;  %v6431_v36 = vrot.slane %v10614_v45, 7  ;;  %v5856_v2 = vrot.slane %v5580_v48, 1  ;;  %v5857_v18 = vrot.slane %v5580_v48, 2 }
 0x5f5   :  { %7878 = vst [vmem:[#allocation1 + $0x1] ss:$9 sm:$0xff] %v7097_v56  ;;  %v7104_v44 = vmul.f32 %v5853_v59, %v10614_v45  ;;  %v7105_v56 = vmul.f32 %v6425_v30, %v5579_v57  ;;  %v5466_v0 = vrot.slane %v12016_v49, 5  ;;  %v2453_v22 = vrot.slane %v2452_v52, 2 }
 0x5f6   :  { %7879 = vst [vmem:[#allocation1 + $0x2] ss:$9 sm:$0xff] %v7098_v3  ;;  %v4804_v50 = vadd.f32 %v8853_v55, %v4803_v1  ;;  %v5467_v3 = vrot.slane %v12016_v49, 6  ;;  %v2434_v11 = vrot.slane %v2433_v7, 1  ;;  %v2459_v12 = vadd.f32 %v2458_v32, %v2457_v46 }
 0x5f7   :  { %7880 = vst [vmem:[#allocation1 + $0x3] ss:$9 sm:$0xff] %v7099_v4  ;;  %v7107_v19 = vmul.f32 %v6427_v33, %v5855_v35  ;;  %v5468_v24 = vrot.slane %v12016_v49, 7  ;;  %v2427_v30 = vrot.slane %v2426_v9, 1  ;;  %v2440_v37 = vadd.f32 %v2439_v14, %v2438_v26  ;;  %v13562_v26 = vld [vmem:[#allocation32_spill] sm:$0xff] }
 0x5f8   :  { %7881 = vst [vmem:[#allocation1 + $0x4] ss:$9 sm:$0xff] %v7100_v16  ;;  %v4808_v53 = vsel %vm4807_vm2, %v8853_v55, %v4804_v50  ;;  %v2446_v55 = vrot.slane %v2445_v27, 2  ;;  %v7108_v5 = vmul.f32 %v6428_v13, %v5580_v48  ;;  %v7109_v17 = vmul.f32 %v6429_v20, %v5856_v2  ;;  %v5057_v50 = vpop.f32.mrf.mxu3 }
 0x5f9   :  { %7882 = vst [vmem:[#allocation1 + $0x5] ss:$9 sm:$0xff] %v7101_v6  ;;  %v4813_v40 = vsel %vm4810_vm9, %v4812_v38, %v4808_v53  ;;  %v5581_v54 = vperm.slane %v5466_v0, 0  ;;  %v6432_v39 = vrot.slane %v13561_v62, 1  ;;  %v6433_v33 = vrot.slane %v13561_v62, 2 }
 0x5fa   :  { %7883 = vst [vmem:[#allocation1 + $0x6] ss:$9 sm:$0xff] %v7102_v63  ;;  %v12073_v21 = vmul.f32 %v4813_v40, %v11981_v34  ;;  %v7106_v34 = vmul.f32 %v6426_v61, %v5854_v10  ;;  %v7110_v61 = vmul.f32 %v6430_v43, %v5857_v18  ;;  %v2447_v16 = vadd.f32 %v2446_v55, %v2445_v27 }
 0x5fb   :  { %7884 = vst [vmem:[#allocation1 + $0x7] ss:$9 sm:$0xff] %v7103_v25  ;;  %v2454_v49 = vadd.f32 %v2453_v22, %v2452_v52  ;;  %v5582_v6 = vperm.slane %v5467_v3, 0  ;;  %v6434_v63 = vrot.slane %v13561_v62, 3  ;;  %v12097_v23 = vadd.f32 %v2434_v11, %v2433_v7 }
 0x5fc   :  { %8530 = vmatmul.msk.f32.gmra.mxu3 %vm80_vm0, %v12073_v21  ;;  %v2460_v13 = vrot.slane %v2459_v12, 2  ;;  %v5583_v42 = vperm.slane %v5468_v24, 0  ;;  %v6435_v45 = vrot.slane %v13561_v62, 4  ;;  %v12100_v20 = vadd.f32 %v2427_v30, %v2426_v9  ;;  %v13563_v24 = vld [vmem:[#allocation16_spill] sm:$0xff]  ;;  %8308 = vst.msk [vmem:[%s13470_s8 + $0x28] sm:$0xff] %vm80_vm0, %v12050_v41 }
 0x5fd   :  { %v2441_v1 = vrot.slane %v2440_v37, 1  ;;  %v6436_v58 = vrot.slane %v13561_v62, 5  ;;  %v6437_v31 = vrot.slane %v13561_v62, 6  ;;  %v6438_v43 = vrot.slane %v13561_v62, 7 }
 0x5fe   :  { %v2448_v57 = vrot.slane %v2447_v16, 1  ;;  %v5858_v25 = vrot.slane %v5581_v54, 1  ;;  %v7111_v51 = vmul.f32 %v6431_v36, %v5581_v54  ;;  %v2455_v60 = vrot.slane %v2454_v49, 1 }
 0x5ff   :  { %v2464_v48 = vsel %vm1637_vm1, %v13562_v26, 0.0  ;;  %v5859_v59 = vrot.slane %v5581_v54, 2  ;;  %v5860_v38 = vrot.slane %v5582_v6, 1  ;;  %v2461_v27 = vadd.f32 %v2460_v13, %v2459_v12 }
 0x600   :  { %8854 = vrsqrt.f32 %v12097_v23  ;;  %v5861_v53 = vrot.slane %v5582_v6, 2  ;;  %v5862_v52 = vrot.slane %v5583_v42, 1  ;;  %v12108_v28 = vadd.f32 %v2441_v1, %v2440_v37 }
 0x601   :  { %8856 = vrsqrt.f32 %v12100_v20  ;;  %v5863_v46 = vrot.slane %v5583_v42, 2  ;;  %v12112_v10 = vadd.f32 %v5057_v50, %v11693_v47  ;;  %v12114_v40 = vadd.f32 %v2448_v57, %v2447_v16 }
 0x602   :  { %v12088_v4 = vld [vmem:[#allocation1] sm:$0xff]  ;;  %v2465_v7 = vrot.slane %v2464_v48, 4  ;;  %v7112_v32 = vmul.f32 %v5858_v25, %v13561_v62  ;;  %v12117_v35 = vadd.f32 %v2455_v60, %v2454_v49  ;;  %v7113_v9 = vmul.f32 %v6432_v39, %v5859_v59 }
 0x603   :  { %7886 = vst [vmem:[#allocation1] ss:$9 sm:$0xff] %v7104_v44  ;;  %v7114_v14 = vmul.f32 %v6433_v33, %v5582_v6  ;;  %v7117_v36 = vmul.f32 %v6436_v58, %v5583_v42  ;;  %v2462_v2 = vrot.slane %v2461_v27, 1  ;;  %v7115_v18 = vmul.f32 %v6434_v63, %v5860_v38  ;;  %v13564_v6 = vld [vmem:[#allocation33_spill] sm:$0xff]  ;;  %v13567_v58 = vld [vmem:[#allocation48_spill] sm:$0xff] }
 0x604   :  { %7887 = vst [vmem:[#allocation1 + $0x1] ss:$9 sm:$0xff] %v7105_v56  ;;  %v7116_v55 = vmul.f32 %v6435_v45, %v5861_v53  ;;  %v7118_v44 = vmul.f32 %v6437_v31, %v5862_v52  ;;  %8858 = vrsqrt.f32 %v12108_v28  ;;  %v7119_v0 = vmul.f32 %v6438_v43, %v5863_v46  ;;  %v13565_v45 = vld [vmem:[#allocation18_spill] sm:$0xff] }
 0x605   :  { %7888 = vst [vmem:[#allocation1 + $0x2] ss:$9 sm:$0xff] %v7106_v34  ;;  %v5469_v22 = vrot.slane %v12112_v10, 1  ;;  %v2466_v34 = vadd.f32 %v2465_v7, %v2464_v48  ;;  %8860 = vrsqrt.f32 %v12114_v40  ;;  %v5470_v11 = vrot.slane %v12112_v10, 2 }
 0x606   :  { %7889 = vst [vmem:[#allocation1 + $0x3] ss:$9 sm:$0xff] %v7107_v19  ;;  %v12120_v56 = vpop.eup %8854  ;;  %v5471_v12 = vrot.slane %v12112_v10, 3  ;;  %v5472_v19 = vrot.slane %v12112_v10, 4  ;;  %8862 = vrsqrt.f32 %v12117_v35  ;;  %v6439_v30 = vrot.slane %v13563_v24, 1 }
 0x607   :  { %7890 = vst [vmem:[#allocation1 + $0x4] ss:$9 sm:$0xff] %v7108_v5  ;;  %v12124_v3 = vpop.eup %8856  ;;  %v6440_v37 = vrot.slane %v13563_v24, 2  ;;  %v6441_v5 = vrot.slane %v13563_v24, 3  ;;  %v6442_v16 = vrot.slane %v13563_v24, 4  ;;  %v6443_v54 = vrot.slane %v13563_v24, 5 }
 0x608   :  { %7891 = vst [vmem:[#allocation1 + $0x5] ss:$9 sm:$0xff] %v7109_v17  ;;  %v6444_v62 = vrot.slane %v13563_v24, 6  ;;  %v3891_v39 = vmul.f32 %v12120_v56, %v12097_v23  ;;  %v6445_v33 = vrot.slane %v13563_v24, 7  ;;  %v2467_v49 = vrot.slane %v2466_v34, 2 }
 0x609   :  { %7892 = vst [vmem:[#allocation1 + $0x6] ss:$9 sm:$0xff] %v7110_v61  ;;  %v12135_v61 = vadd.f32 %v2462_v2, %v2461_v27  ;;  %v2471_v63 = vsel %vm1637_vm1, %v13564_v6, 0.0  ;;  %v3879_v13 = vmul.f32 %v12124_v3, %v12100_v20  ;;  %v6446_v1 = vrot.slane %v13565_v45, 1 }
 0x60a   :  { %7893 = vst [vmem:[#allocation1 + $0x7] ss:$9 sm:$0xff] %v7111_v51  ;;  %v12147_v42 = vpop.eup %8858  ;;  %v5584_v25 = vperm.slane %v12112_v10, 0  ;;  %v2468_v51 = vadd.f32 %v2467_v49, %v2466_v34  ;;  %v2472_v50 = vrot.slane %v2471_v63, 4  ;;  %v5585_v48 = vperm.slane %v5469_v22, 0 }
 0x60b   :  { %v12153_v57 = vpop.eup %8860  ;;  %8864 = vrsqrt.f32 %v12135_v61  ;;  %v12160_v59 = vperm.slane %v5470_v11, 0  ;;  %v3892_v38 = vmul.f32 %v12120_v56, %v3891_v39  ;;  %v12164_v53 = vperm.slane %v5471_v12, 0  ;;  %8304 = vst.msk [vmem:[%s13470_s8 + $0x8] sm:$0xff] %vm80_vm0, %v13567_v58 }
 0x60c   :  { %v12157_v60 = vpop.eup %8862  ;;  %v3880_v52 = vmul.f32 %v12124_v3, %v3879_v13  ;;  %v3903_v46 = vmul.f32 %v12147_v42, %v12108_v28  ;;  %v5864_v2 = vrot.slane %v5584_v25, 1  ;;  %v5866_v22 = vrot.slane %v5585_v48, 1  ;;  %8309 = vst.msk [vmem:[%s13470_s8 + $0x30] sm:$0xff] %vm80_vm0, %v12088_v4 }
 0x60d   :  { %v5867_v34 = vrot.slane %v5585_v48, 2  ;;  %v5868_v11 = vrot.slane %v12160_v59, 1  ;;  %v3893_v12 = vmul.f32 0.5, %v3892_v38  ;;  %vm3885_vm4 = vcmp.eq.f32.partialorder %v12100_v20, inf }
 0x60e   :  { %v3881_v49 = vmul.f32 0.5, %v3880_v52  ;;  %v3904_v6 = vmul.f32 %v12147_v42, %v3903_v46  ;;  %v7120_v52 = vmul.f32 %v5584_v25, %v13563_v24  ;;  %v7121_v46 = vmul.f32 %v6439_v30, %v5864_v2 }
 0x60f   :  { %v3894_v43 = vsub.f32 1.5, %v3893_v12  ;;  %v5473_v2 = vrot.slane %v12112_v10, 5  ;;  %v7124_v58 = vmul.f32 %v6442_v16, %v5866_v22  ;;  %v13568_v24 = vrot.slane %v13565_v45, 2 }
 0x610   :  { %vm3887_vm5 = vcmp.eq.f32.partialorder %v12100_v20, 0.0  ;;  %vm3897_vm12 = vcmp.eq.f32.partialorder %v12097_v23, inf  ;;  %vm3899_vm13 = vcmp.eq.f32.partialorder %v12097_v23, 0.0  ;;  %vm3909_vm14 = vcmp.eq.f32.partialorder %v12108_v28, inf }
 0x611   :  { %v12133_v17 = vld [vmem:[#allocation1] sm:$0xff]  ;;  %v12177_v39 = vpop.eup %8864  ;;  %vm3911_vm2 = vcmp.eq.f32.partialorder %v12108_v28, 0.0  ;;  %vm3921_vm9 = vcmp.eq.f32.partialorder %v12114_v40, inf }
 0x612   :  { %7895 = vst [vmem:[#allocation1] ss:$9 sm:$0xff] %v7112_v32  ;;  %v12170_v32 = vperm.slane %v5472_v19, 0  ;;  %v5870_v19 = vrot.slane %v12164_v53, 1  ;;  %v3939_v26 = vmul.f32 %v12177_v39, %v12135_v61 }
 0x613   :  { %7896 = vst [vmem:[#allocation1 + $0x1] ss:$9 sm:$0xff] %v7113_v9  ;;  %v2469_v9 = vrot.slane %v2468_v51, 1 }
 0x614   :  { %7897 = vst [vmem:[#allocation1 + $0x2] ss:$9 sm:$0xff] %v7114_v14  ;;  %v3915_v14 = vmul.f32 %v12153_v57, %v12114_v40  ;;  %v5873_v7 = vrot.slane %v12170_v32, 2  ;;  %v3940_v31 = vmul.f32 %v12177_v39, %v3939_v26 }
 0x615   :  { %7898 = vst [vmem:[#allocation1 + $0x3] ss:$9 sm:$0xff] %v7115_v18  ;;  %v5865_v18 = vrot.slane %v5584_v25, 2  ;;  %v12184_v13 = vadd.f32 %v2469_v9, %v2468_v51  ;;  %v13566_v51 = vld [vmem:[#allocation46_spill] sm:$0xff]  ;;  %v7123_v25 = vmul.f32 %v6441_v5, %v5585_v48  ;;  %v7126_v48 = vmul.f32 %v6444_v62, %v12160_v59 }
 0x616   :  { %7899 = vst [vmem:[#allocation1 + $0x4] ss:$9 sm:$0xff] %v7116_v55  ;;  %v2473_v55 = vadd.f32 %v2472_v50, %v2471_v63  ;;  %v5872_v63 = vrot.slane %v12170_v32, 1  ;;  %v3916_v50 = vmul.f32 %v12153_v57, %v3915_v14  ;;  %v3882_v14 = vsub.f32 1.5, %v3881_v49 }
 0x617   :  { %7900 = vst [vmem:[#allocation1 + $0x5] ss:$9 sm:$0xff] %v7117_v36  ;;  %v3927_v36 = vmul.f32 %v12157_v60, %v12117_v35  ;;  %8866 = vrsqrt.f32 %v12184_v13  ;;  %v7122_v30 = vmul.f32 %v6440_v37, %v5865_v18  ;;  %v7125_v37 = vmul.f32 %v6443_v54, %v5867_v34 }
 0x618   :  { %7901 = vst [vmem:[#allocation1 + $0x6] ss:$9 sm:$0xff] %v7118_v44  ;;  %v5869_v44 = vrot.slane %v12160_v59, 2  ;;  %v2474_v38 = vrot.slane %v2473_v55, 2  ;;  %v7127_v18 = vmul.f32 %v6445_v33, %v5868_v11  ;;  %v3895_v49 = vmul.f32 %v12120_v56, %v3894_v43 }
 0x619   :  { %7902 = vst [vmem:[#allocation1 + $0x7] ss:$9 sm:$0xff] %v7119_v0  ;;  %v5871_v0 = vrot.slane %v12164_v53, 2  ;;  %v3928_v27 = vmul.f32 %v12157_v60, %v3927_v36  ;;  %v3905_v36 = vmul.f32 0.5, %v3904_v6  ;;  %v3941_v8 = vmul.f32 0.5, %v3940_v31 }
 0x61a   :  { %8303 = vst.msk [vmem:[%s13470_s8] sm:$0xff] %vm80_vm0, %v13566_v51  ;;  %v2475_v9 = vadd.f32 %v2474_v38, %v2473_v55  ;;  %v3917_v55 = vmul.f32 0.5, %v3916_v50  ;;  %v12229_v6 = vmul.f32 %v5869_v44, %v13565_v45  ;;  %v3883_v54 = vmul.f32 %v12124_v3, %v3882_v14 }
 0x61b   :  { %v3929_v5 = vmul.f32 0.5, %v3928_v27  ;;  %v3906_v27 = vsub.f32 1.5, %v3905_v36  ;;  %v12237_v62 = vmul.f32 %v6446_v1, %v12164_v53  ;;  %v12241_v33 = vmul.f32 %v13568_v24, %v5870_v19  ;;  %8310 = vst.msk [vmem:[%s13470_s8 + $0x38] sm:$0xff] %vm80_vm0, %v12133_v17  ;;  %v4426_v24 = vpop.f32.mrf.mxu2 }
 0x61c   :  { %v2476_v26 = vrot.slane %v2475_v9, 1  ;;  %v12243_v56 = vperm.slane %v5473_v2, 0  ;;  %v3918_v31 = vsub.f32 1.5, %v3917_v55  ;;  %v13569_v43 = vrot.slane %v13565_v45, 3 }
 0x61d   :  { %v8867_v22 = vpop.eup %8866  ;;  %v3930_v3 = vsub.f32 1.5, %v3929_v5  ;;  %v13570_v1 = vrot.slane %v13565_v45, 4  ;;  %v13571_v11 = vrot.slane %v13565_v45, 5  ;;  %v3896_v19 = vmul.f32 %v3895_v49, %v12097_v23 }
 0x61e   :  { %v12231_v16 = vadd.f32 %v2476_v26, %v2475_v9  ;;  %v12247_v59 = vmul.f32 %v13569_v43, %v5871_v0  ;;  %v3951_v34 = vmul.f32 %v8867_v22, %v12184_v13  ;;  %v3942_v0 = vsub.f32 1.5, %v3941_v8  ;;  %v13574_v43 = vld [vmem:[#allocation36_spill] sm:$0xff] }
 0x61f   :  { %v12254_v53 = vmul.f32 %v13570_v1, %v12170_v32  ;;  %v12258_v44 = vmul.f32 %v13571_v11, %v5872_v63  ;;  %v13572_v50 = vrot.slane %v13565_v45, 6  ;;  %v5474_v32 = vrot.slane %v12112_v10, 6  ;;  %v12360_v1 = vld [vmem:[%s13468_s4] ss:$0 sm:$0xff] }
 0x620   :  { %v12211_v12 = vld [vmem:[#allocation1] sm:$0xff]  ;;  %8868 = vrsqrt.f32 %v12231_v16  ;;  %v3952_v51 = vmul.f32 %v8867_v22, %v3951_v34  ;;  %v13573_v63 = vrot.slane %v13565_v45, 7  ;;  %v3919_v14 = vmul.f32 %v12153_v57, %v3918_v31 }
 0x621   :  { %7904 = vst [vmem:[#allocation1] ss:$9 sm:$0xff] %v7120_v52  ;;  %v12263_v38 = vmul.f32 %v13572_v50, %v5873_v7  ;;  %v3884_v52 = vmul.f32 %v3883_v54, %v12100_v20  ;;  %v3931_v7 = vmul.f32 %v12157_v60, %v3930_v3  ;;  %v3888_v45 = vand.u32 2147483648, %v12100_v20 }
 0x622   :  { %7905 = vst [vmem:[#allocation1 + $0x1] ss:$9 sm:$0xff] %v7121_v46  ;;  %v3907_v46 = vmul.f32 %v12147_v42, %v3906_v27  ;;  %v12271_v9 = vmul.f32 %v13573_v63, %v12243_v56  ;;  %v3953_v42 = vmul.f32 0.5, %v3952_v51  ;;  %v3898_v36 = vsel %vm3897_vm12, %v12097_v23, %v3896_v19 }
 0x623   :  { %7906 = vst [vmem:[#allocation1 + $0x2] ss:$9 sm:$0xff] %v7122_v30  ;;  %v3943_v57 = vmul.f32 %v12177_v39, %v3942_v0  ;;  %v3886_v30 = vsel %vm3885_vm4, %v12100_v20, %v3884_v52  ;;  %v3920_v15 = vmul.f32 %v3919_v14, %v12114_v40  ;;  %v3912_v55 = vand.u32 2147483648, %v12108_v28 }
 0x624   :  { %7907 = vst [vmem:[#allocation1 + $0x3] ss:$9 sm:$0xff] %v7123_v25  ;;  %v3900_v25 = vand.u32 2147483648, %v12097_v23  ;;  %v3908_v29 = vmul.f32 %v3907_v46, %v12108_v28  ;;  %v3954_v2 = vsub.f32 1.5, %v3953_v42  ;;  %vm3923_vm4 = vcmp.eq.f32.partialorder %v12114_v40, 0.0 }
 0x625   :  { %7908 = vst [vmem:[#allocation1 + $0x4] ss:$9 sm:$0xff] %v7124_v58  ;;  %v3932_v58 = vmul.f32 %v3931_v7, %v12117_v35  ;;  %v3944_v26 = vmul.f32 %v3943_v57, %v12135_v61  ;;  %v3924_v20 = vand.u32 2147483648, %v12114_v40  ;;  %vm3935_vm12 = vcmp.eq.f32.partialorder %v12117_v35, 0.0 }
 0x626   :  { %7909 = vst [vmem:[#allocation1 + $0x5] ss:$9 sm:$0xff] %v7125_v37  ;;  %v8869_v60 = vpop.eup %8868  ;;  %v3901_v23 = vsel %vm3899_vm13, %v3900_v25, %v3898_v36  ;;  %v3955_v41 = vmul.f32 %v8867_v22, %v3954_v2  ;;  %v3889_v37 = vsel %vm3887_vm5, %v3888_v45, %v3886_v30  ;;  %vm3933_vm5 = vcmp.eq.f32.partialorder %v12117_v35, inf  ;;  %v5060_v45 = vpop.f32.mrf.mxu3 }
 0x627   :  { %7910 = vst [vmem:[#allocation1 + $0x6] ss:$9 sm:$0xff] %v7126_v48  ;;  %v3963_v39 = vmul.f32 %v8869_v60, %v12231_v16  ;;  %v3910_v48 = vsel %vm3909_vm14, %v12108_v28, %v3908_v29  ;;  %v3934_v8 = vsel %vm3933_vm5, %v12117_v35, %v3932_v58  ;;  %v3936_v54 = vand.u32 2147483648, %v12117_v35 }
 0x628   :  { %7911 = vst [vmem:[#allocation1 + $0x7] ss:$9 sm:$0xff] %v7127_v18  ;;  %v3956_v17 = vmul.f32 %v3955_v41, %v12184_v13  ;;  %v3922_v18 = vsel %vm3921_vm9, %v12114_v40, %v3920_v15  ;;  %vm3945_vm13 = vcmp.eq.f32.partialorder %v12135_v61, inf  ;;  %vm3957_vm14 = vcmp.eq.f32.partialorder %v12184_v13, inf }
 0x629   :  { %v3964_v4 = vmul.f32 %v8869_v60, %v3963_v39  ;;  %8311 = vst.msk [vmem:[%s13470_s8 + $0x40] sm:$0xff] %vm80_vm0, %v12211_v12  ;;  %v4327_v12 = vsel %vm4222_vm8, %v3901_v23, %v3889_v37  ;;  %v3946_v27 = vsel %vm3945_vm13, %v12135_v61, %v3944_v26  ;;  %v3948_v35 = vand.u32 2147483648, %v12135_v61 }
 0x62a   :  { %v3958_v31 = vsel %vm3957_vm14, %v12184_v13, %v3956_v17  ;;  %v3937_v28 = vsel %vm3935_vm12, %v3936_v54, %v3934_v8  ;;  %v3960_v3 = vand.u32 2147483648, %v12184_v13  ;;  %vm3959_vm9 = vcmp.eq.f32.partialorder %v12184_v13, 0.0  ;;  %v13576_v8 = vld [vmem:[#allocation35_spill] sm:$0xff] }
 0x62b   :  { %v3965_v49 = vmul.f32 0.5, %v3964_v4  ;;  %v3972_v13 = vand.u32 2147483648, %v12231_v16  ;;  %v5590_v52 = vperm.slane %v5474_v32, 0  ;;  %vm3971_vm5 = vcmp.eq.f32.partialorder %v12231_v16, 0.0  ;;  %v13575_v32 = vld [vmem:[#allocation19_spill] sm:$0xff] }
 0x62c   :  { %v3961_v11 = vsel %vm3959_vm9, %v3960_v3, %v3958_v31  ;;  %v5874_v51 = vrot.slane %v12243_v56, 1  ;;  %v6453_v7 = vrot.slane %v13575_v32, 1  ;;  %v6454_v42 = vrot.slane %v13575_v32, 2 }
 0x62d   :  { %v3966_v22 = vsub.f32 1.5, %v3965_v49  ;;  %v5876_v36 = vrot.slane %v5590_v52, 1  ;;  %v6455_v57 = vrot.slane %v13575_v32, 3  ;;  %v6456_v30 = vrot.slane %v13575_v32, 4 }
 0x62e   :  { %v6457_v25 = vrot.slane %v13575_v32, 5  ;;  %v7136_v29 = vmul.f32 %v5874_v51, %v13575_v32  ;;  %v6458_v2 = vrot.slane %v13575_v32, 6  ;;  %v12396_v39 = vadd.f32 %v5060_v45, %v11693_v47  ;;  %v13582_v45 = vld [vmem:[#allocation41_spill] sm:$0xff] }
 0x62f   :  { %v7912_v5 = vld [vmem:[#allocation1] sm:$0xff]  ;;  %v3967_v34 = vmul.f32 %v8869_v60, %v3966_v22  ;;  %v5877_v60 = vrot.slane %v5590_v52, 2  ;;  %v6459_v41 = vrot.slane %v13575_v32, 7  ;;  %v7138_v37 = vmul.f32 %v6454_v42, %v5590_v52 }
 0x630   :  { %7913 = vst [vmem:[#allocation1] ss:$9 sm:$0xff] %v12229_v6  ;;  %v3913_v6 = vsel %vm3911_vm2, %v3912_v55, %v3910_v48  ;;  %vm3947_vm2 = vcmp.eq.f32.partialorder %v12135_v61, 0.0  ;;  %v5475_v61 = vrot.slane %v12112_v10, 7  ;;  %v5875_v10 = vrot.slane %v12243_v56, 2 }
 0x631   :  { %7914 = vst [vmem:[#allocation1 + $0x1] ss:$9 sm:$0xff] %v12237_v62  ;;  %v3925_v62 = vsel %vm3923_vm4, %v3924_v20, %v3922_v18  ;;  %v4328_v40 = vsel %vm4224_vm10, %v3913_v6, %v4327_v12  ;;  %vm3969_vm4 = vcmp.eq.f32.partialorder %v12231_v16, inf  ;;  %v7139_v26 = vmul.f32 %v6455_v57, %v5876_v36  ;;  %v13577_v6 = vld [vmem:[#allocation20_spill] sm:$0xff] }
 0x632   :  { %7915 = vst [vmem:[#allocation1 + $0x2] ss:$9 sm:$0xff] %v12241_v33  ;;  %v4540_v33 = vadd.f32 %v13574_v43, %v4426_v24  ;;  %v4329_v19 = vsel %vm4226_vm15, %v3925_v62, %v4328_v40  ;;  %v5591_v14 = vperm.slane %v5475_v61, 0  ;;  %v7137_v15 = vmul.f32 %v6453_v7, %v5875_v10  ;;  %v13578_v62 = vld [vmem:[#allocation34_spill] sm:$0xff]  ;;  %v13581_v10 = vld [vmem:[#allocation39_spill] sm:$0xff] }
 0x633   :  { %7916 = vst [vmem:[#allocation1 + $0x3] ss:$9 sm:$0xff] %v12247_v59  ;;  %v3949_v59 = vsel %vm3947_vm2, %v3948_v35, %v3946_v27  ;;  %v4330_v0 = vsel %vm4228_vm3, %v3937_v28, %v4329_v19  ;;  %v5476_v17 = vrot.slane %v12396_v39, 1  ;;  %v5477_v49 = vrot.slane %v12396_v39, 2  ;;  %v13579_v61 = vld [vmem:[#allocation22_spill] sm:$0xff] }
 0x634   :  { %7917 = vst [vmem:[#allocation1 + $0x4] ss:$9 sm:$0xff] %v12254_v53  ;;  %v12363_v53 = vadd.f32 %v12360_v1, %v4540_v33  ;;  %v4331_v46 = vsel %vm4230_vm6, %v3949_v59, %v4330_v0  ;;  %v5878_v56 = vrot.slane %v5591_v14, 1  ;;  %v5879_v58 = vrot.slane %v5591_v14, 2 }
 0x635   :  { %7918 = vst [vmem:[#allocation1 + $0x5] ss:$9 sm:$0xff] %v12258_v44  ;;  %v3968_v44 = vmul.f32 %v3967_v34, %v12231_v16  ;;  %v7141_v48 = vmul.f32 %v6457_v25, %v5591_v14  ;;  %v5478_v12 = vrot.slane %v12396_v39, 3  ;;  %v2485_v54 = vsel %vm1637_vm1, %v13576_v8, 0.0 }
 0x636   :  { %7919 = vst [vmem:[#allocation1 + $0x6] ss:$9 sm:$0xff] %v12263_v38  ;;  %v8499_v50 = vmul.f32 -1.442695, %v12363_v53  ;;  %v7142_v20 = vmul.f32 %v6458_v2, %v5878_v56  ;;  %v7143_v18 = vmul.f32 %v6459_v41, %v5879_v58  ;;  %v6460_v27 = vrot.slane %v13577_v6, 1 }
 0x637   :  { %7920 = vst [vmem:[#allocation1 + $0x7] ss:$9 sm:$0xff] %v12271_v9  ;;  %v3970_v38 = vsel %vm3969_vm4, %v12231_v16, %v3968_v44  ;;  %v4332_v9 = vsel %vm4232_vm7, %v3961_v11, %v4331_v46  ;;  %v5479_v22 = vrot.slane %v12396_v39, 4  ;;  %v5592_v24 = vperm.slane %v12396_v39, 0  ;;  %v13580_v46 = vld [vmem:[#allocation37_spill] sm:$0xff] }
 0x638   :  { %8312 = vst.msk [vmem:[%s13470_s8 + $0x48] sm:$0xff] %vm80_vm0, %v7912_v5  ;;  %v3973_v63 = vsel %vm3971_vm5, %v3972_v13, %v3970_v38  ;;  %8870 = vpow2.f32 %v8499_v50  ;;  %v7140_v5 = vmul.f32 %v6456_v30, %v5877_v60  ;;  %v2478_v35 = vsel %vm1637_vm1, %v13578_v62, 0.0 }
 0x639   :  { %v4333_v16 = vsel %vm4234_vm11, %v3973_v63, %v4332_v9  ;;  %v6461_v31 = vrot.slane %v13577_v6, 2  ;;  %v6462_v43 = vrot.slane %v13577_v6, 3  ;;  %v6463_v33 = vrot.slane %v13577_v6, 4 }
 0x63a   :  { %8469 = vmatmul.msk.f32.gmra.mxu2 %vm80_vm0, %v4333_v16  ;;  %v6464_v28 = vrot.slane %v13577_v6, 5  ;;  %v6465_v3 = vrot.slane %v13577_v6, 6  ;;  %v6466_v34 = vrot.slane %v13577_v6, 7  ;;  %v5593_v59 = vperm.slane %v5476_v17, 0 }
 0x63b   :  { %v2486_v40 = vrot.slane %v2485_v54, 4  ;;  %v6467_v11 = vrot.slane %v13579_v61, 1  ;;  %v6468_v44 = vrot.slane %v13579_v61, 2  ;;  %v12420_v19 = vperm.slane %v5477_v49, 0 }
 0x63c   :  { %v2479_v13 = vrot.slane %v2478_v35, 4  ;;  %v6469_v50 = vrot.slane %v13579_v61, 3  ;;  %v12427_v52 = vperm.slane %v5478_v12, 0  ;;  %v5880_v38 = vrot.slane %v5592_v24, 1 }
 0x63d   :  { %v2492_v51 = vsel %vm1637_vm1, %v13580_v46, 0.0  ;;  %v12431_v63 = vperm.slane %v5479_v22, 0  ;;  %v5881_v9 = vrot.slane %v5592_v24, 2  ;;  %v2499_v32 = vsel %vm1637_vm1, %v13581_v10, 0.0  ;;  %v13583_v22 = vld [vmem:[#allocation43_spill] sm:$0xff] }
 0x63e   :  { %v7921_v23 = vld [vmem:[#allocation1] sm:$0xff]  ;;  %v8871_v55 = vpop.eup %8870  ;;  %v5882_v7 = vrot.slane %v5593_v59, 1  ;;  %v5883_v16 = vrot.slane %v5593_v59, 2  ;;  %v2487_v42 = vadd.f32 %v2486_v40, %v2485_v54  ;;  %v2506_v36 = vsel %vm1637_vm1, %v13582_v45, 0.0 }
 0x63f   :  { %7922 = vst [vmem:[#allocation1] ss:$9 sm:$0xff] %v7136_v29  ;;  %v12399_v4 = vadd.f32 1.0, %v8871_v55  ;;  %v5884_v57 = vrot.slane %v12420_v19, 1  ;;  %v2480_v30 = vadd.f32 %v2479_v13, %v2478_v35  ;;  %v2493_v25 = vrot.slane %v2492_v51, 4 }
 0x640   :  { %7923 = vst [vmem:[#allocation1 + $0x1] ss:$9 sm:$0xff] %v7137_v15  ;;  %v7144_v29 = vmul.f32 %v5592_v24, %v13577_v6  ;;  %v7145_v56 = vmul.f32 %v6460_v27, %v5880_v38  ;;  %v2500_v15 = vrot.slane %v2499_v32, 4  ;;  %v2507_v41 = vrot.slane %v2506_v36, 4 }
 0x641   :  { %7924 = vst [vmem:[#allocation1 + $0x2] ss:$9 sm:$0xff] %v7138_v37  ;;  %8872 = vrcp.f32 %v12399_v4  ;;  %v4826_v2 = vand.u32 2147483648, %v12399_v4  ;;  %v4824_v58 = vand.u32 2147483647, %v12399_v4  ;;  %v5885_v37 = vrot.slane %v12420_v19, 2 }
 0x642   :  { %7925 = vst [vmem:[#allocation1 + $0x3] ss:$9 sm:$0xff] %v7139_v26  ;;  %v7146_v26 = vmul.f32 %v6461_v31, %v5881_v9  ;;  %vm4820_vm13 = vweird.f32 %v12399_v4  ;;  %v2481_v17 = vrot.slane %v2480_v30, 2  ;;  %v7148_v49 = vmul.f32 %v6463_v33, %v5882_v7 }
 0x643   :  { %7926 = vst [vmem:[#allocation1 + $0x4] ss:$9 sm:$0xff] %v7140_v5  ;;  %v7147_v5 = vmul.f32 %v6462_v43, %v5593_v59  ;;  %v7149_v12 = vmul.f32 %v6464_v28, %v5883_v16  ;;  %v4827_v8 = vor.u32 1.1754944e-38, %v4826_v2  ;;  %v2501_v54 = vadd.f32 %v2500_v15, %v2499_v32 }
 0x644   :  { %7927 = vst [vmem:[#allocation1 + $0x5] ss:$9 sm:$0xff] %v7141_v48  ;;  %v2488_v48 = vrot.slane %v2487_v42, 2  ;;  %vm4825_vm2 = vcmp.eq.f32.partialorder %v4824_v58, 8.507059e+37  ;;  %v2508_v27 = vadd.f32 %v2507_v41, %v2506_v36  ;;  %v2513_v24 = vsel %vm1637_vm1, %v13583_v22, 0.0 }
 0x645   :  { %7928 = vst [vmem:[#allocation1 + $0x6] ss:$9 sm:$0xff] %v7142_v20  ;;  %v7150_v62 = vmul.f32 %v6465_v3, %v12420_v19  ;;  %v2514_v31 = vrot.slane %v2513_v24, 4  ;;  %v7151_v43 = vmul.f32 %v6466_v34, %v5884_v57  ;;  %v2482_v28 = vadd.f32 %v2481_v17, %v2480_v30 }
 0x646   :  { %7929 = vst [vmem:[#allocation1 + $0x7] ss:$9 sm:$0xff] %v7143_v18  ;;  %v2494_v18 = vadd.f32 %v2493_v25, %v2492_v51  ;;  %v2489_v35 = vadd.f32 %v2488_v48, %v2487_v42  ;;  %v6470_v40 = vrot.slane %v13579_v61, 4  ;;  %v6471_v13 = vrot.slane %v13579_v61, 5  ;;  %v13585_v48 = vld [vmem:[#allocation44_spill] sm:$0xff] }
 0x647   :  { %8313 = vst.msk [vmem:[%s13470_s8 + $0x50] sm:$0xff] %vm80_vm0, %v7921_v23  ;;  %v8873_v0 = vpop.eup %8872  ;;  %v2502_v38 = vrot.slane %v2501_v54, 2  ;;  %v6472_v3 = vrot.slane %v13579_v61, 6  ;;  %v6473_v19 = vrot.slane %v13579_v61, 7  ;;  %v5887_v34 = vrot.slane %v12427_v52, 2 }
 0x648   :  { %v4816_v14 = vmul.f32 %v8873_v0, %v12399_v4  ;;  %vm4821_vm12 = vweird.f32 %v8873_v0  ;;  %v2495_v59 = vrot.slane %v2494_v18, 2  ;;  %v5888_v46 = vrot.slane %v12431_v63, 1 }
 0x649   :  { %vm4822_vm14 = vmor %vm4820_vm13, %vm4821_vm12  ;;  %v5889_v51 = vrot.slane %v12431_v63, 2  ;;  %v2490_v9 = vrot.slane %v2489_v35, 1  ;;  %v7152_v10 = vmul.f32 %v5885_v37, %v13579_v61  ;;  %v5480_v32 = vrot.slane %v12396_v39, 5 }
 0x64a   :  { %v4817_v60 = vsub.f32 1.0, %v4816_v14  ;;  %v2515_v14 = vadd.f32 %v2514_v31, %v2513_v24  ;;  %v2483_v7 = vrot.slane %v2482_v28, 1  ;;  %v2496_v16 = vadd.f32 %v2495_v59, %v2494_v18 }
 0x64b   :  { %v7153_v42 = vmul.f32 %v6467_v11, %v12427_v52  ;;  %v5481_v36 = vrot.slane %v12396_v39, 6  ;;  %v2503_v57 = vadd.f32 %v2502_v38, %v2501_v54  ;;  %v7156_v30 = vmul.f32 %v6470_v40, %v12431_v63  ;;  %v5063_v54 = vpop.f32.mrf.mxu3 }
 0x64c   :  { %v4818_v55 = vmul.f32 %v8873_v0, %v4817_v60  ;;  %v7155_v60 = vmul.f32 %v6469_v50, %v5887_v34  ;;  %v5482_v25 = vrot.slane %v12396_v39, 7  ;;  %v7158_v2 = vmul.f32 %v6472_v3, %v5889_v51 }
 0x64d   :  { %v7930_v23 = vld [vmem:[#allocation1] sm:$0xff]  ;;  %v12477_v15 = vadd.f32 %v2490_v9, %v2489_v35  ;;  %v5597_v11 = vperm.slane %v5480_v32, 0  ;;  %v2497_v58 = vrot.slane %v2496_v16, 1  ;;  %v5598_v41 = vperm.slane %v5481_v36, 0 }
 0x64e   :  { %7931 = vst [vmem:[#allocation1] ss:$9 sm:$0xff] %v7144_v29  ;;  %v4819_v20 = vadd.f32 %v8873_v0, %v4818_v55  ;;  %v2504_v37 = vrot.slane %v2503_v57, 1  ;;  %v5599_v39 = vperm.slane %v5482_v25, 0  ;;  %v12499_v59 = vadd.f32 %v5063_v54, %v11693_v47 }
 0x64f   :  { %7932 = vst [vmem:[#allocation1 + $0x1] ss:$9 sm:$0xff] %v7145_v56  ;;  %v7157_v56 = vmul.f32 %v6471_v13, %v5888_v46  ;;  %8874 = vrsqrt.f32 %v12477_v15  ;;  %vm3993_vm4 = vcmp.eq.f32.partialorder %v12477_v15, inf  ;;  %vm3995_vm5 = vcmp.eq.f32.partialorder %v12477_v15, 0.0 }
 0x650   :  { %7933 = vst [vmem:[#allocation1 + $0x2] ss:$9 sm:$0xff] %v7146_v26  ;;  %v4823_v6 = vsel %vm4822_vm14, %v8873_v0, %v4819_v20  ;;  %v5886_v0 = vrot.slane %v12427_v52, 1  ;;  %v13584_v52 = vld [vmem:[#allocation23_spill] sm:$0xff]  ;;  %v2520_v20 = vsel %vm1637_vm1, %v13585_v48, 0.0  ;;  %v12494_v24 = vadd.f32 %v2504_v37, %v2503_v57 }
 0x651   :  { %7934 = vst [vmem:[#allocation1 + $0x3] ss:$9 sm:$0xff] %v7147_v5  ;;  %v4828_v4 = vsel %vm4825_vm2, %v4827_v8, %v4823_v6  ;;  %v6474_v55 = vrot.slane %v13584_v52, 1  ;;  %v6475_v61 = vrot.slane %v13584_v52, 2  ;;  %v6476_v50 = vrot.slane %v13584_v52, 3 }
 0x652   :  { %7935 = vst [vmem:[#allocation1 + $0x4] ss:$9 sm:$0xff] %v7148_v49  ;;  %v12449_v33 = vmul.f32 %v4828_v4, %v12363_v53  ;;  %v2509_v53 = vrot.slane %v2508_v27, 2  ;;  %v7154_v45 = vmul.f32 %v6468_v44, %v5886_v0  ;;  %v12480_v44 = vadd.f32 %v2483_v7, %v2482_v28 }
 0x653   :  { %7936 = vst [vmem:[#allocation1 + $0x5] ss:$9 sm:$0xff] %v7149_v12  ;;  %v6477_v26 = vrot.slane %v13584_v52, 4  ;;  %v6478_v17 = vrot.slane %v13584_v52, 5  ;;  %v6479_v18 = vrot.slane %v13584_v52, 6  ;;  %v5890_v12 = vrot.slane %v5597_v11, 1 }
 0x654   :  { %7937 = vst [vmem:[#allocation1 + $0x6] ss:$9 sm:$0xff] %v7150_v62  ;;  %8531 = vmatmul.msk.f32.gmra.mxu3 %vm80_vm0, %v12449_v33  ;;  %v2510_v29 = vadd.f32 %v2509_v53, %v2508_v27  ;;  %v5891_v8 = vrot.slane %v5597_v11, 2  ;;  %v12490_v6 = vadd.f32 %v2497_v58, %v2496_v16  ;;  %8876 = vrsqrt.f32 %v12480_v44 }
 0x655   :  { %7938 = vst [vmem:[#allocation1 + $0x7] ss:$9 sm:$0xff] %v7151_v43  ;;  %v5892_v27 = vrot.slane %v5598_v41, 1  ;;  %v6480_v22 = vrot.slane %v13584_v52, 7  ;;  %v2521_v62 = vrot.slane %v2520_v20, 4  ;;  %v5893_v4 = vrot.slane %v5598_v41, 2  ;;  %v12503_v3 = vpop.eup %8874 }
 0x656   :  { %8314 = vst.msk [vmem:[%s13470_s8 + $0x58] sm:$0xff] %vm80_vm0, %v7930_v23  ;;  %v2516_v23 = vrot.slane %v2515_v14, 2  ;;  %v2511_v5 = vrot.slane %v2510_v29, 1  ;;  %v5894_v35 = vrot.slane %v5599_v39, 1  ;;  %v5895_v31 = vrot.slane %v5599_v39, 2 }
 0x657   :  { %v7159_v28 = vmul.f32 %v6473_v19, %v5597_v11  ;;  %v7160_v13 = vmul.f32 %v5890_v12, %v13584_v52  ;;  %v7161_v0 = vmul.f32 %v6474_v55, %v5891_v8  ;;  %v7162_v38 = vmul.f32 %v6475_v61, %v5598_v41  ;;  %v12540_v41 = vpop.f32.mrf.mxu1 }
 0x658   :  { %v2517_v49 = vadd.f32 %v2516_v23, %v2515_v14  ;;  %v12496_v43 = vadd.f32 %v2511_v5, %v2510_v29  ;;  %8878 = vrsqrt.f32 %v12490_v6  ;;  %v7163_v34 = vmul.f32 %v6476_v50, %v5892_v27  ;;  %v13587_v29 = vld [vmem:[#allocation45_spill] sm:$0xff] }
 0x659   :  { %v12505_v53 = vmul.f32 %v6478_v17, %v5599_v39  ;;  %v2522_v46 = vadd.f32 %v2521_v62, %v2520_v20  ;;  %8880 = vrsqrt.f32 %v12494_v24  ;;  %v7164_v51 = vmul.f32 %v6477_v26, %v5893_v4 }
 0x65a   :  { %v2518_v40 = vrot.slane %v2517_v49, 1  ;;  %v12508_v19 = vpop.eup %8876  ;;  %v12510_v9 = vmul.f32 %v6479_v18, %v5894_v35  ;;  %v12512_v14 = vmul.f32 %v6480_v22, %v5895_v31  ;;  %8882 = vrsqrt.f32 %v12496_v43 }
 0x65b   :  { %v5484_v32 = vrot.slane %v12499_v59, 2  ;;  %v5485_v7 = vrot.slane %v12499_v59, 3  ;;  %v5486_v57 = vrot.slane %v12499_v59, 4  ;;  %v2523_v25 = vrot.slane %v2522_v46, 2 }
 0x65c   :  { %v7939_v63 = vld [vmem:[#allocation1] sm:$0xff]  ;;  %v12522_v16 = vadd.f32 %v2518_v40, %v2517_v49  ;;  %v6488_v50 = vrot.slane %v12540_v41, 1  ;;  %v6489_v26 = vrot.slane %v12540_v41, 2  ;;  %v6490_v5 = vrot.slane %v12540_v41, 3 }
 0x65d   :  { %7940 = vst [vmem:[#allocation1] ss:$9 sm:$0xff] %v7152_v10  ;;  %v5483_v10 = vrot.slane %v12499_v59, 1  ;;  %v5600_v48 = vperm.slane %v12499_v59, 0  ;;  %v6491_v18 = vrot.slane %v12540_v41, 4  ;;  %v6492_v54 = vrot.slane %v12540_v41, 5 }
 0x65e   :  { %7941 = vst [vmem:[#allocation1 + $0x1] ss:$9 sm:$0xff] %v7153_v42  ;;  %v13586_v42 = vld [vmem:[#allocation24_spill] sm:$0xff]  ;;  %v12534_v23 = vpop.eup %8878  ;;  %8884 = vrsqrt.f32 %v12522_v16  ;;  %v5602_v27 = vperm.slane %v5484_v32, 0  ;;  %v5603_v40 = vperm.slane %v5485_v7, 0  ;;  %vm3983_vm9 = vcmp.eq.f32.partialorder %v12480_v44, 0.0 }
 0x65f   :  { %7942 = vst [vmem:[#allocation1 + $0x2] ss:$9 sm:$0xff] %v7154_v45  ;;  %v6481_v45 = vrot.slane %v13586_v42, 1  ;;  %v6482_v36 = vrot.slane %v13586_v42, 2  ;;  %v6484_v11 = vrot.slane %v13586_v42, 4  ;;  %v6485_v52 = vrot.slane %v13586_v42, 5  ;;  %v12542_v61 = vpop.eup %8880 }
 0x660   :  { %7943 = vst [vmem:[#allocation1 + $0x3] ss:$9 sm:$0xff] %v7155_v60  ;;  %v3987_v60 = vmul.f32 %v12503_v3, %v12477_v15  ;;  %v6486_v55 = vrot.slane %v13586_v42, 6  ;;  %v6487_v58 = vrot.slane %v13586_v42, 7  ;;  %v12546_v39 = vpop.eup %8882  ;;  %v5601_v49 = vperm.slane %v5483_v10, 0 }
 0x661   :  { %7944 = vst [vmem:[#allocation1 + $0x4] ss:$9 sm:$0xff] %v7156_v30  ;;  %v6483_v30 = vrot.slane %v13586_v42, 3  ;;  %v3999_v8 = vmul.f32 %v12534_v23, %v12490_v6  ;;  %v4011_v62 = vmul.f32 %v12542_v61, %v12494_v24  ;;  %v5897_v32 = vrot.slane %v5600_v48, 2 }
 0x662   :  { %7945 = vst [vmem:[#allocation1 + $0x5] ss:$9 sm:$0xff] %v7157_v56  ;;  %v2527_v56 = vsel %vm1637_vm1, %v13587_v29, 0.0  ;;  %v3988_v17 = vmul.f32 %v12503_v3, %v3987_v60  ;;  %v5898_v60 = vrot.slane %v5601_v49, 1  ;;  %v7168_v35 = vmul.f32 %v5600_v48, %v13586_v42 }
 0x663   :  { %7946 = vst [vmem:[#allocation1 + $0x6] ss:$9 sm:$0xff] %v7158_v2  ;;  %v3975_v2 = vmul.f32 %v12508_v19, %v12480_v44  ;;  %v2528_v37 = vrot.slane %v2527_v56, 4  ;;  %v4000_v29 = vmul.f32 %v12534_v23, %v3999_v8  ;;  %v4012_v7 = vmul.f32 %v12542_v61, %v4011_v62 }
 0x664   :  { %7947 = vst [vmem:[#allocation1 + $0x7] ss:$9 sm:$0xff] %v7159_v28  ;;  %v4023_v28 = vmul.f32 %v12546_v39, %v12496_v43  ;;  %v3989_v10 = vmul.f32 0.5, %v3988_v17  ;;  %v5902_v17 = vrot.slane %v5603_v40, 1  ;;  %vm3981_vm1 = vcmp.eq.f32.partialorder %v12480_v44, inf }
 0x665   :  { %8315 = vst.msk [vmem:[%s13470_s8 + $0x60] sm:$0xff] %vm80_vm0, %v7939_v63  ;;  %v2524_v63 = vadd.f32 %v2523_v25, %v2522_v46  ;;  %v3976_v12 = vmul.f32 %v12508_v19, %v3975_v2  ;;  %v2529_v31 = vadd.f32 %v2528_v37, %v2527_v56  ;;  %v5896_v46 = vrot.slane %v5600_v48, 1 }
 0x666   :  { %v5899_v2 = vrot.slane %v5601_v49, 2  ;;  %v4024_v37 = vmul.f32 %v12546_v39, %v4023_v28  ;;  %v3990_v8 = vsub.f32 1.5, %v3989_v10  ;;  %vm4005_vm12 = vcmp.eq.f32.partialorder %v12490_v6, inf }
 0x667   :  { %v2525_v22 = vrot.slane %v2524_v63, 1  ;;  %v3977_v25 = vmul.f32 0.5, %v3976_v12  ;;  %v5903_v12 = vrot.slane %v5603_v40, 2  ;;  %v7169_v10 = vmul.f32 %v6481_v45, %v5896_v46 }
 0x668   :  { %v7173_v48 = vmul.f32 %v6485_v52, %v5899_v2  ;;  %vm4007_vm13 = vcmp.eq.f32.partialorder %v12490_v6, 0.0  ;;  %vm4017_vm14 = vcmp.eq.f32.partialorder %v12494_v24, inf  ;;  %vm4019_vm2 = vcmp.eq.f32.partialorder %v12494_v24, 0.0 }
 0x669   :  { %v12569_v56 = vadd.f32 %v2525_v22, %v2524_v63  ;;  %v3978_v63 = vsub.f32 1.5, %v3977_v25  ;;  %v4001_v22 = vmul.f32 0.5, %v4000_v29  ;;  %v4025_v29 = vmul.f32 0.5, %v4024_v37 }
 0x66a   :  { %v12619_v42 = vmul.f32 %v6490_v5, %v5903_v12  ;;  %v5487_v5 = vrot.slane %v12499_v59, 5 }
 0x66b   :  { %v7948_v20 = vld [vmem:[#allocation1] sm:$0xff]  ;;  %8886 = vrsqrt.f32 %v12569_v56  ;;  %v3979_v45 = vmul.f32 %v12508_v19, %v3978_v63  ;;  %v4002_v46 = vsub.f32 1.5, %v4001_v22  ;;  %v4008_v63 = vand.u32 2147483648, %v12490_v6 }
 0x66c   :  { %7949 = vst [vmem:[#allocation1] ss:$9 sm:$0xff] %v7160_v13  ;;  %v12563_v13 = vperm.slane %v5486_v57, 0  ;;  %v5901_v57 = vrot.slane %v5602_v27, 2 }
 0x66d   :  { %7950 = vst [vmem:[#allocation1 + $0x1] ss:$9 sm:$0xff] %v7161_v0  ;;  %v12565_v0 = vpop.eup %8884  ;;  %v4003_v2 = vmul.f32 %v12534_v23, %v4002_v46 }
 0x66e   :  { %7951 = vst [vmem:[#allocation1 + $0x2] ss:$9 sm:$0xff] %v7162_v38  ;;  %v5900_v38 = vrot.slane %v5602_v27, 1  ;;  %v5905_v28 = vrot.slane %v12563_v13, 2 }
 0x66f   :  { %7952 = vst [vmem:[#allocation1 + $0x3] ss:$9 sm:$0xff] %v7163_v34  ;;  %v2530_v34 = vrot.slane %v2529_v31, 2  ;;  %v4004_v12 = vmul.f32 %v4003_v2, %v12490_v6  ;;  %v5605_v2 = vperm.slane %v5487_v5, 0  ;;  %v13589_v5 = vrot.slane %v12540_v41, 6 }
 0x670   :  { %7953 = vst [vmem:[#allocation1 + $0x4] ss:$9 sm:$0xff] %v7164_v51  ;;  %v4035_v51 = vmul.f32 %v12565_v0, %v12522_v16 }
 0x671   :  { %7954 = vst [vmem:[#allocation1 + $0x5] ss:$9 sm:$0xff] %v12505_v53  ;;  %v2531_v53 = vadd.f32 %v2530_v34, %v2529_v31  ;;  %v7170_v31 = vmul.f32 %v6482_v36, %v5897_v32  ;;  %v7171_v34 = vmul.f32 %v6483_v30, %v5601_v49  ;;  %v8887_v36 = vpop.eup %8886  ;;  %v7174_v32 = vmul.f32 %v6486_v55, %v5602_v27 }
 0x672   :  { %7955 = vst [vmem:[#allocation1 + $0x6] ss:$9 sm:$0xff] %v12510_v9  ;;  %v4036_v62 = vmul.f32 %v12565_v0, %v4035_v51  ;;  %v5904_v9 = vrot.slane %v12563_v13, 1  ;;  %v3991_v51 = vmul.f32 %v12503_v3, %v3990_v8  ;;  %v7175_v30 = vmul.f32 %v6487_v58, %v5900_v38 }
 0x673   :  { %7956 = vst [vmem:[#allocation1 + $0x7] ss:$9 sm:$0xff] %v12512_v14  ;;  %v4013_v14 = vmul.f32 0.5, %v4012_v7  ;;  %v2532_v25 = vrot.slane %v2531_v53, 1  ;;  %v12609_v49 = vmul.f32 %v6488_v50, %v5603_v40  ;;  %v4047_v19 = vmul.f32 %v8887_v36, %v12569_v56 }
 0x674   :  { %8316 = vst.msk [vmem:[%s13470_s8 + $0x68] sm:$0xff] %vm80_vm0, %v7948_v20  ;;  %v7172_v20 = vmul.f32 %v6484_v11, %v5898_v60  ;;  %v4037_v4 = vmul.f32 0.5, %v4036_v62  ;;  %v12605_v11 = vmul.f32 %v5901_v57, %v12540_v41  ;;  %v4026_v60 = vsub.f32 1.5, %v4025_v29 }
 0x675   :  { %v12597_v7 = vadd.f32 %v2532_v25, %v2531_v53  ;;  %v4014_v3 = vsub.f32 1.5, %v4013_v14  ;;  %v12615_v55 = vmul.f32 %v6489_v26, %v5902_v17  ;;  %v3992_v58 = vmul.f32 %v3991_v51, %v12477_v15 }
 0x676   :  { %v4038_v27 = vsub.f32 1.5, %v4037_v4  ;;  %v12625_v50 = vmul.f32 %v6491_v18, %v12563_v13  ;;  %v3980_v40 = vmul.f32 %v3979_v45, %v12480_v44  ;;  %v4048_v26 = vmul.f32 %v8887_v36, %v4047_v19 }
 0x677   :  { %8888 = vrsqrt.f32 %v12597_v7  ;;  %v12631_v38 = vmul.f32 %v6492_v54, %v5904_v9  ;;  %v4015_v4 = vmul.f32 %v12542_v61, %v4014_v3  ;;  %v4027_v18 = vmul.f32 %v12546_v39, %v4026_v60 }
 0x678   :  { %v4049_v23 = vmul.f32 0.5, %v4048_v26  ;;  %v3994_v54 = vsel %vm3993_vm4, %v12477_v15, %v3992_v58  ;;  %v4039_v57 = vmul.f32 %v12565_v0, %v4038_v27  ;;  %v3982_v61 = vsel %vm3981_vm1, %v12480_v44, %v3980_v40 }
 0x679   :  { %v3996_v17 = vand.u32 2147483648, %v12477_v15  ;;  %v4016_v39 = vmul.f32 %v4015_v4, %v12494_v24  ;;  %v4028_v22 = vmul.f32 %v4027_v18, %v12496_v43  ;;  %vm4029_vm1 = vcmp.eq.f32.partialorder %v12496_v43, inf }
 0x67a   :  { %v7957_v52 = vld [vmem:[#allocation1] sm:$0xff]  ;;  %v4050_v8 = vsub.f32 1.5, %v4049_v23  ;;  %v4040_v9 = vmul.f32 %v4039_v57, %v12522_v16  ;;  %v4032_v51 = vand.u32 2147483648, %v12496_v43  ;;  %vm4041_vm4 = vcmp.eq.f32.partialorder %v12522_v16, inf }
 0x67b   :  { %7958 = vst [vmem:[#allocation1] ss:$9 sm:$0xff] %v7168_v35  ;;  %v3984_v35 = vand.u32 2147483648, %v12480_v44  ;;  %v3997_v0 = vsel %vm3995_vm5, %v3996_v17, %v3994_v54  ;;  %v4018_v44 = vsel %vm4017_vm14, %v12494_v24, %v4016_v39  ;;  %vm4053_vm5 = vcmp.eq.f32.partialorder %v12569_v56, inf }
 0x67c   :  { %7959 = vst [vmem:[#allocation1 + $0x1] ss:$9 sm:$0xff] %v7169_v10  ;;  %v4051_v62 = vmul.f32 %v8887_v36, %v4050_v8  ;;  %v4006_v10 = vsel %vm4005_vm12, %v12490_v6, %v4004_v12  ;;  %v4042_v45 = vsel %vm4041_vm4, %v12522_v16, %v4040_v9  ;;  %v4429_v36 = vpop.f32.mrf.mxu2  ;;  %v4056_v6 = vand.u32 2147483648, %v12569_v56 }
 0x67d   :  { %7960 = vst [vmem:[#allocation1 + $0x2] ss:$9 sm:$0xff] %v7170_v31  ;;  %v8889_v37 = vpop.eup %8888  ;;  %v3985_v15 = vsel %vm3983_vm9, %v3984_v35, %v3982_v61  ;;  %v4020_v31 = vand.u32 2147483648, %v12494_v24  ;;  %vm4031_vm9 = vcmp.eq.f32.partialorder %v12496_v43, 0.0  ;;  %vm4055_vm12 = vcmp.eq.f32.partialorder %v12569_v56, 0.0 }
 0x67e   :  { %7961 = vst [vmem:[#allocation1 + $0x3] ss:$9 sm:$0xff] %v7171_v34  ;;  %v4059_v53 = vmul.f32 %v8889_v37, %v12597_v7  ;;  %v4052_v25 = vmul.f32 %v4051_v62, %v12569_v56  ;;  %v4334_v34 = vsel %vm4222_vm8, %v3997_v0, %v3985_v15  ;;  %vm4043_vm8 = vcmp.eq.f32.partialorder %v12522_v16, 0.0 }
 0x67f   :  { %7962 = vst [vmem:[#allocation1 + $0x4] ss:$9 sm:$0xff] %v7172_v20  ;;  %v4030_v20 = vsel %vm4029_vm1, %v12496_v43, %v4028_v22  ;;  %v5488_v23 = vrot.slane %v12499_v59, 6  ;;  %v13590_v13 = vrot.slane %v12540_v41, 7  ;;  %v5907_v61 = vrot.slane %v5605_v2, 2  ;;  %v5066_v22 = vpop.f32.mrf.mxu3 }
 0x680   :  { %7963 = vst [vmem:[#allocation1 + $0x5] ss:$9 sm:$0xff] %v7173_v48  ;;  %v4060_v14 = vmul.f32 %v8889_v37, %v4059_v53  ;;  %v4009_v48 = vsel %vm4007_vm13, %v4008_v63, %v4006_v10  ;;  %v4054_v3 = vsel %vm4053_vm5, %v12569_v56, %v4052_v25  ;;  %v4033_v19 = vsel %vm4031_vm9, %v4032_v51, %v4030_v20 }
 0x681   :  { %7964 = vst [vmem:[#allocation1 + $0x6] ss:$9 sm:$0xff] %v7174_v32  ;;  %v4021_v32 = vsel %vm4019_vm2, %v4020_v31, %v4018_v44  ;;  %v4335_v24 = vsel %vm4224_vm10, %v4009_v48, %v4334_v34  ;;  %v4057_v26 = vsel %vm4055_vm12, %v4056_v6, %v4054_v3  ;;  %vm4065_vm13 = vcmp.eq.f32.partialorder %v12597_v7, inf }
 0x682   :  { %7965 = vst [vmem:[#allocation1 + $0x7] ss:$9 sm:$0xff] %v7175_v30  ;;  %v4061_v29 = vmul.f32 0.5, %v4060_v14  ;;  %v4044_v30 = vand.u32 2147483648, %v12522_v16  ;;  %v4336_v4 = vsel %vm4226_vm15, %v4021_v32, %v4335_v24  ;;  %v4068_v56 = vand.u32 2147483648, %v12597_v7  ;;  %v13591_v14 = vld [vmem:[#allocation10_spill] sm:$0xff] }
 0x683   :  { %8317 = vst.msk [vmem:[%s13470_s8 + $0x70] sm:$0xff] %vm80_vm0, %v7957_v52  ;;  %v13588_v52 = vld [vmem:[#allocation38_spill] sm:$0xff]  ;;  %vm4067_vm10 = vcmp.eq.f32.partialorder %v12597_v7, 0.0  ;;  %v7183_v57 = vmul.f32 %v13590_v13, %v5605_v2  ;;  %v12722_v20 = vadd.f32 %v5066_v22, %v11693_v47 }
 0x684   :  { %v4062_v46 = vsub.f32 1.5, %v4061_v29  ;;  %v4543_v43 = vadd.f32 %v13588_v52, %v4429_v36  ;;  %v4045_v27 = vsel %vm4043_vm8, %v4044_v30, %v4042_v45 }
 0x685   :  { %v5490_v32 = vrot.slane %v12722_v20, 1  ;;  %v5608_v3 = vperm.slane %v12722_v20, 0 }
 0x686   :  { %v4063_v58 = vmul.f32 %v8889_v37, %v4062_v46  ;;  %v12686_v40 = vadd.f32 %v12360_v1, %v4543_v43  ;;  %v5606_v37 = vperm.slane %v5488_v23, 0  ;;  %v13592_v43 = vld [vmem:[#allocation11_spill] sm:$0xff] }
 0x688   :  { %v4064_v16 = vmul.f32 %v4063_v58, %v12597_v7  ;;  %v8500_v1 = vmul.f32 -1.442695, %v12686_v40  ;;  %v5908_v39 = vrot.slane %v5606_v37, 1  ;;  %v5909_v0 = vrot.slane %v5606_v37, 2 }
 0x689   :  { %v7966_v60 = vld [vmem:[#allocation1] sm:$0xff]  ;;  %v5609_v58 = vperm.slane %v5490_v32, 0 }
 0x68a   :  { %7967 = vst [vmem:[#allocation1] ss:$9 sm:$0xff] %v12605_v11  ;;  %v4337_v11 = vsel %vm4228_vm3, %v4033_v19, %v4336_v4  ;;  %v4066_v18 = vsel %vm4065_vm13, %v12597_v7, %v4064_v16  ;;  %8890 = vpow2.f32 %v8500_v1  ;;  %v5489_v7 = vrot.slane %v12499_v59, 7 }
 0x68b   :  { %7968 = vst [vmem:[#allocation1 + $0x1] ss:$9 sm:$0xff] %v12609_v49  ;;  %v7182_v49 = vmul.f32 %v13589_v5, %v5905_v28  ;;  %v4069_v35 = vsel %vm4067_vm10, %v4068_v56, %v4066_v18  ;;  %v5913_v4 = vrot.slane %v5608_v3, 2  ;;  %v5914_v18 = vrot.slane %v5609_v58, 1 }
 0x68c   :  { %7969 = vst [vmem:[#allocation1 + $0x2] ss:$9 sm:$0xff] %v12615_v55  ;;  %v4338_v55 = vsel %vm4230_vm6, %v4045_v27, %v4337_v11 }
 0x68d   :  { %7970 = vst [vmem:[#allocation1 + $0x3] ss:$9 sm:$0xff] %v12619_v42  ;;  %v4339_v54 = vsel %vm4232_vm7, %v4057_v26, %v4338_v55  ;;  %v470_v42 = vpop.f32.mrf.mxu1  ;;  %v5912_v26 = vrot.slane %v5608_v3, 1 }
 0x68e   :  { %7971 = vst [vmem:[#allocation1 + $0x4] ss:$9 sm:$0xff] %v12625_v50  ;;  %v4340_v28 = vsel %vm4234_vm11, %v4069_v35, %v4339_v54  ;;  %v5906_v50 = vrot.slane %v5605_v2, 1  ;;  %v6495_v17 = vrot.slane %v470_v42, 1  ;;  %v6496_v12 = vrot.slane %v470_v42, 2 }
 0x68f   :  { %7972 = vst [vmem:[#allocation1 + $0x5] ss:$9 sm:$0xff] %v12631_v38  ;;  %8470 = vmatmul.msk.f32.gmra.mxu2 %vm80_vm0, %v4340_v28  ;;  %v5607_v38 = vperm.slane %v5489_v7, 0  ;;  %v6497_v53 = vrot.slane %v470_v42, 3  ;;  %v6498_v63 = vrot.slane %v470_v42, 4  ;;  %v6499_v62 = vrot.slane %v470_v42, 5 }
 0x690   :  { %7973 = vst [vmem:[#allocation1 + $0x6] ss:$9 sm:$0xff] %v7182_v49  ;;  %v8891_v41 = vpop.eup %8890  ;;  %v7184_v59 = vmul.f32 %v5906_v50, %v470_v42  ;;  %v7185_v15 = vmul.f32 %v6495_v17, %v5907_v61  ;;  %v6500_v31 = vrot.slane %v470_v42, 6  ;;  %v7186_v25 = vmul.f32 %v6496_v12, %v5606_v37  ;;  %v13593_v50 = vld [vmem:[#allocation12_spill] sm:$0xff] }
 0x691   :  { %7974 = vst [vmem:[#allocation1 + $0x7] ss:$9 sm:$0xff] %v7183_v57  ;;  %v4632_v8 = vadd.f32 1.0, %v8891_v41  ;;  %v5910_v10 = vrot.slane %v5607_v38, 1  ;;  %v5911_v44 = vrot.slane %v5607_v38, 2  ;;  %v6501_v29 = vrot.slane %v470_v42, 7 }
 0x692   :  { %8318 = vst.msk [vmem:[%s13470_s8 + $0x78] sm:$0xff] %vm80_vm0, %v7966_v60  ;;  %v7187_v34 = vmul.f32 %v6497_v53, %v5908_v39  ;;  %v7188_v51 = vmul.f32 %v6498_v63, %v5909_v0  ;;  %v7189_v48 = vmul.f32 %v6499_v62, %v5607_v38  ;;  %v5491_v60 = vrot.slane %v12722_v20, 2  ;;  %v13594_v63 = vld [vmem:[#allocation13_spill] sm:$0xff] }
 0x693   :  { %8892 = vrcp.f32 %v4632_v8  ;;  %v7190_v46 = vmul.f32 %v6500_v31, %v5910_v10  ;;  %v7191_v36 = vmul.f32 %v6501_v29, %v5911_v44  ;;  %v4841_v19 = vand.u32 2147483648, %v4632_v8 }
 0x694   :  { %v4839_v24 = vand.u32 2147483647, %v4632_v8  ;;  %vm4835_vm3 = vweird.f32 %v4632_v8  ;;  %v5610_v5 = vperm.slane %v5491_v60, 0  ;;  %v5915_v54 = vrot.slane %v5609_v58, 2 }
 0x695   :  { %v473_v6 = vpop.f32.mrf.mxu1  ;;  %v4842_v49 = vor.u32 1.1754944e-38, %v4841_v19  ;;  %v5492_v12 = vrot.slane %v12722_v20, 3  ;;  %v5493_v53 = vrot.slane %v12722_v20, 4 }
 0x696   :  { %v6502_v2 = vrot.slane %v473_v6, 1  ;;  %v6503_v16 = vrot.slane %v473_v6, 2  ;;  %v6504_v11 = vrot.slane %v473_v6, 3  ;;  %v6505_v1 = vrot.slane %v473_v6, 4 }
 0x697   :  { %8503 = vmatmul.msk.f32.vlgmr.msra.gmra.mxu2 %vm80_vm0, %v13591_v14  ;;  %v7192_v55 = vmul.f32 %v5608_v3, %v473_v6  ;;  %vm4840_vm7 = vcmp.eq.f32.partialorder %v4839_v24, 8.507059e+37  ;;  %v6506_v35 = vrot.slane %v473_v6, 5  ;;  %v6507_v7 = vrot.slane %v473_v6, 6 }
 0x698   :  { %v7975_v9 = vld [vmem:[#allocation1] sm:$0xff]  ;;  %v7193_v13 = vmul.f32 %v6502_v2, %v5912_v26  ;;  %v7194_v42 = vmul.f32 %v6503_v16, %v5913_v4  ;;  %v6508_v41 = vrot.slane %v473_v6, 7  ;;  %v5916_v61 = vrot.slane %v5610_v5, 1 }
 0x699   :  { %7976 = vst [vmem:[#allocation1] ss:$9 sm:$0xff] %v7184_v59  ;;  %v8893_v45 = vpop.eup %8892  ;;  %v7195_v17 = vmul.f32 %v6504_v11, %v5609_v58  ;;  %v7196_v38 = vmul.f32 %v6505_v1, %v5914_v18  ;;  %v7198_v39 = vmul.f32 %v6507_v7, %v5610_v5  ;;  %v5611_v0 = vperm.slane %v5492_v12, 0  ;;  %v13596_v4 = vld [vmem:[#allocation17_spill] sm:$0xff] }
 0x69a   :  { %7977 = vst [vmem:[#allocation1 + $0x1] ss:$9 sm:$0xff] %v7185_v15  ;;  %v4831_v30 = vmul.f32 %v8893_v45, %v4632_v8  ;;  %vm4836_vm15 = vweird.f32 %v8893_v45  ;;  %v7197_v8 = vmul.f32 %v6506_v35, %v5915_v54  ;;  %v5917_v22 = vrot.slane %v5610_v5, 2  ;;  %v5069_v35 = vpop.f32.mrf.mxu3  ;;  %v13597_v12 = vld [vmem:[#allocation21_spill] sm:$0xff] }
 0x69b   :  { %7978 = vst [vmem:[#allocation1 + $0x2] ss:$9 sm:$0xff] %v7186_v25  ;;  %vm4837_vm6 = vmor %vm4835_vm3, %vm4836_vm15  ;;  %v5612_v15 = vperm.slane %v5493_v53, 0  ;;  %v5918_v14 = vrot.slane %v5611_v0, 1  ;;  %v5919_v31 = vrot.slane %v5611_v0, 2  ;;  %v5494_v25 = vrot.slane %v12722_v20, 5 }
 0x69c   :  { %7979 = vst [vmem:[#allocation1 + $0x3] ss:$9 sm:$0xff] %v7187_v34  ;;  %v4832_v52 = vsub.f32 1.0, %v4831_v30  ;;  %v5495_v58 = vrot.slane %v12722_v20, 6  ;;  %v5496_v24 = vrot.slane %v12722_v20, 7 }
 0x69d   :  { %7980 = vst [vmem:[#allocation1 + $0x4] ss:$9 sm:$0xff] %v7188_v51  ;;  %v476_v59 = vpop.f32.mrf.mxu1  ;;  %v5920_v51 = vrot.slane %v5612_v15, 1 }
 0x69e   :  { %7981 = vst [vmem:[#allocation1 + $0x5] ss:$9 sm:$0xff] %v7189_v48  ;;  %v4833_v27 = vmul.f32 %v8893_v45, %v4832_v52  ;;  %v6509_v62 = vrot.slane %v476_v59, 1  ;;  %v6511_v10 = vrot.slane %v476_v59, 3  ;;  %v6512_v44 = vrot.slane %v476_v59, 4 }
 0x69f   :  { %7982 = vst [vmem:[#allocation1 + $0x6] ss:$9 sm:$0xff] %v7190_v46  ;;  %8504 = vmatmul.msk.f32.gmra.mxu2 %vm80_vm0, %v13592_v43  ;;  %v7200_v29 = vmul.f32 %v5917_v22, %v476_v59  ;;  %v6513_v34 = vrot.slane %v476_v59, 5  ;;  %v6514_v46 = vrot.slane %v476_v59, 6  ;;  %v6515_v30 = vrot.slane %v476_v59, 7  ;;  %v13595_v43 = vld [vmem:[#allocation14_spill] sm:$0xff] }
 0x6a0   :  { %7983 = vst [vmem:[#allocation1 + $0x7] ss:$9 sm:$0xff] %v7191_v36  ;;  %v4834_v56 = vadd.f32 %v8893_v45, %v4833_v27  ;;  %v7201_v48 = vmul.f32 %v6509_v62, %v5611_v0  ;;  %v5921_v36 = vrot.slane %v5612_v15, 2  ;;  %v7203_v3 = vmul.f32 %v6511_v10, %v5919_v31 }
 0x6a1   :  { %8319 = vst.msk [vmem:[%s13470_s8 + $0x80] sm:$0xff] %vm80_vm0, %v7975_v9  ;;  %v6510_v9 = vrot.slane %v476_v59, 2  ;;  %v5613_v52 = vperm.slane %v5494_v25, 0  ;;  %v7204_v60 = vmul.f32 %v6512_v44, %v5612_v15  ;;  %v7205_v19 = vmul.f32 %v6513_v34, %v5920_v51 }
 0x6a2   :  { %v4838_v23 = vsel %vm4837_vm6, %v8893_v45, %v4834_v56  ;;  %v7206_v6 = vmul.f32 %v6514_v46, %v5921_v36  ;;  %v5614_v26 = vperm.slane %v5495_v58, 0  ;;  %v5615_v1 = vperm.slane %v5496_v24, 0 }
 0x6a3   :  { %v4843_v28 = vsel %vm4840_vm7, %v4842_v49, %v4838_v23  ;;  %v7202_v32 = vmul.f32 %v6510_v9, %v5918_v14  ;;  %v7207_v27 = vmul.f32 %v6515_v30, %v5613_v52  ;;  %v5922_v16 = vrot.slane %v5613_v52, 1  ;;  %v13598_v9 = vld [vmem:[#allocation25_spill] sm:$0xff] }
 0x6a4   :  { %v12734_v37 = vmul.f32 %v4843_v28, %v12686_v40  ;;  %v7199_v40 = vmul.f32 %v6508_v41, %v5916_v61  ;;  %v5923_v56 = vrot.slane %v5613_v52, 2  ;;  %v5924_v49 = vrot.slane %v5614_v26, 1 }
 0x6a5   :  { %v479_v2 = vpop.f32.mrf.mxu1  ;;  %v5926_v28 = vrot.slane %v5615_v1, 1 }
 0x6a6   :  { %8532 = vmatmul.msk.f32.gmra.mxu3 %vm80_vm0, %v12734_v37  ;;  %v6516_v11 = vrot.slane %v479_v2, 1  ;;  %v6517_v5 = vrot.slane %v479_v2, 2  ;;  %v6518_v18 = vrot.slane %v479_v2, 3  ;;  %v6519_v20 = vrot.slane %v479_v2, 4 }
 0x6a7   :  { %v7984_v57 = vld [vmem:[#allocation1] sm:$0xff]  ;;  %8505 = vmatmul.msk.f32.gmra.mxu2 %vm80_vm0, %v13593_v50  ;;  %v7208_v23 = vmul.f32 %v5922_v16, %v479_v2  ;;  %v6520_v54 = vrot.slane %v479_v2, 5  ;;  %v6521_v7 = vrot.slane %v479_v2, 6  ;;  %v5927_v50 = vrot.slane %v5615_v1, 2  ;;  %v13600_v16 = vld [vmem:[#allocation40_spill] sm:$0xff] }
 0x6a8   :  { %7985 = vst [vmem:[#allocation1] ss:$9 sm:$0xff] %v7192_v55  ;;  %v5925_v55 = vrot.slane %v5614_v26, 2  ;;  %v6522_v41 = vrot.slane %v479_v2, 7  ;;  %v7211_v61 = vmul.f32 %v6518_v18, %v5924_v49  ;;  %v12785_v49 = vld [vmem:[%s13468_s4] ss:$0 sm:$0xff] }
 0x6a9   :  { %7986 = vst [vmem:[#allocation1 + $0x1] ss:$9 sm:$0xff] %v7193_v13  ;;  %v7209_v13 = vmul.f32 %v6516_v11, %v5923_v56 }
 0x6aa   :  { %7987 = vst [vmem:[#allocation1 + $0x2] ss:$9 sm:$0xff] %v7194_v42  ;;  %v7210_v42 = vmul.f32 %v6517_v5, %v5614_v26 }
 0x6ab   :  { %7988 = vst [vmem:[#allocation1 + $0x3] ss:$9 sm:$0xff] %v7195_v17  ;;  %v12760_v17 = vadd.f32 %v5069_v35, %v11693_v47 }
 0x6ac   :  { %7989 = vst [vmem:[#allocation1 + $0x4] ss:$9 sm:$0xff] %v7196_v38  ;;  %v7212_v38 = vmul.f32 %v6519_v20, %v5925_v55 }
 0x6ad   :  { %7990 = vst [vmem:[#allocation1 + $0x5] ss:$9 sm:$0xff] %v7197_v8  ;;  %v7213_v8 = vmul.f32 %v6520_v54, %v5615_v1  ;;  %v5497_v53 = vrot.slane %v12760_v17, 1  ;;  %v5616_v0 = vperm.slane %v12760_v17, 0  ;;  %v482_v59 = vpop.f32.mrf.mxu1  ;;  %v5500_v24 = vrot.slane %v12760_v17, 4 }
 0x6ae   :  { %7991 = vst [vmem:[#allocation1 + $0x6] ss:$9 sm:$0xff] %v7198_v39  ;;  %v7214_v39 = vmul.f32 %v6521_v7, %v5926_v28  ;;  %v6523_v62 = vrot.slane %v482_v59, 1  ;;  %v6524_v14 = vrot.slane %v482_v59, 2  ;;  %v6525_v31 = vrot.slane %v482_v59, 3 }
 0x6af   :  { %7992 = vst [vmem:[#allocation1 + $0x7] ss:$9 sm:$0xff] %v7199_v40  ;;  %8506 = vmatmul.msk.f32.gmra.mxu2 %vm80_vm0, %v13594_v63  ;;  %v7215_v40 = vmul.f32 %v6522_v41, %v5927_v50  ;;  %v5498_v63 = vrot.slane %v12760_v17, 2  ;;  %v5617_v22 = vperm.slane %v5497_v53, 0  ;;  %v5928_v15 = vrot.slane %v5616_v0, 1 }
 0x6b0   :  { %8320 = vst.msk [vmem:[%s13470_s8 + $0x88] sm:$0xff] %vm80_vm0, %v7984_v57  ;;  %v5929_v10 = vrot.slane %v5616_v0, 2  ;;  %v6526_v44 = vrot.slane %v482_v59, 4  ;;  %v7216_v34 = vmul.f32 %v5616_v0, %v482_v59  ;;  %v6527_v51 = vrot.slane %v482_v59, 5 }
 0x6b1   :  { %v5618_v25 = vperm.slane %v5498_v63, 0  ;;  %v6528_v36 = vrot.slane %v482_v59, 6  ;;  %v6529_v30 = vrot.slane %v482_v59, 7  ;;  %v7219_v52 = vmul.f32 %v6525_v31, %v5617_v22 }
 0x6b2   :  { %v5620_v5 = vperm.slane %v5500_v24, 0  ;;  %v5501_v54 = vrot.slane %v12760_v17, 5 }
 0x6b3   :  { %v7222_v58 = vmul.f32 %v6528_v36, %v5618_v25  ;;  %v5933_v11 = vrot.slane %v5618_v25, 2 }
 0x6b4   :  { %v5936_v50 = vrot.slane %v5620_v5, 1 }
 0x6b5   :  { %v485_v56 = vpop.f32.mrf.mxu1 }
 0x6b6   :  { %v7993_v45 = vld [vmem:[#allocation1] sm:$0xff]  ;;  %v6530_v1 = vrot.slane %v485_v56, 1  ;;  %v6531_v55 = vrot.slane %v485_v56, 2  ;;  %v6532_v35 = vrot.slane %v485_v56, 3  ;;  %v6533_v28 = vrot.slane %v485_v56, 4 }
 0x6b7   :  { %7994 = vst [vmem:[#allocation1] ss:$9 sm:$0xff] %v7200_v29  ;;  %8507 = vmatmul.msk.f32.gmra.mxu2 %vm80_vm0, %v13595_v43  ;;  %v5930_v29 = vrot.slane %v5617_v22, 1  ;;  %v7224_v7 = vmul.f32 %v5933_v11, %v485_v56 }
 0x6b8   :  { %7995 = vst [vmem:[#allocation1 + $0x1] ss:$9 sm:$0xff] %v7201_v48  ;;  %v5931_v48 = vrot.slane %v5617_v22, 2  ;;  %v7228_v0 = vmul.f32 %v6533_v28, %v5620_v5  ;;  %v5502_v22 = vrot.slane %v12760_v17, 6 }
 0x6b9   :  { %7996 = vst [vmem:[#allocation1 + $0x2] ss:$9 sm:$0xff] %v7202_v32  ;;  %v7218_v32 = vmul.f32 %v6524_v14, %v5929_v10  ;;  %v7220_v43 = vmul.f32 %v6526_v44, %v5930_v29  ;;  %v5503_v10 = vrot.slane %v12760_v17, 7 }
 0x6ba   :  { %7997 = vst [vmem:[#allocation1 + $0x3] ss:$9 sm:$0xff] %v7203_v3  ;;  %v5932_v3 = vrot.slane %v5618_v25, 1  ;;  %v5622_v25 = vperm.slane %v5502_v22, 0 }
 0x6bb   :  { %7998 = vst [vmem:[#allocation1 + $0x4] ss:$9 sm:$0xff] %v7204_v60  ;;  %v5499_v60 = vrot.slane %v12760_v17, 3 }
 0x6bc   :  { %7999 = vst [vmem:[#allocation1 + $0x5] ss:$9 sm:$0xff] %v7205_v19  ;;  %v7221_v19 = vmul.f32 %v6527_v51, %v5931_v48  ;;  %v5623_v51 = vperm.slane %v5503_v10, 0  ;;  %v5941_v36 = vrot.slane %v5622_v25, 2 }
 0x6bd   :  { %8000 = vst [vmem:[#allocation1 + $0x6] ss:$9 sm:$0xff] %v7206_v6  ;;  %v13599_v6 = vld [vmem:[#allocation26_spill] sm:$0xff]  ;;  %v5619_v2 = vperm.slane %v5499_v60, 0  ;;  %v4432_v26 = vpop.f32.mrf.mxu2  ;;  %v488_v31 = vpop.f32.mrf.mxu1 }
 0x6be   :  { %8001 = vst [vmem:[#allocation1 + $0x7] ss:$9 sm:$0xff] %v7207_v27  ;;  %v7223_v27 = vmul.f32 %v6529_v30, %v5932_v3  ;;  %v6538_v48 = vrot.slane %v488_v31, 2  ;;  %v6540_v17 = vrot.slane %v488_v31, 4  ;;  %v5072_v30 = vpop.f32.mrf.mxu3  ;;  %v5943_v24 = vrot.slane %v5623_v51, 2 }
 0x6bf   :  { %8321 = vst.msk [vmem:[%s13470_s8 + $0x90] sm:$0xff] %vm80_vm0, %v7993_v45  ;;  %8508 = vmatmul.msk.f32.gmra.mxu2 %vm80_vm0, %v13596_v4  ;;  %v7217_v45 = vmul.f32 %v6523_v62, %v5928_v15  ;;  %v4546_v4 = vadd.f32 %v13600_v16, %v4432_v26  ;;  %v5934_v20 = vrot.slane %v5619_v2, 1  ;;  %v7225_v41 = vmul.f32 %v6530_v1, %v5619_v2  ;;  %v13602_v62 = vld [vmem:[#allocation47_spill] sm:$0xff] }
 0x6c0   :  { %v12805_v16 = vadd.f32 %v5072_v30, %v11693_v47 }
 0x6c1   :  { %v12788_v18 = vadd.f32 %v12785_v49, %v4546_v4 }
 0x6c5   :  { %v8002_v57 = vld [vmem:[#allocation1] sm:$0xff] }
 0x6c6   :  { %8003 = vst [vmem:[#allocation1] ss:$9 sm:$0xff] %v7208_v23  ;;  %v13601_v23 = vld [vmem:[#allocation27_spill] sm:$0xff] }
 0x6c7   :  { %8004 = vst [vmem:[#allocation1 + $0x1] ss:$9 sm:$0xff] %v7209_v13  ;;  %8509 = vmatmul.msk.f32.gmra.mxu2 %vm80_vm0, %v13597_v12  ;;  %v5935_v13 = vrot.slane %v5619_v2, 2  ;;  %v5937_v12 = vrot.slane %v5620_v5, 2  ;;  %v6543_v2 = vrot.slane %v488_v31, 7 }
 0x6c8   :  { %8005 = vst [vmem:[#allocation1 + $0x2] ss:$9 sm:$0xff] %v7210_v42  ;;  %v6534_v42 = vrot.slane %v485_v56, 5 }
 0x6c9   :  { %8006 = vst [vmem:[#allocation1 + $0x3] ss:$9 sm:$0xff] %v7211_v61  ;;  %v7227_v53 = vmul.f32 %v6532_v35, %v5935_v13  ;;  %v5624_v35 = vperm.slane %v12805_v16, 0 }
 0x6ca   :  { %8007 = vst [vmem:[#allocation1 + $0x4] ss:$9 sm:$0xff] %v7212_v38  ;;  %v6535_v38 = vrot.slane %v485_v56, 6  ;;  %v7229_v63 = vmul.f32 %v6534_v42, %v5936_v50 }
 0x6cb   :  { %8008 = vst [vmem:[#allocation1 + $0x5] ss:$9 sm:$0xff] %v7213_v8  ;;  %v7226_v8 = vmul.f32 %v6531_v55, %v5934_v20  ;;  %v7239_v20 = vmul.f32 %v6543_v2, %v5943_v24 }
 0x6cc   :  { %8009 = vst [vmem:[#allocation1 + $0x6] ss:$9 sm:$0xff] %v7214_v39  ;;  %v6536_v39 = vrot.slane %v485_v56, 7  ;;  %v7230_v59 = vmul.f32 %v6535_v38, %v5937_v12  ;;  %v5945_v12 = vrot.slane %v5624_v35, 2 }
 0x6cd   :  { %8010 = vst [vmem:[#allocation1 + $0x7] ss:$9 sm:$0xff] %v7215_v40  ;;  %v5621_v40 = vperm.slane %v5501_v54, 0 }
 0x6ce   :  { %8322 = vst.msk [vmem:[%s13470_s8 + $0x98] sm:$0xff] %vm80_vm0, %v8002_v57  ;;  %v8501_v57 = vmul.f32 -1.442695, %v12788_v18 }
 0x6cf   :  { %8510 = vmatmul.msk.f32.gmra.mxu2 %vm80_vm0, %v13598_v9  ;;  %v7231_v9 = vmul.f32 %v6536_v39, %v5621_v40  ;;  %v5938_v44 = vrot.slane %v5621_v40, 1  ;;  %v5939_v29 = vrot.slane %v5621_v40, 2 }
 0x6d0   :  { %8894 = vpow2.f32 %v8501_v57  ;;  %v5505_v57 = vrot.slane %v12805_v16, 2 }
 0x6d2   :  { %v5626_v39 = vperm.slane %v5505_v57, 0 }
 0x6d4   :  { %v8011_v46 = vld [vmem:[#allocation1] sm:$0xff] }
 0x6d5   :  { %8012 = vst [vmem:[#allocation1] ss:$9 sm:$0xff] %v7216_v34  ;;  %v6537_v34 = vrot.slane %v488_v31, 1 }
 0x6d6   :  { %8013 = vst [vmem:[#allocation1 + $0x1] ss:$9 sm:$0xff] %v7217_v45  ;;  %v8895_v15 = vpop.eup %8894  ;;  %v5940_v45 = vrot.slane %v5622_v25, 1 }
 0x6d7   :  { %8014 = vst [vmem:[#allocation1 + $0x2] ss:$9 sm:$0xff] %v7218_v32  ;;  %8511 = vmatmul.msk.f32.gmra.mxu2 %vm80_vm0, %v13599_v6  ;;  %v4633_v14 = vadd.f32 1.0, %v8895_v15  ;;  %v7232_v32 = vmul.f32 %v5938_v44, %v488_v31  ;;  %v7233_v60 = vmul.f32 %v6537_v34, %v5939_v29  ;;  %v6542_v6 = vrot.slane %v488_v31, 6 }
 0x6d8   :  { %8015 = vst [vmem:[#allocation1 + $0x3] ss:$9 sm:$0xff] %v7219_v52  ;;  %v5507_v34 = vrot.slane %v12805_v16, 4 }
 0x6d9   :  { %8016 = vst [vmem:[#allocation1 + $0x4] ss:$9 sm:$0xff] %v7220_v43  ;;  %8896 = vrcp.f32 %v4633_v14  ;;  %v6541_v43 = vrot.slane %v488_v31, 5  ;;  %v4856_v11 = vand.u32 2147483648, %v4633_v14  ;;  %v4854_v55 = vand.u32 2147483647, %v4633_v14 }
 0x6da   :  { %8017 = vst [vmem:[#allocation1 + $0x5] ss:$9 sm:$0xff] %v7221_v19  ;;  %v5942_v19 = vrot.slane %v5623_v51, 1  ;;  %vm4850_vm14 = vweird.f32 %v4633_v14 }
 0x6db   :  { %8018 = vst [vmem:[#allocation1 + $0x6] ss:$9 sm:$0xff] %v7222_v58  ;;  %v7234_v58 = vmul.f32 %v6538_v48, %v5622_v25  ;;  %v7237_v56 = vmul.f32 %v6541_v43, %v5623_v51  ;;  %v4857_v13 = vor.u32 1.1754944e-38, %v4856_v11  ;;  %vm4855_vm1 = vcmp.eq.f32.partialorder %v4854_v55, 8.507059e+37 }
 0x6dc   :  { %8019 = vst [vmem:[#allocation1 + $0x7] ss:$9 sm:$0xff] %v7223_v27  ;;  %v7238_v1 = vmul.f32 %v6542_v6, %v5942_v19  ;;  %v5506_v25 = vrot.slane %v12805_v16, 3  ;;  %v5509_v55 = vrot.slane %v12805_v16, 6 }
 0x6dd   :  { %8323 = vst.msk [vmem:[%s13470_s8 + $0xa0] sm:$0xff] %vm80_vm0, %v8011_v46  ;;  %v6539_v46 = vrot.slane %v488_v31, 3 }
 0x6de   :  { %v5627_v51 = vperm.slane %v5506_v25, 0 }
 0x6df   :  { %8512 = vmatmul.msk.f32.gmra.mxu2 %vm80_vm0, %v13601_v23  ;;  %v8897_v3 = vpop.eup %8896  ;;  %v7235_v26 = vmul.f32 %v6539_v46, %v5940_v45  ;;  %v5504_v23 = vrot.slane %v12805_v16, 1  ;;  %v5949_v45 = vrot.slane %v5626_v39, 2 }
 0x6e0   :  { %v4846_v27 = vmul.f32 %v8897_v3, %v4633_v14  ;;  %vm4851_vm11 = vweird.f32 %v8897_v3  ;;  %v5948_v14 = vrot.slane %v5626_v39, 1 }
 0x6e1   :  { %vm4852_vm2 = vmor %vm4850_vm14, %vm4851_vm11  ;;  %v5625_v42 = vperm.slane %v5504_v23, 0  ;;  %v5510_v23 = vrot.slane %v12805_v16, 7 }
 0x6e2   :  { %v4847_v4 = vsub.f32 1.0, %v4846_v27 }
 0x6e3   :  { %v8020_v61 = vld [vmem:[#allocation1] sm:$0xff]  ;;  %v5947_v22 = vrot.slane %v5625_v42, 2 }
 0x6e4   :  { %8021 = vst [vmem:[#allocation1] ss:$9 sm:$0xff] %v7224_v7  ;;  %v4848_v5 = vmul.f32 %v8897_v3, %v4847_v4  ;;  %v491_v7 = vpop.f32.mrf.mxu1 }
 0x6e5   :  { %8022 = vst [vmem:[#allocation1 + $0x1] ss:$9 sm:$0xff] %v7225_v41  ;;  %v6544_v50 = vrot.slane %v491_v7, 1  ;;  %v5944_v41 = vrot.slane %v5624_v35, 1  ;;  %v6545_v38 = vrot.slane %v491_v7, 2  ;;  %v6547_v40 = vrot.slane %v491_v7, 4 }
 0x6e6   :  { %8023 = vst [vmem:[#allocation1 + $0x2] ss:$9 sm:$0xff] %v7226_v8  ;;  %v4849_v54 = vadd.f32 %v8897_v3, %v4848_v5  ;;  %v6546_v8 = vrot.slane %v491_v7, 3  ;;  %v6549_v15 = vrot.slane %v491_v7, 6 }
 0x6e7   :  { %8024 = vst [vmem:[#allocation1 + $0x3] ss:$9 sm:$0xff] %v7227_v53  ;;  %8513 = vmatmul.msk.f32.gmra.mxu2 %vm80_vm0, %v13602_v62  ;;  %v5946_v53 = vrot.slane %v5625_v42, 1  ;;  %v7241_v62 = vmul.f32 %v6544_v50, %v5944_v41 }
 0x6e8   :  { %8025 = vst [vmem:[#allocation1 + $0x4] ss:$9 sm:$0xff] %v7228_v0  ;;  %v4853_v28 = vsel %vm4852_vm2, %v8897_v3, %v4849_v54  ;;  %v7240_v0 = vmul.f32 %v5624_v35, %v491_v7  ;;  %v7243_v10 = vmul.f32 %v6546_v8, %v5625_v42  ;;  %v7246_v29 = vmul.f32 %v6549_v15, %v5626_v39 }
 0x6e9   :  { %8026 = vst [vmem:[#allocation1 + $0x5] ss:$9 sm:$0xff] %v7229_v63  ;;  %v7244_v31 = vmul.f32 %v6547_v40, %v5946_v53  ;;  %v5508_v3 = vrot.slane %v12805_v16, 5  ;;  %v5630_v54 = vperm.slane %v5509_v55, 0 }
 0x6ea   :  { %8027 = vst [vmem:[#allocation1 + $0x6] ss:$9 sm:$0xff] %v7230_v59  ;;  %v6548_v59 = vrot.slane %v491_v7, 5 }
 0x6eb   :  { %8028 = vst [vmem:[#allocation1 + $0x7] ss:$9 sm:$0xff] %v7231_v9  ;;  %v7242_v9 = vmul.f32 %v6545_v38, %v5945_v12  ;;  %v5629_v4 = vperm.slane %v5508_v3, 0  ;;  %v5957_v41 = vrot.slane %v5630_v54, 2  ;;  %v5075_v12 = vpop.f32.mrf.mxu3 }
 0x6ec   :  { %8324 = vst.msk [vmem:[%s13470_s8 + $0xa8] sm:$0xff] %vm80_vm0, %v8020_v61  ;;  %v7245_v44 = vmul.f32 %v6548_v59, %v5947_v22  ;;  %v494_v48 = vpop.f32.mrf.mxu1 }
 0x6ed   :  { %v6551_v46 = vrot.slane %v494_v48, 1  ;;  %v6553_v30 = vrot.slane %v494_v48, 3  ;;  %v6554_v43 = vrot.slane %v494_v48, 4  ;;  %v6555_v19 = vrot.slane %v494_v48, 5 }
 0x6ee   :  { %v6556_v24 = vrot.slane %v494_v48, 6  ;;  %v5955_v57 = vrot.slane %v5629_v4, 2 }
 0x6ef   :  { %8514 = vmatmul.msk.f32.gmra.mxu2 %vm80_vm0, %v12073_v21  ;;  %v7236_v21 = vmul.f32 %v6540_v17, %v5941_v36  ;;  %v5628_v36 = vperm.slane %v5507_v34, 0  ;;  %v6552_v17 = vrot.slane %v494_v48, 2 }
 0x6f1   :  { %v5952_v6 = vrot.slane %v5628_v36, 1  ;;  %v5953_v2 = vrot.slane %v5628_v36, 2  ;;  %v7252_v11 = vmul.f32 %v6554_v43, %v5628_v36 }
 0x6f2   :  { %v8029_v52 = vld [vmem:[#allocation1] sm:$0xff] }
 0x6f3   :  { %8030 = vst [vmem:[#allocation1] ss:$9 sm:$0xff] %v7232_v32  ;;  %v5950_v32 = vrot.slane %v5627_v51, 1  ;;  %v7254_v5 = vmul.f32 %v6556_v24, %v5953_v2 }
 0x6f4   :  { %8031 = vst [vmem:[#allocation1 + $0x1] ss:$9 sm:$0xff] %v7233_v60  ;;  %v7248_v60 = vmul.f32 %v5949_v45, %v494_v48  ;;  %v497_v35 = vpop.f32.mrf.mxu1 }
 0x6f5   :  { %8032 = vst [vmem:[#allocation1 + $0x2] ss:$9 sm:$0xff] %v7234_v58  ;;  %v7249_v58 = vmul.f32 %v6551_v46, %v5627_v51  ;;  %v6559_v42 = vrot.slane %v497_v35, 2  ;;  %v6560_v50 = vrot.slane %v497_v35, 3  ;;  %v6562_v16 = vrot.slane %v497_v35, 5 }
 0x6f6   :  { %8033 = vst [vmem:[#allocation1 + $0x3] ss:$9 sm:$0xff] %v7235_v26  ;;  %v7250_v26 = vmul.f32 %v6552_v17, %v5950_v32  ;;  %v6563_v53 = vrot.slane %v497_v35, 6  ;;  %v6564_v59 = vrot.slane %v497_v35, 7 }
 0x6f7   :  { %8034 = vst [vmem:[#allocation1 + $0x4] ss:$9 sm:$0xff] %v7236_v21  ;;  %8515 = vmatmul.msk.f32.gmra.mxu2 %vm80_vm0, %v12449_v33  ;;  %v4858_v33 = vsel %vm4855_vm1, %v4857_v13, %v4853_v28  ;;  %v6557_v21 = vrot.slane %v494_v48, 7  ;;  %v5954_v13 = vrot.slane %v5629_v4, 1  ;;  %v6558_v28 = vrot.slane %v497_v35, 1 }
 0x6f8   :  { %8035 = vst [vmem:[#allocation1 + $0x5] ss:$9 sm:$0xff] %v7237_v56  ;;  %v4889_v61 = vmul.f32 %v4858_v33, %v12788_v18  ;;  %v6550_v18 = vrot.slane %v491_v7, 7  ;;  %v5631_v7 = vperm.slane %v5510_v23, 0  ;;  %v5956_v33 = vrot.slane %v5630_v54, 1 }
 0x6f9   :  { %8036 = vst [vmem:[#allocation1 + $0x6] ss:$9 sm:$0xff] %v7238_v1  ;;  %v7253_v1 = vmul.f32 %v6555_v19, %v5952_v6  ;;  %v7256_v38 = vmul.f32 %v5954_v13, %v497_v35  ;;  %v7257_v39 = vmul.f32 %v6558_v28, %v5955_v57 }
 0x6fa   :  { %8037 = vst [vmem:[#allocation1 + $0x7] ss:$9 sm:$0xff] %v7239_v20  ;;  %8533 = vmatmul.msk.f32.gmra.mxu3 %vm80_vm0, %v4889_v61  ;;  %v7255_v20 = vmul.f32 %v6557_v21, %v5629_v4  ;;  %v5958_v40 = vrot.slane %v5631_v7, 1  ;;  %v7259_v22 = vmul.f32 %v6560_v50, %v5956_v33 }
 0x6fb   :  { %8325 = vst.msk [vmem:[%s13470_s8 + $0xb0] sm:$0xff] %vm80_vm0, %v8029_v52  ;;  %v5951_v52 = vrot.slane %v5627_v51, 2 }
 0x6fd   :  { %v7251_v56 = vmul.f32 %v6553_v30, %v5951_v52 }
 0x6ff   :  { %8516 = vmatmul.msk.f32.gmra.mxu2 %vm80_vm0, %v12734_v37  ;;  %v7247_v37 = vmul.f32 %v6550_v18, %v5948_v14  ;;  %v7262_v18 = vmul.f32 %v6563_v53, %v5958_v40 }
 0x701   :  { %v8038_v63 = vld [vmem:[#allocation1] sm:$0xff] }
 0x702   :  { %8039 = vst [vmem:[#allocation1] ss:$9 sm:$0xff] %v7240_v0  ;;  %v7258_v0 = vmul.f32 %v6559_v42, %v5630_v54 }
 0x703   :  { %8040 = vst [vmem:[#allocation1 + $0x1] ss:$9 sm:$0xff] %v7241_v62  ;;  %v12835_v62 = vadd.f32 %v5075_v12, %v11693_v47 }
 0x704   :  { %8041 = vst [vmem:[#allocation1 + $0x2] ss:$9 sm:$0xff] %v7242_v9  ;;  %v7261_v9 = vmul.f32 %v6562_v16, %v5631_v7 }
 0x705   :  { %8042 = vst [vmem:[#allocation1 + $0x3] ss:$9 sm:$0xff] %v7243_v10  ;;  %v5511_v10 = vrot.slane %v12835_v62, 1  ;;  %v5512_v25 = vrot.slane %v12835_v62, 2  ;;  %v5513_v2 = vrot.slane %v12835_v62, 3 }
 0x706   :  { %8043 = vst [vmem:[#allocation1 + $0x4] ss:$9 sm:$0xff] %v7244_v31  ;;  %v5632_v31 = vperm.slane %v12835_v62, 0 }
 0x707   :  { %8044 = vst [vmem:[#allocation1 + $0x5] ss:$9 sm:$0xff] %v7245_v44  ;;  %8517 = vmatmul.msk.f32.gmra.mxu2 %vm80_vm0, %v4889_v61  ;;  %v6561_v61 = vrot.slane %v497_v35, 4  ;;  %v500_v44 = vpop.f32.mrf.mxu1  ;;  %v5634_v46 = vperm.slane %v5512_v25, 0  ;;  %v5516_v25 = vrot.slane %v12835_v62, 6 }
 0x708   :  { %8045 = vst [vmem:[#allocation1 + $0x6] ss:$9 sm:$0xff] %v7246_v29  ;;  %v5633_v29 = vperm.slane %v5511_v10, 0  ;;  %v5960_v34 = vrot.slane %v5632_v31, 1  ;;  %v6566_v51 = vrot.slane %v500_v44, 2  ;;  %v5961_v48 = vrot.slane %v5632_v31, 2 }
 0x709   :  { %8046 = vst [vmem:[#allocation1 + $0x7] ss:$9 sm:$0xff] %v7247_v37  ;;  %v7260_v15 = vmul.f32 %v6561_v61, %v5957_v41  ;;  %v6565_v37 = vrot.slane %v500_v44, 1  ;;  %v6567_v45 = vrot.slane %v500_v44, 3  ;;  %v6568_v36 = vrot.slane %v500_v44, 4 }
 0x70a   :  { %8326 = vst.msk [vmem:[%s13470_s8 + $0xb8] sm:$0xff] %vm80_vm0, %v8038_v63  ;;  %v5959_v63 = vrot.slane %v5631_v7, 2  ;;  %v5962_v17 = vrot.slane %v5633_v29, 1  ;;  %v7264_v32 = vmul.f32 %v5632_v31, %v500_v44  ;;  %v6569_v3 = vrot.slane %v500_v44, 5  ;;  %v12859_v41 = vld [vmem:[%s13469_s6] ss:$0 sm:$0xff] }
 0x70b   :  { %v5963_v52 = vrot.slane %v5633_v29, 2  ;;  %v7265_v43 = vmul.f32 %v6565_v37, %v5960_v34  ;;  %v7266_v19 = vmul.f32 %v6566_v51, %v5961_v48  ;;  %v6571_v6 = vrot.slane %v500_v44, 7 }
 0x70c   :  { %v7263_v14 = vmul.f32 %v6564_v59, %v5959_v63  ;;  %v7268_v24 = vmul.f32 %v6568_v36, %v5962_v17  ;;  %v5965_v54 = vrot.slane %v5634_v46, 2 }
 0x70f   :  { %v503_v35 = vpop.f32.mrf.mxu1 }
 0x710   :  { %v8047_v27 = vld [vmem:[#allocation1] sm:$0xff]  ;;  %v6572_v13 = vrot.slane %v503_v35, 1  ;;  %v6573_v28 = vrot.slane %v503_v35, 2  ;;  %v6574_v33 = vrot.slane %v503_v35, 3  ;;  %v7272_v12 = vmul.f32 %v5965_v54, %v503_v35 }
 0x711   :  { %8048 = vst [vmem:[#allocation1] ss:$9 sm:$0xff] %v7248_v60  ;;  %v6570_v60 = vrot.slane %v500_v44, 6  ;;  %v5517_v44 = vrot.slane %v12835_v62, 7 }
 0x712   :  { %8049 = vst [vmem:[#allocation1 + $0x1] ss:$9 sm:$0xff] %v7249_v58  ;;  %v5964_v58 = vrot.slane %v5634_v46, 1  ;;  %v4435_v21 = vpop.f32.mrf.mxu2 }
 0x713   :  { %8050 = vst [vmem:[#allocation1 + $0x2] ss:$9 sm:$0xff] %v7250_v26  ;;  %v7269_v26 = vmul.f32 %v6569_v3, %v5963_v52  ;;  %v7270_v4 = vmul.f32 %v6570_v60, %v5634_v46  ;;  %v5638_v46 = vperm.slane %v5516_v25, 0  ;;  %v5639_v36 = vperm.slane %v5517_v44, 0 }
 0x714   :  { %8051 = vst [vmem:[#allocation1 + $0x3] ss:$9 sm:$0xff] %v7251_v56  ;;  %v13603_v56 = vld [vmem:[#allocation42_spill] sm:$0xff] }
 0x715   :  { %8052 = vst [vmem:[#allocation1 + $0x4] ss:$9 sm:$0xff] %v7252_v11  ;;  %v4549_v11 = vadd.f32 %v13603_v56, %v4435_v21 }
 0x716   :  { %8053 = vst [vmem:[#allocation1 + $0x5] ss:$9 sm:$0xff] %v7253_v1  ;;  %v7271_v1 = vmul.f32 %v6571_v6, %v5964_v58  ;;  %v5973_v6 = vrot.slane %v5638_v46, 2  ;;  %v5974_v58 = vrot.slane %v5639_v36, 1 }
 0x717   :  { %8054 = vst [vmem:[#allocation1 + $0x6] ss:$9 sm:$0xff] %v7254_v5  ;;  %v5514_v5 = vrot.slane %v12835_v62, 4  ;;  %v12848_v55 = vadd.f32 %v12785_v49, %v4549_v11  ;;  %v5515_v49 = vrot.slane %v12835_v62, 5  ;;  %v506_v48 = vpop.f32.mrf.mxu1 }
 0x718   :  { %8055 = vst [vmem:[#allocation1 + $0x7] ss:$9 sm:$0xff] %v7255_v20  ;;  %v5635_v20 = vperm.slane %v5513_v2, 0  ;;  %v6583_v60 = vrot.slane %v506_v48, 5  ;;  %v5975_v2 = vrot.slane %v5639_v36, 2  ;;  %v6582_v21 = vrot.slane %v506_v48, 4 }
 0x719   :  { %8327 = vst.msk [vmem:[%s13470_s8 + $0xc0] sm:$0xff] %vm80_vm0, %v8047_v27  ;;  %v7267_v27 = vmul.f32 %v6567_v45, %v5633_v29  ;;  %v8502_v23 = vmul.f32 -1.442695, %v12848_v55  ;;  %v5636_v57 = vperm.slane %v5514_v5, 0  ;;  %v6585_v11 = vrot.slane %v506_v48, 7 }
 0x71a   :  { %v5966_v7 = vrot.slane %v5635_v20, 1  ;;  %v4964_v42 = vpop.f32.mrf.mxu2  ;;  %v5967_v50 = vrot.slane %v5635_v20, 2 }
 0x71b   :  { %8898 = vpow2.f32 %v8502_v23  ;;  %v12862_v61 = vadd.f32 %v12859_v41, %v4964_v42  ;;  %v5968_v16 = vrot.slane %v5636_v57, 1  ;;  %v5969_v63 = vrot.slane %v5636_v57, 2 }
 0x71c   :  { %v7274_v59 = vmul.f32 %v6573_v28, %v5966_v7 }
 0x71d   :  { %v8535_v53 = vmul.f32 -1.442695, %v12862_v61 }
 0x71f   :  { %v8056_v8 = vld [vmem:[#allocation1] sm:$0xff]  ;;  %8900 = vpow2.f32 %v8535_v53  ;;  %v7287_v53 = vmul.f32 %v6585_v11, %v5975_v2 }
 0x720   :  { %8057 = vst [vmem:[#allocation1] ss:$9 sm:$0xff] %v7256_v38  ;;  %v6575_v38 = vrot.slane %v503_v35, 4 }
 0x721   :  { %8058 = vst [vmem:[#allocation1 + $0x1] ss:$9 sm:$0xff] %v7257_v39  ;;  %v7273_v39 = vmul.f32 %v6572_v13, %v5635_v20 }
 0x722   :  { %8059 = vst [vmem:[#allocation1 + $0x2] ss:$9 sm:$0xff] %v7258_v0  ;;  %v6577_v0 = vrot.slane %v503_v35, 6  ;;  %v4967_v37 = vpop.f32.mrf.mxu2 }
 0x723   :  { %8060 = vst [vmem:[#allocation1 + $0x3] ss:$9 sm:$0xff] %v7259_v22  ;;  %v8899_v22 = vpop.eup %8898  ;;  %v12871_v51 = vadd.f32 %v12859_v41, %v4967_v37 }
 0x724   :  { %8061 = vst [vmem:[#allocation1 + $0x4] ss:$9 sm:$0xff] %v7260_v15  ;;  %v6578_v15 = vrot.slane %v503_v35, 7  ;;  %v12865_v10 = vadd.f32 1.0, %v8899_v22  ;;  %v7278_v29 = vmul.f32 %v6577_v0, %v5969_v63 }
 0x725   :  { %8062 = vst [vmem:[#allocation1 + $0x5] ss:$9 sm:$0xff] %v7261_v9  ;;  %v5637_v9 = vperm.slane %v5515_v49, 0  ;;  %v8901_v45 = vpop.eup %8900  ;;  %v8536_v17 = vmul.f32 -1.442695, %v12871_v51 }
 0x726   :  { %8063 = vst [vmem:[#allocation1 + $0x6] ss:$9 sm:$0xff] %v7262_v18  ;;  %v7275_v18 = vmul.f32 %v6574_v33, %v5967_v50  ;;  %8902 = vrcp.f32 %v12865_v10  ;;  %v12878_v62 = vadd.f32 1.0, %v8901_v45  ;;  %v4869_v42 = vand.u32 2147483647, %v12865_v10 }
 0x727   :  { %8064 = vst [vmem:[#allocation1 + $0x7] ss:$9 sm:$0xff] %v7263_v14  ;;  %v7276_v14 = vmul.f32 %v6575_v38, %v5636_v57  ;;  %v7279_v34 = vmul.f32 %v6578_v15, %v5637_v9  ;;  %8904 = vpow2.f32 %v8536_v17  ;;  %v5971_v52 = vrot.slane %v5637_v9, 2 }
 0x728   :  { %8328 = vst.msk [vmem:[%s13470_s8 + $0xc8] sm:$0xff] %vm80_vm0, %v8056_v8  ;;  %v6576_v8 = vrot.slane %v503_v35, 5  ;;  %8906 = vrcp.f32 %v12878_v62  ;;  %v4871_v57 = vand.u32 2147483648, %v12865_v10  ;;  %v7284_v38 = vmul.f32 %v6582_v21, %v5973_v6 }
 0x729   :  { %vm4865_vm4 = vweird.f32 %v12865_v10  ;;  %vm4870_vm8 = vcmp.eq.f32.partialorder %v4869_v42, 8.507059e+37  ;;  %vm5165_vm13 = vweird.f32 %v12878_v62 }
 0x72a   :  { %v7277_v31 = vmul.f32 %v6576_v8, %v5968_v16  ;;  %v4970_v56 = vpop.f32.mrf.mxu2  ;;  %v4872_v0 = vor.u32 1.1754944e-38, %v4871_v57 }
 0x72b   :  { %v12883_v20 = vadd.f32 %v12859_v41, %v4970_v56 }
 0x72c   :  { %v8903_v3 = vpop.eup %8902 }
 0x72d   :  { %v8905_v28 = vpop.eup %8904  ;;  %vm4866_vm9 = vweird.f32 %v8903_v3  ;;  %v8537_v33 = vmul.f32 -1.442695, %v12883_v20 }
 0x72e   :  { %v8065_v30 = vld [vmem:[#allocation1] sm:$0xff]  ;;  %v8907_v49 = vpop.eup %8906  ;;  %v12891_v8 = vadd.f32 1.0, %v8905_v28  ;;  %vm4867_vm5 = vmor %vm4865_vm4, %vm4866_vm9 }
 0x72f   :  { %8066 = vst [vmem:[#allocation1] ss:$9 sm:$0xff] %v7264_v32  ;;  %v5970_v32 = vrot.slane %v5637_v9, 1  ;;  %8908 = vpow2.f32 %v8537_v33  ;;  %vm5166_vm12 = vweird.f32 %v8907_v49 }
 0x730   :  { %8067 = vst [vmem:[#allocation1 + $0x1] ss:$9 sm:$0xff] %v7265_v43  ;;  %v6579_v43 = vrot.slane %v506_v48, 1  ;;  %8910 = vrcp.f32 %v12891_v8  ;;  %vm5167_vm10 = vmor %vm5165_vm13, %vm5166_vm12  ;;  %v5186_v56 = vand.u32 2147483648, %v12891_v8  ;;  %vm5180_vm6 = vweird.f32 %v12891_v8 }
 0x731   :  { %8068 = vst [vmem:[#allocation1 + $0x2] ss:$9 sm:$0xff] %v7266_v19  ;;  %v5972_v19 = vrot.slane %v5638_v46, 1 }
 0x732   :  { %8069 = vst [vmem:[#allocation1 + $0x3] ss:$9 sm:$0xff] %v7267_v27  ;;  %v5078_v27 = vpop.f32.mrf.mxu3  ;;  %v7281_v35 = vmul.f32 %v6579_v43, %v5971_v52 }
 0x733   :  { %8070 = vst [vmem:[#allocation1 + $0x4] ss:$9 sm:$0xff] %v7268_v24  ;;  %v4861_v24 = vmul.f32 %v8903_v3, %v12865_v10  ;;  %v12886_v13 = vadd.f32 %v5078_v27, %v11693_v47  ;;  %v4973_v10 = vpop.f32.mrf.mxu2 }
 0x734   :  { %8071 = vst [vmem:[#allocation1 + $0x5] ss:$9 sm:$0xff] %v7269_v26  ;;  %v6581_v26 = vrot.slane %v506_v48, 3 }
 0x735   :  { %8072 = vst [vmem:[#allocation1 + $0x6] ss:$9 sm:$0xff] %v7270_v4  ;;  %v6584_v4 = vrot.slane %v506_v48, 6  ;;  %v4862_v5 = vsub.f32 1.0, %v4861_v24  ;;  %v5518_v63 = vrot.slane %v12886_v13, 1  ;;  %v5640_v15 = vperm.slane %v12886_v13, 0  ;;  %v8909_v45 = vpop.eup %8908 }
 0x736   :  { %8073 = vst [vmem:[#allocation1 + $0x7] ss:$9 sm:$0xff] %v7271_v1  ;;  %v7280_v1 = vmul.f32 %v5970_v32, %v506_v48  ;;  %v7283_v50 = vmul.f32 %v6581_v26, %v5972_v19  ;;  %v8911_v17 = vpop.eup %8910  ;;  %v12920_v52 = vadd.f32 1.0, %v8909_v45 }
 0x737   :  { %8329 = vst.msk [vmem:[%s13470_s8 + $0xd0] sm:$0xff] %vm80_vm0, %v8065_v30  ;;  %v6580_v30 = vrot.slane %v506_v48, 2  ;;  %v4863_v7 = vmul.f32 %v8903_v3, %v4862_v5  ;;  %v5519_v48 = vrot.slane %v12886_v13, 2  ;;  %v5641_v32 = vperm.slane %v5518_v63, 0 }
 0x738   :  { %v5977_v19 = vrot.slane %v5640_v15, 2  ;;  %vm5181_vm3 = vweird.f32 %v8911_v17  ;;  %vm5195_vm2 = vweird.f32 %v12920_v52 }
 0x739   :  { %v7282_v54 = vmul.f32 %v6580_v30, %v5638_v46  ;;  %v4864_v16 = vadd.f32 %v8903_v3, %v4863_v7  ;;  %v5976_v30 = vrot.slane %v5640_v15, 1  ;;  %v12926_v27 = vperm.slane %v5519_v48, 0  ;;  %vm5182_vm7 = vmor %vm5180_vm6, %vm5181_vm3 }
 0x73a   :  { %v5978_v26 = vrot.slane %v5641_v32, 1  ;;  %v5979_v21 = vrot.slane %v5641_v32, 2 }
 0x73b   :  { %v5980_v28 = vrot.slane %v12926_v27, 1  ;;  %v5981_v48 = vrot.slane %v12926_v27, 2 }
 0x73d   :  { %v8074_v40 = vld [vmem:[#allocation1] sm:$0xff] }
 0x73e   :  { %8075 = vst [vmem:[#allocation1] ss:$9 sm:$0xff] %v7272_v12  ;;  %v7285_v12 = vmul.f32 %v6583_v60, %v5639_v36  ;;  %v5176_v60 = vmul.f32 %v8911_v17, %v12891_v8 }
 0x73f   :  { %8076 = vst [vmem:[#allocation1 + $0x1] ss:$9 sm:$0xff] %v7273_v39  ;;  %v5161_v39 = vmul.f32 %v8907_v49, %v12878_v62 }
 0x740   :  { %8077 = vst [vmem:[#allocation1 + $0x2] ss:$9 sm:$0xff] %v7274_v59  ;;  %v4868_v59 = vsel %vm4867_vm5, %v8903_v3, %v4864_v16  ;;  %v5177_v2 = vsub.f32 1.0, %v5176_v60 }
 0x741   :  { %8078 = vst [vmem:[#allocation1 + $0x3] ss:$9 sm:$0xff] %v7275_v18  ;;  %v5162_v22 = vsub.f32 1.0, %v5161_v39  ;;  %v4873_v9 = vsel %vm4870_vm8, %v4872_v0, %v4868_v59  ;;  %v5169_v18 = vand.u32 2147483647, %v12878_v62 }
 0x742   :  { %8079 = vst [vmem:[#allocation1 + $0x4] ss:$9 sm:$0xff] %v7276_v14  ;;  %v5171_v14 = vand.u32 2147483648, %v12878_v62  ;;  %v4890_v25 = vmul.f32 %v4873_v9, %v12848_v55  ;;  %v5178_v5 = vmul.f32 %v8911_v17, %v5177_v2 }
 0x743   :  { %8080 = vst [vmem:[#allocation1 + $0x5] ss:$9 sm:$0xff] %v7277_v31  ;;  %v12901_v31 = vpop.f32.mrf.mxu1  ;;  %v5163_v44 = vmul.f32 %v8907_v49, %v5162_v22  ;;  %vm5170_vm15 = vcmp.eq.f32.partialorder %v5169_v18, 8.507059e+37 }
 0x744   :  { %8081 = vst [vmem:[#allocation1 + $0x6] ss:$9 sm:$0xff] %v7278_v29  ;;  %v12905_v29 = vadd.f32 %v12859_v41, %v4973_v10  ;;  %v6586_v37 = vrot.slane %v12901_v31, 1  ;;  %v6588_v46 = vrot.slane %v12901_v31, 3  ;;  %8518 = vmatmul.msk.f32.gmra.mxu2 %vm80_vm0, %v4890_v25  ;;  %8534 = vmatmul.msk.f32.gmra.mxu3 %vm80_vm0, %v4890_v25  ;;  %v5172_v3 = vor.u32 1.1754944e-38, %v5171_v14  ;;  %v4976_v14 = vpop.f32.mrf.mxu2 }
 0x745   :  { %8082 = vst [vmem:[#allocation1 + $0x7] ss:$9 sm:$0xff] %v7279_v34  ;;  %v6587_v34 = vrot.slane %v12901_v31, 2  ;;  %v5164_v55 = vadd.f32 %v8907_v49, %v5163_v44  ;;  %v6589_v62 = vrot.slane %v12901_v31, 4  ;;  %v5179_v42 = vadd.f32 %v8911_v17, %v5178_v5 }
 0x746   :  { %8330 = vst.msk [vmem:[%s13470_s8 + $0xd8] sm:$0xff] %vm80_vm0, %v8074_v40  ;;  %v7286_v40 = vmul.f32 %v6584_v4, %v5974_v58  ;;  %v8538_v36 = vmul.f32 -1.442695, %v12905_v29  ;;  %v6590_v58 = vrot.slane %v12901_v31, 5  ;;  %v7288_v4 = vmul.f32 %v5640_v15, %v12901_v31 }
 0x747   :  { %v5168_v43 = vsel %vm5167_vm10, %v8907_v49, %v5164_v55  ;;  %v7291_v7 = vmul.f32 %v6588_v46, %v5641_v32  ;;  %v5520_v49 = vrot.slane %v12886_v13, 3  ;;  %v5183_v39 = vsel %vm5182_vm7, %v8911_v17, %v5179_v42 }
 0x748   :  { %8912 = vpow2.f32 %v8538_v36  ;;  %v5173_v6 = vsel %vm5170_vm15, %v5172_v3, %v5168_v43  ;;  %v7293_v16 = vmul.f32 %v6590_v58, %v5979_v21  ;;  %v5522_v25 = vrot.slane %v12886_v13, 5 }
 0x749   :  { %8914 = vrcp.f32 %v12920_v52  ;;  %v5400_v24 = vmul.f32 %v5173_v6, %v12862_v61  ;;  %v6591_v61 = vrot.slane %v12901_v31, 6  ;;  %v5643_v15 = vperm.slane %v5520_v49, 0 }
 0x74a   :  { %v12966_v36 = vadd.f32 %v12859_v41, %v4976_v14  ;;  %v5645_v5 = vperm.slane %v5522_v25, 0  ;;  %v5523_v42 = vrot.slane %v12886_v13, 6  ;;  %v5081_v14 = vpop.f32.mrf.mxu3 }
 0x74b   :  { %5416 = vst.msk [vmem:[%s13471_s7] sm:$0xff] %vm80_vm0, %v5400_v24  ;;  %v512_v9 = vpop.f32.mrf.mxu1  ;;  %v5982_v46 = vrot.slane %v5643_v15, 1  ;;  %v5983_v43 = vrot.slane %v5643_v15, 2 }
 0x74c   :  { %v8083_v23 = vld [vmem:[#allocation1] sm:$0xff]  ;;  %v6593_v10 = vrot.slane %v512_v9, 1  ;;  %v6597_v17 = vrot.slane %v512_v9, 5  ;;  %v6598_v32 = vrot.slane %v512_v9, 6  ;;  %v7296_v6 = vmul.f32 %v5981_v48, %v512_v9 }
 0x74d   :  { %8084 = vst [vmem:[#allocation1] ss:$9 sm:$0xff] %v7280_v1  ;;  %v7289_v1 = vmul.f32 %v6586_v37, %v5976_v30  ;;  %v6594_v37 = vrot.slane %v512_v9, 2  ;;  %v5201_v30 = vand.u32 2147483648, %v12920_v52 }
 0x74e   :  { %8085 = vst [vmem:[#allocation1 + $0x1] ss:$9 sm:$0xff] %v7281_v35  ;;  %v6592_v35 = vrot.slane %v12901_v31, 7  ;;  %v8913_v57 = vpop.eup %8912  ;;  %v6596_v31 = vrot.slane %v512_v9, 4  ;;  %v7297_v58 = vmul.f32 %v6593_v10, %v5643_v15 }
 0x74f   :  { %8086 = vst [vmem:[#allocation1 + $0x2] ss:$9 sm:$0xff] %v7282_v54  ;;  %v7290_v54 = vmul.f32 %v6587_v34, %v5977_v19  ;;  %v12940_v33 = vpop.eup %8914  ;;  %v6599_v34 = vrot.slane %v512_v9, 7  ;;  %v7298_v2 = vmul.f32 %v6594_v37, %v5982_v46 }
 0x750   :  { %8087 = vst [vmem:[#allocation1 + $0x3] ss:$9 sm:$0xff] %v7283_v50  ;;  %v7292_v50 = vmul.f32 %v6589_v62, %v5978_v26  ;;  %v7295_v63 = vmul.f32 %v6592_v35, %v5980_v28  ;;  %vm5196_vm14 = vweird.f32 %v12940_v33  ;;  %v5199_v62 = vand.u32 2147483647, %v12920_v52 }
 0x751   :  { %8088 = vst [vmem:[#allocation1 + $0x4] ss:$9 sm:$0xff] %v7284_v38  ;;  %v5187_v38 = vor.u32 1.1754944e-38, %v5186_v56  ;;  %vm12972_vm1 = vmor %vm5195_vm2, %vm5196_vm14  ;;  %v8539_v56 = vmul.f32 -1.442695, %v12966_v36  ;;  %v7303_v49 = vmul.f32 %v6599_v34, %v5645_v5 }
 0x752   :  { %8089 = vst [vmem:[#allocation1 + $0x5] ss:$9 sm:$0xff] %v7285_v12  ;;  %v12944_v12 = vadd.f32 1.0, %v8913_v57  ;;  %vm5200_vm4 = vcmp.eq.f32.partialorder %v5199_v62, 8.507059e+37 }
 0x753   :  { %8090 = vst [vmem:[#allocation1 + $0x6] ss:$9 sm:$0xff] %v7286_v40  ;;  %v5191_v40 = vmul.f32 %v12940_v33, %v12920_v52  ;;  %v5202_v52 = vor.u32 1.1754944e-38, %v5201_v30 }
 0x754   :  { %8091 = vst [vmem:[#allocation1 + $0x7] ss:$9 sm:$0xff] %v7287_v53  ;;  %v7294_v53 = vmul.f32 %v6591_v61, %v12926_v27  ;;  %8916 = vrcp.f32 %v12944_v12  ;;  %vm5210_vm5 = vweird.f32 %v12944_v12 }
 0x755   :  { %8331 = vst.msk [vmem:[%s13470_s8 + $0xe0] sm:$0xff] %vm80_vm0, %v8083_v23  ;;  %v5184_v23 = vand.u32 2147483647, %v12891_v8  ;;  %v5521_v8 = vrot.slane %v12886_v13, 4  ;;  %v5192_v22 = vsub.f32 1.0, %v5191_v40  ;;  %8918 = vpow2.f32 %v8539_v56  ;;  %v515_v40 = vpop.f32.mrf.mxu1 }
 0x757   :  { %vm5185_vm11 = vcmp.eq.f32.partialorder %v5184_v23, 8.507059e+37  ;;  %v5193_v18 = vmul.f32 %v12940_v33, %v5192_v22  ;;  %v5644_v44 = vperm.slane %v5521_v8, 0  ;;  %v5646_v8 = vperm.slane %v5523_v42, 0 }
 0x758   :  { %v5188_v0 = vsel %vm5185_vm11, %v5187_v38, %v5183_v39  ;;  %v6602_v22 = vrot.slane %v515_v40, 3 }
 0x759   :  { %v5401_v59 = vmul.f32 %v5188_v0, %v12871_v51  ;;  %v6595_v51 = vrot.slane %v512_v9, 3  ;;  %v5194_v55 = vadd.f32 %v12940_v33, %v5193_v18  ;;  %v5984_v60 = vrot.slane %v5644_v44, 1 }
 0x75a   :  { %v8917_v45 = vpop.eup %8916  ;;  %v5985_v19 = vrot.slane %v5644_v44, 2  ;;  %v7300_v61 = vmul.f32 %v6596_v31, %v5644_v44  ;;  %v5986_v0 = vrot.slane %v5645_v5, 1  ;;  %v5989_v15 = vrot.slane %v5646_v8, 2  ;;  %v4979_v44 = vpop.f32.mrf.mxu2 }
 0x75b   :  { %v8092_v11 = vld [vmem:[#allocation1] sm:$0xff]  ;;  %5417 = vst.msk [vmem:[%s13471_s7 + $0x8] sm:$0xff] %vm80_vm0, %v5401_v59  ;;  %v5206_v3 = vmul.f32 %v8917_v45, %v12944_v12  ;;  %v5198_v21 = vsel %vm12972_vm1, %v12940_v33, %v5194_v55  ;;  %vm5211_vm9 = vweird.f32 %v8917_v45  ;;  %v7299_v23 = vmul.f32 %v6595_v51, %v5983_v43  ;;  %v8919_v39 = vpop.eup %8918 }
 0x75c   :  { %8093 = vst [vmem:[#allocation1] ss:$9 sm:$0xff] %v7288_v4  ;;  %v5216_v4 = vand.u32 2147483648, %v12944_v12  ;;  %v5203_v35 = vsel %vm5200_vm4, %v5202_v52, %v5198_v21  ;;  %v7301_v57 = vmul.f32 %v6597_v17, %v5984_v60  ;;  %vm5212_vm8 = vmor %vm5210_vm5, %vm5211_vm9  ;;  %v5988_v59 = vrot.slane %v5646_v8, 1 }
 0x75d   :  { %8094 = vst [vmem:[#allocation1 + $0x1] ss:$9 sm:$0xff] %v7289_v1  ;;  %v5207_v24 = vsub.f32 1.0, %v5206_v3  ;;  %v5214_v1 = vand.u32 2147483647, %v12944_v12  ;;  %v5524_v12 = vrot.slane %v12886_v13, 7  ;;  %v7304_v18 = vmul.f32 %v5986_v0, %v515_v40 }
 0x75e   :  { %8095 = vst [vmem:[#allocation1 + $0x2] ss:$9 sm:$0xff] %v7290_v54  ;;  %v5217_v28 = vor.u32 1.1754944e-38, %v5216_v4  ;;  %v6603_v9 = vrot.slane %v515_v40, 4  ;;  %v6604_v31 = vrot.slane %v515_v40, 5  ;;  %v6605_v51 = vrot.slane %v515_v40, 6  ;;  %v518_v4 = vpop.f32.mrf.mxu1 }
 0x75f   :  { %8096 = vst [vmem:[#allocation1 + $0x3] ss:$9 sm:$0xff] %v7291_v7  ;;  %v7302_v7 = vmul.f32 %v6598_v32, %v5985_v19  ;;  %vm5215_vm12 = vcmp.eq.f32.partialorder %v5214_v1, 8.507059e+37  ;;  %v5647_v13 = vperm.slane %v5524_v12, 0  ;;  %v13003_v48 = vadd.f32 %v12859_v41, %v4979_v44 }
 0x760   :  { %8097 = vst [vmem:[#allocation1 + $0x4] ss:$9 sm:$0xff] %v7292_v50  ;;  %v5402_v50 = vmul.f32 %v5203_v35, %v12883_v20  ;;  %v5987_v20 = vrot.slane %v5645_v5, 2  ;;  %v6606_v55 = vrot.slane %v515_v40, 7  ;;  %v7307_v17 = vmul.f32 %v6602_v22, %v5988_v59 }
 0x761   :  { %8098 = vst [vmem:[#allocation1 + $0x5] ss:$9 sm:$0xff] %v7293_v16  ;;  %v5990_v37 = vrot.slane %v5647_v13, 1  ;;  %v5991_v46 = vrot.slane %v5647_v13, 2  ;;  %v13006_v32 = vadd.f32 %v5081_v14, %v11693_v47  ;;  %v7308_v30 = vmul.f32 %v6603_v9, %v5989_v15 }
 0x762   :  { %8099 = vst [vmem:[#allocation1 + $0x6] ss:$9 sm:$0xff] %v7294_v53  ;;  %v12991_v53 = vadd.f32 1.0, %v8919_v39  ;;  %v8540_v43 = vmul.f32 -1.442695, %v13003_v48  ;;  %v7309_v60 = vmul.f32 %v6604_v31, %v5647_v13  ;;  %v4982_v21 = vpop.f32.mrf.mxu2  ;;  %v6607_v1 = vrot.slane %v518_v4, 1 }
 0x763   :  { %8100 = vst [vmem:[#allocation1 + $0x7] ss:$9 sm:$0xff] %v7295_v63  ;;  %v6601_v63 = vrot.slane %v515_v40, 2  ;;  %v7310_v62 = vmul.f32 %v6605_v51, %v5990_v37  ;;  %v5526_v56 = vrot.slane %v13006_v32, 2  ;;  %v5527_v15 = vrot.slane %v13006_v32, 3 }
 0x764   :  { %8332 = vst.msk [vmem:[%s13470_s8 + $0xe8] sm:$0xff] %vm80_vm0, %v8092_v11  ;;  %v5208_v11 = vmul.f32 %v8917_v45, %v5207_v24  ;;  %8920 = vrcp.f32 %v12991_v53  ;;  %v5231_v27 = vand.u32 2147483648, %v12991_v53  ;;  %v5648_v24 = vperm.slane %v13006_v32, 0 }
 0x765   :  { %5418 = vst.msk [vmem:[%s13471_s7 + $0x10] sm:$0xff] %vm80_vm0, %v5402_v50  ;;  %v7306_v34 = vmul.f32 %v6601_v63, %v5646_v8  ;;  %8922 = vpow2.f32 %v8540_v43  ;;  %vm5225_vm10 = vweird.f32 %v12991_v53  ;;  %v13026_v50 = vperm.slane %v5526_v56, 0 }
 0x766   :  { %v5209_v54 = vadd.f32 %v8917_v45, %v5208_v11  ;;  %v13021_v11 = vadd.f32 %v12859_v41, %v4982_v21  ;;  %v5992_v35 = vrot.slane %v5648_v24, 1  ;;  %v7312_v12 = vmul.f32 %v5648_v24, %v518_v4 }
 0x767   :  { %v6611_v8 = vrot.slane %v518_v4, 5  ;;  %v5996_v63 = vrot.slane %v13026_v50, 1  ;;  %v5528_v14 = vrot.slane %v13006_v32, 4 }
 0x768   :  { %v5213_v33 = vsel %vm5212_vm8, %v8917_v45, %v5209_v54  ;;  %v7313_v0 = vmul.f32 %v6607_v1, %v5992_v35 }
 0x769   :  { %v5218_v38 = vsel %vm5215_vm12, %v5217_v28, %v5213_v33  ;;  %v6608_v28 = vrot.slane %v518_v4, 2 }
 0x76a   :  { %v8101_v26 = vld [vmem:[#allocation1] sm:$0xff]  ;;  %v5403_v16 = vmul.f32 %v5218_v38, %v12905_v29  ;;  %v6600_v29 = vrot.slane %v515_v40, 1  ;;  %v8921_v45 = vpop.eup %8920  ;;  %v4985_v13 = vpop.f32.mrf.mxu2 }
 0x76b   :  { %8102 = vst [vmem:[#allocation1] ss:$9 sm:$0xff] %v7296_v6  ;;  %v5221_v3 = vmul.f32 %v8921_v45, %v12991_v53  ;;  %v7311_v6 = vmul.f32 %v6606_v55, %v5991_v46  ;;  %vm5226_vm13 = vweird.f32 %v8921_v45  ;;  %v13036_v22 = vadd.f32 %v12859_v41, %v4985_v13 }
 0x76c   :  { %8103 = vst [vmem:[#allocation1 + $0x1] ss:$9 sm:$0xff] %v7297_v58  ;;  %v7305_v25 = vmul.f32 %v6600_v29, %v5987_v20  ;;  %v5525_v58 = vrot.slane %v13006_v32, 1  ;;  %vm5227_vm15 = vmor %vm5225_vm10, %vm5226_vm13  ;;  %v6612_v20 = vrot.slane %v518_v4, 6  ;;  %v5529_v46 = vrot.slane %v13006_v32, 5 }
 0x76d   :  { %8104 = vst [vmem:[#allocation1 + $0x2] ss:$9 sm:$0xff] %v7298_v2  ;;  %v5222_v19 = vsub.f32 1.0, %v5221_v3  ;;  %v8542_v31 = vmul.f32 -1.442695, %v13036_v22  ;;  %v5651_v55 = vperm.slane %v5527_v15, 0 }
 0x76e   :  { %8105 = vst [vmem:[#allocation1 + $0x3] ss:$9 sm:$0xff] %v7299_v23  ;;  %v5649_v5 = vperm.slane %v5525_v58, 0  ;;  %v5232_v23 = vor.u32 1.1754944e-38, %v5231_v27  ;;  %v7318_v44 = vmul.f32 %v6612_v20, %v13026_v50  ;;  %v5652_v3 = vperm.slane %v5528_v14, 0 }
 0x76f   :  { %8106 = vst [vmem:[#allocation1 + $0x4] ss:$9 sm:$0xff] %v7300_v61  ;;  %v5223_v2 = vmul.f32 %v8921_v45, %v5222_v19  ;;  %v8923_v61 = vpop.eup %8922  ;;  %v13068_v21 = vperm.slane %v5529_v46, 0  ;;  %v5999_v56 = vrot.slane %v5651_v55, 2 }
 0x770   :  { %8107 = vst [vmem:[#allocation1 + $0x5] ss:$9 sm:$0xff] %v7301_v57  ;;  %v8541_v57 = vmul.f32 -1.442695, %v13021_v11  ;;  %v13024_v33 = vadd.f32 1.0, %v8923_v61  ;;  %v5994_v39 = vrot.slane %v5649_v5, 1 }
 0x771   :  { %8108 = vst [vmem:[#allocation1 + $0x6] ss:$9 sm:$0xff] %v7302_v7  ;;  %v5224_v52 = vadd.f32 %v8921_v45, %v5223_v2  ;;  %v5993_v7 = vrot.slane %v5648_v24, 2  ;;  %v5997_v24 = vrot.slane %v13026_v50, 2  ;;  %v6000_v1 = vrot.slane %v5652_v3, 1 }
 0x772   :  { %8109 = vst [vmem:[#allocation1 + $0x7] ss:$9 sm:$0xff] %v7303_v49  ;;  %v6609_v49 = vrot.slane %v518_v4, 3  ;;  %8924 = vpow2.f32 %v8541_v57  ;;  %v4988_v58 = vpop.f32.mrf.mxu2  ;;  %vm5240_vm7 = vweird.f32 %v13024_v33  ;;  %v5244_v57 = vand.u32 2147483647, %v13024_v33 }
 0x773   :  { %8333 = vst.msk [vmem:[%s13470_s8 + $0xf0] sm:$0xff] %vm80_vm0, %v8101_v26  ;;  %v5229_v26 = vand.u32 2147483647, %v12991_v53  ;;  %v5228_v54 = vsel %vm5227_vm15, %v8921_v45, %v5224_v52  ;;  %8926 = vrcp.f32 %v13024_v33  ;;  %v5995_v53 = vrot.slane %v5649_v5, 2  ;;  %v13048_v45 = vpop.f32.mrf.mxu1 }
 0x774   :  { %5419 = vst.msk [vmem:[%s13471_s7 + $0x18] sm:$0xff] %vm80_vm0, %v5403_v16  ;;  %v6610_v16 = vrot.slane %v518_v4, 4  ;;  %v7314_v29 = vmul.f32 %v6608_v28, %v5993_v7  ;;  %v7315_v59 = vmul.f32 %v6609_v49, %v5649_v5  ;;  %8928 = vpow2.f32 %v8542_v31 }
 0x775   :  { %vm5230_vm3 = vcmp.eq.f32.partialorder %v5229_v26, 8.507059e+37  ;;  %v6618_v19 = vrot.slane %v13048_v45, 5  ;;  %v6619_v27 = vrot.slane %v13048_v45, 6  ;;  %v13066_v26 = vadd.f32 %v12859_v41, %v4988_v58 }
 0x776   :  { %v5233_v42 = vsel %vm5230_vm3, %v5232_v23, %v5228_v54  ;;  %v7316_v9 = vmul.f32 %v6610_v16, %v5994_v39  ;;  %v5246_v23 = vand.u32 2147483648, %v13024_v33  ;;  %v6001_v54 = vrot.slane %v5652_v3, 2 }
 0x777   :  { %v5404_v38 = vmul.f32 %v5233_v42, %v12966_v36  ;;  %v6613_v36 = vrot.slane %v518_v4, 7  ;;  %v5998_v4 = vrot.slane %v5651_v55, 1  ;;  %v8543_v61 = vmul.f32 -1.442695, %v13066_v26 }
 0x778   :  { %v7320_v7 = vmul.f32 %v5997_v24, %v13048_v45  ;;  %vm5245_vm14 = vcmp.eq.f32.partialorder %v5244_v57, 8.507059e+37  ;;  %v7325_v15 = vmul.f32 %v6618_v19, %v6000_v1 }
 0x779   :  { %v8110_v10 = vld [vmem:[#allocation1] sm:$0xff]  ;;  %5420 = vst.msk [vmem:[%s13471_s7 + $0x20] sm:$0xff] %vm80_vm0, %v5404_v38  ;;  %v7319_v51 = vmul.f32 %v6613_v36, %v5996_v63 }
 0x77a   :  { %8111 = vst [vmem:[#allocation1] ss:$9 sm:$0xff] %v7304_v18  ;;  %v8925_v18 = vpop.eup %8924  ;;  %v4991_v13 = vpop.f32.mrf.mxu2 }
 0x77b   :  { %8112 = vst [vmem:[#allocation1 + $0x1] ss:$9 sm:$0xff] %v7305_v25  ;;  %v13041_v25 = vpop.eup %8926  ;;  %v13044_v37 = vadd.f32 1.0, %v8925_v18  ;;  %v13096_v14 = vpop.f32.mrf.mxu1 }
 0x77c   :  { %8113 = vst [vmem:[#allocation1 + $0x2] ss:$9 sm:$0xff] %v7306_v34  ;;  %v5236_v34 = vmul.f32 %v13041_v25, %v13024_v33  ;;  %vm5241_vm6 = vweird.f32 %v13041_v25  ;;  %v8929_v52 = vpop.eup %8928  ;;  %v5530_v33 = vrot.slane %v13006_v32, 6  ;;  %v6621_v24 = vrot.slane %v13096_v14, 1 }
 0x77d   :  { %8114 = vst [vmem:[#allocation1 + $0x3] ss:$9 sm:$0xff] %v7307_v17  ;;  %8930 = vrcp.f32 %v13044_v37  ;;  %v6614_v17 = vrot.slane %v13048_v45, 1  ;;  %v13076_v28 = vadd.f32 1.0, %v8929_v52  ;;  %vm13079_vm11 = vmor %vm5240_vm7, %vm5241_vm6  ;;  %v5259_v20 = vand.u32 2147483647, %v13044_v37 }
 0x77e   :  { %8115 = vst [vmem:[#allocation1 + $0x4] ss:$9 sm:$0xff] %v7308_v30  ;;  %v6617_v30 = vrot.slane %v13048_v45, 4  ;;  %v5237_v43 = vsub.f32 1.0, %v5236_v34  ;;  %8932 = vpow2.f32 %v8543_v61  ;;  %vm5255_vm1 = vweird.f32 %v13044_v37 }
 0x77f   :  { %8116 = vst [vmem:[#allocation1 + $0x5] ss:$9 sm:$0xff] %v7309_v60  ;;  %v6615_v60 = vrot.slane %v13048_v45, 2  ;;  %v7321_v42 = vmul.f32 %v6614_v17, %v5651_v55  ;;  %8934 = vrcp.f32 %v13076_v28  ;;  %vm5260_vm4 = vcmp.eq.f32.partialorder %v5259_v20, 8.507059e+37 }
 0x780   :  { %8117 = vst [vmem:[#allocation1 + $0x6] ss:$9 sm:$0xff] %v7310_v62  ;;  %v6616_v62 = vrot.slane %v13048_v45, 3  ;;  %v5238_v2 = vmul.f32 %v13041_v25, %v5237_v43  ;;  %v6622_v17 = vrot.slane %v13096_v14, 2  ;;  %v5276_v52 = vand.u32 2147483648, %v13076_v28 }
 0x781   :  { %8118 = vst [vmem:[#allocation1 + $0x7] ss:$9 sm:$0xff] %v7311_v6  ;;  %v6620_v6 = vrot.slane %v13048_v45, 7  ;;  %v7322_v38 = vmul.f32 %v6615_v60, %v5998_v4  ;;  %v6623_v4 = vrot.slane %v13096_v14, 3  ;;  %vm5270_vm8 = vweird.f32 %v13076_v28 }
 0x782   :  { %8334 = vst.msk [vmem:[%s13470_s8 + $0xf8] sm:$0xff] %vm80_vm0, %v8110_v10  ;;  %v7317_v10 = vmul.f32 %v6611_v8, %v5995_v53  ;;  %v5239_v5 = vadd.f32 %v13041_v25, %v5238_v2  ;;  %v7323_v16 = vmul.f32 %v6616_v62, %v5999_v56  ;;  %v5247_v8 = vor.u32 1.1754944e-38, %v5246_v23 }
 0x783   :  { %v8931_v35 = vpop.eup %8930  ;;  %v6003_v62 = vrot.slane %v13068_v21, 2  ;;  %v6624_v56 = vrot.slane %v13096_v14, 4  ;;  %v5274_v61 = vand.u32 2147483647, %v13076_v28  ;;  %v6626_v57 = vrot.slane %v13096_v14, 6 }
 0x784   :  { %v5251_v50 = vmul.f32 %v8931_v35, %v13044_v37  ;;  %vm5256_vm2 = vweird.f32 %v8931_v35  ;;  %v8933_v18 = vpop.eup %8932 }
 0x785   :  { %vm5257_vm9 = vmor %vm5255_vm1, %vm5256_vm2  ;;  %v13108_v46 = vadd.f32 1.0, %v8933_v18  ;;  %vm5275_vm13 = vcmp.eq.f32.partialorder %v5274_v61, 8.507059e+37 }
 0x786   :  { %v5252_v53 = vsub.f32 1.0, %v5251_v50 }
 0x787   :  { %vm5285_vm15 = vweird.f32 %v13108_v46 }
 0x788   :  { %v8119_v40 = vld [vmem:[#allocation1] sm:$0xff]  ;;  %v5253_v63 = vmul.f32 %v8931_v35, %v5252_v53 }
 0x789   :  { %8120 = vst [vmem:[#allocation1] ss:$9 sm:$0xff] %v7312_v12  ;;  %v5243_v12 = vsel %vm13079_vm11, %v13041_v25, %v5239_v5  ;;  %v5084_v5 = vpop.f32.mrf.mxu3 }
 0x78a   :  { %8121 = vst [vmem:[#allocation1 + $0x1] ss:$9 sm:$0xff] %v7313_v0  ;;  %v7324_v0 = vmul.f32 %v6617_v30, %v5652_v3  ;;  %v5248_v36 = vsel %vm5245_vm14, %v5247_v8, %v5243_v12  ;;  %v5254_v31 = vadd.f32 %v8931_v35, %v5253_v63  ;;  %v6625_v3 = vrot.slane %v13096_v14, 5 }
 0x78b   :  { %8122 = vst [vmem:[#allocation1 + $0x2] ss:$9 sm:$0xff] %v7314_v29  ;;  %v5261_v29 = vand.u32 2147483648, %v13044_v37  ;;  %v5405_v34 = vmul.f32 %v5248_v36, %v13003_v48  ;;  %v6002_v48 = vrot.slane %v13068_v21, 1 }
 0x78c   :  { %8123 = vst [vmem:[#allocation1 + $0x3] ss:$9 sm:$0xff] %v7315_v59  ;;  %v13093_v59 = vadd.f32 %v12859_v41, %v4991_v13  ;;  %v5258_v55 = vsel %vm5257_vm9, %v8931_v35, %v5254_v31  ;;  %v5291_v13 = vand.u32 2147483648, %v13108_v46 }
 0x78d   :  { %8124 = vst [vmem:[#allocation1 + $0x4] ss:$9 sm:$0xff] %v7316_v9  ;;  %v7326_v9 = vmul.f32 %v6619_v27, %v6001_v54  ;;  %v5262_v45 = vor.u32 1.1754944e-38, %v5261_v29  ;;  %v4994_v27 = vpop.f32.mrf.mxu2 }
 0x78e   :  { %8125 = vst [vmem:[#allocation1 + $0x5] ss:$9 sm:$0xff] %v7317_v10  ;;  %v13098_v10 = vperm.slane %v5530_v33, 0  ;;  %v8544_v25 = vmul.f32 -1.442695, %v13093_v59  ;;  %v13137_v2 = vadd.f32 %v12859_v41, %v4994_v27  ;;  %v13164_v33 = vadd.f32 %v5084_v5, %v11693_v47 }
 0x78f   :  { %8126 = vst [vmem:[#allocation1 + $0x6] ss:$9 sm:$0xff] %v7318_v44  ;;  %v13102_v44 = vpop.eup %8934  ;;  %v5263_v30 = vsel %vm5260_vm4, %v5262_v45, %v5258_v55 }
 0x790   :  { %8127 = vst [vmem:[#allocation1 + $0x7] ss:$9 sm:$0xff] %v7319_v51  ;;  %v5266_v37 = vmul.f32 %v13102_v44, %v13076_v28  ;;  %8936 = vpow2.f32 %v8544_v25  ;;  %v5406_v43 = vmul.f32 %v5263_v30, %v13021_v11  ;;  %v6004_v19 = vrot.slane %v13098_v10, 1 }
 0x791   :  { %8335 = vst.msk [vmem:[%s13470_s8 + $0x100] sm:$0xff] %vm80_vm0, %v8119_v40  ;;  %v5531_v40 = vrot.slane %v13006_v32, 7  ;;  %v7327_v32 = vmul.f32 %v6620_v6, %v13068_v21  ;;  %8938 = vrcp.f32 %v13108_v46  ;;  %v6005_v6 = vrot.slane %v13098_v10, 2 }
 0x792   :  { %v5267_v60 = vsub.f32 1.0, %v5266_v37  ;;  %5421 = vst.msk [vmem:[%s13471_s7 + $0x28] sm:$0xff] %vm80_vm0, %v5405_v34  ;;  %vm5271_vm5 = vweird.f32 %v13102_v44  ;;  %v8545_v35 = vmul.f32 -1.442695, %v13137_v2  ;;  %v7330_v12 = vmul.f32 %v6622_v17, %v13098_v10 }
 0x793   :  { %v13104_v51 = vperm.slane %v5531_v40, 0  ;;  %5422 = vst.msk [vmem:[%s13471_s7 + $0x30] sm:$0xff] %vm80_vm0, %v5406_v43  ;;  %vm13152_vm12 = vmor %vm5270_vm8, %vm5271_vm5  ;;  %v5277_v40 = vor.u32 1.1754944e-38, %v5276_v52  ;;  %v7331_v8 = vmul.f32 %v6623_v4, %v6004_v19  ;;  %v5656_v34 = vperm.slane %v13164_v33, 0 }
 0x794   :  { %v5268_v11 = vmul.f32 %v13102_v44, %v5267_v60  ;;  %8940 = vpow2.f32 %v8545_v35 }
 0x795   :  { %v6006_v58 = vrot.slane %v13104_v51, 1  ;;  %v6007_v21 = vrot.slane %v13104_v51, 2  ;;  %v7333_v20 = vmul.f32 %v6625_v3, %v13104_v51  ;;  %v4997_v36 = vpop.f32.mrf.mxu2 }
 0x796   :  { %v8937_v1 = vpop.eup %8936  ;;  %v5269_v23 = vadd.f32 %v13102_v44, %v5268_v11 }
 0x797   :  { %v8128_v39 = vld [vmem:[#allocation1] sm:$0xff]  ;;  %v8939_v54 = vpop.eup %8938  ;;  %v13156_v50 = vadd.f32 1.0, %v8937_v1 }
 0x798   :  { %8129 = vst [vmem:[#allocation1] ss:$9 sm:$0xff] %v7320_v7  ;;  %v6627_v7 = vrot.slane %v13096_v14, 7  ;;  %v5273_v28 = vsel %vm13152_vm12, %v13102_v44, %v5269_v23  ;;  %vm5286_vm10 = vweird.f32 %v8939_v54 }
 0x799   :  { %8130 = vst [vmem:[#allocation1 + $0x1] ss:$9 sm:$0xff] %v7321_v42  ;;  %v7328_v42 = vmul.f32 %v6002_v48, %v13096_v14  ;;  %8942 = vrcp.f32 %v13156_v50  ;;  %v5278_v29 = vsel %vm5275_vm13, %v5277_v40, %v5273_v28  ;;  %v5532_v14 = vrot.slane %v13164_v33, 1  ;;  %vm5287_vm3 = vmor %vm5285_vm15, %vm5286_vm10 }
 0x79a   :  { %8131 = vst [vmem:[#allocation1 + $0x2] ss:$9 sm:$0xff] %v7322_v38  ;;  %v7335_v18 = vmul.f32 %v6627_v7, %v6007_v21  ;;  %v8941_v10 = vpop.eup %8940  ;;  %v5407_v31 = vmul.f32 %v5278_v29, %v13036_v22  ;;  %v527_v22 = vpop.f32.mrf.mxu1  ;;  %vm5300_vm11 = vweird.f32 %v13156_v50 }
 0x79b   :  { %8132 = vst [vmem:[#allocation1 + $0x3] ss:$9 sm:$0xff] %v7323_v16  ;;  %v7329_v16 = vmul.f32 %v6621_v24, %v6003_v62  ;;  %v13179_v45 = vadd.f32 1.0, %v8941_v10  ;;  %v6628_v30 = vrot.slane %v527_v22, 1  ;;  %v5657_v48 = vperm.slane %v5532_v14, 0 }
 0x79c   :  { %8133 = vst [vmem:[#allocation1 + $0x4] ss:$9 sm:$0xff] %v7324_v0  ;;  %v7332_v0 = vmul.f32 %v6624_v56, %v6005_v6  ;;  %v6629_v60 = vrot.slane %v527_v22, 2  ;;  %v6630_v62 = vrot.slane %v527_v22, 3  ;;  %v6633_v19 = vrot.slane %v527_v22, 6 }
 0x79d   :  { %8134 = vst [vmem:[#allocation1 + $0x5] ss:$9 sm:$0xff] %v7325_v15  ;;  %v5289_v15 = vand.u32 2147483647, %v13108_v46  ;;  %v6008_v6 = vrot.slane %v5656_v34, 1  ;;  %v5306_v24 = vand.u32 2147483648, %v13156_v50  ;;  %v7336_v1 = vmul.f32 %v5656_v34, %v527_v22 }
 0x79e   :  { %8135 = vst [vmem:[#allocation1 + $0x6] ss:$9 sm:$0xff] %v7326_v9  ;;  %v13171_v9 = vadd.f32 %v12859_v41, %v4997_v36  ;;  %v5292_v41 = vor.u32 1.1754944e-38, %v5291_v13  ;;  %v6631_v11 = vrot.slane %v527_v22, 4  ;;  %v6632_v21 = vrot.slane %v527_v22, 5 }
 0x79f   :  { %8136 = vst [vmem:[#allocation1 + $0x7] ss:$9 sm:$0xff] %v7327_v32  ;;  %v7334_v32 = vmul.f32 %v6626_v57, %v6006_v58  ;;  %v8943_v51 = vpop.eup %8942  ;;  %vm5290_vm6 = vcmp.eq.f32.partialorder %v5289_v15, 8.507059e+37  ;;  %v6009_v58 = vrot.slane %v5656_v34, 2  ;;  %v6010_v52 = vrot.slane %v5657_v48, 1 }
 0x7a0   :  { %8336 = vst.msk [vmem:[%s13470_s8 + $0x108] sm:$0xff] %vm80_vm0, %v8128_v39  ;;  %v5281_v39 = vmul.f32 %v8939_v54, %v13108_v46  ;;  %v8546_v44 = vmul.f32 -1.442695, %v13171_v9  ;;  %v5296_v37 = vmul.f32 %v8943_v51, %v13156_v50  ;;  %v5533_v46 = vrot.slane %v13164_v33, 2 }
 0x7a1   :  { %5423 = vst.msk [vmem:[%s13471_s7 + $0x38] sm:$0xff] %vm80_vm0, %v5407_v31  ;;  %vm5301_vm7 = vweird.f32 %v8943_v51  ;;  %v6634_v35 = vrot.slane %v527_v22, 7  ;;  %v7337_v57 = vmul.f32 %v6628_v30, %v6008_v6  ;;  %v5319_v13 = vand.u32 2147483647, %v13179_v45 }
 0x7a2   :  { %v5282_v53 = vsub.f32 1.0, %v5281_v39  ;;  %8944 = vpow2.f32 %v8546_v44  ;;  %v5297_v43 = vsub.f32 1.0, %v5296_v37  ;;  %v13198_v4 = vperm.slane %v5533_v46, 0  ;;  %vm5302_vm14 = vmor %vm5300_vm11, %vm5301_vm7 }
 0x7a3   :  { %8946 = vrcp.f32 %v13179_v45  ;;  %v7339_v39 = vmul.f32 %v6630_v62, %v5657_v48  ;;  %v5535_v15 = vrot.slane %v13164_v33, 4  ;;  %vm5315_vm9 = vweird.f32 %v13179_v45 }
 0x7a4   :  { %v5283_v63 = vmul.f32 %v8939_v54, %v5282_v53  ;;  %v5298_v27 = vmul.f32 %v8943_v51, %v5297_v43  ;;  %v6012_v28 = vrot.slane %v13198_v4, 1  ;;  %vm5320_vm5 = vcmp.eq.f32.partialorder %v5319_v13, 8.507059e+37 }
 0x7a5   :  { %v5536_v44 = vrot.slane %v13164_v33, 5 }
 0x7a6   :  { %v8137_v38 = vld [vmem:[#allocation1] sm:$0xff]  ;;  %v5284_v25 = vadd.f32 %v8939_v54, %v5283_v63  ;;  %v5299_v5 = vadd.f32 %v8943_v51, %v5298_v27  ;;  %v7343_v36 = vmul.f32 %v6634_v35, %v6012_v28  ;;  %v5538_v28 = vrot.slane %v13164_v33, 7 }
 0x7a7   :  { %8138 = vst [vmem:[#allocation1] ss:$9 sm:$0xff] %v7328_v42  ;;  %v7338_v42 = vmul.f32 %v6629_v60, %v6009_v58 }
 0x7a8   :  { %8139 = vst [vmem:[#allocation1 + $0x1] ss:$9 sm:$0xff] %v7329_v16  ;;  %v5288_v55 = vsel %vm5287_vm3, %v8939_v54, %v5284_v25  ;;  %v8945_v56 = vpop.eup %8944  ;;  %v6011_v54 = vrot.slane %v5657_v48, 2  ;;  %v5303_v49 = vsel %vm5302_vm14, %v8943_v51, %v5299_v5  ;;  %v530_v25 = vpop.f32.mrf.mxu1  ;;  %v6013_v51 = vrot.slane %v13198_v4, 2 }
 0x7a9   :  { %8140 = vst [vmem:[#allocation1 + $0x2] ss:$9 sm:$0xff] %v7330_v12  ;;  %v5293_v17 = vsel %vm5290_vm6, %v5292_v41, %v5288_v55  ;;  %v8947_v23 = vpop.eup %8946  ;;  %v13203_v7 = vadd.f32 1.0, %v8945_v56  ;;  %v6635_v41 = vrot.slane %v530_v25, 1  ;;  %v6636_v22 = vrot.slane %v530_v25, 2 }
 0x7aa   :  { %8141 = vst [vmem:[#allocation1 + $0x3] ss:$9 sm:$0xff] %v7331_v8  ;;  %v5408_v3 = vmul.f32 %v5293_v17, %v13066_v26  ;;  %v5304_v26 = vand.u32 2147483647, %v13156_v50  ;;  %v5311_v16 = vmul.f32 %v8947_v23, %v13179_v45  ;;  %v7340_v50 = vmul.f32 %v6631_v11, %v6010_v52 }
 0x7ab   :  { %8142 = vst [vmem:[#allocation1 + $0x4] ss:$9 sm:$0xff] %v7332_v0  ;;  %8948 = vrcp.f32 %v13203_v7  ;;  %v5534_v8 = vrot.slane %v13164_v33, 3  ;;  %v7341_v53 = vmul.f32 %v6632_v21, %v6011_v54  ;;  %v5321_v0 = vand.u32 2147483648, %v13179_v45  ;;  %v13238_v54 = vld [vmem:[%s13469_s6] ss:$0 sm:$0xff] }
 0x7ac   :  { %8143 = vst [vmem:[#allocation1 + $0x5] ss:$9 sm:$0xff] %v7333_v20  ;;  %vm5305_vm2 = vcmp.eq.f32.partialorder %v5304_v26, 8.507059e+37  ;;  %v5312_v40 = vsub.f32 1.0, %v5311_v16  ;;  %v7342_v20 = vmul.f32 %v6633_v19, %v13198_v4  ;;  %vm5316_vm1 = vweird.f32 %v8947_v23 }
 0x7ad   :  { %8144 = vst [vmem:[#allocation1 + $0x6] ss:$9 sm:$0xff] %v7334_v32  ;;  %v5659_v14 = vperm.slane %v5534_v8, 0  ;;  %vm5317_vm4 = vmor %vm5315_vm9, %vm5316_vm1  ;;  %v5322_v10 = vor.u32 1.1754944e-38, %v5321_v0  ;;  %v5660_v45 = vperm.slane %v5535_v15, 0  ;;  %v6637_v46 = vrot.slane %v530_v25, 3 }
 0x7ae   :  { %8145 = vst [vmem:[#allocation1 + $0x7] ss:$9 sm:$0xff] %v7335_v18  ;;  %v5313_v29 = vmul.f32 %v8947_v23, %v5312_v40  ;;  %v5336_v30 = vand.u32 2147483648, %v13203_v7  ;;  %v5334_v43 = vand.u32 2147483647, %v13203_v7  ;;  %v6638_v60 = vrot.slane %v530_v25, 4 }
 0x7af   :  { %8337 = vst.msk [vmem:[%s13470_s8 + $0x110] sm:$0xff] %vm80_vm0, %v8137_v38  ;;  %v5307_v38 = vor.u32 1.1754944e-38, %v5306_v24  ;;  %v6014_v17 = vrot.slane %v5659_v14, 1  ;;  %v6015_v48 = vrot.slane %v5659_v14, 2  ;;  %v6639_v62 = vrot.slane %v530_v25, 5 }
 0x7b0   :  { %5424 = vst.msk [vmem:[%s13471_s7 + $0x40] sm:$0xff] %vm80_vm0, %v5408_v3  ;;  %v5314_v32 = vadd.f32 %v8947_v23, %v5313_v29  ;;  %v6641_v19 = vrot.slane %v530_v25, 7  ;;  %v6016_v6 = vrot.slane %v5660_v45, 1  ;;  %v7345_v58 = vmul.f32 %v6635_v41, %v5659_v14 }
 0x7b1   :  { %v5308_v12 = vsel %vm5305_vm2, %v5307_v38, %v5303_v49  ;;  %v8949_v18 = vpop.eup %8948  ;;  %vm5330_vm12 = vweird.f32 %v13203_v7  ;;  %v6640_v11 = vrot.slane %v530_v25, 6  ;;  %v6017_v21 = vrot.slane %v5660_v45, 2 }
 0x7b2   :  { %v5409_v63 = vmul.f32 %v5308_v12, %v13093_v59  ;;  %v5318_v31 = vsel %vm5317_vm4, %v8947_v23, %v5314_v32  ;;  %v5326_v59 = vmul.f32 %v8949_v18, %v13203_v7  ;;  %vm5331_vm8 = vweird.f32 %v8949_v18 }
 0x7b3   :  { %v5323_v34 = vsel %vm5320_vm5, %v5322_v10, %v5318_v31  ;;  %v7346_v4 = vmul.f32 %v6636_v22, %v6014_v17  ;;  %vm5332_vm13 = vmor %vm5330_vm12, %vm5331_vm8  ;;  %v5337_v26 = vor.u32 1.1754944e-38, %v5336_v30  ;;  %v5661_v56 = vperm.slane %v5536_v44, 0 }
 0x7b4   :  { %5425 = vst.msk [vmem:[%s13471_s7 + $0x48] sm:$0xff] %vm80_vm0, %v5409_v63  ;;  %v5410_v55 = vmul.f32 %v5323_v34, %v13137_v2  ;;  %v5327_v37 = vsub.f32 1.0, %v5326_v59  ;;  %v7344_v2 = vmul.f32 %v6013_v51, %v530_v25  ;;  %v7347_v52 = vmul.f32 %v6637_v46, %v6015_v48 }
 0x7b5   :  { %v8146_v61 = vld [vmem:[#allocation1] sm:$0xff]  ;;  %vm5335_vm10 = vcmp.eq.f32.partialorder %v5334_v43, 8.507059e+37  ;;  %v7348_v5 = vmul.f32 %v6638_v60, %v5660_v45  ;;  %v7349_v35 = vmul.f32 %v6639_v62, %v6016_v6  ;;  %v7350_v7 = vmul.f32 %v6640_v11, %v6017_v21 }
 0x7b6   :  { %8147 = vst [vmem:[#allocation1] ss:$9 sm:$0xff] %v7336_v1  ;;  %v5328_v3 = vmul.f32 %v8949_v18, %v5327_v37  ;;  %v5537_v49 = vrot.slane %v13164_v33, 6  ;;  %v5663_v40 = vperm.slane %v5538_v28, 0  ;;  %v6019_v8 = vrot.slane %v5661_v56, 2 }
 0x7b7   :  { %8148 = vst [vmem:[#allocation1 + $0x1] ss:$9 sm:$0xff] %v7337_v57 }
 0x7b8   :  { %8149 = vst [vmem:[#allocation1 + $0x2] ss:$9 sm:$0xff] %v7338_v42  ;;  %v5329_v24 = vadd.f32 %v8949_v18, %v5328_v3  ;;  %v7351_v42 = vmul.f32 %v6641_v19, %v5661_v56  ;;  %v6022_v31 = vrot.slane %v5663_v40, 1  ;;  %v6023_v41 = vrot.slane %v5663_v40, 2 }
 0x7b9   :  { %8150 = vst [vmem:[#allocation1 + $0x3] ss:$9 sm:$0xff] %v7339_v39  ;;  %v533_v39 = vpop.f32.mrf.mxu1 }
 0x7ba   :  { %8151 = vst [vmem:[#allocation1 + $0x4] ss:$9 sm:$0xff] %v7340_v50  ;;  %v5333_v1 = vsel %vm5332_vm13, %v8949_v18, %v5329_v24  ;;  %v5662_v50 = vperm.slane %v5537_v49, 0  ;;  %v6643_v0 = vrot.slane %v533_v39, 2  ;;  %v6644_v13 = vrot.slane %v533_v39, 3 }
 0x7bb   :  { %8152 = vst [vmem:[#allocation1 + $0x5] ss:$9 sm:$0xff] %v7341_v53  ;;  %v5338_v23 = vsel %vm5335_vm10, %v5337_v26, %v5333_v1  ;;  %v6642_v53 = vrot.slane %v533_v39, 1  ;;  %v6645_v18 = vrot.slane %v533_v39, 4  ;;  %v6646_v59 = vrot.slane %v533_v39, 5 }
 0x7bc   :  { %8153 = vst [vmem:[#allocation1 + $0x6] ss:$9 sm:$0xff] %v7342_v20  ;;  %v5411_v38 = vmul.f32 %v5338_v23, %v13171_v9  ;;  %v6018_v9 = vrot.slane %v5661_v56, 1  ;;  %v6020_v29 = vrot.slane %v5662_v50, 1  ;;  %v6021_v32 = vrot.slane %v5662_v50, 2 }
 0x7bd   :  { %8154 = vst [vmem:[#allocation1 + $0x7] ss:$9 sm:$0xff] %v7343_v36  ;;  %v5087_v36 = vpop.f32.mrf.mxu3  ;;  %v7353_v25 = vmul.f32 %v6642_v53, %v6019_v8  ;;  %v6647_v44 = vrot.slane %v533_v39, 6  ;;  %v7354_v51 = vmul.f32 %v6643_v0, %v5662_v50  ;;  %v6648_v45 = vrot.slane %v533_v39, 7 }
 0x7be   :  { %8338 = vst.msk [vmem:[%s13470_s8 + $0x118] sm:$0xff] %vm80_vm0, %v8146_v61  ;;  %v5000_v61 = vpop.f32.mrf.mxu2  ;;  %v7352_v14 = vmul.f32 %v6018_v9, %v533_v39  ;;  %v13266_v34 = vadd.f32 %v5087_v36, %v11693_v47  ;;  %v7356_v37 = vmul.f32 %v6645_v18, %v6021_v32  ;;  %v7357_v46 = vmul.f32 %v6646_v59, %v5663_v40 }
 0x7bf   :  { %5426 = vst.msk [vmem:[%s13471_s7 + $0x50] sm:$0xff] %vm80_vm0, %v5410_v55  ;;  %v13241_v57 = vadd.f32 %v13238_v54, %v5000_v61  ;;  %v7355_v55 = vmul.f32 %v6644_v13, %v6020_v29  ;;  %v7358_v30 = vmul.f32 %v6647_v44, %v6022_v31  ;;  %v7359_v43 = vmul.f32 %v6648_v45, %v6023_v41 }
 0x7c0   :  { %5427 = vst.msk [vmem:[%s13471_s7 + $0x58] sm:$0xff] %vm80_vm0, %v5411_v38  ;;  %v5539_v48 = vrot.slane %v13266_v34, 1  ;;  %v5540_v60 = vrot.slane %v13266_v34, 2  ;;  %v5541_v18 = vrot.slane %v13266_v34, 3 }
 0x7c1   :  { %v8547_v16 = vmul.f32 -1.442695, %v13241_v57  ;;  %v536_v6 = vpop.f32.mrf.mxu1 }
 0x7c2   :  { %v5665_v24 = vperm.slane %v5539_v48, 0  ;;  %v13280_v11 = vperm.slane %v5540_v60, 0  ;;  %v6650_v26 = vrot.slane %v536_v6, 2  ;;  %v6651_v49 = vrot.slane %v536_v6, 3 }
 0x7c3   :  { %8950 = vpow2.f32 %v8547_v16  ;;  %v6652_v39 = vrot.slane %v536_v6, 4  ;;  %v6653_v50 = vrot.slane %v536_v6, 5  ;;  %v6654_v29 = vrot.slane %v536_v6, 6 }
 0x7c4   :  { %v8155_v27 = vld [vmem:[#allocation1] sm:$0xff]  ;;  %v6026_v23 = vrot.slane %v5665_v24, 1  ;;  %v6027_v61 = vrot.slane %v5665_v24, 2  ;;  %v6655_v36 = vrot.slane %v536_v6, 7 }
 0x7c5   :  { %8156 = vst [vmem:[#allocation1] ss:$9 sm:$0xff] %v7344_v2  ;;  %v7366_v44 = vmul.f32 %v6654_v29, %v13280_v11 }
 0x7c6   :  { %8157 = vst [vmem:[#allocation1 + $0x1] ss:$9 sm:$0xff] %v7345_v58  ;;  %v5003_v12 = vpop.f32.mrf.mxu2  ;;  %v5664_v58 = vperm.slane %v13266_v34, 0  ;;  %v7365_v31 = vmul.f32 %v6653_v50, %v6027_v61 }
 0x7c7   :  { %8158 = vst [vmem:[#allocation1 + $0x2] ss:$9 sm:$0xff] %v7346_v4  ;;  %v13256_v33 = vadd.f32 %v13238_v54, %v5003_v12  ;;  %v6649_v4 = vrot.slane %v536_v6, 1 }
 0x7c8   :  { %8159 = vst [vmem:[#allocation1 + $0x3] ss:$9 sm:$0xff] %v7347_v52  ;;  %v6024_v56 = vrot.slane %v5664_v58, 1  ;;  %v7360_v9 = vmul.f32 %v5664_v58, %v536_v6 }
 0x7c9   :  { %8160 = vst [vmem:[#allocation1 + $0x4] ss:$9 sm:$0xff] %v7348_v5  ;;  %v8951_v20 = vpop.eup %8950  ;;  %v8548_v63 = vmul.f32 -1.442695, %v13256_v33  ;;  %v6025_v5 = vrot.slane %v5664_v58, 2  ;;  %v13612_v58 = vld [vmem:[#allocation2_spill] sm:$0xff] }
 0x7ca   :  { %8161 = vst [vmem:[#allocation1 + $0x5] ss:$9 sm:$0xff] %v7349_v35  ;;  %v13259_v10 = vadd.f32 1.0, %v8951_v20  ;;  %v7361_v8 = vmul.f32 %v6649_v4, %v6024_v56  ;;  %v6658_v56 = vrot.slane %v13612_v58, 3 }
 0x7cb   :  { %8162 = vst [vmem:[#allocation1 + $0x6] ss:$9 sm:$0xff] %v7350_v7  ;;  %8952 = vpow2.f32 %v8548_v63  ;;  %v7362_v13 = vmul.f32 %v6650_v26, %v6025_v5  ;;  %v7363_v63 = vmul.f32 %v6651_v49, %v5665_v24  ;;  %v5543_v24 = vrot.slane %v13266_v34, 5 }
 0x7cc   :  { %8163 = vst [vmem:[#allocation1 + $0x7] ss:$9 sm:$0xff] %v7351_v42  ;;  %8954 = vrcp.f32 %v13259_v10  ;;  %v5351_v1 = vand.u32 2147483648, %v13259_v10  ;;  %v5349_v35 = vand.u32 2147483647, %v13259_v10  ;;  %v6028_v42 = vrot.slane %v13280_v11, 1 }
 0x7cd   :  { %8339 = vst.msk [vmem:[%s13470_s8 + $0x120] sm:$0xff] %vm80_vm0, %v8155_v27  ;;  %vm5345_vm3 = vweird.f32 %v13259_v10  ;;  %v6660_v49 = vrot.slane %v13612_v58, 5 }
 0x7ce   :  { %v5006_v22 = vpop.f32.mrf.mxu2  ;;  %v5352_v0 = vor.u32 1.1754944e-38, %v5351_v1  ;;  %vm5350_vm7 = vcmp.eq.f32.partialorder %v5349_v35, 8.507059e+37  ;;  %v7367_v41 = vmul.f32 %v6655_v36, %v6028_v42 }
 0x7cf   :  { %v13270_v17 = vadd.f32 %v13238_v54, %v5006_v22 }
 0x7d1   :  { %v8953_v3 = vpop.eup %8952  ;;  %v8549_v62 = vmul.f32 -1.442695, %v13270_v17 }
 0x7d2   :  { %v8955_v19 = vpop.eup %8954  ;;  %v13275_v2 = vadd.f32 1.0, %v8953_v3  ;;  %v6029_v3 = vrot.slane %v13280_v11, 2 }
 0x7d3   :  { %v8164_v15 = vld [vmem:[#allocation1] sm:$0xff]  ;;  %v5341_v27 = vmul.f32 %v8955_v19, %v13259_v10  ;;  %8956 = vpow2.f32 %v8549_v62  ;;  %vm5346_vm15 = vweird.f32 %v8955_v19 }
 0x7d4   :  { %8340 = vst.msk [vmem:[%s13470_s8 + $0x128] sm:$0xff] %vm80_vm0, %v8164_v15  ;;  %8958 = vrcp.f32 %v13275_v2  ;;  %vm13287_vm6 = vmor %vm5345_vm3, %vm5346_vm15  ;;  %v5366_v10 = vand.u32 2147483648, %v13275_v2  ;;  %vm5360_vm14 = vweird.f32 %v13275_v2  ;;  %v7368_v4 = vmul.f32 %v6029_v3, %v13612_v58 }
 0x7d5   :  { %8165 = vst [vmem:[#allocation1] ss:$9 sm:$0xff] %v7352_v14  ;;  %v5342_v21 = vsub.f32 1.0, %v5341_v27  ;;  %v7364_v14 = vmul.f32 %v6652_v39, %v6026_v23  ;;  %v6656_v27 = vrot.slane %v13612_v58, 1 }
 0x7d6   :  { %8166 = vst [vmem:[#allocation1 + $0x1] ss:$9 sm:$0xff] %v7353_v25  ;;  %v5364_v25 = vand.u32 2147483647, %v13275_v2  ;;  %v5367_v22 = vor.u32 1.1754944e-38, %v5366_v10 }
 0x7d7   :  { %8167 = vst [vmem:[#allocation1 + $0x2] ss:$9 sm:$0xff] %v7354_v51  ;;  %v5343_v52 = vmul.f32 %v8955_v19, %v5342_v21 }
 0x7d8   :  { %8168 = vst [vmem:[#allocation1 + $0x3] ss:$9 sm:$0xff] %v7355_v55  ;;  %vm5365_vm1 = vcmp.eq.f32.partialorder %v5364_v25, 8.507059e+37  ;;  %v5090_v25 = vpop.f32.mrf.mxu3 }
 0x7d9   :  { %8169 = vst [vmem:[#allocation1 + $0x4] ss:$9 sm:$0xff] %v7356_v37  ;;  %v8957_v7 = vpop.eup %8956  ;;  %v5344_v38 = vadd.f32 %v8955_v19, %v5343_v52  ;;  %v5542_v37 = vrot.slane %v13266_v34, 4  ;;  %v6659_v52 = vrot.slane %v13612_v58, 4 }
 0x7da   :  { %8170 = vst [vmem:[#allocation1 + $0x5] ss:$9 sm:$0xff] %v7357_v46  ;;  %v8959_v16 = vpop.eup %8958  ;;  %v13291_v40 = vadd.f32 1.0, %v8957_v7  ;;  %v5667_v46 = vperm.slane %v5541_v18, 0 }
 0x7db   :  { %8171 = vst [vmem:[#allocation1 + $0x6] ss:$9 sm:$0xff] %v7358_v30  ;;  %v5348_v53 = vsel %vm13287_vm6, %v8955_v19, %v5344_v38  ;;  %v5356_v20 = vmul.f32 %v8959_v16, %v13275_v2  ;;  %vm5361_vm11 = vweird.f32 %v8959_v16  ;;  %v5668_v62 = vperm.slane %v5542_v37, 0 }
 0x7dc   :  { %8172 = vst [vmem:[#allocation1 + $0x7] ss:$9 sm:$0xff] %v7359_v43  ;;  %8960 = vrcp.f32 %v13291_v40  ;;  %v5353_v15 = vsel %vm5350_vm7, %v5352_v0, %v5348_v53  ;;  %vm5362_vm2 = vmor %vm5360_vm14, %vm5361_vm11  ;;  %v6030_v19 = vrot.slane %v5667_v46, 1  ;;  %v5381_v6 = vand.u32 2147483648, %v13291_v40 }
 0x7dd   :  { %v5357_v32 = vsub.f32 1.0, %v5356_v20  ;;  %v5412_v51 = vmul.f32 %v5353_v15, %v13241_v57  ;;  %v6031_v21 = vrot.slane %v5667_v46, 2  ;;  %v5379_v11 = vand.u32 2147483647, %v13291_v40  ;;  %v13613_v15 = vld [vmem:[#allocation3_spill] sm:$0xff] }
 0x7de   :  { %vm5375_vm4 = vweird.f32 %v13291_v40  ;;  %v6032_v1 = vrot.slane %v5668_v62, 1  ;;  %v7369_v5 = vmul.f32 %v6656_v27, %v5667_v46  ;;  %v6033_v61 = vrot.slane %v5668_v62, 2 }
 0x7df   :  { %v5358_v59 = vmul.f32 %v8959_v16, %v5357_v32  ;;  %5428 = vst.msk [vmem:[%s13471_s7 + $0x60] sm:$0xff] %vm80_vm0, %v5412_v51  ;;  %v5382_v42 = vor.u32 1.1754944e-38, %v5381_v6  ;;  %v5669_v38 = vperm.slane %v5543_v24, 0  ;;  %vm5380_vm8 = vcmp.eq.f32.partialorder %v5379_v11, 8.507059e+37  ;;  %v13614_v11 = vld [vmem:[#allocation4_spill] sm:$0xff] }
 0x7e0   :  { %v7372_v39 = vmul.f32 %v6659_v52, %v5668_v62  ;;  %v7373_v12 = vmul.f32 %v6660_v49, %v6032_v1  ;;  %v5545_v20 = vrot.slane %v13266_v34, 7  ;;  %v6665_v10 = vrot.slane %v13613_v15, 3 }
 0x7e1   :  { %v5359_v45 = vadd.f32 %v8959_v16, %v5358_v59  ;;  %v6035_v36 = vrot.slane %v5669_v38, 2  ;;  %v6674_v49 = vrot.slane %v13614_v11, 5 }
 0x7e2   :  { %v8961_v55 = vpop.eup %8960 }
 0x7e3   :  { %v8173_v28 = vld [vmem:[#allocation1] sm:$0xff]  ;;  %v5363_v30 = vsel %vm5362_vm2, %v8959_v16, %v5359_v45  ;;  %v5371_v48 = vmul.f32 %v8961_v55, %v13291_v40  ;;  %vm5376_vm9 = vweird.f32 %v8961_v55  ;;  %v7371_v16 = vmul.f32 %v6658_v56, %v6031_v21 }
 0x7e4   :  { %8341 = vst.msk [vmem:[%s13470_s8 + $0x130] sm:$0xff] %vm80_vm0, %v8173_v28  ;;  %v5368_v57 = vsel %vm5365_vm1, %v5367_v22, %v5363_v30  ;;  %vm5377_vm5 = vmor %vm5375_vm4, %vm5376_vm9  ;;  %v6661_v28 = vrot.slane %v13612_v58, 6  ;;  %v5544_v40 = vrot.slane %v13266_v34, 6  ;;  %v6664_v34 = vrot.slane %v13613_v15, 2 }
 0x7e5   :  { %8174 = vst [vmem:[#allocation1] ss:$9 sm:$0xff] %v7360_v9  ;;  %v5413_v43 = vmul.f32 %v5368_v57, %v13256_v33  ;;  %v5372_v60 = vsub.f32 1.0, %v5371_v48  ;;  %v6657_v33 = vrot.slane %v13612_v58, 2  ;;  %v6662_v9 = vrot.slane %v13612_v58, 7  ;;  %v5009_v48 = vpop.f32.mrf.mxu2 }
 0x7e6   :  { %8175 = vst [vmem:[#allocation1 + $0x1] ss:$9 sm:$0xff] %v7361_v8  ;;  %v7374_v8 = vmul.f32 %v6661_v28, %v6033_v61  ;;  %v5670_v29 = vperm.slane %v5544_v40, 0  ;;  %v6667_v45 = vrot.slane %v13613_v15, 5  ;;  %v6668_v22 = vrot.slane %v13613_v15, 6 }
 0x7e7   :  { %8176 = vst [vmem:[#allocation1 + $0x2] ss:$9 sm:$0xff] %v7362_v13  ;;  %v5373_v2 = vmul.f32 %v8961_v55, %v5372_v60  ;;  %v7370_v35 = vmul.f32 %v6657_v33, %v6030_v19  ;;  %v7375_v53 = vmul.f32 %v6662_v9, %v5669_v38  ;;  %v6034_v13 = vrot.slane %v5669_v38, 1 }
 0x7e8   :  { %8177 = vst [vmem:[#allocation1 + $0x3] ss:$9 sm:$0xff] %v7363_v63  ;;  %v5671_v63 = vperm.slane %v5545_v20, 0  ;;  %v6036_v32 = vrot.slane %v5670_v29, 1  ;;  %v6037_v18 = vrot.slane %v5670_v29, 2  ;;  %v13351_v30 = vadd.f32 %v5090_v25, %v11693_v47 }
 0x7e9   :  { %8178 = vst [vmem:[#allocation1 + $0x4] ss:$9 sm:$0xff] %v7364_v14  ;;  %v5374_v26 = vadd.f32 %v8961_v55, %v5373_v2  ;;  %v7376_v14 = vmul.f32 %v6034_v13, %v13613_v15  ;;  %v6669_v57 = vrot.slane %v13613_v15, 7  ;;  %v6670_v33 = vrot.slane %v13614_v11, 1 }
 0x7ea   :  { %8179 = vst [vmem:[#allocation1 + $0x5] ss:$9 sm:$0xff] %v7365_v31  ;;  %v6038_v51 = vrot.slane %v5671_v63, 1  ;;  %v7379_v37 = vmul.f32 %v6665_v10, %v6036_v32  ;;  %v7381_v3 = vmul.f32 %v6667_v45, %v5671_v63  ;;  %v5546_v2 = vrot.slane %v13351_v30, 1 }
 0x7eb   :  { %8180 = vst [vmem:[#allocation1 + $0x6] ss:$9 sm:$0xff] %v7366_v44  ;;  %v5378_v7 = vsel %vm5377_vm5, %v8961_v55, %v5374_v26  ;;  %v6666_v44 = vrot.slane %v13613_v15, 4  ;;  %v6039_v55 = vrot.slane %v5671_v63, 2  ;;  %v5672_v6 = vperm.slane %v13351_v30, 0 }
 0x7ec   :  { %8181 = vst [vmem:[#allocation1 + $0x7] ss:$9 sm:$0xff] %v7367_v41  ;;  %v5383_v50 = vsel %vm5380_vm8, %v5382_v42, %v5378_v7  ;;  %v7378_v41 = vmul.f32 %v6664_v34, %v5670_v29  ;;  %v7382_v60 = vmul.f32 %v6668_v22, %v6038_v51  ;;  %v5673_v58 = vperm.slane %v5546_v2, 0  ;;  %v13615_v34 = vld [vmem:[#allocation5_spill] sm:$0xff] }
 0x7ed   :  { %5429 = vst.msk [vmem:[%s13471_s7 + $0x68] sm:$0xff] %vm80_vm0, %v5413_v43  ;;  %v5414_v0 = vmul.f32 %v5383_v50, %v13270_v17  ;;  %v6663_v17 = vrot.slane %v13613_v15, 1  ;;  %v7380_v46 = vmul.f32 %v6666_v44, %v6037_v18  ;;  %v13355_v43 = vadd.f32 %v13238_v54, %v5009_v48 }
 0x7ee   :  { %v7383_v62 = vmul.f32 %v6669_v57, %v6039_v55  ;;  %v5547_v54 = vrot.slane %v13351_v30, 2  ;;  %v6040_v27 = vrot.slane %v5672_v6, 1  ;;  %v6041_v24 = vrot.slane %v5672_v6, 2 }
 0x7ef   :  { %5430 = vst.msk [vmem:[%s13471_s7 + $0x70] sm:$0xff] %vm80_vm0, %v5414_v0  ;;  %v7377_v31 = vmul.f32 %v6663_v17, %v6035_v36  ;;  %v8550_v19 = vmul.f32 -1.442695, %v13355_v43  ;;  %v6671_v26 = vrot.slane %v13614_v11, 2  ;;  %v6042_v52 = vrot.slane %v5673_v58, 1 }
 0x7f0   :  { %v7384_v1 = vmul.f32 %v5672_v6, %v13614_v11  ;;  %v6043_v61 = vrot.slane %v5673_v58, 2  ;;  %v6673_v7 = vrot.slane %v13614_v11, 4  ;;  %v6675_v28 = vrot.slane %v13614_v11, 6 }
 0x7f1   :  { %8962 = vpow2.f32 %v8550_v19  ;;  %v7386_v42 = vmul.f32 %v6671_v26, %v6041_v24  ;;  %v6676_v50 = vrot.slane %v13614_v11, 7  ;;  %v5548_v9 = vrot.slane %v13351_v30, 3 }
 0x7f2   :  { %v5549_v0 = vrot.slane %v13351_v30, 4  ;;  %v6677_v18 = vrot.slane %v13615_v34, 1  ;;  %v6679_v51 = vrot.slane %v13615_v34, 3  ;;  %v6682_v19 = vrot.slane %v13615_v34, 6 }
 0x7f3   :  { %v8182_v23 = vld [vmem:[#allocation1] sm:$0xff]  ;;  %v5675_v20 = vperm.slane %v5548_v9, 0 }
 0x7f4   :  { %8183 = vst [vmem:[#allocation1] ss:$9 sm:$0xff] %v7368_v4  ;;  %v5674_v4 = vperm.slane %v5547_v54, 0  ;;  %v5676_v63 = vperm.slane %v5549_v0, 0  ;;  %v6683_v54 = vrot.slane %v13615_v34, 7 }
 0x7f5   :  { %8184 = vst [vmem:[#allocation1 + $0x1] ss:$9 sm:$0xff] %v7369_v5  ;;  %v6046_v15 = vrot.slane %v5675_v20, 1  ;;  %v6047_v10 = vrot.slane %v5675_v20, 2  ;;  %v7393_v55 = vmul.f32 %v6677_v18, %v5675_v20 }
 0x7f6   :  { %8185 = vst [vmem:[#allocation1 + $0x2] ss:$9 sm:$0xff] %v7370_v35  ;;  %v7385_v35 = vmul.f32 %v6670_v33, %v6040_v27  ;;  %v6044_v38 = vrot.slane %v5674_v4, 1  ;;  %v7390_v40 = vmul.f32 %v6675_v28, %v5674_v4  ;;  %v6045_v13 = vrot.slane %v5674_v4, 2 }
 0x7f7   :  { %8186 = vst [vmem:[#allocation1 + $0x3] ss:$9 sm:$0xff] %v7371_v16  ;;  %v8963_v21 = vpop.eup %8962  ;;  %v6048_v45 = vrot.slane %v5676_v63, 1  ;;  %v6049_v22 = vrot.slane %v5676_v63, 2  ;;  %v5551_v27 = vrot.slane %v13351_v30, 6  ;;  %v5552_v33 = vrot.slane %v13351_v30, 7 }
 0x7f8   :  { %8187 = vst [vmem:[#allocation1 + $0x4] ss:$9 sm:$0xff] %v7372_v39  ;;  %v5159_v5 = vadd.f32 1.0, %v8963_v21  ;;  %v7388_v39 = vmul.f32 %v6673_v7, %v6042_v52  ;;  %v7392_v25 = vmul.f32 %v6045_v13, %v13615_v34 }
 0x7f9   :  { %8188 = vst [vmem:[#allocation1 + $0x5] ss:$9 sm:$0xff] %v7373_v12  ;;  %v7389_v12 = vmul.f32 %v6674_v49, %v6043_v61  ;;  %v7398_v24 = vmul.f32 %v6682_v19, %v6049_v22  ;;  %v5678_v4 = vperm.slane %v5551_v27, 0  ;;  %v5679_v52 = vperm.slane %v5552_v33, 0  ;;  %v5093_v49 = vpop.f32.mrf.mxu3 }
 0x7fa   :  { %8189 = vst [vmem:[#allocation1 + $0x6] ss:$9 sm:$0xff] %v7374_v8  ;;  %8964 = vrcp.f32 %v5159_v5  ;;  %v7391_v8 = vmul.f32 %v6676_v50, %v6044_v38  ;;  %v5396_v32 = vand.u32 2147483648, %v5159_v5  ;;  %vm5390_vm13 = vweird.f32 %v5159_v5 }
 0x7fb   :  { %8190 = vst [vmem:[#allocation1 + $0x7] ss:$9 sm:$0xff] %v7375_v53  ;;  %v6055_v50 = vrot.slane %v5679_v52, 2 }
 0x7fc   :  { %8342 = vst.msk [vmem:[%s13470_s8 + $0x138] sm:$0xff] %vm80_vm0, %v8182_v23  ;;  %v6672_v23 = vrot.slane %v13614_v11, 3  ;;  %v5397_v57 = vor.u32 1.1754944e-38, %v5396_v32  ;;  %v13617_v32 = vld [vmem:[#allocation7_spill] sm:$0xff] }
 0x7fe   :  { %v7387_v16 = vmul.f32 %v6672_v23, %v5673_v58  ;;  %v6053_v23 = vrot.slane %v5678_v4, 2 }
 0x800   :  { %v8965_v53 = vpop.eup %8964 }
 0x801   :  { %v5386_v29 = vmul.f32 %v8965_v53, %v5159_v5  ;;  %vm5391_vm12 = vweird.f32 %v8965_v53 }
 0x802   :  { %v8191_v59 = vld [vmem:[#allocation1] sm:$0xff]  ;;  %vm5392_vm10 = vmor %vm5390_vm13, %vm5391_vm12 }
 0x803   :  { %8192 = vst [vmem:[#allocation1] ss:$9 sm:$0xff] %v7376_v14  ;;  %v5387_v36 = vsub.f32 1.0, %v5386_v29  ;;  %v5550_v14 = vrot.slane %v13351_v30, 5 }
 0x804   :  { %8193 = vst [vmem:[#allocation1 + $0x1] ss:$9 sm:$0xff] %v7377_v31  ;;  %v5394_v31 = vand.u32 2147483647, %v5159_v5  ;;  %v6052_v5 = vrot.slane %v5678_v4, 1 }
 0x805   :  { %8194 = vst [vmem:[#allocation1 + $0x2] ss:$9 sm:$0xff] %v7378_v41  ;;  %v5388_v17 = vmul.f32 %v8965_v53, %v5387_v36  ;;  %v6680_v41 = vrot.slane %v13615_v34, 4 }
 0x806   :  { %8195 = vst [vmem:[#allocation1 + $0x3] ss:$9 sm:$0xff] %v7379_v37  ;;  %vm5395_vm15 = vcmp.eq.f32.partialorder %v5394_v31, 8.507059e+37 }
 0x807   :  { %8196 = vst [vmem:[#allocation1 + $0x4] ss:$9 sm:$0xff] %v7380_v46  ;;  %v5389_v44 = vadd.f32 %v8965_v53, %v5388_v17  ;;  %v7396_v2 = vmul.f32 %v6680_v41, %v5676_v63  ;;  %v6694_v41 = vrot.slane %v13617_v32, 4 }
 0x808   :  { %8197 = vst [vmem:[#allocation1 + $0x5] ss:$9 sm:$0xff] %v7381_v3  ;;  %v6681_v3 = vrot.slane %v13615_v34, 5 }
 0x809   :  { %8198 = vst [vmem:[#allocation1 + $0x6] ss:$9 sm:$0xff] %v7382_v60  ;;  %v5393_v48 = vsel %vm5392_vm10, %v8965_v53, %v5389_v44  ;;  %v5677_v60 = vperm.slane %v5550_v14, 0  ;;  %v6692_v14 = vrot.slane %v13617_v32, 2 }
 0x80a   :  { %8199 = vst [vmem:[#allocation1 + $0x7] ss:$9 sm:$0xff] %v7383_v62  ;;  %v7395_v62 = vmul.f32 %v6679_v51, %v6047_v10  ;;  %v5398_v6 = vsel %vm5395_vm15, %v5397_v57, %v5393_v48  ;;  %v7397_v58 = vmul.f32 %v6681_v3, %v6048_v45  ;;  %v6697_v57 = vrot.slane %v13617_v32, 7 }
 0x80b   :  { %8343 = vst.msk [vmem:[%s13470_s8 + $0x140] sm:$0xff] %vm80_vm0, %v8191_v59  ;;  %v6678_v59 = vrot.slane %v13615_v34, 2  ;;  %v7399_v21 = vmul.f32 %v6683_v54, %v5677_v60  ;;  %v5415_v11 = vmul.f32 %v5398_v6, %v13355_v43  ;;  %v6050_v26 = vrot.slane %v5677_v60, 1 }
 0x80c   :  { %v6691_v34 = vrot.slane %v13617_v32, 1 }
 0x80d   :  { %v7394_v46 = vmul.f32 %v6678_v59, %v6046_v15  ;;  %5431 = vst.msk [vmem:[%s13471_s7 + $0x78] sm:$0xff] %vm80_vm0, %v5415_v11 }
 0x811   :  { %v8200_v56 = vld [vmem:[#allocation1] sm:$0xff] }
 0x812   :  { %8344 = vst.msk [vmem:[%s13470_s8 + $0x148] sm:$0xff] %vm80_vm0, %v8200_v56  ;;  %v6051_v56 = vrot.slane %v5677_v60, 2 }
 0x813   :  { %8201 = vst [vmem:[#allocation1] ss:$9 sm:$0xff] %v7384_v1  ;;  %v13616_v1 = vld [vmem:[#allocation6_spill] sm:$0xff] }
 0x814   :  { %8202 = vst [vmem:[#allocation1 + $0x1] ss:$9 sm:$0xff] %v7385_v35  ;;  %v6684_v43 = vrot.slane %v13616_v1, 1  ;;  %v6685_v30 = vrot.slane %v13616_v1, 2  ;;  %v7400_v61 = vmul.f32 %v6050_v26, %v13616_v1  ;;  %v6686_v35 = vrot.slane %v13616_v1, 3 }
 0x815   :  { %8203 = vst [vmem:[#allocation1 + $0x2] ss:$9 sm:$0xff] %v7386_v42  ;;  %v6687_v38 = vrot.slane %v13616_v1, 4  ;;  %v6690_v53 = vrot.slane %v13616_v1, 7 }
 0x816   :  { %8204 = vst [vmem:[#allocation1 + $0x3] ss:$9 sm:$0xff] %v7387_v16  ;;  %v7401_v7 = vmul.f32 %v6684_v43, %v6051_v56  ;;  %v6054_v16 = vrot.slane %v5679_v52, 1  ;;  %v7402_v28 = vmul.f32 %v6685_v30, %v5678_v4  ;;  %v7403_v9 = vmul.f32 %v6686_v35, %v6052_v5 }
 0x817   :  { %8205 = vst [vmem:[#allocation1 + $0x4] ss:$9 sm:$0xff] %v7388_v39  ;;  %v6688_v39 = vrot.slane %v13616_v1, 5  ;;  %v7407_v29 = vmul.f32 %v6690_v53, %v6055_v50 }
 0x818   :  { %8206 = vst [vmem:[#allocation1 + $0x5] ss:$9 sm:$0xff] %v7389_v12  ;;  %v6689_v12 = vrot.slane %v13616_v1, 6 }
 0x819   :  { %8207 = vst [vmem:[#allocation1 + $0x6] ss:$9 sm:$0xff] %v7390_v40  ;;  %v7404_v40 = vmul.f32 %v6687_v38, %v6053_v23  ;;  %v7405_v0 = vmul.f32 %v6688_v39, %v5679_v52 }
 0x81a   :  { %8208 = vst [vmem:[#allocation1 + $0x7] ss:$9 sm:$0xff] %v7391_v8  ;;  %v13408_v8 = vadd.f32 %v5093_v49, %v11693_v47  ;;  %v7406_v20 = vmul.f32 %v6689_v12, %v6054_v16 }
 0x81c   :  { %v5553_v13 = vrot.slane %v13408_v8, 1  ;;  %v5680_v36 = vperm.slane %v13408_v8, 0  ;;  %v5554_v47 = vrot.slane %v13408_v8, 2  ;;  %v5555_v3 = vrot.slane %v13408_v8, 3 }
 0x81d   :  { %v5557_v11 = vrot.slane %v13408_v8, 5 }
 0x81e   :  { %v5681_v63 = vperm.slane %v5553_v13, 0  ;;  %v6056_v15 = vrot.slane %v5680_v36, 1  ;;  %v6057_v17 = vrot.slane %v5680_v36, 2  ;;  %v5682_v18 = vperm.slane %v5554_v47, 0 }
 0x81f   :  { %v7408_v59 = vmul.f32 %v5680_v36, %v13617_v32  ;;  %v5683_v6 = vperm.slane %v5555_v3, 0  ;;  %v5685_v35 = vperm.slane %v5557_v11, 0 }
 0x820   :  { %v6058_v31 = vrot.slane %v5681_v63, 1  ;;  %v6059_v44 = vrot.slane %v5681_v63, 2  ;;  %v7409_v51 = vmul.f32 %v6691_v34, %v6056_v15  ;;  %v7410_v45 = vmul.f32 %v6692_v14, %v6057_v17 }
 0x821   :  { %v8209_v37 = vld [vmem:[#allocation1] sm:$0xff]  ;;  %v6061_v54 = vrot.slane %v5682_v18, 2  ;;  %v6062_v27 = vrot.slane %v5683_v6, 1  ;;  %v6063_v33 = vrot.slane %v5683_v6, 2  ;;  %v6067_v53 = vrot.slane %v5685_v35, 2 }
 0x822   :  { %8210 = vst [vmem:[#allocation1] ss:$9 sm:$0xff] %v7392_v25  ;;  %v6693_v25 = vrot.slane %v13617_v32, 3  ;;  %v7412_v48 = vmul.f32 %v6694_v41, %v6058_v31 }
 0x823   :  { %8211 = vst [vmem:[#allocation1 + $0x1] ss:$9 sm:$0xff] %v7393_v55  ;;  %v6695_v55 = vrot.slane %v13617_v32, 5 }
 0x824   :  { %8212 = vst [vmem:[#allocation1 + $0x2] ss:$9 sm:$0xff] %v7394_v46  ;;  %v7411_v22 = vmul.f32 %v6693_v25, %v5681_v63  ;;  %v6696_v46 = vrot.slane %v13617_v32, 6 }
 0x825   :  { %8213 = vst [vmem:[#allocation1 + $0x3] ss:$9 sm:$0xff] %v7395_v62  ;;  %v7413_v60 = vmul.f32 %v6695_v55, %v6059_v44 }
 0x826   :  { %8214 = vst [vmem:[#allocation1 + $0x4] ss:$9 sm:$0xff] %v7396_v2  ;;  %v7414_v62 = vmul.f32 %v6696_v46, %v5682_v18  ;;  %v5556_v2 = vrot.slane %v13408_v8, 4 }
 0x827   :  { %8215 = vst [vmem:[#allocation1 + $0x5] ss:$9 sm:$0xff] %v7397_v58 }
 0x828   :  { %8216 = vst [vmem:[#allocation1 + $0x6] ss:$9 sm:$0xff] %v7398_v24  ;;  %v5684_v58 = vperm.slane %v5556_v2, 0  ;;  %v13618_v24 = vld [vmem:[#allocation8_spill] sm:$0xff] }
 0x829   :  { %8217 = vst [vmem:[#allocation1 + $0x7] ss:$9 sm:$0xff] %v7399_v21  ;;  %v6698_v21 = vrot.slane %v13618_v24, 1  ;;  %v6699_v4 = vrot.slane %v13618_v24, 2  ;;  %v7416_v26 = vmul.f32 %v6061_v54, %v13618_v24  ;;  %v6700_v56 = vrot.slane %v13618_v24, 3 }
 0x82a   :  { %8345 = vst.msk [vmem:[%s13470_s8 + $0x150] sm:$0xff] %vm80_vm0, %v8209_v37  ;;  %v6060_v37 = vrot.slane %v5682_v18, 1  ;;  %v6064_v52 = vrot.slane %v5684_v58, 1  ;;  %v6701_v5 = vrot.slane %v13618_v24, 4  ;;  %v6065_v30 = vrot.slane %v5684_v58, 2 }
 0x82b   :  { %v7417_v1 = vmul.f32 %v6698_v21, %v5683_v6  ;;  %v7418_v23 = vmul.f32 %v6699_v4, %v6062_v27  ;;  %v6704_v38 = vrot.slane %v13618_v24, 7 }
 0x82c   :  { %v7415_v19 = vmul.f32 %v6697_v57, %v6060_v37  ;;  %v7420_v49 = vmul.f32 %v6701_v5, %v5684_v58 }
 0x82d   :  { %v7423_v50 = vmul.f32 %v6704_v38, %v5685_v35 }
 0x830   :  { %v8218_v42 = vld [vmem:[#allocation1] sm:$0xff] }
 0x831   :  { %8219 = vst [vmem:[#allocation1] ss:$9 sm:$0xff] %v7400_v61  ;;  %v6702_v61 = vrot.slane %v13618_v24, 5 }
 0x832   :  { %8220 = vst [vmem:[#allocation1 + $0x1] ss:$9 sm:$0xff] %v7401_v7  ;;  %v7419_v7 = vmul.f32 %v6700_v56, %v6063_v33 }
 0x833   :  { %8221 = vst [vmem:[#allocation1 + $0x2] ss:$9 sm:$0xff] %v7402_v28  ;;  %v7421_v16 = vmul.f32 %v6702_v61, %v6064_v52  ;;  %v5558_v28 = vrot.slane %v13408_v8, 6 }
 0x834   :  { %8222 = vst [vmem:[#allocation1 + $0x3] ss:$9 sm:$0xff] %v7403_v9  ;;  %v5559_v9 = vrot.slane %v13408_v8, 7 }
 0x835   :  { %8223 = vst [vmem:[#allocation1 + $0x4] ss:$9 sm:$0xff] %v7404_v40  ;;  %v5686_v12 = vperm.slane %v5558_v28, 0  ;;  %v6066_v40 = vrot.slane %v5685_v35, 1 }
 0x836   :  { %8224 = vst [vmem:[#allocation1 + $0x5] ss:$9 sm:$0xff] %v7405_v0  ;;  %v5687_v0 = vperm.slane %v5559_v9, 0 }
 0x837   :  { %8225 = vst [vmem:[#allocation1 + $0x6] ss:$9 sm:$0xff] %v7406_v20  ;;  %v13619_v20 = vld [vmem:[#allocation9_spill] sm:$0xff]  ;;  %v6068_v13 = vrot.slane %v5686_v12, 1  ;;  %v6069_v47 = vrot.slane %v5686_v12, 2 }
 0x838   :  { %8226 = vst [vmem:[#allocation1 + $0x7] ss:$9 sm:$0xff] %v7407_v29  ;;  %v6705_v29 = vrot.slane %v13619_v20, 1  ;;  %v6706_v36 = vrot.slane %v13619_v20, 2  ;;  %v7424_v63 = vmul.f32 %v6066_v40, %v13619_v20  ;;  %v6707_v8 = vrot.slane %v13619_v20, 3 }
 0x839   :  { %8346 = vst.msk [vmem:[%s13470_s8 + $0x158] sm:$0xff] %vm80_vm0, %v8218_v42  ;;  %v6703_v42 = vrot.slane %v13618_v24, 6  ;;  %v6708_v32 = vrot.slane %v13619_v20, 4  ;;  %v6070_v34 = vrot.slane %v5687_v0, 1  ;;  %v6709_v14 = vrot.slane %v13619_v20, 5 }
 0x83a   :  { %v7425_v15 = vmul.f32 %v6705_v29, %v6067_v53  ;;  %v7426_v18 = vmul.f32 %v6706_v36, %v5686_v12  ;;  %v7427_v31 = vmul.f32 %v6707_v8, %v6068_v13  ;;  %v6711_v44 = vrot.slane %v13619_v20, 7 }
 0x83b   :  { %v7422_v39 = vmul.f32 %v6703_v42, %v6065_v30  ;;  %v7428_v25 = vmul.f32 %v6708_v32, %v6069_v47 }
 0x83f   :  { %v8227_v10 = vld [vmem:[#allocation1] sm:$0xff] }
 0x840   :  { %8347 = vst.msk [vmem:[%s13470_s8 + $0x160] sm:$0xff] %vm80_vm0, %v8227_v10  ;;  %v6071_v10 = vrot.slane %v5687_v0, 2 }
 0x841   :  { %8228 = vst [vmem:[#allocation1] ss:$9 sm:$0xff] %v7408_v59  ;;  %v6710_v59 = vrot.slane %v13619_v20, 6 }
 0x842   :  { %8229 = vst [vmem:[#allocation1 + $0x1] ss:$9 sm:$0xff] %v7409_v51  ;;  %v7429_v51 = vmul.f32 %v6709_v14, %v5687_v0 }
 0x843   :  { %8230 = vst [vmem:[#allocation1 + $0x2] ss:$9 sm:$0xff] %v7410_v45  ;;  %v7430_v41 = vmul.f32 %v6710_v59, %v6070_v34  ;;  %v7431_v45 = vmul.f32 %v6711_v44, %v6071_v10 }
 0x844   :  { %8231 = vst [vmem:[#allocation1 + $0x3] ss:$9 sm:$0xff] %v7411_v22 }
 0x845   :  { %8232 = vst [vmem:[#allocation1 + $0x4] ss:$9 sm:$0xff] %v7412_v48 }
 0x846   :  { %8233 = vst [vmem:[#allocation1 + $0x5] ss:$9 sm:$0xff] %v7413_v60 }
 0x847   :  { %8234 = vst [vmem:[#allocation1 + $0x6] ss:$9 sm:$0xff] %v7414_v62 }
 0x848   :  { %8235 = vst [vmem:[#allocation1 + $0x7] ss:$9 sm:$0xff] %v7415_v19 }
 0x84f   :  { %v8236_v43 = vld [vmem:[#allocation1] sm:$0xff] }
 0x850   :  { %8237 = vst [vmem:[#allocation1] ss:$9 sm:$0xff] %v7416_v26 }
 0x851   :  { %8238 = vst [vmem:[#allocation1 + $0x1] ss:$9 sm:$0xff] %v7417_v1 }
 0x852   :  { %8239 = vst [vmem:[#allocation1 + $0x2] ss:$9 sm:$0xff] %v7418_v23 }
 0x853   :  { %8240 = vst [vmem:[#allocation1 + $0x3] ss:$9 sm:$0xff] %v7419_v7 }
 0x854   :  { %8241 = vst [vmem:[#allocation1 + $0x4] ss:$9 sm:$0xff] %v7420_v49 }
 0x855   :  { %8242 = vst [vmem:[#allocation1 + $0x5] ss:$9 sm:$0xff] %v7421_v16 }
 0x856   :  { %8243 = vst [vmem:[#allocation1 + $0x6] ss:$9 sm:$0xff] %v7422_v39 }
 0x857   :  { %8244 = vst [vmem:[#allocation1 + $0x7] ss:$9 sm:$0xff] %v7423_v50 }
 0x858   :  { %8348 = vst.msk [vmem:[%s13470_s8 + $0x168] sm:$0xff] %vm80_vm0, %v8236_v43 }
 0x85e   :  { %v8245_v17 = vld [vmem:[#allocation1] sm:$0xff] }
 0x85f   :  { %8246 = vst [vmem:[#allocation1] ss:$9 sm:$0xff] %v7424_v63 }
 0x860   :  { %8247 = vst [vmem:[#allocation1 + $0x1] ss:$9 sm:$0xff] %v7425_v15 }
 0x861   :  { %8248 = vst [vmem:[#allocation1 + $0x2] ss:$9 sm:$0xff] %v7426_v18 }
 0x862   :  { %8249 = vst [vmem:[#allocation1 + $0x3] ss:$9 sm:$0xff] %v7427_v31 }
 0x863   :  { %8250 = vst [vmem:[#allocation1 + $0x4] ss:$9 sm:$0xff] %v7428_v25 }
 0x864   :  { %8251 = vst [vmem:[#allocation1 + $0x5] ss:$9 sm:$0xff] %v7429_v51 }
 0x865   :  { %8252 = vst [vmem:[#allocation1 + $0x6] ss:$9 sm:$0xff] %v7430_v41 }
 0x866   :  { %8253 = vst [vmem:[#allocation1 + $0x7] ss:$9 sm:$0xff] %v7431_v45 }
 0x867   :  { %8349 = vst.msk [vmem:[%s13470_s8 + $0x170] sm:$0xff] %vm80_vm0, %v8245_v17 }
 0x86d   :  { %v8254_v55 = vld [vmem:[#allocation1] sm:$0xff] }
 0x86e   :  { %8350 = vst.msk [vmem:[%s13470_s8 + $0x178] sm:$0xff] %vm80_vm0, %v8254_v55 }

</bundles_post_ra>
